<compile_context>
chip_gen: v7x
topology: tpu7x:2x2x1
jax: 0.10.0
libtpu: 0.0.40
codegen_flags: <defaults>
</compile_context>

<pallas_src>
import functools
import math

import jax
import jax.numpy as jnp
from jax.experimental import pallas as pl
from jax.experimental.pallas import tpu as pltpu


def _vmem_spec():
    return pl.BlockSpec(memory_space=pltpu.MemorySpace.VMEM)


# -----------------------------------------------------------------------------
# Fused DoubleConv kernel
# -----------------------------------------------------------------------------
def _double_conv_kernel(p1_ref, w1_ref, g1_ref, be1_ref, w2_ref, g2_ref,
                        be2_ref, o_ref, hpad_ref, p2_ref, *, N, H, W, C2):
    """Conv3x3+BN+ReLU+Conv3x3+BN, fully fused.

    p1_ref : (N*H*W, 9*Cin) bf16  im2col patches of the zero-padded input
    w1_ref : (9*Cin, C2)    bf16  conv1 weight (HWIO flattened)
    w2_ref : (9*C2, C2)     bf16  conv2 weight (HWIO flattened)
    g*/be* : (1, C2)        f32   BatchNorm gamma / beta
    o_ref  : (N*H*W, C2)    f32   output rows ordered n*H*W + i*W + j
    hpad_ref : (N, H+2, W+2, C2) f32 scratch — zero-padded intermediate act
    p2_ref   : (N*H*W, 9*C2)     f32 scratch — im2col patches for conv2
    """
    M = N * H * W
    inv_m = 1.0 / M
    eps = 1e-5

    def batchnorm(acc, g, be):
        # One-pass training-mode batch statistics (biased variance), f32.
        mean = jnp.sum(acc, axis=0, keepdims=True) * inv_m
        mean_sq = jnp.sum(acc * acc, axis=0, keepdims=True) * inv_m
        var = mean_sq - mean * mean
        return (acc - mean) * jax.lax.rsqrt(var + eps) * g + be

    # ---- conv1: single (M, 9*Cin) @ (9*Cin, C2) MXU matmul -----------------
    acc1 = jnp.dot(p1_ref[...], w1_ref[...],
                   preferred_element_type=jnp.float32)
    h = jnp.maximum(batchnorm(acc1, g1_ref[...], be1_ref[...]), 0.0)

    # ---- stash activation, zero-padded, in VMEM (no HBM round trip) --------
    hpad_ref[...] = jnp.zeros_like(hpad_ref)
    hpad_ref[:, 1:H + 1, 1:W + 1, :] = h.reshape(N, H, W, C2)

    # ---- conv2: build im2col patches in VMEM, then ONE matmul --------------
    for kh in range(3):
        for kw in range(3):
            k = 3 * kh + kw
            tap = hpad_ref[:, kh:kh + H, kw:kw + W, :].reshape(M, C2)
            p2_ref[:, k * C2:(k + 1) * C2] = tap
    acc2 = jnp.dot(p2_ref[...].astype(jnp.bfloat16), w2_ref[...],
                   preferred_element_type=jnp.float32)

    o_ref[...] = batchnorm(acc2, g2_ref[...], be2_ref[...])


def double_conv(x_nchw, params):
    """DoubleConv forward: (N, Cin, H, W) f32 -> (N, Cout, H, W) f32."""
    w1, g1, be1 = params["w1"], params["g1"], params["be1"]
    w2, g2, be2 = params["w2"], params["g2"], params["be2"]
    N, Cin, H, W = x_nchw.shape
    C2 = w1.shape[-1]

    # XLA glue (outside the kernel): NCHW -> NHWC, pad, build conv1 im2col
    # patches once, cast matmul operands to bf16 (halves their HBM bytes).
    x = jnp.transpose(x_nchw, (0, 2, 3, 1))
    xp = jnp.pad(x, ((0, 0), (1, 1), (1, 1), (0, 0)))
    patches1 = jnp.concatenate(
        [xp[:, kh:kh + H, kw:kw + W, :] for kh in range(3) for kw in range(3)],
        axis=-1).reshape(N * H * W, 9 * Cin).astype(jnp.bfloat16)

    kern = functools.partial(_double_conv_kernel, N=N, H=H, W=W, C2=C2)
    y = pl.pallas_call(
        kern,
        out_shape=jax.ShapeDtypeStruct((N * H * W, C2), jnp.float32),
        in_specs=[_vmem_spec()] * 7,
        out_specs=_vmem_spec(),
        scratch_shapes=[
            pltpu.VMEM((N, H + 2, W + 2, C2), jnp.float32),   # padded act
            pltpu.VMEM((N * H * W, 9 * C2), jnp.float32),     # conv2 im2col
        ],
    )(patches1,
      w1.reshape(9 * Cin, C2).astype(jnp.bfloat16),
      g1.reshape(1, C2), be1.reshape(1, C2),
      w2.reshape(9 * C2, C2).astype(jnp.bfloat16),
      g2.reshape(1, C2), be2.reshape(1, C2))

    # Free contiguous reshape + layout transpose back to NCHW (XLA glue).
    return jnp.transpose(y.reshape(N, H, W, C2), (0, 3, 1, 2))


# -----------------------------------------------------------------------------
# Parameters (deterministic, synthetic — no checkpoint load)
# -----------------------------------------------------------------------------
def init_double_conv_params(key, cin, cout):
    k1, k2 = jax.random.split(key)
    s1 = 1.0 / math.sqrt(cin * 9)
    s2 = 1.0 / math.sqrt(cout * 9)
    return {
        # Conv weights in HWIO.  Conv biases are intentionally omitted: a
        # per-channel constant before BatchNorm is exactly cancelled by the
        # mean subtraction, so it cannot affect the forward output.
        "w1": s1 * jax.random.normal(k1, (3, 3, cin, cout), jnp.float32),
        "g1": jnp.ones((cout,), jnp.float32),
        "be1": jnp.zeros((cout,), jnp.float32),
        "w2": s2 * jax.random.normal(k2, (3, 3, cout, cout), jnp.float32),
        "g2": jnp.ones((cout,), jnp.float32),
        "be2": jnp.zeros((cout,), jnp.float32),
    }


# -----------------------------------------------------------------------------
# Pure-JAX reference (f32) for a correctness sanity check
# -----------------------------------------------------------------------------
def double_conv_reference(x_nchw, params):
    x = jnp.transpose(x_nchw, (0, 2, 3, 1))

    def conv_bn(x, w, g, be, relu):
        y = jax.lax.conv_general_dilated(
            x, w, window_strides=(1, 1), padding="SAME",
            dimension_numbers=("NHWC", "HWIO", "NHWC"))
        mean = jnp.mean(y, axis=(0, 1, 2), keepdims=True)
        var = jnp.mean(jnp.square(y - mean), axis=(0, 1, 2), keepdims=True)
        y = (y - mean) * jax.lax.rsqrt(var + 1e-5) * g + be
        return jnp.maximum(y, 0.0) if relu else y

    h = conv_bn(x, params["w1"], params["g1"], params["be1"], True)
    y = conv_bn(h, params["w2"], params["g2"], params["be2"], False)
    return jnp.transpose(y, (0, 3, 1, 2))


if __name__ == "__main__":
    in_channels, out_channels = 4, 16
    N, H, W = 2, 16, 16

    key = jax.random.PRNGKey(0)
    k_param, k_x = jax.random.split(key)
    params = init_double_conv_params(k_param, in_channels, out_channels)
    x = jax.random.normal(k_x, (N, in_channels, H, W), jnp.float32)  # NCHW

    out = jax.jit(double_conv)(x, params)
    jax.block_until_ready(out)

    assert out.shape == (N, out_channels, H, W), out.shape
    assert out.dtype == jnp.float32

    # Sanity check against a pure-JAX f32 reference (tolerance accounts for
    # the bf16 matmul operands inside the kernel).
    ref = double_conv_reference(x, params)
    err = float(jnp.max(jnp.abs(out - ref)))
    assert err < 2e-1, f"max abs error too large: {err}"

    print("KERNEL_OK")
</pallas_src>

<mosaic_0001>
module attributes {stable_mosaic.version = 11 : i64} {
  func.func @_double_conv_kernel(%arg0: memref<512x36xbf16, #tpu.memory_space<vmem>>, %arg1: memref<36x16xbf16, #tpu.memory_space<vmem>>, %arg2: memref<1x16xf32, #tpu.memory_space<vmem>>, %arg3: memref<1x16xf32, #tpu.memory_space<vmem>>, %arg4: memref<144x16xbf16, #tpu.memory_space<vmem>>, %arg5: memref<1x16xf32, #tpu.memory_space<vmem>>, %arg6: memref<1x16xf32, #tpu.memory_space<vmem>>, %arg7: memref<512x16xf32, #tpu.memory_space<vmem>>, %arg8: memref<2x18x18x16xf32, #tpu.memory_space<vmem>>, %arg9: memref<512x144xf32, #tpu.memory_space<vmem>>) attributes {dimension_semantics = [], scalar_prefetch = 0 : i64, scratch_operands = 2 : i64, tpu.core_type = #tpu.core_type<tc>} {
    %c0 = arith.constant 0 : index
    %c0_0 = arith.constant 0 : index
    %0 = vector.load %arg0[%c0, %c0_0] : memref<512x36xbf16, #tpu.memory_space<vmem>>, vector<512x36xbf16>
    %c0_1 = arith.constant 0 : index
    %c0_2 = arith.constant 0 : index
    %1 = vector.load %arg1[%c0_1, %c0_2] : memref<36x16xbf16, #tpu.memory_space<vmem>>, vector<36x16xbf16>
    %cst = arith.constant dense<0.000000e+00> : vector<512x16xf32>
    %2 = tpu.matmul %0, %1, %cst {dimension_numbers = #tpu.dot_dimension_numbers<[1], [0], [0], [1], [0, 0, 1, 1], [], []>} : vector<512x36xbf16>, vector<36x16xbf16>, vector<512x16xf32> -> vector<512x16xf32>
    %c0_3 = arith.constant 0 : index
    %c0_4 = arith.constant 0 : index
    %3 = vector.load %arg2[%c0_3, %c0_4] : memref<1x16xf32, #tpu.memory_space<vmem>>, vector<1x16xf32>
    %c0_5 = arith.constant 0 : index
    %c0_6 = arith.constant 0 : index
    %4 = vector.load %arg3[%c0_5, %c0_6] : memref<1x16xf32, #tpu.memory_space<vmem>>, vector<1x16xf32>
    %cst_7 = arith.constant dense<0.000000e+00> : vector<16xf32>
    %5 = vector.multi_reduction <add>, %2, %cst_7 [0] : vector<512x16xf32> to vector<16xf32>
    %6 = vector.shape_cast %5 : vector<16xf32> to vector<1x16xf32>
    %cst_8 = arith.constant 0.001953125 : f32
    %7 = vector.broadcast %cst_8 : f32 to vector<1x16xf32>
    %8 = arith.mulf %6, %7 : vector<1x16xf32>
    %9 = arith.mulf %2, %2 : vector<512x16xf32>
    %cst_9 = arith.constant dense<0.000000e+00> : vector<16xf32>
    %10 = vector.multi_reduction <add>, %9, %cst_9 [0] : vector<512x16xf32> to vector<16xf32>
    %11 = vector.shape_cast %10 : vector<16xf32> to vector<1x16xf32>
    %cst_10 = arith.constant 0.001953125 : f32
    %12 = vector.broadcast %cst_10 : f32 to vector<1x16xf32>
    %13 = arith.mulf %11, %12 : vector<1x16xf32>
    %14 = arith.mulf %8, %8 : vector<1x16xf32>
    %15 = arith.subf %13, %14 : vector<1x16xf32>
    %16 = vector.broadcast %8 : vector<1x16xf32> to vector<512x16xf32>
    %17 = arith.subf %2, %16 : vector<512x16xf32>
    %cst_11 = arith.constant 9.99999974E-6 : f32
    %18 = vector.broadcast %cst_11 : f32 to vector<1x16xf32>
    %19 = arith.addf %15, %18 : vector<1x16xf32>
    %20 = math.rsqrt %19 : vector<1x16xf32>
    %21 = vector.broadcast %20 : vector<1x16xf32> to vector<512x16xf32>
    %22 = arith.mulf %17, %21 : vector<512x16xf32>
    %23 = vector.broadcast %3 : vector<1x16xf32> to vector<512x16xf32>
    %24 = arith.mulf %22, %23 : vector<512x16xf32>
    %25 = vector.broadcast %4 : vector<1x16xf32> to vector<512x16xf32>
    %26 = arith.addf %24, %25 : vector<512x16xf32>
    %cst_12 = arith.constant 0.000000e+00 : f32
    %27 = vector.broadcast %cst_12 : f32 to vector<512x16xf32>
    %28 = arith.maximumf %26, %27 : vector<512x16xf32>
    %cst_13 = arith.constant 0.000000e+00 : f32
    %29 = vector.broadcast %cst_13 : f32 to vector<2x18x18x16xf32>
    %c0_14 = arith.constant 0 : index
    %c0_15 = arith.constant 0 : index
    %c0_16 = arith.constant 0 : index
    %c0_17 = arith.constant 0 : index
    %30 = vector.load %arg8[%c0_14, %c0_15, %c0_16, %c0_17] : memref<2x18x18x16xf32, #tpu.memory_space<vmem>>, vector<2x18x18x16xf32>
    tpu.vector_store %arg8[%c0_14, %c0_15, %c0_16, %c0_17], %29 {strides = array<i32>} : memref<2x18x18x16xf32, #tpu.memory_space<vmem>>, vector<2x18x18x16xf32>,
    %31 = vector.shape_cast %28 : vector<512x16xf32> to vector<2x16x16x16xf32>
    %c0_18 = arith.constant 0 : index
    %c1 = arith.constant 1 : index
    %c1_19 = arith.constant 1 : index
    %c0_20 = arith.constant 0 : index
    %32 = vector.load %arg8[%c0_18, %c1, %c1_19, %c0_20] : memref<2x18x18x16xf32, #tpu.memory_space<vmem>>, vector<2x16x16x16xf32>
    tpu.vector_store %arg8[%c0_18, %c1, %c1_19, %c0_20], %31 {strides = array<i32>} : memref<2x18x18x16xf32, #tpu.memory_space<vmem>>, vector<2x16x16x16xf32>,
    %c0_21 = arith.constant 0 : index
    %c0_22 = arith.constant 0 : index
    %c0_23 = arith.constant 0 : index
    %c0_24 = arith.constant 0 : index
    %33 = vector.load %arg8[%c0_21, %c0_22, %c0_23, %c0_24] : memref<2x18x18x16xf32, #tpu.memory_space<vmem>>, vector<2x16x16x16xf32>
    %34 = vector.shape_cast %33 : vector<2x16x16x16xf32> to vector<512x16xf32>
    %c0_25 = arith.constant 0 : index
    %c0_26 = arith.constant 0 : index
    %35 = vector.load %arg9[%c0_25, %c0_26] : memref<512x144xf32, #tpu.memory_space<vmem>>, vector<512x16xf32>
    tpu.vector_store %arg9[%c0_25, %c0_26], %34 {strides = array<i32>} : memref<512x144xf32, #tpu.memory_space<vmem>>, vector<512x16xf32>,
    %c0_27 = arith.constant 0 : index
    %c0_28 = arith.constant 0 : index
    %c1_29 = arith.constant 1 : index
    %c0_30 = arith.constant 0 : index
    %36 = vector.load %arg8[%c0_27, %c0_28, %c1_29, %c0_30] : memref<2x18x18x16xf32, #tpu.memory_space<vmem>>, vector<2x16x16x16xf32>
    %37 = vector.shape_cast %36 : vector<2x16x16x16xf32> to vector<512x16xf32>
    %c0_31 = arith.constant 0 : index
    %c16 = arith.constant 16 : index
    %38 = vector.load %arg9[%c0_31, %c16] : memref<512x144xf32, #tpu.memory_space<vmem>>, vector<512x16xf32>
    tpu.vector_store %arg9[%c0_31, %c16], %37 {strides = array<i32>} : memref<512x144xf32, #tpu.memory_space<vmem>>, vector<512x16xf32>,
    %c0_32 = arith.constant 0 : index
    %c0_33 = arith.constant 0 : index
    %c2 = arith.constant 2 : index
    %c0_34 = arith.constant 0 : index
    %39 = vector.load %arg8[%c0_32, %c0_33, %c2, %c0_34] : memref<2x18x18x16xf32, #tpu.memory_space<vmem>>, vector<2x16x16x16xf32>
    %40 = vector.shape_cast %39 : vector<2x16x16x16xf32> to vector<512x16xf32>
    %c0_35 = arith.constant 0 : index
    %c32 = arith.constant 32 : index
    %41 = vector.load %arg9[%c0_35, %c32] : memref<512x144xf32, #tpu.memory_space<vmem>>, vector<512x16xf32>
    tpu.vector_store %arg9[%c0_35, %c32], %40 {strides = array<i32>} : memref<512x144xf32, #tpu.memory_space<vmem>>, vector<512x16xf32>,
    %c0_36 = arith.constant 0 : index
    %c1_37 = arith.constant 1 : index
    %c0_38 = arith.constant 0 : index
    %c0_39 = arith.constant 0 : index
    %42 = vector.load %arg8[%c0_36, %c1_37, %c0_38, %c0_39] : memref<2x18x18x16xf32, #tpu.memory_space<vmem>>, vector<2x16x16x16xf32>
    %43 = vector.shape_cast %42 : vector<2x16x16x16xf32> to vector<512x16xf32>
    %c0_40 = arith.constant 0 : index
    %c48 = arith.constant 48 : index
    %44 = vector.load %arg9[%c0_40, %c48] : memref<512x144xf32, #tpu.memory_space<vmem>>, vector<512x16xf32>
    tpu.vector_store %arg9[%c0_40, %c48], %43 {strides = array<i32>} : memref<512x144xf32, #tpu.memory_space<vmem>>, vector<512x16xf32>,
    %c0_41 = arith.constant 0 : index
    %c1_42 = arith.constant 1 : index
    %c1_43 = arith.constant 1 : index
    %c0_44 = arith.constant 0 : index
    %45 = vector.load %arg8[%c0_41, %c1_42, %c1_43, %c0_44] : memref<2x18x18x16xf32, #tpu.memory_space<vmem>>, vector<2x16x16x16xf32>
    %46 = vector.shape_cast %45 : vector<2x16x16x16xf32> to vector<512x16xf32>
    %c0_45 = arith.constant 0 : index
    %c64 = arith.constant 64 : index
    %47 = vector.load %arg9[%c0_45, %c64] : memref<512x144xf32, #tpu.memory_space<vmem>>, vector<512x16xf32>
    tpu.vector_store %arg9[%c0_45, %c64], %46 {strides = array<i32>} : memref<512x144xf32, #tpu.memory_space<vmem>>, vector<512x16xf32>,
    %c0_46 = arith.constant 0 : index
    %c1_47 = arith.constant 1 : index
    %c2_48 = arith.constant 2 : index
    %c0_49 = arith.constant 0 : index
    %48 = vector.load %arg8[%c0_46, %c1_47, %c2_48, %c0_49] : memref<2x18x18x16xf32, #tpu.memory_space<vmem>>, vector<2x16x16x16xf32>
    %49 = vector.shape_cast %48 : vector<2x16x16x16xf32> to vector<512x16xf32>
    %c0_50 = arith.constant 0 : index
    %c80 = arith.constant 80 : index
    %50 = vector.load %arg9[%c0_50, %c80] : memref<512x144xf32, #tpu.memory_space<vmem>>, vector<512x16xf32>
    tpu.vector_store %arg9[%c0_50, %c80], %49 {strides = array<i32>} : memref<512x144xf32, #tpu.memory_space<vmem>>, vector<512x16xf32>,
    %c0_51 = arith.constant 0 : index
    %c2_52 = arith.constant 2 : index
    %c0_53 = arith.constant 0 : index
    %c0_54 = arith.constant 0 : index
    %51 = vector.load %arg8[%c0_51, %c2_52, %c0_53, %c0_54] : memref<2x18x18x16xf32, #tpu.memory_space<vmem>>, vector<2x16x16x16xf32>
    %52 = vector.shape_cast %51 : vector<2x16x16x16xf32> to vector<512x16xf32>
    %c0_55 = arith.constant 0 : index
    %c96 = arith.constant 96 : index
    %53 = vector.load %arg9[%c0_55, %c96] : memref<512x144xf32, #tpu.memory_space<vmem>>, vector<512x16xf32>
    tpu.vector_store %arg9[%c0_55, %c96], %52 {strides = array<i32>} : memref<512x144xf32, #tpu.memory_space<vmem>>, vector<512x16xf32>,
    %c0_56 = arith.constant 0 : index
    %c2_57 = arith.constant 2 : index
    %c1_58 = arith.constant 1 : index
    %c0_59 = arith.constant 0 : index
    %54 = vector.load %arg8[%c0_56, %c2_57, %c1_58, %c0_59] : memref<2x18x18x16xf32, #tpu.memory_space<vmem>>, vector<2x16x16x16xf32>
    %55 = vector.shape_cast %54 : vector<2x16x16x16xf32> to vector<512x16xf32>
    %c0_60 = arith.constant 0 : index
    %c112 = arith.constant 112 : index
    %56 = vector.load %arg9[%c0_60, %c112] : memref<512x144xf32, #tpu.memory_space<vmem>>, vector<512x16xf32>
    tpu.vector_store %arg9[%c0_60, %c112], %55 {strides = array<i32>} : memref<512x144xf32, #tpu.memory_space<vmem>>, vector<512x16xf32>,
    %c0_61 = arith.constant 0 : index
    %c2_62 = arith.constant 2 : index
    %c2_63 = arith.constant 2 : index
    %c0_64 = arith.constant 0 : index
    %57 = vector.load %arg8[%c0_61, %c2_62, %c2_63, %c0_64] : memref<2x18x18x16xf32, #tpu.memory_space<vmem>>, vector<2x16x16x16xf32>
    %58 = vector.shape_cast %57 : vector<2x16x16x16xf32> to vector<512x16xf32>
    %c0_65 = arith.constant 0 : index
    %c128 = arith.constant 128 : index
    %59 = vector.load %arg9[%c0_65, %c128] : memref<512x144xf32, #tpu.memory_space<vmem>>, vector<512x16xf32>
    tpu.vector_store %arg9[%c0_65, %c128], %58 {strides = array<i32>} : memref<512x144xf32, #tpu.memory_space<vmem>>, vector<512x16xf32>,
    %c0_66 = arith.constant 0 : index
    %c0_67 = arith.constant 0 : index
    %60 = vector.load %arg9[%c0_66, %c0_67] : memref<512x144xf32, #tpu.memory_space<vmem>>, vector<512x144xf32>
    %61 = arith.truncf %60 : vector<512x144xf32> to vector<512x144xbf16>
    %c0_68 = arith.constant 0 : index
    %c0_69 = arith.constant 0 : index
    %62 = vector.load %arg4[%c0_68, %c0_69] : memref<144x16xbf16, #tpu.memory_space<vmem>>, vector<144x16xbf16>
    %cst_70 = arith.constant dense<0.000000e+00> : vector<512x16xf32>
    %63 = tpu.matmul %61, %62, %cst_70 {dimension_numbers = #tpu.dot_dimension_numbers<[1], [0], [0], [1], [0, 0, 1, 1], [], []>} : vector<512x144xbf16>, vector<144x16xbf16>, vector<512x16xf32> -> vector<512x16xf32>
    %c0_71 = arith.constant 0 : index
    %c0_72 = arith.constant 0 : index
    %64 = vector.load %arg5[%c0_71, %c0_72] : memref<1x16xf32, #tpu.memory_space<vmem>>, vector<1x16xf32>
    %c0_73 = arith.constant 0 : index
    %c0_74 = arith.constant 0 : index
    %65 = vector.load %arg6[%c0_73, %c0_74] : memref<1x16xf32, #tpu.memory_space<vmem>>, vector<1x16xf32>
    %cst_75 = arith.constant dense<0.000000e+00> : vector<16xf32>
    %66 = vector.multi_reduction <add>, %63, %cst_75 [0] : vector<512x16xf32> to vector<16xf32>
    %67 = vector.shape_cast %66 : vector<16xf32> to vector<1x16xf32>
    %cst_76 = arith.constant 0.001953125 : f32
    %68 = vector.broadcast %cst_76 : f32 to vector<1x16xf32>
    %69 = arith.mulf %67, %68 : vector<1x16xf32>
    %70 = arith.mulf %63, %63 : vector<512x16xf32>
    %cst_77 = arith.constant dense<0.000000e+00> : vector<16xf32>
    %71 = vector.multi_reduction <add>, %70, %cst_77 [0] : vector<512x16xf32> to vector<16xf32>
    %72 = vector.shape_cast %71 : vector<16xf32> to vector<1x16xf32>
    %cst_78 = arith.constant 0.001953125 : f32
    %73 = vector.broadcast %cst_78 : f32 to vector<1x16xf32>
    %74 = arith.mulf %72, %73 : vector<1x16xf32>
    %75 = arith.mulf %69, %69 : vector<1x16xf32>
    %76 = arith.subf %74, %75 : vector<1x16xf32>
    %77 = vector.broadcast %69 : vector<1x16xf32> to vector<512x16xf32>
    %78 = arith.subf %63, %77 : vector<512x16xf32>
    %cst_79 = arith.constant 9.99999974E-6 : f32
    %79 = vector.broadcast %cst_79 : f32 to vector<1x16xf32>
    %80 = arith.addf %76, %79 : vector<1x16xf32>
    %81 = math.rsqrt %80 : vector<1x16xf32>
    %82 = vector.broadcast %81 : vector<1x16xf32> to vector<512x16xf32>
    %83 = arith.mulf %78, %82 : vector<512x16xf32>
    %84 = vector.broadcast %64 : vector<1x16xf32> to vector<512x16xf32>
    %85 = arith.mulf %83, %84 : vector<512x16xf32>
    %86 = vector.broadcast %65 : vector<1x16xf32> to vector<512x16xf32>
    %87 = arith.addf %85, %86 : vector<512x16xf32>
    %c0_80 = arith.constant 0 : index
    %c0_81 = arith.constant 0 : index
    %88 = vector.load %arg7[%c0_80, %c0_81] : memref<512x16xf32, #tpu.memory_space<vmem>>, vector<512x16xf32>
    tpu.vector_store %arg7[%c0_80, %c0_81], %87 {strides = array<i32>} : memref<512x16xf32, #tpu.memory_space<vmem>>, vector<512x16xf32>,
    return
  }
}

</mosaic_0001>

<bundles_post_ra>
// kernel: double_conv.1
= control target key start
LH: loop header
LB: loop body
LE: loop exit
PB: predicated region body
PF: predicated region fallthrough
CT: control target
= control target key end

     0   :  { %vm271_vm0 = vcmask 293888   ;;  %vm368_vm1 = vcmask 1041408   ;;  %vm663_vm2 = vcmask 130048   ;;  %v6074_v29 = vmov 0.0   ;;  %s6076_s22 = smov 32   ;;  %s6079_s30 = smov 64   ;;  %s11350_s1 = inlined_call_operand.vmem [shape: bf16[36,16], index: 1, kind: input, shape index: {}]   ;;  %s11351_s0 = inlined_call_operand.vmem [shape: bf16[512,36], index: 0, kind: input, shape index: {}]   ;;  %s11352_s2 = inlined_call_operand.vmem [shape: f32[1,16], index: 2, kind: input, shape index: {}]   ;;  %s11353_s3 = inlined_call_operand.vmem [shape: f32[1,16], index: 3, kind: input, shape index: {}]   ;;  %s11354_s4 = inlined_call_operand.vmem [shape: bf16[144,16], index: 4, kind: input, shape index: {}]   ;;  %s11355_s5 = inlined_call_operand.vmem [shape: f32[1,16], index: 5, kind: input, shape index: {}]   ;;  %s11356_s6 = inlined_call_operand.vmem [shape: f32[1,16], index: 6, kind: input, shape index: {}]   ;;  %s11357_s7 = inlined_call_operand.vmem [shape: f32[512,16], index: 7, kind: output, shape index: {}]  }
   0x1   :  { %v6026_v0 = vld [vmem:[%s11350_s1] sm:$0xff]   ;;  %v6027_v1 = vld [vmem:[%s11350_s1 + $0x8] sm:$0xff]   ;;  %v6028_v2 = vld [vmem:[%s11350_s1 + $0x10] ss:$0 sps:$4 sm:$0x33]   ;;  %1339 = vst.msk [vmem:[#allocation2 + $0x30] sm:$0xff] %vm663_vm2, %v6074_v29 }
   0x2   :  { %5928 = vmatprep.subr.bf16.mxu0 %v6026_v0  ;;  %v6029_v3 = vld [vmem:[%s11351_s0] sm:$0xff]   ;;  %v370_v4 = vsel %vm368_vm1, %v6028_v2, 0  ;;  %v6030_v5 = vld [vmem:[%s11351_s0 + $0x8] sm:$0xff]   ;;  %v6031_v6 = vld [vmem:[%s11351_s0 + $0x10] sm:$0xff]   ;;  %1340 = vst.msk [vmem:[#allocation2 + $0x38] sm:$0xff] %vm663_vm2, %v6074_v29  ;;  %vm1334_vm3 = vcmask 123904  }
   0x3   :  { %5929 = vmatpush3.bf16.msra.mxu0 %v6026_v0  ;;  %5934 = vmatprep.mubr.msk.bf16.mxu0 %vm271_vm0, %v6029_v3  ;;  %v6032_v7 = vld [vmem:[%s11351_s0 + $0x18] sm:$0xff]   ;;  %v6033_v8 = vld [vmem:[%s11351_s0 + $0x20] sm:$0xff]   ;;  %v6034_v9 = vld [vmem:[%s11351_s0 + $0x28] sm:$0xff]   ;;  %1332 = vst.msk [vmem:[#allocation2] sm:$0xff] %vm663_vm2, %v6074_v29  ;;  %vm1954_vm4 = vcmask 261248   ;;  %vm2339_vm5 = vcmask 392448  }
   0x4   :  { %5930 = vmatprep.subr.bf16.mxu0 %v6027_v1  ;;  %v6035_v10 = vld [vmem:[%s11351_s0 + $0x30] sm:$0xff]   ;;  %v6036_v11 = vld [vmem:[%s11351_s0 + $0x38] sm:$0xff]   ;;  %v6037_v12 = vld [vmem:[%s11351_s0 + $0x40] sm:$0xff]   ;;  %1333 = vst.msk [vmem:[#allocation2 + $0x8] sm:$0xff] %vm663_vm2, %v6074_v29  ;;  %vm2724_vm6 = vcmask 523648   ;;  %s6080_s15 = smov 80  }
   0x5   :  { %v6038_v13 = vld [vmem:[%s11351_s0 + $0x48] sm:$0xff]   ;;  %v6039_v14 = vld [vmem:[%s11351_s0 + $0x50] sm:$0xff]   ;;  %v6040_v15 = vld [vmem:[%s11351_s0 + $0x58] sm:$0xff]   ;;  %1336 = vst.msk [vmem:[#allocation2 + $0x18] sm:$0xff] %vm663_vm2, %v6074_v29  ;;  %s6081_s18 = smov 96   ;;  %s6082_s21 = smov 112  }
   0x6   :  { %v6041_v16 = vld [vmem:[%s11351_s0 + $0x60] sm:$0xff]   ;;  %v6042_v17 = vld [vmem:[%s11351_s0 + $0x68] sm:$0xff]   ;;  %v6043_v18 = vld [vmem:[%s11351_s0 + $0x70] sm:$0xff]   ;;  %1337 = vst.msk [vmem:[#allocation2 + $0x20] sm:$0xff] %vm663_vm2, %v6074_v29  ;;  %vm3109_vm7 = vcmask 654848   ;;  %vm3494_vm8 = vcmask 786048  }
   0x7   :  { %5931 = vmatpush3.bf16.msra.mxu0 %v6027_v1  ;;  %v6044_v19 = vld [vmem:[%s11351_s0 + $0x78] sm:$0xff]   ;;  %v6045_v20 = vld [vmem:[%s11351_s0 + $0x80] sm:$0xff]   ;;  %v6046_v21 = vld [vmem:[%s11351_s0 + $0x88] sm:$0xff]   ;;  %1342 = vst.msk [vmem:[#allocation2 + $0x48] sm:$0xff] %vm663_vm2, %v6074_v29  ;;  %vm3880_vm9 = vcmask 917248   ;;  %vm4265_vm10 = vcmask 1048448  }
   0x8   :  { %6016 = vmatprep.subr.msk.bf16.mxu0 %vm368_vm1, %v6028_v2  ;;  %v6047_v22 = vld [vmem:[%s11351_s0 + $0x90] sm:$0xff]   ;;  %v6048_v23 = vld [vmem:[%s11351_s0 + $0x98] sm:$0xff]   ;;  %v6049_v24 = vld [vmem:[%s11351_s0 + $0xa0] sm:$0xff]   ;;  %1343 = vst.msk [vmem:[#allocation2 + $0x50] sm:$0xff] %vm663_vm2, %v6074_v29 }
   0x9   :  { %v6050_v25 = vld [vmem:[%s11351_s0 + $0xa8] sm:$0xff]   ;;  %v6051_v26 = vld [vmem:[%s11351_s0 + $0xb0] sm:$0xff]   ;;  %v6227_v27 = vld [vmem:[%s11351_s0 + $0xb8] sm:$0xff]   ;;  %1345 = vst.msk [vmem:[#allocation2 + $0x60] sm:$0xff] %vm663_vm2, %v6074_v29 }
   0xa   :  { %v6232_v28 = vld [vmem:[%s11351_s0 + $0xc0] sm:$0xff]   ;;  %1346 = vst.msk [vmem:[#allocation2 + $0x68] sm:$0xff] %vm663_vm2, %v6074_v29  ;;  %1348 = vst.msk [vmem:[#allocation2 + $0x78] sm:$0xff] %vm663_vm2, %v6074_v29  ;;  %v6054_v30 = vld [vmem:[%s11351_s0 + $0xc8] sm:$0xff]  }
   0xb   :  { %5933 = vmatpush3.bf16.msra.mxu0 %v370_v4  ;;  %1349 = vst.msk [vmem:[#allocation2 + $0x80] sm:$0xff] %vm663_vm2, %v6074_v29  ;;  %1351 = vst.msk [vmem:[#allocation2 + $0x90] sm:$0xff] %vm663_vm2, %v6074_v29  ;;  %v6055_v31 = vld [vmem:[%s11351_s0 + $0xd0] sm:$0xff]   ;;  %v6056_v32 = vld [vmem:[%s11351_s0 + $0xd8] sm:$0xff]  }
   0xc   :  { %1352 = vst.msk [vmem:[#allocation2 + $0x98] sm:$0xff] %vm663_vm2, %v6074_v29  ;;  %1354 = vst.msk [vmem:[#allocation2 + $0xa8] sm:$0xff] %vm663_vm2, %v6074_v29  ;;  %v6057_v33 = vld [vmem:[%s11351_s0 + $0xe0] sm:$0xff]   ;;  %v6058_v34 = vld [vmem:[%s11351_s0 + $0xe8] sm:$0xff]  }
   0xd   :  { %1355 = vst.msk [vmem:[#allocation2 + $0xb0] sm:$0xff] %vm663_vm2, %v6074_v29  ;;  %1357 = vst.msk [vmem:[#allocation2 + $0xc0] sm:$0xff] %vm663_vm2, %v6074_v29  ;;  %v6059_v35 = vld [vmem:[%s11351_s0 + $0xf0] sm:$0xff]   ;;  %v6060_v36 = vld [vmem:[%s11351_s0 + $0xf8] sm:$0xff]   ;;  %s6075_s0 = smov 16  }
   0xe   :  { %5935 = vmatmul.mubr.msk.bf16.vlgmr.msra.gmra.mrb[0].mxu0 %vm271_vm0, %v6030_v5  ;;  %1358 = vst.msk [vmem:[#allocation2 + $0xc8] sm:$0xff] %vm663_vm2, %v6074_v29  ;;  %1360 = vst.msk [vmem:[#allocation2 + $0xd8] sm:$0xff] %vm663_vm2, %v6074_v29 }
   0xf   :  { %5938 = vmatprep.mubr.msk.bf16.mxu0 %vm271_vm0, %v6031_v6  ;;  %1361 = vst.msk [vmem:[#allocation2 + $0xe0] sm:$0xff] %vm663_vm2, %v6074_v29  ;;  %1363 = vst.msk [vmem:[#allocation2 + $0xf0] sm:$0xff] %vm663_vm2, %v6074_v29 }
  0x10   :  { %1364 = vst.msk [vmem:[#allocation2 + $0xf8] sm:$0xff] %vm663_vm2, %v6074_v29  ;;  %1366 = vst.msk [vmem:[#allocation2 + $0x108] sm:$0xff] %vm663_vm2, %v6074_v29 }
  0x11   :  { %1367 = vst.msk [vmem:[#allocation2 + $0x110] sm:$0xff] %vm663_vm2, %v6074_v29  ;;  %1369 = vst.msk [vmem:[#allocation2 + $0x120] sm:$0xff] %vm663_vm2, %v6074_v29 }
  0x12   :  { %1370 = vst.msk [vmem:[#allocation2 + $0x128] sm:$0xff] %vm663_vm2, %v6074_v29  ;;  %1372 = vst.msk [vmem:[#allocation2 + $0x138] sm:$0xff] %vm663_vm2, %v6074_v29 }
  0x13   :  { %1373 = vst.msk [vmem:[#allocation2 + $0x140] sm:$0xff] %vm663_vm2, %v6074_v29  ;;  %1375 = vst.msk [vmem:[#allocation2 + $0x150] sm:$0xff] %vm663_vm2, %v6074_v29 }
  0x14   :  { %1376 = vst.msk [vmem:[#allocation2 + $0x158] sm:$0xff] %vm663_vm2, %v6074_v29  ;;  %1378 = vst.msk [vmem:[#allocation2 + $0x168] sm:$0xff] %vm663_vm2, %v6074_v29 }
  0x15   :  { %1379 = vst.msk [vmem:[#allocation2 + $0x170] sm:$0xff] %vm663_vm2, %v6074_v29  ;;  %1381 = vst.msk [vmem:[#allocation2 + $0x180] sm:$0xff] %vm663_vm2, %v6074_v29 }
  0x16   :  { %5939 = vmatmul.mubr.msk.bf16.gmra.mrb[4].mxu0 %vm271_vm0, %v6032_v7  ;;  %1382 = vst.msk [vmem:[#allocation2 + $0x188] sm:$0xff] %vm663_vm2, %v6074_v29  ;;  %1384 = vst.msk [vmem:[#allocation2 + $0x198] sm:$0xff] %vm663_vm2, %v6074_v29 }
  0x17   :  { %5942 = vmatprep.mubr.msk.bf16.mxu0 %vm271_vm0, %v6033_v8  ;;  %1385 = vst.msk [vmem:[#allocation2 + $0x1a0] sm:$0xff] %vm663_vm2, %v6074_v29  ;;  %1387 = vst.msk [vmem:[#allocation2 + $0x1b0] sm:$0xff] %vm663_vm2, %v6074_v29 }
  0x18   :  { %1388 = vst.msk [vmem:[#allocation2 + $0x1b8] sm:$0xff] %vm663_vm2, %v6074_v29  ;;  %1390 = vst.msk [vmem:[#allocation2 + $0x1c8] sm:$0xff] %vm663_vm2, %v6074_v29 }
  0x19   :  { %1391 = vst.msk [vmem:[#allocation2 + $0x1d0] sm:$0xff] %vm663_vm2, %v6074_v29  ;;  %1393 = vst.msk [vmem:[#allocation2 + $0x1e0] sm:$0xff] %vm663_vm2, %v6074_v29 }
  0x1a   :  { %1394 = vst.msk [vmem:[#allocation2 + $0x1e8] sm:$0xff] %vm663_vm2, %v6074_v29  ;;  %1396 = vst.msk [vmem:[#allocation2 + $0x1f8] sm:$0xff] %vm663_vm2, %v6074_v29 }
  0x1b   :  { %1397 = vst.msk [vmem:[#allocation2 + $0x200] sm:$0xff] %vm663_vm2, %v6074_v29  ;;  %1399 = vst.msk [vmem:[#allocation2 + $0x210] sm:$0xff] %vm663_vm2, %v6074_v29 }
  0x1c   :  { %1400 = vst.msk [vmem:[#allocation2 + $0x218] sm:$0xff] %vm663_vm2, %v6074_v29  ;;  %1402 = vst.msk [vmem:[#allocation2 + $0x228] sm:$0xff] %vm663_vm2, %v6074_v29 }
  0x1d   :  { %1403 = vst.msk [vmem:[#allocation2 + $0x230] sm:$0xff] %vm663_vm2, %v6074_v29  ;;  %1405 = vst.msk [vmem:[#allocation2 + $0x240] sm:$0xff] %vm663_vm2, %v6074_v29 }
  0x1e   :  { %5943 = vmatmul.mubr.msk.bf16.gmra.mrb[8].mxu0 %vm271_vm0, %v6034_v9  ;;  %1406 = vst.msk [vmem:[#allocation2 + $0x248] sm:$0xff] %vm663_vm2, %v6074_v29  ;;  %1408 = vst.msk [vmem:[#allocation2 + $0x258] sm:$0xff] %vm663_vm2, %v6074_v29 }
  0x1f   :  { %5946 = vmatprep.mubr.msk.bf16.mxu0 %vm271_vm0, %v6035_v10  ;;  %1409 = vst.msk [vmem:[#allocation2 + $0x260] sm:$0xff] %vm663_vm2, %v6074_v29  ;;  %1411 = vst.msk [vmem:[#allocation2 + $0x270] sm:$0xff] %vm663_vm2, %v6074_v29 }
  0x20   :  { %1412 = vst.msk [vmem:[#allocation2 + $0x278] sm:$0xff] %vm663_vm2, %v6074_v29  ;;  %1414 = vst.msk [vmem:[#allocation2 + $0x288] sm:$0xff] %vm663_vm2, %v6074_v29 }
  0x21   :  { %1415 = vst.msk [vmem:[#allocation2 + $0x290] sm:$0xff] %vm663_vm2, %v6074_v29  ;;  %1417 = vst.msk [vmem:[#allocation2 + $0x2a0] sm:$0xff] %vm663_vm2, %v6074_v29 }
  0x22   :  { %1418 = vst.msk [vmem:[#allocation2 + $0x2a8] sm:$0xff] %vm663_vm2, %v6074_v29  ;;  %1420 = vst.msk [vmem:[#allocation2 + $0x2b8] sm:$0xff] %vm663_vm2, %v6074_v29 }
  0x23   :  { %1421 = vst.msk [vmem:[#allocation2 + $0x2c0] sm:$0xff] %vm663_vm2, %v6074_v29  ;;  %1423 = vst.msk [vmem:[#allocation2 + $0x2d0] sm:$0xff] %vm663_vm2, %v6074_v29 }
  0x24   :  { %1424 = vst.msk [vmem:[#allocation2 + $0x2d8] sm:$0xff] %vm663_vm2, %v6074_v29  ;;  %1426 = vst.msk [vmem:[#allocation2 + $0x2e8] sm:$0xff] %vm663_vm2, %v6074_v29 }
  0x25   :  { %1427 = vst.msk [vmem:[#allocation2 + $0x2f0] sm:$0xff] %vm663_vm2, %v6074_v29  ;;  %1429 = vst.msk [vmem:[#allocation2 + $0x300] sm:$0xff] %vm663_vm2, %v6074_v29 }
  0x26   :  { %5947 = vmatmul.mubr.msk.bf16.gmra.mrb[12].mxu0 %vm271_vm0, %v6036_v11  ;;  %1430 = vst.msk [vmem:[#allocation2 + $0x308] sm:$0xff] %vm663_vm2, %v6074_v29  ;;  %1432 = vst.msk [vmem:[#allocation2 + $0x318] sm:$0xff] %vm663_vm2, %v6074_v29 }
  0x27   :  { %5950 = vmatprep.mubr.msk.bf16.mxu0 %vm271_vm0, %v6037_v12  ;;  %1433 = vst.msk [vmem:[#allocation2 + $0x320] sm:$0xff] %vm663_vm2, %v6074_v29  ;;  %1435 = vst.msk [vmem:[#allocation2 + $0x330] sm:$0xff] %vm663_vm2, %v6074_v29 }
  0x28   :  { %1436 = vst.msk [vmem:[#allocation2 + $0x338] sm:$0xff] %vm663_vm2, %v6074_v29  ;;  %1438 = vst.msk [vmem:[#allocation2 + $0x348] sm:$0xff] %vm663_vm2, %v6074_v29 }
  0x29   :  { %1439 = vst.msk [vmem:[#allocation2 + $0x350] sm:$0xff] %vm663_vm2, %v6074_v29 }
  0x2a   :  { %1341 = vst.msk [vmem:[#allocation2 + $0x40] sm:$0x3] %vm1334_vm3, %v6074_v29  ;;  %1335 = vst.msk [vmem:[#allocation2 + $0x10] sm:$0x3] %vm1334_vm3, %v6074_v29 }
  0x2b   :  { %1338 = vst.msk [vmem:[#allocation2 + $0x28] sm:$0x3] %vm1334_vm3, %v6074_v29  ;;  %1344 = vst.msk [vmem:[#allocation2 + $0x58] sm:$0x3] %vm1334_vm3, %v6074_v29 }
  0x2c   :  { %1347 = vst.msk [vmem:[#allocation2 + $0x70] sm:$0x3] %vm1334_vm3, %v6074_v29  ;;  %1350 = vst.msk [vmem:[#allocation2 + $0x88] sm:$0x3] %vm1334_vm3, %v6074_v29 }
  0x2d   :  { %1353 = vst.msk [vmem:[#allocation2 + $0xa0] sm:$0x3] %vm1334_vm3, %v6074_v29  ;;  %1356 = vst.msk [vmem:[#allocation2 + $0xb8] sm:$0x3] %vm1334_vm3, %v6074_v29 }
  0x2e   :  { %5951 = vmatmul.mubr.msk.bf16.gmra.mrb[16].mxu0 %vm271_vm0, %v6038_v13  ;;  %1359 = vst.msk [vmem:[#allocation2 + $0xd0] sm:$0x3] %vm1334_vm3, %v6074_v29  ;;  %1362 = vst.msk [vmem:[#allocation2 + $0xe8] sm:$0x3] %vm1334_vm3, %v6074_v29 }
  0x2f   :  { %5954 = vmatprep.mubr.msk.bf16.mxu0 %vm271_vm0, %v6039_v14  ;;  %1365 = vst.msk [vmem:[#allocation2 + $0x100] sm:$0x3] %vm1334_vm3, %v6074_v29  ;;  %1368 = vst.msk [vmem:[#allocation2 + $0x118] sm:$0x3] %vm1334_vm3, %v6074_v29 }
  0x30   :  { %1371 = vst.msk [vmem:[#allocation2 + $0x130] sm:$0x3] %vm1334_vm3, %v6074_v29  ;;  %1374 = vst.msk [vmem:[#allocation2 + $0x148] sm:$0x3] %vm1334_vm3, %v6074_v29 }
  0x31   :  { %1377 = vst.msk [vmem:[#allocation2 + $0x160] sm:$0x3] %vm1334_vm3, %v6074_v29  ;;  %1380 = vst.msk [vmem:[#allocation2 + $0x178] sm:$0x3] %vm1334_vm3, %v6074_v29 }
  0x32   :  { %1383 = vst.msk [vmem:[#allocation2 + $0x190] sm:$0x3] %vm1334_vm3, %v6074_v29  ;;  %1386 = vst.msk [vmem:[#allocation2 + $0x1a8] sm:$0x3] %vm1334_vm3, %v6074_v29 }
  0x33   :  { %1389 = vst.msk [vmem:[#allocation2 + $0x1c0] sm:$0x3] %vm1334_vm3, %v6074_v29  ;;  %1392 = vst.msk [vmem:[#allocation2 + $0x1d8] sm:$0x3] %vm1334_vm3, %v6074_v29 }
  0x34   :  { %1395 = vst.msk [vmem:[#allocation2 + $0x1f0] sm:$0x3] %vm1334_vm3, %v6074_v29  ;;  %1398 = vst.msk [vmem:[#allocation2 + $0x208] sm:$0x3] %vm1334_vm3, %v6074_v29 }
  0x35   :  { %1401 = vst.msk [vmem:[#allocation2 + $0x220] sm:$0x3] %vm1334_vm3, %v6074_v29  ;;  %1404 = vst.msk [vmem:[#allocation2 + $0x238] sm:$0x3] %vm1334_vm3, %v6074_v29 }
  0x36   :  { %5955 = vmatmul.mubr.msk.bf16.gmra.mrb[20].mxu0 %vm271_vm0, %v6040_v15  ;;  %1407 = vst.msk [vmem:[#allocation2 + $0x250] sm:$0x3] %vm1334_vm3, %v6074_v29  ;;  %1410 = vst.msk [vmem:[#allocation2 + $0x268] sm:$0x3] %vm1334_vm3, %v6074_v29 }
  0x37   :  { %5958 = vmatprep.mubr.msk.bf16.mxu0 %vm271_vm0, %v6041_v16  ;;  %1413 = vst.msk [vmem:[#allocation2 + $0x280] sm:$0x3] %vm1334_vm3, %v6074_v29  ;;  %1416 = vst.msk [vmem:[#allocation2 + $0x298] sm:$0x3] %vm1334_vm3, %v6074_v29 }
  0x38   :  { %1419 = vst.msk [vmem:[#allocation2 + $0x2b0] sm:$0x3] %vm1334_vm3, %v6074_v29  ;;  %1422 = vst.msk [vmem:[#allocation2 + $0x2c8] sm:$0x3] %vm1334_vm3, %v6074_v29 }
  0x39   :  { %1425 = vst.msk [vmem:[#allocation2 + $0x2e0] sm:$0x3] %vm1334_vm3, %v6074_v29  ;;  %1428 = vst.msk [vmem:[#allocation2 + $0x2f8] sm:$0x3] %vm1334_vm3, %v6074_v29 }
  0x3a   :  { %1431 = vst.msk [vmem:[#allocation2 + $0x310] sm:$0x3] %vm1334_vm3, %v6074_v29  ;;  %1434 = vst.msk [vmem:[#allocation2 + $0x328] sm:$0x3] %vm1334_vm3, %v6074_v29 }
  0x3b   :  { %1437 = vst.msk [vmem:[#allocation2 + $0x340] sm:$0x3] %vm1334_vm3, %v6074_v29  ;;  %1440 = vst.msk [vmem:[#allocation2 + $0x358] sm:$0x3] %vm1334_vm3, %v6074_v29 }
  0x3e   :  { %5959 = vmatmul.mubr.msk.bf16.gmra.mrb[24].mxu0 %vm271_vm0, %v6042_v17 }
  0x3f   :  { %5962 = vmatprep.mubr.msk.bf16.mxu0 %vm271_vm0, %v6043_v18 }
  0x46   :  { %5963 = vmatmul.mubr.msk.bf16.gmra.mrb[28].mxu0 %vm271_vm0, %v6044_v19 }
  0x47   :  { %5966 = vmatprep.mubr.msk.bf16.mxu0 %vm271_vm0, %v6045_v20 }
  0x4e   :  { %5967 = vmatmul.mubr.msk.bf16.gmra.mrb[32].mxu0 %vm271_vm0, %v6046_v21 }
  0x4f   :  { %5970 = vmatprep.mubr.msk.bf16.mxu0 %vm271_vm0, %v6047_v22 }
  0x56   :  { %5971 = vmatmul.mubr.msk.bf16.gmra.mrb[36].mxu0 %vm271_vm0, %v6048_v23 }
  0x57   :  { %5974 = vmatprep.mubr.msk.bf16.mxu0 %vm271_vm0, %v6049_v24 }
  0x5e   :  { %5975 = vmatmul.mubr.msk.bf16.gmra.mrb[40].mxu0 %vm271_vm0, %v6050_v25 }
  0x5f   :  { %5978 = vmatprep.mubr.msk.bf16.mxu0 %vm271_vm0, %v6051_v26 }
  0x66   :  { %5979 = vmatmul.mubr.msk.bf16.gmra.mrb[44].mxu0 %vm271_vm0, %v6227_v27 }
  0x67   :  { %5982 = vmatprep.mubr.msk.bf16.mxu0 %vm271_vm0, %v6232_v28 }
  0x6e   :  { %5983 = vmatmul.mubr.msk.bf16.gmra.mrb[48].mxu0 %vm271_vm0, %v6054_v30 }
  0x6f   :  { %5986 = vmatprep.mubr.msk.bf16.mxu0 %vm271_vm0, %v6055_v31 }
  0x76   :  { %5987 = vmatmul.mubr.msk.bf16.gmra.mrb[52].mxu0 %vm271_vm0, %v6056_v32 }
  0x77   :  { %5990 = vmatprep.mubr.msk.bf16.mxu0 %vm271_vm0, %v6057_v33 }
  0x7e   :  { %5991 = vmatmul.mubr.msk.bf16.gmra.mrb[56].mxu0 %vm271_vm0, %v6058_v34 }
  0x7f   :  { %5994 = vmatprep.mubr.msk.bf16.mxu0 %vm271_vm0, %v6059_v35 }
  0x86   :  { %5995 = vmatmul.mubr.msk.bf16.gmra.mrb[60].mxu0 %vm271_vm0, %v6060_v36 }
  0xe1   :  { %v6482_v37 = vpop.f32.mrb[0].mxu0 }
  0xe2   :  { %v6484_v38 = vpop.f32.mrb[1].mxu0  ;;  %v800_v42 = vmul.f32 %v6482_v37, %v6482_v37  ;;  %v667_v47 = vsel %vm663_vm2, %v6482_v37, 0.0 }
  0xe3   :  { %v798_v39 = vmul.f32 %v6484_v38, %v6484_v38  ;;  %v6488_v40 = vpop.f32.mrb[2].mxu0  ;;  %v664_v43 = vsel %vm663_vm2, %v6484_v38, 0.0 }
  0xe4   :  { %v6490_v41 = vpop.f32.mrb[3].mxu0  ;;  %v801_v49 = vmul.f32 %v6488_v40, %v6488_v40  ;;  %v865_v53 = vsel %vm663_vm2, %v800_v42, 0.0  ;;  %v669_v54 = vsel %vm663_vm2, %v6488_v40, 0.0 }
  0xe5   :  { %v665_v44 = vsel %vm663_vm2, %v6490_v41, 0.0  ;;  %v799_v45 = vmul.f32 %v6490_v41, %v6490_v41  ;;  %v862_v48 = vsel %vm663_vm2, %v798_v39, 0.0 }
  0xe6   :  { %v666_v46 = vadd.f32 %v665_v44, %v664_v43  ;;  %v867_v59 = vsel %vm663_vm2, %v801_v49, 0.0 }
  0xe7   :  { %v863_v50 = vsel %vm663_vm2, %v799_v45, 0.0 }
  0xe8   :  { %v668_v51 = vadd.f32 %v667_v47, %v666_v46  ;;  %v864_v52 = vadd.f32 %v863_v50, %v862_v48 }
  0xe9   :  { %v6509_v55 = vpop.f32.mrb[4].mxu0 }
  0xea   :  { %v866_v56 = vadd.f32 %v865_v53, %v864_v52  ;;  %v6511_v57 = vpop.f32.mrb[5].mxu0  ;;  %v670_v58 = vadd.f32 %v669_v54, %v668_v51  ;;  %v804_v2 = vmul.f32 %v6509_v55, %v6509_v55  ;;  %v675_v8 = vsel %vm663_vm2, %v6509_v55, 0.0 }
  0xeb   :  { %v671_v60 = vsel %vm663_vm2, %v6511_v57, 0.0  ;;  %v802_v61 = vmul.f32 %v6511_v57, %v6511_v57  ;;  %v6518_v62 = vpop.f32.mrb[6].mxu0 }
  0xec   :  { %v672_v63 = vadd.f32 %v671_v60, %v670_v58  ;;  %v868_v0 = vadd.f32 %v867_v59, %v866_v56  ;;  %v6520_v1 = vpop.f32.mrb[7].mxu0  ;;  %v805_v9 = vmul.f32 %v6518_v62, %v6518_v62  ;;  %v873_v13 = vsel %vm663_vm2, %v804_v2, 0.0 }
  0xed   :  { %v869_v3 = vsel %vm663_vm2, %v802_v61, 0.0  ;;  %v673_v4 = vsel %vm663_vm2, %v6520_v1, 0.0  ;;  %v803_v5 = vmul.f32 %v6520_v1, %v6520_v1  ;;  %v677_v14 = vsel %vm663_vm2, %v6518_v62, 0.0 }
  0xee   :  { %v870_v6 = vadd.f32 %v869_v3, %v868_v0  ;;  %v674_v7 = vadd.f32 %v673_v4, %v672_v63  ;;  %v875_v19 = vsel %vm663_vm2, %v805_v9, 0.0 }
  0xef   :  { %v871_v10 = vsel %vm663_vm2, %v803_v5, 0.0 }
  0xf0   :  { %v676_v11 = vadd.f32 %v675_v8, %v674_v7  ;;  %v872_v12 = vadd.f32 %v871_v10, %v870_v6 }
  0xf1   :  { %v6537_v15 = vpop.f32.mrb[8].mxu0 }
  0xf2   :  { %v874_v16 = vadd.f32 %v873_v13, %v872_v12  ;;  %v6539_v17 = vpop.f32.mrb[9].mxu0  ;;  %v678_v18 = vadd.f32 %v677_v14, %v676_v11  ;;  %v808_v26 = vmul.f32 %v6537_v15, %v6537_v15  ;;  %v683_v32 = vsel %vm663_vm2, %v6537_v15, 0.0 }
  0xf3   :  { %v679_v20 = vsel %vm663_vm2, %v6539_v17, 0.0  ;;  %v806_v21 = vmul.f32 %v6539_v17, %v6539_v17  ;;  %v6546_v22 = vpop.f32.mrb[10].mxu0 }
  0xf4   :  { %v680_v23 = vadd.f32 %v679_v20, %v678_v18  ;;  %v876_v24 = vadd.f32 %v875_v19, %v874_v16  ;;  %v6548_v25 = vpop.f32.mrb[11].mxu0  ;;  %v809_v33 = vmul.f32 %v6546_v22, %v6546_v22  ;;  %v881_v39 = vsel %vm663_vm2, %v808_v26, 0.0 }
  0xf5   :  { %v877_v27 = vsel %vm663_vm2, %v806_v21, 0.0  ;;  %v681_v28 = vsel %vm663_vm2, %v6548_v25, 0.0  ;;  %v807_v29 = vmul.f32 %v6548_v25, %v6548_v25  ;;  %v685_v42 = vsel %vm663_vm2, %v6546_v22, 0.0 }
  0xf6   :  { %v878_v30 = vadd.f32 %v877_v27, %v876_v24  ;;  %v682_v31 = vadd.f32 %v681_v28, %v680_v23  ;;  %v883_v47 = vsel %vm663_vm2, %v809_v33, 0.0 }
  0xf7   :  { %v879_v34 = vsel %vm663_vm2, %v807_v29, 0.0 }
  0xf8   :  { %v684_v35 = vadd.f32 %v683_v32, %v682_v31  ;;  %v880_v36 = vadd.f32 %v879_v34, %v878_v30 }
  0xf9   :  { %v6565_v43 = vpop.f32.mrb[12].mxu0 }
  0xfa   :  { %v882_v44 = vadd.f32 %v881_v39, %v880_v36  ;;  %v6567_v45 = vpop.f32.mrb[13].mxu0  ;;  %v686_v46 = vadd.f32 %v685_v42, %v684_v35  ;;  %v812_v54 = vmul.f32 %v6565_v43, %v6565_v43  ;;  %v691_v63 = vsel %vm663_vm2, %v6565_v43, 0.0 }
  0xfb   :  { %v687_v48 = vsel %vm663_vm2, %v6567_v45, 0.0  ;;  %v810_v49 = vmul.f32 %v6567_v45, %v6567_v45  ;;  %v6574_v50 = vpop.f32.mrb[14].mxu0 }
  0xfc   :  { %v688_v51 = vadd.f32 %v687_v48, %v686_v46  ;;  %v884_v52 = vadd.f32 %v883_v47, %v882_v44  ;;  %v6576_v53 = vpop.f32.mrb[15].mxu0  ;;  %v813_v0 = vmul.f32 %v6574_v50, %v6574_v50  ;;  %v889_v5 = vsel %vm663_vm2, %v812_v54, 0.0 }
  0xfd   :  { %v885_v56 = vsel %vm663_vm2, %v810_v49, 0.0  ;;  %v689_v58 = vsel %vm663_vm2, %v6576_v53, 0.0  ;;  %v811_v59 = vmul.f32 %v6576_v53, %v6576_v53  ;;  %v693_v6 = vsel %vm663_vm2, %v6574_v50, 0.0  ;;  %v1634_v49 = vld [vmem:[#allocation2 + $0x1] sm:$0xff] }
  0xfe   :  { %v886_v60 = vadd.f32 %v885_v56, %v884_v52  ;;  %v690_v61 = vadd.f32 %v689_v58, %v688_v51  ;;  %v891_v11 = vsel %vm663_vm2, %v813_v0, 0.0  ;;  %1762 = vrot.lane.b32.xlu0 %v1634_v49, %s6075_s0 }
  0xff   :  { %v887_v2 = vsel %vm663_vm2, %v811_v59, 0.0 }
 0x100   :  { %v692_v3 = vadd.f32 %v691_v63, %v690_v61  ;;  %v888_v4 = vadd.f32 %v887_v2, %v886_v60 }
 0x101   :  { %v6593_v7 = vpop.f32.mrb[16].mxu0 }
 0x102   :  { %v890_v8 = vadd.f32 %v889_v5, %v888_v4  ;;  %v6595_v9 = vpop.f32.mrb[17].mxu0  ;;  %v694_v10 = vadd.f32 %v693_v6, %v692_v3  ;;  %v816_v20 = vmul.f32 %v6593_v7, %v6593_v7  ;;  %v699_v28 = vsel %vm663_vm2, %v6593_v7, 0.0 }
 0x103   :  { %v695_v12 = vsel %vm663_vm2, %v6595_v9, 0.0  ;;  %v814_v13 = vmul.f32 %v6595_v9, %v6595_v9  ;;  %v6602_v14 = vpop.f32.mrb[18].mxu0 }
 0x104   :  { %v696_v16 = vadd.f32 %v695_v12, %v694_v10  ;;  %v892_v18 = vadd.f32 %v891_v11, %v890_v8  ;;  %v6604_v19 = vpop.f32.mrb[19].mxu0  ;;  %v817_v29 = vmul.f32 %v6602_v14, %v6602_v14  ;;  %v897_v33 = vsel %vm663_vm2, %v816_v20, 0.0 }
 0x105   :  { %v893_v21 = vsel %vm663_vm2, %v814_v13, 0.0  ;;  %v697_v23 = vsel %vm663_vm2, %v6604_v19, 0.0  ;;  %v815_v24 = vmul.f32 %v6604_v19, %v6604_v19  ;;  %v701_v34 = vsel %vm663_vm2, %v6602_v14, 0.0 }
 0x106   :  { %v894_v26 = vadd.f32 %v893_v21, %v892_v18  ;;  %v698_v27 = vadd.f32 %v697_v23, %v696_v16  ;;  %v899_v44 = vsel %vm663_vm2, %v817_v29, 0.0  ;;  %v1635_v23 = vld [vmem:[#allocation2 + $0x9] sm:$0xff] }
 0x107   :  { %v895_v30 = vsel %vm663_vm2, %v815_v24, 0.0  ;;  %1764 = vrot.lane.b32.xlu0 %v1635_v23, %s6075_s0 }
 0x108   :  { %v700_v31 = vadd.f32 %v699_v28, %v698_v27  ;;  %v896_v32 = vadd.f32 %v895_v30, %v894_v26 }
 0x109   :  { %v6621_v35 = vpop.f32.mrb[20].mxu0 }
 0x10a   :  { %v898_v36 = vadd.f32 %v897_v33, %v896_v32  ;;  %v6623_v39 = vpop.f32.mrb[21].mxu0  ;;  %v702_v42 = vadd.f32 %v701_v34, %v700_v31  ;;  %v820_v56 = vmul.f32 %v6621_v35, %v6621_v35  ;;  %v707_v0 = vsel %vm663_vm2, %v6621_v35, 0.0 }
 0x10b   :  { %v703_v46 = vsel %vm663_vm2, %v6623_v39, 0.0  ;;  %v818_v47 = vmul.f32 %v6623_v39, %v6623_v39  ;;  %v6630_v48 = vpop.f32.mrb[22].mxu0 }
 0x10c   :  { %v704_v51 = vadd.f32 %v703_v46, %v702_v42  ;;  %v900_v52 = vadd.f32 %v899_v44, %v898_v36  ;;  %v6632_v54 = vpop.f32.mrb[23].mxu0  ;;  %v821_v2 = vmul.f32 %v6630_v48, %v6630_v48  ;;  %v905_v6 = vsel %vm663_vm2, %v820_v56, 0.0 }
 0x10d   :  { %v901_v58 = vsel %vm663_vm2, %v818_v47, 0.0  ;;  %v705_v59 = vsel %vm663_vm2, %v6632_v54, 0.0  ;;  %v819_v60 = vmul.f32 %v6632_v54, %v6632_v54  ;;  %v709_v8 = vsel %vm663_vm2, %v6630_v48, 0.0 }
 0x10e   :  { %v902_v61 = vadd.f32 %v901_v58, %v900_v52  ;;  %v706_v63 = vadd.f32 %v705_v59, %v704_v51  ;;  %v907_v16 = vsel %vm663_vm2, %v821_v2, 0.0 }
 0x10f   :  { %v903_v3 = vsel %vm663_vm2, %v819_v60, 0.0 }
 0x110   :  { %v708_v4 = vadd.f32 %v707_v0, %v706_v63  ;;  %v904_v5 = vadd.f32 %v903_v3, %v902_v61 }
 0x111   :  { %v6650_v10 = vpop.f32.mrb[24].mxu0 }
 0x112   :  { %v906_v11 = vadd.f32 %v905_v6, %v904_v5  ;;  %v6652_v12 = vpop.f32.mrb[25].mxu0  ;;  %v710_v13 = vadd.f32 %v709_v8, %v708_v4  ;;  %v824_v28 = vmul.f32 %v6650_v10, %v6650_v10  ;;  %v715_v34 = vsel %vm663_vm2, %v6650_v10, 0.0 }
 0x113   :  { %v711_v18 = vsel %vm663_vm2, %v6652_v12, 0.0  ;;  %v822_v20 = vmul.f32 %v6652_v12, %v6652_v12  ;;  %v6659_v21 = vpop.f32.mrb[26].mxu0 }
 0x114   :  { %v712_v24 = vadd.f32 %v711_v18, %v710_v13  ;;  %v908_v26 = vadd.f32 %v907_v16, %v906_v11  ;;  %v6661_v27 = vpop.f32.mrb[27].mxu0  ;;  %v825_v36 = vmul.f32 %v6659_v21, %v6659_v21  ;;  %v913_v47 = vsel %vm663_vm2, %v824_v28, 0.0 }
 0x115   :  { %v909_v29 = vsel %vm663_vm2, %v822_v20, 0.0  ;;  %v713_v30 = vsel %vm663_vm2, %v6661_v27, 0.0  ;;  %v823_v31 = vmul.f32 %v6661_v27, %v6661_v27  ;;  %v717_v49 = vsel %vm663_vm2, %v6659_v21, 0.0 }
 0x116   :  { %v910_v32 = vadd.f32 %v909_v29, %v908_v26  ;;  %v714_v33 = vadd.f32 %v713_v30, %v712_v24  ;;  %v915_v59 = vsel %vm663_vm2, %v825_v36, 0.0 }
 0x117   :  { %v911_v42 = vsel %vm663_vm2, %v823_v31, 0.0 }
 0x118   :  { %v716_v44 = vadd.f32 %v715_v34, %v714_v33  ;;  %v912_v46 = vadd.f32 %v911_v42, %v910_v32 }
 0x119   :  { %v6679_v51 = vpop.f32.mrb[28].mxu0 }
 0x11a   :  { %v914_v52 = vadd.f32 %v913_v47, %v912_v46  ;;  %v6681_v56 = vpop.f32.mrb[29].mxu0  ;;  %v718_v58 = vadd.f32 %v717_v49, %v716_v44  ;;  %v828_v4 = vmul.f32 %v6679_v51, %v6679_v51  ;;  %v723_v16 = vsel %vm663_vm2, %v6679_v51, 0.0  ;;  %v1667_v44 = vld [vmem:[#allocation2 + $0x1b9] sm:$0xff] }
 0x11b   :  { %v719_v60 = vsel %vm663_vm2, %v6681_v56, 0.0  ;;  %v826_v61 = vmul.f32 %v6681_v56, %v6681_v56  ;;  %v6688_v63 = vpop.f32.mrb[30].mxu0  ;;  %1828 = vrot.lane.b32.xlu1 %v1667_v44, %s6075_s0 }
 0x11c   :  { %v720_v0 = vadd.f32 %v719_v60, %v718_v58  ;;  %v916_v2 = vadd.f32 %v915_v59, %v914_v52  ;;  %v6690_v3 = vpop.f32.mrb[31].mxu0  ;;  %v829_v18 = vmul.f32 %v6688_v63, %v6688_v63  ;;  %v921_v26 = vsel %vm663_vm2, %v828_v4, 0.0 }
 0x11d   :  { %v917_v5 = vsel %vm663_vm2, %v826_v61, 0.0  ;;  %v721_v6 = vsel %vm663_vm2, %v6690_v3, 0.0  ;;  %v827_v8 = vmul.f32 %v6690_v3, %v6690_v3  ;;  %v725_v28 = vsel %vm663_vm2, %v6688_v63, 0.0 }
 0x11e   :  { %v918_v11 = vadd.f32 %v917_v5, %v916_v2  ;;  %v722_v13 = vadd.f32 %v721_v6, %v720_v0  ;;  %v923_v33 = vsel %vm663_vm2, %v829_v18, 0.0 }
 0x11f   :  { %v919_v20 = vsel %vm663_vm2, %v827_v8, 0.0 }
 0x120   :  { %v724_v23 = vadd.f32 %v723_v16, %v722_v13  ;;  %v920_v24 = vadd.f32 %v919_v20, %v918_v11 }
 0x121   :  { %v6707_v29 = vpop.f32.mrb[32].mxu0 }
 0x122   :  { %v922_v30 = vadd.f32 %v921_v26, %v920_v24  ;;  %v6709_v31 = vpop.f32.mrb[33].mxu0  ;;  %v726_v32 = vadd.f32 %v725_v28, %v724_v23  ;;  %v832_v52 = vmul.f32 %v6707_v29, %v6707_v29  ;;  %v731_v2 = vsel %vm663_vm2, %v6707_v29, 0.0 }
 0x123   :  { %v727_v34 = vsel %vm663_vm2, %v6709_v31, 0.0  ;;  %v830_v36 = vmul.f32 %v6709_v31, %v6709_v31  ;;  %v6716_v42 = vpop.f32.mrb[34].mxu0 }
 0x124   :  { %v728_v46 = vadd.f32 %v727_v34, %v726_v32  ;;  %v924_v47 = vadd.f32 %v923_v33, %v922_v30  ;;  %v6718_v49 = vpop.f32.mrb[35].mxu0  ;;  %v833_v4 = vmul.f32 %v6716_v42, %v6716_v42  ;;  %v929_v11 = vsel %vm663_vm2, %v832_v52, 0.0 }
 0x125   :  { %v925_v58 = vsel %vm663_vm2, %v830_v36, 0.0  ;;  %v729_v59 = vsel %vm663_vm2, %v6718_v49, 0.0  ;;  %v831_v60 = vmul.f32 %v6718_v49, %v6718_v49  ;;  %v733_v13 = vsel %vm663_vm2, %v6716_v42, 0.0 }
 0x126   :  { %v926_v61 = vadd.f32 %v925_v58, %v924_v47  ;;  %v730_v0 = vadd.f32 %v729_v59, %v728_v46  ;;  %v931_v24 = vsel %vm663_vm2, %v833_v4, 0.0 }
 0x127   :  { %v927_v5 = vsel %vm663_vm2, %v831_v60, 0.0 }
 0x128   :  { %v732_v6 = vadd.f32 %v731_v2, %v730_v0  ;;  %v928_v8 = vadd.f32 %v927_v5, %v926_v61 }
 0x129   :  { %v6736_v16 = vpop.f32.mrb[36].mxu0 }
 0x12a   :  { %v930_v18 = vadd.f32 %v929_v11, %v928_v8  ;;  %v6738_v20 = vpop.f32.mrb[37].mxu0  ;;  %v734_v23 = vadd.f32 %v733_v13, %v732_v6  ;;  %v836_v36 = vmul.f32 %v6736_v16, %v6736_v16  ;;  %v739_v59 = vsel %vm663_vm2, %v6736_v16, 0.0 }
 0x12b   :  { %v735_v26 = vsel %vm663_vm2, %v6738_v20, 0.0  ;;  %v834_v28 = vmul.f32 %v6738_v20, %v6738_v20  ;;  %v6745_v30 = vpop.f32.mrb[38].mxu0 }
 0x12c   :  { %v736_v32 = vadd.f32 %v735_v26, %v734_v23  ;;  %v932_v33 = vadd.f32 %v931_v24, %v930_v18  ;;  %v6747_v34 = vpop.f32.mrb[39].mxu0  ;;  %v837_v60 = vmul.f32 %v6745_v30, %v6745_v30  ;;  %v937_v4 = vsel %vm663_vm2, %v836_v36, 0.0  ;;  %v1666_v18 = vld [vmem:[#allocation2 + $0x1b1] sm:$0xff] }
 0x12d   :  { %v933_v44 = vsel %vm663_vm2, %v834_v28, 0.0  ;;  %v737_v46 = vsel %vm663_vm2, %v6747_v34, 0.0  ;;  %v835_v47 = vmul.f32 %v6747_v34, %v6747_v34  ;;  %v741_v5 = vsel %vm663_vm2, %v6745_v30, 0.0  ;;  %1826 = vrot.lane.b32.xlu0 %v1666_v18, %s6075_s0 }
 0x12e   :  { %v934_v52 = vadd.f32 %v933_v44, %v932_v33  ;;  %v738_v58 = vadd.f32 %v737_v46, %v736_v32  ;;  %v939_v23 = vsel %vm663_vm2, %v837_v60, 0.0 }
 0x12f   :  { %v935_v61 = vsel %vm663_vm2, %v835_v47, 0.0 }
 0x130   :  { %v740_v0 = vadd.f32 %v739_v59, %v738_v58  ;;  %v936_v2 = vadd.f32 %v935_v61, %v934_v52 }
 0x131   :  { %v6764_v6 = vpop.f32.mrb[40].mxu0 }
 0x132   :  { %11513 = vst [vmem:[#allocation4_spill] sm:$0xff] %v6764_v6  ;;  %v938_v8 = vadd.f32 %v937_v4, %v936_v2  ;;  %v6766_v11 = vpop.f32.mrb[41].mxu0  ;;  %v742_v13 = vadd.f32 %v741_v5, %v740_v0  ;;  %v840_v44 = vmul.f32 %v6764_v6, %v6764_v6  ;;  %v747_v60 = vsel %vm663_vm2, %v6764_v6, 0.0 }
 0x133   :  { %11514 = vst [vmem:[#allocation5_spill] sm:$0xff] %v6766_v11  ;;  %v743_v24 = vsel %vm663_vm2, %v6766_v11, 0.0  ;;  %v838_v26 = vmul.f32 %v6766_v11, %v6766_v11  ;;  %v6773_v28 = vpop.f32.mrb[42].mxu0 }
 0x134   :  { %11515 = vst [vmem:[#allocation6_spill] sm:$0xff] %v6773_v28  ;;  %v744_v32 = vadd.f32 %v743_v24, %v742_v13  ;;  %v940_v33 = vadd.f32 %v939_v23, %v938_v8  ;;  %v6776_v36 = vpop.f32.mrb[43].mxu0  ;;  %v841_v61 = vmul.f32 %v6773_v28, %v6773_v28  ;;  %v945_v5 = vsel %vm663_vm2, %v840_v44, 0.0 }
 0x135   :  { %11516 = vst [vmem:[#allocation7_spill] sm:$0xff] %v6776_v36  ;;  %v941_v46 = vsel %vm663_vm2, %v838_v26, 0.0  ;;  %v745_v47 = vsel %vm663_vm2, %v6776_v36, 0.0  ;;  %v839_v52 = vmul.f32 %v6776_v36, %v6776_v36  ;;  %v749_v8 = vsel %vm663_vm2, %v6773_v28, 0.0 }
 0x136   :  { %v942_v58 = vadd.f32 %v941_v46, %v940_v33  ;;  %v746_v59 = vadd.f32 %v745_v47, %v744_v32  ;;  %v947_v26 = vsel %vm663_vm2, %v841_v61, 0.0 }
 0x137   :  { %v943_v0 = vsel %vm663_vm2, %v839_v52, 0.0 }
 0x138   :  { %v748_v2 = vadd.f32 %v747_v60, %v746_v59  ;;  %v944_v4 = vadd.f32 %v943_v0, %v942_v58 }
 0x139   :  { %v6793_v13 = vpop.f32.mrb[44].mxu0 }
 0x13a   :  { %11517 = vst [vmem:[#allocation8_spill] sm:$0xff] %v6793_v13  ;;  %v946_v18 = vadd.f32 %v945_v5, %v944_v4  ;;  %v6795_v23 = vpop.f32.mrb[45].mxu0  ;;  %v750_v24 = vadd.f32 %v749_v8, %v748_v2  ;;  %v844_v58 = vmul.f32 %v6793_v13, %v6793_v13  ;;  %v755_v4 = vsel %vm663_vm2, %v6793_v13, 0.0 }
 0x13b   :  { %11518 = vst [vmem:[#allocation9_spill] sm:$0xff] %v6795_v23  ;;  %v751_v32 = vsel %vm663_vm2, %v6795_v23, 0.0  ;;  %v842_v33 = vmul.f32 %v6795_v23, %v6795_v23  ;;  %v6802_v46 = vpop.f32.mrb[46].mxu0 }
 0x13c   :  { %11519 = vst [vmem:[#allocation10_spill] sm:$0xff] %v6802_v46  ;;  %v752_v44 = vadd.f32 %v751_v32, %v750_v24  ;;  %v948_v47 = vadd.f32 %v947_v26, %v946_v18  ;;  %v6804_v52 = vpop.f32.mrb[47].mxu0  ;;  %v845_v5 = vmul.f32 %v6802_v46, %v6802_v46  ;;  %v953_v26 = vsel %vm663_vm2, %v844_v58, 0.0  ;;  %v2020_v58 = vld [vmem:[#allocation2 + $0xa] sm:$0xff] }
 0x13d   :  { %11520 = vst [vmem:[#allocation11_spill] sm:$0xff] %v6804_v52  ;;  %v949_v59 = vsel %vm663_vm2, %v842_v33, 0.0  ;;  %v753_v60 = vsel %vm663_vm2, %v6804_v52, 0.0  ;;  %v843_v61 = vmul.f32 %v6804_v52, %v6804_v52  ;;  %v757_v32 = vsel %vm663_vm2, %v6802_v46, 0.0  ;;  %2149 = vrot.lane.b32.xlu1 %v2020_v58, %s6076_s22 }
 0x13e   :  { %v950_v0 = vadd.f32 %v949_v59, %v948_v47  ;;  %v754_v2 = vadd.f32 %v753_v60, %v752_v44  ;;  %v955_v59 = vsel %vm663_vm2, %v845_v5, 0.0 }
 0x13f   :  { %v951_v8 = vsel %vm663_vm2, %v843_v61, 0.0 }
 0x140   :  { %v756_v18 = vadd.f32 %v755_v4, %v754_v2  ;;  %v952_v24 = vadd.f32 %v951_v8, %v950_v0 }
 0x141   :  { %v6821_v33 = vpop.f32.mrb[48].mxu0 }
 0x142   :  { %11521 = vst [vmem:[#allocation12_spill] sm:$0xff] %v6821_v33  ;;  %v954_v52 = vadd.f32 %v953_v26, %v952_v24  ;;  %v6823_v47 = vpop.f32.mrb[49].mxu0  ;;  %v758_v44 = vadd.f32 %v757_v32, %v756_v18  ;;  %v2019_v24 = vld [vmem:[#allocation2 + $0x2] sm:$0xff]  ;;  %v848_v5 = vmul.f32 %v6821_v33, %v6821_v33  ;;  %v763_v58 = vsel %vm663_vm2, %v6821_v33, 0.0 }
 0x143   :  { %11522 = vst [vmem:[#allocation13_spill] sm:$0xff] %v6823_v47  ;;  %v759_v60 = vsel %vm663_vm2, %v6823_v47, 0.0  ;;  %v846_v61 = vmul.f32 %v6823_v47, %v6823_v47  ;;  %v6830_v0 = vpop.f32.mrb[50].mxu0  ;;  %2147 = vrot.lane.b32.xlu0 %v2019_v24, %s6076_s22 }
 0x144   :  { %11523 = vst [vmem:[#allocation14_spill] sm:$0xff] %v6830_v0  ;;  %v760_v2 = vadd.f32 %v759_v60, %v758_v44  ;;  %v956_v4 = vadd.f32 %v955_v59, %v954_v52  ;;  %v6832_v8 = vpop.f32.mrb[51].mxu0  ;;  %v2052_v52 = vld [vmem:[#allocation2 + $0x1ba] sm:$0xff]  ;;  %v2051_v60 = vld [vmem:[#allocation2 + $0x1b2] sm:$0xff]  ;;  %v849_v47 = vmul.f32 %v6830_v0, %v6830_v0  ;;  %v765_v24 = vsel %vm663_vm2, %v6830_v0, 0.0 }
 0x145   :  { %11524 = vst [vmem:[#allocation15_spill] sm:$0xff] %v6832_v8  ;;  %v957_v18 = vsel %vm663_vm2, %v846_v61, 0.0  ;;  %v761_v26 = vsel %vm663_vm2, %v6832_v8, 0.0  ;;  %v847_v32 = vmul.f32 %v6832_v8, %v6832_v8  ;;  %2213 = vrot.lane.b32.xlu1 %v2052_v52, %s6076_s22  ;;  %v961_v8 = vsel %vm663_vm2, %v848_v5, 0.0 }
 0x146   :  { %v958_v44 = vadd.f32 %v957_v18, %v956_v4  ;;  %v762_v59 = vadd.f32 %v761_v26, %v760_v2  ;;  %v963_v33 = vsel %vm663_vm2, %v849_v47, 0.0 }
 0x147   :  { %v959_v61 = vsel %vm663_vm2, %v847_v32, 0.0  ;;  %2211 = vrot.lane.b32.xlu0 %v2051_v60, %s6076_s22 }
 0x148   :  { %v764_v46 = vadd.f32 %v763_v58, %v762_v59  ;;  %v960_v13 = vadd.f32 %v959_v61, %v958_v44 }
 0x149   :  { %v6852_v4 = vpop.f32.mrb[52].mxu0 }
 0x14a   :  { %11525 = vst [vmem:[#allocation16_spill] sm:$0xff] %v6852_v4  ;;  %v962_v2 = vadd.f32 %v961_v8, %v960_v13  ;;  %v6855_v18 = vpop.f32.mrb[53].mxu0  ;;  %v766_v26 = vadd.f32 %v765_v24, %v764_v46  ;;  %v852_v13 = vmul.f32 %v6852_v4, %v6852_v4  ;;  %v771_v24 = vsel %vm663_vm2, %v6852_v4, 0.0 }
 0x14b   :  { %11526 = vst [vmem:[#allocation17_spill] sm:$0xff] %v6855_v18  ;;  %v767_v32 = vsel %vm663_vm2, %v6855_v18, 0.0  ;;  %v850_v52 = vmul.f32 %v6855_v18, %v6855_v18  ;;  %v6862_v5 = vpop.f32.mrb[54].mxu0 }
 0x14c   :  { %11527 = vst [vmem:[#allocation18_spill] sm:$0xff] %v6862_v5  ;;  %v768_v44 = vadd.f32 %v767_v32, %v766_v26  ;;  %v964_v59 = vadd.f32 %v963_v33, %v962_v2  ;;  %v6864_v58 = vpop.f32.mrb[55].mxu0  ;;  %v853_v33 = vmul.f32 %v6862_v5, %v6862_v5  ;;  %v773_v18 = vsel %vm663_vm2, %v6862_v5, 0.0 }
 0x14d   :  { %11528 = vst [vmem:[#allocation19_spill] sm:$0xff] %v6864_v58  ;;  %v965_v8 = vsel %vm663_vm2, %v850_v52, 0.0  ;;  %v769_v46 = vsel %vm663_vm2, %v6864_v58, 0.0  ;;  %v851_v47 = vmul.f32 %v6864_v58, %v6864_v58  ;;  %v969_v52 = vsel %vm663_vm2, %v852_v13, 0.0 }
 0x14e   :  { %v966_v60 = vadd.f32 %v965_v8, %v964_v59  ;;  %v770_v61 = vadd.f32 %v769_v46, %v768_v44  ;;  %v971_v8 = vsel %vm663_vm2, %v853_v33, 0.0 }
 0x14f   :  { %v967_v2 = vsel %vm663_vm2, %v851_v47, 0.0 }
 0x150   :  { %v772_v26 = vadd.f32 %v771_v24, %v770_v61  ;;  %v968_v32 = vadd.f32 %v967_v2, %v966_v60 }
 0x151   :  { %v6881_v0 = vpop.f32.mrb[56].mxu0 }
 0x152   :  { %11529 = vst [vmem:[#allocation20_spill] sm:$0xff] %v6881_v0  ;;  %v970_v58 = vadd.f32 %v969_v52, %v968_v32  ;;  %v6883_v59 = vpop.f32.mrb[57].mxu0  ;;  %v774_v44 = vadd.f32 %v773_v18, %v772_v26  ;;  %v856_v2 = vmul.f32 %v6881_v0, %v6881_v0 }
 0x153   :  { %11530 = vst [vmem:[#allocation21_spill] sm:$0xff] %v6883_v59  ;;  %v775_v46 = vsel %vm663_vm2, %v6883_v59, 0.0  ;;  %v854_v47 = vmul.f32 %v6883_v59, %v6883_v59  ;;  %v6890_v60 = vpop.f32.mrb[58].mxu0  ;;  %v779_v59 = vsel %vm663_vm2, %v6881_v0, 0.0 }
 0x154   :  { %11531 = vst [vmem:[#allocation22_spill] sm:$0xff] %v6890_v60  ;;  %v776_v13 = vadd.f32 %v775_v46, %v774_v44  ;;  %v972_v61 = vadd.f32 %v971_v8, %v970_v58  ;;  %v6892_v24 = vpop.f32.mrb[59].mxu0  ;;  %v857_v58 = vmul.f32 %v6890_v60, %v6890_v60  ;;  %v781_v5 = vsel %vm663_vm2, %v6890_v60, 0.0 }
 0x155   :  { %11532 = vst [vmem:[#allocation23_spill] sm:$0xff] %v6892_v24  ;;  %v973_v32 = vsel %vm663_vm2, %v854_v47, 0.0  ;;  %v777_v18 = vsel %vm663_vm2, %v6892_v24, 0.0  ;;  %v855_v33 = vmul.f32 %v6892_v24, %v6892_v24  ;;  %v977_v47 = vsel %vm663_vm2, %v856_v2, 0.0 }
 0x156   :  { %v974_v26 = vadd.f32 %v973_v32, %v972_v61  ;;  %v778_v52 = vadd.f32 %v777_v18, %v776_v13  ;;  %v979_v32 = vsel %vm663_vm2, %v857_v58, 0.0 }
 0x157   :  { %v975_v44 = vsel %vm663_vm2, %v855_v33, 0.0 }
 0x158   :  { %v780_v8 = vadd.f32 %v779_v59, %v778_v52  ;;  %v976_v46 = vadd.f32 %v975_v44, %v974_v26 }
 0x159   :  { %v6909_v4 = vpop.f32.mrb[60].mxu0 }
 0x15a   :  { %11533 = vst [vmem:[#allocation24_spill] sm:$0xff] %v6909_v4  ;;  %v978_v24 = vadd.f32 %v977_v47, %v976_v46  ;;  %v6911_v61 = vpop.f32.mrb[61].mxu0  ;;  %v782_v13 = vadd.f32 %v781_v5, %v780_v8  ;;  %v860_v44 = vmul.f32 %v6909_v4, %v6909_v4 }
 0x15b   :  { %11534 = vst [vmem:[#allocation25_spill] sm:$0xff] %v6911_v61  ;;  %v783_v18 = vsel %vm663_vm2, %v6911_v61, 0.0  ;;  %v858_v59 = vmul.f32 %v6911_v61, %v6911_v61  ;;  %v6918_v33 = vpop.f32.mrb[62].mxu0  ;;  %v787_v61 = vsel %vm663_vm2, %v6909_v4, 0.0 }
 0x15c   :  { %11535 = vst [vmem:[#allocation26_spill] sm:$0xff] %v6918_v33  ;;  %v784_v2 = vadd.f32 %v783_v18, %v782_v13  ;;  %v980_v26 = vadd.f32 %v979_v32, %v978_v24  ;;  %v6920_v52 = vpop.f32.mrb[63].mxu0  ;;  %v861_v24 = vmul.f32 %v6918_v33, %v6918_v33  ;;  %v789_v60 = vsel %vm663_vm2, %v6918_v33, 0.0 }
 0x15d   :  { %v981_v46 = vsel %vm663_vm2, %v858_v59, 0.0  ;;  %v785_v5 = vsel %vm663_vm2, %v6920_v52, 0.0  ;;  %v859_v58 = vmul.f32 %v6920_v52, %v6920_v52  ;;  %v985_v59 = vsel %vm663_vm2, %v860_v44, 0.0 }
 0x15e   :  { %v982_v8 = vadd.f32 %v981_v46, %v980_v26  ;;  %v786_v47 = vadd.f32 %v785_v5, %v784_v2  ;;  %v987_v26 = vsel %vm663_vm2, %v861_v24, 0.0 }
 0x15f   :  { %v983_v13 = vsel %vm663_vm2, %v859_v58, 0.0 }
 0x160   :  { %v788_v32 = vadd.f32 %v787_v61, %v786_v47  ;;  %v984_v18 = vadd.f32 %v983_v13, %v982_v8 }
 0x162   :  { %v790_v0 = vadd.f32 %v789_v60, %v788_v32  ;;  %v986_v23 = vadd.f32 %v985_v59, %v984_v18 }
 0x163   :  { %v11559_v18 = vld [vmem:[#allocation26_spill] sm:$0xff] }
 0x164   :  { %v791_v2 = vrot.slane %v790_v0, 4  ;;  %v988_v46 = vadd.f32 %v987_v26, %v986_v23  ;;  %v11547_v26 = vld [vmem:[#allocation14_spill] sm:$0xff] }
 0x165   :  { %v11555_v23 = vld [vmem:[#allocation22_spill] sm:$0xff] }
 0x166   :  { %v792_v5 = vadd.f32 %v791_v2, %v790_v0  ;;  %v989_v4 = vrot.slane %v988_v46, 4 }
 0x168   :  { %v793_v28 = vrot.slane %v792_v5, 2  ;;  %v990_v6 = vadd.f32 %v989_v4, %v988_v46 }
 0x16a   :  { %v794_v36 = vadd.f32 %v793_v28, %v792_v5  ;;  %v991_v11 = vrot.slane %v990_v6, 2  ;;  %v7065_v28 = vld [vmem:[%s11352_s2] ss:$0 sm:$0xff]  ;;  %v11556_v5 = vld [vmem:[#allocation25_spill] sm:$0xff] }
 0x16c   :  { %v795_v58 = vrot.slane %v794_v36, 1  ;;  %v992_v61 = vadd.f32 %v991_v11, %v990_v6 }
 0x16e   :  { %v796_v8 = vadd.f32 %v795_v58, %v794_v36  ;;  %v993_v47 = vrot.slane %v992_v61, 1  ;;  %v11537_v58 = vld [vmem:[#allocation7_spill] sm:$0xff] }
 0x170   :  { %v6938_v44 = vmul.f32 0.001953125, %v796_v8  ;;  %v994_v13 = vadd.f32 %v993_v47, %v992_v61  ;;  %v11538_v61 = vld [vmem:[#allocation4_spill] sm:$0xff]  ;;  %v11539_v8 = vld [vmem:[#allocation6_spill] sm:$0xff]  ;;  %v11540_v47 = vld [vmem:[#allocation9_spill] sm:$0xff] }
 0x172   :  { %v995_v33 = vmul.f32 0.001953125, %v994_v13  ;;  %v996_v60 = vmul.f32 %v6938_v44, %v6938_v44  ;;  %v11541_v13 = vld [vmem:[#allocation11_spill] sm:$0xff]  ;;  %v11558_v2 = vsub.f32 %v6920_v52, %v6938_v44  ;;  %v11560_v6 = vsub.f32 %v6484_v38, %v6938_v44  ;;  %v7096_v52 = vld [vmem:[%s11353_s3] ss:$0 sm:$0xff]  ;;  %s6077_s3 = smov 48  }
 0x173   :  { %v11561_v24 = vsub.f32 %v6490_v41, %v6938_v44  ;;  %v11564_v38 = vsub.f32 %v6488_v40, %v6938_v44  ;;  %v11565_v41 = vsub.f32 %v6511_v57, %v6938_v44  ;;  %v11566_v36 = vsub.f32 %v6520_v1, %v6938_v44 }
 0x174   :  { %v997_v4 = vsub.f32 %v995_v33, %v996_v60  ;;  %v11557_v33 = vld [vmem:[#allocation24_spill] sm:$0xff]  ;;  %v11567_v40 = vsub.f32 %v6509_v55, %v6938_v44  ;;  %v11568_v57 = vsub.f32 %v6518_v62, %v6938_v44  ;;  %v11569_v1 = vsub.f32 %v6539_v17, %v6938_v44 }
 0x176   :  { %v1062_v46 = vadd.f32 1e-05, %v997_v4  ;;  %v11536_v4 = vld [vmem:[#allocation5_spill] sm:$0xff] }
 0x177   :  { %11562 = vst [vmem:[#allocation5_spill] sm:$0xff] %v7096_v52 }
 0x178   :  { %6070 = vrsqrt.f32 %v1062_v46  ;;  %v11542_v46 = vld [vmem:[#allocation8_spill] sm:$0xff] }
 0x182   :  { %v7060_v60 = vpop.eup %6070 }
 0x183   :  { %v1125_v11 = vmul.f32 %v7060_v60, %v11558_v2  ;;  %v7085_v0 = vmul.f32 %v7060_v60, %v11560_v6  ;;  %v7091_v32 = vmul.f32 %v7060_v60, %v11561_v24  ;;  %v11563_v2 = vsub.f32 %v6482_v37, %v6938_v44 }
 0x184   :  { %v7108_v6 = vmul.f32 %v7060_v60, %v11564_v38  ;;  %v7114_v24 = vmul.f32 %v7060_v60, %v11565_v41  ;;  %v7120_v37 = vmul.f32 %v7060_v60, %v11566_v36  ;;  %v7127_v38 = vmul.f32 %v7060_v60, %v11567_v40 }
 0x185   :  { %v7102_v59 = vmul.f32 %v7060_v60, %v11563_v2  ;;  %v1195_v2 = vmul.f32 %v7065_v28, %v1125_v11  ;;  %v7133_v41 = vmul.f32 %v7060_v60, %v11568_v57  ;;  %v7139_v36 = vmul.f32 %v7060_v60, %v11569_v1 }
 0x186   :  { %v11570_v11 = vsub.f32 %v6548_v25, %v6938_v44  ;;  %v11571_v40 = vsub.f32 %v6537_v15, %v6938_v44  ;;  %v11572_v57 = vsub.f32 %v6546_v22, %v6938_v44  ;;  %v11573_v1 = vsub.f32 %v6567_v45, %v6938_v44 }
 0x187   :  { %v11574_v15 = vsub.f32 %v6576_v53, %v6938_v44  ;;  %v11575_v22 = vsub.f32 %v6565_v43, %v6938_v44  ;;  %v11576_v45 = vsub.f32 %v6574_v50, %v6938_v44 }
 0x188   :  { %v7145_v55 = vmul.f32 %v7060_v60, %v11570_v11  ;;  %v7151_v62 = vmul.f32 %v7060_v60, %v11571_v40  ;;  %v7157_v17 = vmul.f32 %v7060_v60, %v11572_v57  ;;  %v7163_v25 = vmul.f32 %v7060_v60, %v11573_v1 }
 0x189   :  { %v1265_v11 = vadd.f32 %v7096_v52, %v1195_v2  ;;  %v7170_v40 = vmul.f32 %v7060_v60, %v11574_v15  ;;  %v7176_v57 = vmul.f32 %v7060_v60, %v11575_v22  ;;  %v7182_v1 = vmul.f32 %v7060_v60, %v11576_v45 }
 0x18a   :  { %v11577_v2 = vsub.f32 %v6595_v9, %v6938_v44  ;;  %v11578_v15 = vsub.f32 %v6604_v19, %v6938_v44  ;;  %v11579_v22 = vsub.f32 %v6593_v7, %v6938_v44  ;;  %v11580_v45 = vsub.f32 %v6602_v14, %v6938_v44 }
 0x18b   :  { %v11581_v52 = vsub.f32 %v6623_v39, %v6938_v44 }
 0x18c   :  { %v7188_v53 = vmul.f32 %v7060_v60, %v11577_v2  ;;  %v7194_v43 = vmul.f32 %v7060_v60, %v11578_v15  ;;  %v7200_v50 = vmul.f32 %v7060_v60, %v11579_v22  ;;  %v7206_v9 = vmul.f32 %v7060_v60, %v11580_v45 }
 0x18d   :  { %v1329_v2 = vmax.f32 %v1265_v11, 0.0  ;;  %v7212_v19 = vmul.f32 %v7060_v60, %v11581_v52  ;;  %v11582_v15 = vsub.f32 %v6632_v54, %v6938_v44  ;;  %v11583_v22 = vsub.f32 %v6621_v35, %v6938_v44 }
 0x18e   :  { %v11584_v11 = vsub.f32 %v6630_v48, %v6938_v44  ;;  %v11585_v52 = vsub.f32 %v6652_v12, %v6938_v44  ;;  %v11586_v45 = vsub.f32 %v6661_v27, %v6938_v44  ;;  %v11588_v12 = vsub.f32 %v6659_v21, %v6938_v44 }
 0x18f   :  { %v7218_v7 = vmul.f32 %v7060_v60, %v11582_v15  ;;  %v7224_v14 = vmul.f32 %v7060_v60, %v11583_v22  ;;  %v11587_v15 = vsub.f32 %v6650_v10, %v6938_v44  ;;  %1503 = vst.msk [vmem:[#allocation2 + $0x321] sm:$0xff] %vm663_vm2, %v1329_v2  ;;  %v11589_v27 = vsub.f32 %v6681_v56, %v6938_v44 }
 0x190   :  { %v7230_v39 = vmul.f32 %v7060_v60, %v11584_v11  ;;  %v7236_v54 = vmul.f32 %v7060_v60, %v11585_v52  ;;  %v7242_v35 = vmul.f32 %v7060_v60, %v11586_v45  ;;  %v7255_v22 = vmul.f32 %v7060_v60, %v11588_v12 }
 0x191   :  { %v7248_v48 = vmul.f32 %v7060_v60, %v11587_v15  ;;  %v7261_v11 = vmul.f32 %v7060_v60, %v11589_v27  ;;  %v11590_v10 = vsub.f32 %v6690_v3, %v6938_v44  ;;  %v11591_v2 = vsub.f32 %v6679_v51, %v6938_v44 }
 0x192   :  { %v11592_v45 = vsub.f32 %v6688_v63, %v6938_v44  ;;  %v11593_v15 = vsub.f32 %v6709_v31, %v6938_v44  ;;  %v11594_v12 = vsub.f32 %v6718_v49, %v6938_v44  ;;  %v11595_v27 = vsub.f32 %v6707_v29, %v6938_v44 }
 0x193   :  { %v7267_v52 = vmul.f32 %v7060_v60, %v11590_v10  ;;  %v7273_v21 = vmul.f32 %v7060_v60, %v11591_v2  ;;  %v11596_v10 = vsub.f32 %v6716_v42, %v6938_v44  ;;  %v11597_v2 = vsub.f32 %v6738_v20, %v6938_v44 }
 0x194   :  { %v7279_v56 = vmul.f32 %v7060_v60, %v11592_v45  ;;  %v7285_v3 = vmul.f32 %v7060_v60, %v11593_v15  ;;  %v7291_v51 = vmul.f32 %v7060_v60, %v11594_v12  ;;  %v7297_v63 = vmul.f32 %v7060_v60, %v11595_v27 }
 0x195   :  { %v7303_v31 = vmul.f32 %v7060_v60, %v11596_v10  ;;  %v7309_v49 = vmul.f32 %v7060_v60, %v11597_v2  ;;  %v11598_v45 = vsub.f32 %v6747_v34, %v6938_v44  ;;  %v11599_v15 = vsub.f32 %v6736_v16, %v6938_v44 }
 0x196   :  { %v11600_v12 = vsub.f32 %v6745_v30, %v6938_v44  ;;  %v11601_v27 = vsub.f32 %v11536_v4, %v6938_v44  ;;  %v11602_v10 = vsub.f32 %v11537_v58, %v6938_v44  ;;  %v11603_v2 = vsub.f32 %v11538_v61, %v6938_v44 }
 0x197   :  { %v7315_v29 = vmul.f32 %v7060_v60, %v11598_v45  ;;  %v7321_v42 = vmul.f32 %v7060_v60, %v11599_v15  ;;  %v11604_v45 = vsub.f32 %v11539_v8, %v6938_v44  ;;  %v11605_v15 = vsub.f32 %v11540_v47, %v6938_v44 }
 0x198   :  { %v7327_v20 = vmul.f32 %v7060_v60, %v11600_v12  ;;  %v7333_v34 = vmul.f32 %v7060_v60, %v11601_v27  ;;  %v7339_v16 = vmul.f32 %v7060_v60, %v11602_v10  ;;  %v7345_v30 = vmul.f32 %v7060_v60, %v11603_v2  ;;  %v11610_v10 = vld [vmem:[#allocation10_spill] sm:$0xff] }
 0x199   :  { %v7351_v4 = vmul.f32 %v7060_v60, %v11604_v45  ;;  %v7357_v58 = vmul.f32 %v7060_v60, %v11605_v15  ;;  %v11606_v12 = vsub.f32 %v11541_v13, %v6938_v44  ;;  %v11608_v27 = vsub.f32 %v11542_v46, %v6938_v44  ;;  %v11612_v45 = vld [vmem:[#allocation13_spill] sm:$0xff] }
 0x19a   :  { %v11611_v2 = vsub.f32 %v11610_v10, %v6938_v44  ;;  %v11613_v15 = vsub.f32 %v11612_v45, %v6938_v44 }
 0x19b   :  { %v7363_v61 = vmul.f32 %v7060_v60, %v11606_v12  ;;  %v7369_v8 = vmul.f32 %v7060_v60, %v11608_v27  ;;  %v11615_v12 = vld [vmem:[#allocation15_spill] sm:$0xff]  ;;  %v11618_v27 = vld [vmem:[#allocation12_spill] sm:$0xff] }
 0x19c   :  { %v7375_v47 = vmul.f32 %v7060_v60, %v11611_v2  ;;  %v7381_v13 = vmul.f32 %v7060_v60, %v11613_v15  ;;  %v11621_v2 = vsub.f32 %v11547_v26, %v6938_v44  ;;  %v11623_v15 = vld [vmem:[#allocation17_spill] sm:$0xff] }
 0x19d   :  { %11607 = vst [vmem:[#allocation7_spill] sm:$0xff] %v7363_v61  ;;  %11609 = vst [vmem:[#allocation4_spill] sm:$0xff] %v7369_v8  ;;  %v11616_v61 = vsub.f32 %v11615_v12, %v6938_v44  ;;  %v11619_v8 = vsub.f32 %v11618_v27, %v6938_v44 }
 0x19e   :  { %11614 = vst [vmem:[#allocation6_spill] sm:$0xff] %v7381_v13  ;;  %v7399_v45 = vmul.f32 %v7060_v60, %v11621_v2  ;;  %v11624_v13 = vsub.f32 %v11623_v15, %v6938_v44  ;;  %v11632_v2 = vld [vmem:[#allocation18_spill] sm:$0xff] }
 0x19f   :  { %v7387_v46 = vmul.f32 %v7060_v60, %v11616_v61  ;;  %v7393_v10 = vmul.f32 %v7060_v60, %v11619_v8  ;;  %v11626_v61 = vld [vmem:[#allocation19_spill] sm:$0xff]  ;;  %v11629_v8 = vld [vmem:[#allocation16_spill] sm:$0xff] }
 0x1a0   :  { %11622 = vst [vmem:[#allocation8_spill] sm:$0xff] %v7399_v45  ;;  %v7405_v12 = vmul.f32 %v7060_v60, %v11624_v13  ;;  %v11633_v45 = vsub.f32 %v11632_v2, %v6938_v44  ;;  %v11634_v13 = vld [vmem:[#allocation21_spill] sm:$0xff] }
 0x1a1   :  { %11617 = vst [vmem:[#allocation9_spill] sm:$0xff] %v7387_v46  ;;  %11620 = vst [vmem:[#allocation11_spill] sm:$0xff] %v7393_v10  ;;  %v11627_v46 = vsub.f32 %v11626_v61, %v6938_v44  ;;  %v11630_v10 = vsub.f32 %v11629_v8, %v6938_v44 }
 0x1a2   :  { %11625 = vst [vmem:[#allocation14_spill] sm:$0xff] %v7405_v12  ;;  %v7423_v15 = vmul.f32 %v7060_v60, %v11633_v45  ;;  %v11635_v12 = vsub.f32 %v11634_v13, %v6938_v44  ;;  %v11640_v45 = vsub.f32 %v11555_v23, %v6938_v44 }
 0x1a3   :  { %v7411_v27 = vmul.f32 %v7060_v60, %v11627_v46  ;;  %v7417_v26 = vmul.f32 %v7060_v60, %v11630_v10  ;;  %v11636_v46 = vld [vmem:[#allocation23_spill] sm:$0xff]  ;;  %v11638_v10 = vld [vmem:[#allocation20_spill] sm:$0xff] }
 0x1a4   :  { %v7429_v61 = vmul.f32 %v7060_v60, %v11635_v12  ;;  %v7447_v13 = vmul.f32 %v7060_v60, %v11640_v45  ;;  %v11641_v12 = vsub.f32 %v11556_v5, %v6938_v44  ;;  %v7469_v45 = vmul.f32 %v7065_v28, %v7085_v0 }
 0x1a5   :  { %11628 = vst [vmem:[#allocation22_spill] sm:$0xff] %v7411_v27  ;;  %11631 = vst [vmem:[#allocation25_spill] sm:$0xff] %v7417_v26  ;;  %v11637_v27 = vsub.f32 %v11636_v46, %v6938_v44  ;;  %v11639_v26 = vsub.f32 %v11638_v10, %v6938_v44  ;;  %v7473_v5 = vmul.f32 %v7065_v28, %v7091_v32 }
 0x1a6   :  { %v7453_v46 = vmul.f32 %v7060_v60, %v11641_v12  ;;  %v7481_v12 = vmul.f32 %v7065_v28, %v7108_v6  ;;  %v7489_v0 = vmul.f32 %v7065_v28, %v7120_v37  ;;  %v7493_v32 = vmul.f32 %v7065_v28, %v7127_v38 }
 0x1a7   :  { %v7435_v8 = vmul.f32 %v7060_v60, %v11637_v27  ;;  %v7441_v2 = vmul.f32 %v7060_v60, %v11639_v26  ;;  %v11642_v27 = vsub.f32 %v11557_v33, %v6938_v44  ;;  %v11643_v26 = vsub.f32 %v11559_v18, %v6938_v44 }
 0x1a8   :  { %v7477_v33 = vmul.f32 %v7065_v28, %v7102_v59  ;;  %v7485_v44 = vmul.f32 %v7065_v28, %v7114_v24  ;;  %v7497_v18 = vmul.f32 %v7065_v28, %v7133_v41  ;;  %v7501_v59 = vmul.f32 %v7065_v28, %v7139_v36 }
 0x1a9   :  { %v7459_v10 = vmul.f32 %v7060_v60, %v11642_v27  ;;  %v7465_v23 = vmul.f32 %v7060_v60, %v11643_v26  ;;  %v7505_v60 = vmul.f32 %v7065_v28, %v7145_v55  ;;  %v7509_v6 = vmul.f32 %v7065_v28, %v7151_v62  ;;  %v11645_v27 = vld [vmem:[#allocation7_spill] sm:$0xff]  ;;  %v11647_v26 = vld [vmem:[#allocation4_spill] sm:$0xff] }
 0x1aa   :  { %v7513_v24 = vmul.f32 %v7065_v28, %v7157_v17  ;;  %v7517_v37 = vmul.f32 %v7065_v28, %v7163_v25  ;;  %v7521_v38 = vmul.f32 %v7065_v28, %v7170_v40  ;;  %v7525_v41 = vmul.f32 %v7065_v28, %v7176_v57 }
 0x1ab   :  { %v7529_v36 = vmul.f32 %v7065_v28, %v7182_v1  ;;  %v7533_v55 = vmul.f32 %v7065_v28, %v7188_v53  ;;  %v7537_v62 = vmul.f32 %v7065_v28, %v7194_v43  ;;  %v7541_v17 = vmul.f32 %v7065_v28, %v7200_v50 }
 0x1ac   :  { %v7545_v25 = vmul.f32 %v7065_v28, %v7206_v9  ;;  %v7549_v40 = vmul.f32 %v7065_v28, %v7212_v19  ;;  %v7553_v57 = vmul.f32 %v7065_v28, %v7218_v7  ;;  %v7557_v1 = vmul.f32 %v7065_v28, %v7224_v14  ;;  %v1506_v7 = vld [vmem:[#allocation2] sm:$0xff] }
 0x1ad   :  { %v7561_v53 = vmul.f32 %v7065_v28, %v7230_v39  ;;  %v7565_v43 = vmul.f32 %v7065_v28, %v7236_v54  ;;  %v7569_v50 = vmul.f32 %v7065_v28, %v7242_v35  ;;  %v7573_v9 = vmul.f32 %v7065_v28, %v7248_v48  ;;  %1570 = vst.msk [vmem:[#allocation3] sm:$0xff] %vm663_vm2, %v1506_v7 }
 0x1ae   :  { %v7577_v19 = vmul.f32 %v7065_v28, %v7255_v22  ;;  %v7581_v14 = vmul.f32 %v7065_v28, %v7261_v11  ;;  %v7585_v39 = vmul.f32 %v7065_v28, %v7267_v52  ;;  %v7589_v54 = vmul.f32 %v7065_v28, %v7273_v21 }
 0x1af   :  { %v7593_v35 = vmul.f32 %v7065_v28, %v7279_v56  ;;  %v7598_v48 = vmul.f32 %v7065_v28, %v7285_v3  ;;  %v7602_v22 = vmul.f32 %v7065_v28, %v7291_v51  ;;  %v7606_v11 = vmul.f32 %v7065_v28, %v7297_v63 }
 0x1b0   :  { %v7610_v52 = vmul.f32 %v7065_v28, %v7303_v31  ;;  %v7614_v21 = vmul.f32 %v7065_v28, %v7309_v49  ;;  %v7618_v56 = vmul.f32 %v7065_v28, %v7315_v29  ;;  %v7622_v3 = vmul.f32 %v7065_v28, %v7321_v42  ;;  %v1507_v42 = vld [vmem:[#allocation2 + $0x8] sm:$0xff] }
 0x1b1   :  { %v7626_v51 = vmul.f32 %v7065_v28, %v7327_v20  ;;  %v7630_v63 = vmul.f32 %v7065_v28, %v7333_v34  ;;  %v7634_v31 = vmul.f32 %v7065_v28, %v7339_v16  ;;  %v7638_v49 = vmul.f32 %v7065_v28, %v7345_v30  ;;  %1571 = vst.msk [vmem:[#allocation3 + $0x10] sm:$0xff] %vm663_vm2, %v1507_v42  ;;  %v11656_v42 = vld [vmem:[#allocation22_spill] sm:$0xff] }
 0x1b2   :  { %v7642_v29 = vmul.f32 %v7065_v28, %v7351_v4  ;;  %v7646_v20 = vmul.f32 %v7065_v28, %v7357_v58  ;;  %v7650_v34 = vmul.f32 %v7065_v28, %v11645_v27  ;;  %v7654_v16 = vmul.f32 %v7065_v28, %v11647_v26  ;;  %v11650_v4 = vld [vmem:[#allocation6_spill] sm:$0xff]  ;;  %v11652_v58 = vld [vmem:[#allocation9_spill] sm:$0xff]  ;;  %v11653_v27 = vld [vmem:[#allocation11_spill] sm:$0xff] }
 0x1b3   :  { %v7658_v30 = vmul.f32 %v7065_v28, %v7375_v47  ;;  %v7663_v7 = vmul.f32 %v7065_v28, %v11650_v4  ;;  %v11654_v26 = vld [vmem:[#allocation8_spill] sm:$0xff]  ;;  %v11655_v47 = vld [vmem:[#allocation14_spill] sm:$0xff]  ;;  %v7683_v4 = vmul.f32 %v7065_v28, %v11656_v42  ;;  %v7703_v42 = vmul.f32 %v7065_v28, %v7441_v2  ;;  %v11661_v2 = vld [vmem:[#allocation5_spill] sm:$0xff] }
 0x1b4   :  { %11644 = vst [vmem:[#allocation24_spill] sm:$0xff] %v7646_v20  ;;  %11646 = vst [vmem:[#allocation26_spill] sm:$0xff] %v7650_v34  ;;  %v7667_v20 = vmul.f32 %v7065_v28, %v11652_v58  ;;  %v7671_v34 = vmul.f32 %v7065_v28, %v11653_v27  ;;  %v7691_v27 = vmul.f32 %v7065_v28, %v7423_v15 }
 0x1b5   :  { %11648 = vst [vmem:[#allocation10_spill] sm:$0xff] %v7654_v16  ;;  %11649 = vst [vmem:[#allocation13_spill] sm:$0xff] %v7658_v30  ;;  %v7675_v16 = vmul.f32 %v7065_v28, %v11654_v26  ;;  %v7679_v30 = vmul.f32 %v7065_v28, %v11655_v47  ;;  %v7695_v26 = vmul.f32 %v7065_v28, %v7429_v61 }
 0x1b6   :  { %11651 = vst [vmem:[#allocation15_spill] sm:$0xff] %v7663_v7  ;;  %11657 = vst [vmem:[#allocation12_spill] sm:$0xff] %v7683_v4  ;;  %v11658_v7 = vld [vmem:[#allocation25_spill] sm:$0xff]  ;;  %v7699_v47 = vmul.f32 %v7065_v28, %v7435_v8  ;;  %v1538_v4 = vld [vmem:[#allocation2 + $0x1b0] sm:$0xff]  ;;  %v7711_v15 = vmul.f32 %v7065_v28, %v7453_v46  ;;  %v7715_v61 = vmul.f32 %v7065_v28, %v7459_v10 }
 0x1b7   :  { %v7687_v58 = vmul.f32 %v7065_v28, %v11658_v7  ;;  %11660 = vst [vmem:[#allocation19_spill] sm:$0xff] %v7703_v42  ;;  %v7707_v7 = vmul.f32 %v7065_v28, %v7447_v13  ;;  %v7719_v8 = vmul.f32 %v7065_v28, %v7465_v23  ;;  %v7723_v42 = vadd.f32 %v11661_v2, %v7469_v45 }
 0x1b8   :  { %1602 = vst.msk [vmem:[#allocation3 + $0x200] sm:$0xff] %vm663_vm2, %v1538_v4  ;;  %v7729_v13 = vadd.f32 %v11661_v2, %v7473_v5  ;;  %v7733_v46 = vadd.f32 %v11661_v2, %v7477_v33  ;;  %v7737_v28 = vadd.f32 %v11661_v2, %v7481_v12  ;;  %v7741_v10 = vadd.f32 %v11661_v2, %v7485_v44 }
 0x1b9   :  { %11659 = vst [vmem:[#allocation17_spill] sm:$0xff] %v7687_v58  ;;  %v1539_v58 = vld [vmem:[#allocation2 + $0x1b8] sm:$0xff]  ;;  %v7745_v23 = vadd.f32 %v11661_v2, %v7489_v0  ;;  %v7749_v45 = vadd.f32 %v11661_v2, %v7493_v32  ;;  %v7753_v5 = vadd.f32 %v11661_v2, %v7497_v18  ;;  %v7757_v33 = vadd.f32 %v11661_v2, %v7501_v59 }
 0x1ba   :  { %1603 = vst.msk [vmem:[#allocation3 + $0x210] sm:$0xff] %vm663_vm2, %v1539_v58  ;;  %v7761_v12 = vadd.f32 %v11661_v2, %v7505_v60  ;;  %v7765_v44 = vadd.f32 %v11661_v2, %v7509_v6  ;;  %v7769_v0 = vadd.f32 %v11661_v2, %v7513_v24  ;;  %v7773_v32 = vadd.f32 %v11661_v2, %v7517_v37 }
 0x1bb   :  { %v7777_v18 = vadd.f32 %v11661_v2, %v7521_v38  ;;  %v7781_v59 = vadd.f32 %v11661_v2, %v7525_v41  ;;  %v7785_v60 = vadd.f32 %v11661_v2, %v7529_v36  ;;  %v7789_v6 = vadd.f32 %v11661_v2, %v7533_v55  ;;  %v11665_v4 = vld [vmem:[#allocation24_spill] sm:$0xff]  ;;  %v11666_v58 = vld [vmem:[#allocation26_spill] sm:$0xff] }
 0x1bc   :  { %v7793_v24 = vadd.f32 %v11661_v2, %v7537_v62  ;;  %v7797_v37 = vadd.f32 %v11661_v2, %v7541_v17  ;;  %v7801_v38 = vadd.f32 %v11661_v2, %v7545_v25  ;;  %v7805_v41 = vadd.f32 %v11661_v2, %v7549_v40 }
 0x1bd   :  { %v7809_v36 = vadd.f32 %v11661_v2, %v7553_v57  ;;  %v7813_v55 = vadd.f32 %v11661_v2, %v7557_v1  ;;  %v7817_v62 = vadd.f32 %v11661_v2, %v7561_v53  ;;  %v7821_v17 = vadd.f32 %v11661_v2, %v7565_v43 }
 0x1be   :  { %v7825_v25 = vadd.f32 %v11661_v2, %v7569_v50  ;;  %v7829_v40 = vadd.f32 %v11661_v2, %v7573_v9  ;;  %v7833_v57 = vadd.f32 %v11661_v2, %v7577_v19  ;;  %v7837_v1 = vadd.f32 %v11661_v2, %v7581_v14 }
 0x1bf   :  { %v7841_v53 = vadd.f32 %v11661_v2, %v7585_v39  ;;  %v7845_v43 = vadd.f32 %v11661_v2, %v7589_v54  ;;  %v7849_v50 = vadd.f32 %v11661_v2, %v7593_v35  ;;  %v7853_v9 = vadd.f32 %v11661_v2, %v7598_v48  ;;  %v7871_v35 = vpop.permute.xlu0 %1762 }
 0x1c0   :  { %v7857_v19 = vadd.f32 %v11661_v2, %v7602_v22  ;;  %v7861_v14 = vadd.f32 %v11661_v2, %v7606_v11  ;;  %v7865_v39 = vadd.f32 %v11661_v2, %v7610_v52  ;;  %v7869_v54 = vadd.f32 %v11661_v2, %v7614_v21  ;;  %11662 = vst [vmem:[#allocation16_spill] sm:$0xff] %v7871_v35  ;;  %v11667_v35 = vld [vmem:[#allocation10_spill] sm:$0xff] }
 0x1c1   :  { %v7875_v48 = vadd.f32 %v11661_v2, %v7618_v56  ;;  %v7879_v22 = vadd.f32 %v11661_v2, %v7622_v3  ;;  %v7883_v11 = vadd.f32 %v11661_v2, %v7626_v51  ;;  %v7887_v52 = vadd.f32 %v11661_v2, %v7630_v63 }
 0x1c2   :  { %v7891_v21 = vadd.f32 %v11661_v2, %v7634_v31  ;;  %v7895_v56 = vadd.f32 %v11661_v2, %v7638_v49  ;;  %v7899_v3 = vadd.f32 %v11661_v2, %v7642_v29  ;;  %v7903_v51 = vadd.f32 %v11661_v2, %v11665_v4 }
 0x1c3   :  { %v7907_v63 = vadd.f32 %v11661_v2, %v11666_v58  ;;  %v7911_v31 = vadd.f32 %v11661_v2, %v11667_v35  ;;  %v7923_v4 = vadd.f32 %v11661_v2, %v7667_v20  ;;  %v7927_v58 = vadd.f32 %v11661_v2, %v7671_v34 }
 0x1c4   :  { %11663 = vst [vmem:[#allocation18_spill] sm:$0xff] %v7891_v21  ;;  %11664 = vst [vmem:[#allocation21_spill] sm:$0xff] %v7895_v56  ;;  %v11668_v21 = vld [vmem:[#allocation13_spill] sm:$0xff]  ;;  %v11670_v56 = vld [vmem:[#allocation15_spill] sm:$0xff]  ;;  %v7931_v35 = vadd.f32 %v11661_v2, %v7675_v16  ;;  %v7947_v34 = vadd.f32 %v11661_v2, %v7691_v27  ;;  %v7951_v16 = vadd.f32 %v11661_v2, %v7695_v26 }
 0x1c5   :  { %v7915_v49 = vadd.f32 %v11661_v2, %v11668_v21  ;;  %v7919_v29 = vadd.f32 %v11661_v2, %v11670_v56  ;;  %v7935_v21 = vadd.f32 %v11661_v2, %v7679_v30  ;;  %v7955_v30 = vadd.f32 %v11661_v2, %v7699_v47 }
 0x1c6   :  { %11675 = vst [vmem:[#allocation4_spill] sm:$0xff] %v7947_v34  ;;  %v7967_v27 = vadd.f32 %v11661_v2, %v7711_v15  ;;  %v7969_v34 = vpop.permute.xlu0 %1764  ;;  %v7973_v26 = vadd.f32 %v11661_v2, %v7715_v61  ;;  %v7977_v47 = vadd.f32 %v11661_v2, %v7719_v8  ;;  %v1272_v15 = vmax.f32 %v7741_v10, 0.0 }
 0x1c7   :  { %11669 = vst [vmem:[#allocation23_spill] sm:$0xff] %v7915_v49  ;;  %11671 = vst [vmem:[#allocation20_spill] sm:$0xff] %v7919_v29  ;;  %v11673_v49 = vld [vmem:[#allocation12_spill] sm:$0xff]  ;;  %v11674_v29 = vld [vmem:[#allocation17_spill] sm:$0xff]  ;;  %v1275_v61 = vmax.f32 %v7753_v5, 0.0  ;;  %v1277_v8 = vmax.f32 %v7761_v12, 0.0 }
 0x1c8   :  { %11672 = vst [vmem:[#allocation7_spill] sm:$0xff] %v7935_v21  ;;  %v7939_v56 = vadd.f32 %v11661_v2, %v11673_v49  ;;  %v7943_v20 = vadd.f32 %v11661_v2, %v11674_v29  ;;  %v11676_v21 = vld [vmem:[#allocation19_spill] sm:$0xff]  ;;  %v7963_v29 = vadd.f32 %v11661_v2, %v7707_v7  ;;  %11679 = vst [vmem:[#allocation11_spill] sm:$0xff] %v7967_v27  ;;  %v1270_v7 = vmax.f32 %v7733_v46, 0.0 }
 0x1c9   :  { %v7959_v49 = vadd.f32 %v11661_v2, %v11676_v21  ;;  %11680 = vst [vmem:[#allocation8_spill] sm:$0xff] %v7969_v34  ;;  %11681 = vst [vmem:[#allocation14_spill] sm:$0xff] %v7973_v26  ;;  %v1268_v21 = vmax.f32 %v7723_v42, 0.0  ;;  %v1273_v34 = vmax.f32 %v7745_v23, 0.0  ;;  %v1274_v27 = vmax.f32 %v7749_v45, 0.0 }
 0x1ca   :  { %11678 = vst [vmem:[#allocation9_spill] sm:$0xff] %v7963_v29  ;;  %v1271_v29 = vmax.f32 %v7737_v28, 0.0  ;;  %v1276_v26 = vmax.f32 %v7757_v33, 0.0  ;;  %v1278_v42 = vmax.f32 %v7765_v44, 0.0  ;;  %v1279_v2 = vmax.f32 %v7769_v0, 0.0  ;;  %1444 = vst.msk [vmem:[#allocation2 + $0x31] sm:$0xff] %vm663_vm2, %v1270_v7  ;;  %v7999_v28 = vpop.permute.xlu1 %1828 }
 0x1cb   :  { %11677 = vst [vmem:[#allocation6_spill] sm:$0xff] %v7959_v49  ;;  %v1269_v49 = vmax.f32 %v7729_v13, 0.0  ;;  %1442 = vst.msk [vmem:[#allocation2 + $0x19] sm:$0xff] %vm663_vm2, %v1268_v21  ;;  %v1280_v13 = vmax.f32 %v7773_v32, 0.0  ;;  %v1281_v46 = vmax.f32 %v7777_v18, 0.0  ;;  %v1282_v10 = vmax.f32 %v7781_v59, 0.0  ;;  %v8017_v32 = vpop.permute.xlu0 %1826 }
 0x1cc   :  { %1445 = vst.msk [vmem:[#allocation2 + $0x39] sm:$0xff] %vm663_vm2, %v1271_v29  ;;  %1446 = vst.msk [vmem:[#allocation2 + $0x49] sm:$0xff] %vm663_vm2, %v1272_v15  ;;  %v1283_v23 = vmax.f32 %v7785_v60, 0.0  ;;  %v1284_v45 = vmax.f32 %v7789_v6, 0.0  ;;  %v1285_v5 = vmax.f32 %v7793_v24, 0.0  ;;  %v1286_v33 = vmax.f32 %v7797_v37, 0.0 }
 0x1cd   :  { %1443 = vst.msk [vmem:[#allocation2 + $0x21] sm:$0xff] %vm663_vm2, %v1269_v49  ;;  %1447 = vst.msk [vmem:[#allocation2 + $0x51] sm:$0xff] %vm663_vm2, %v1273_v34  ;;  %v1287_v12 = vmax.f32 %v7801_v38, 0.0  ;;  %v1288_v44 = vmax.f32 %v7805_v41, 0.0  ;;  %v1289_v0 = vmax.f32 %v7809_v36, 0.0  ;;  %v1290_v18 = vmax.f32 %v7813_v55, 0.0 }
 0x1ce   :  { %1448 = vst.msk [vmem:[#allocation2 + $0x61] sm:$0xff] %vm663_vm2, %v1274_v27  ;;  %1449 = vst.msk [vmem:[#allocation2 + $0x69] sm:$0xff] %vm663_vm2, %v1275_v61  ;;  %v1291_v59 = vmax.f32 %v7817_v62, 0.0  ;;  %v1292_v60 = vmax.f32 %v7821_v17, 0.0  ;;  %v1293_v6 = vmax.f32 %v7825_v25, 0.0  ;;  %v1294_v24 = vmax.f32 %v7829_v40, 0.0 }
 0x1cf   :  { %1450 = vst.msk [vmem:[#allocation2 + $0x79] sm:$0xff] %vm663_vm2, %v1276_v26  ;;  %1451 = vst.msk [vmem:[#allocation2 + $0x81] sm:$0xff] %vm663_vm2, %v1277_v8  ;;  %v1295_v37 = vmax.f32 %v7833_v57, 0.0  ;;  %v1296_v38 = vmax.f32 %v7837_v1, 0.0  ;;  %v1297_v41 = vmax.f32 %v7841_v53, 0.0  ;;  %v1298_v36 = vmax.f32 %v7845_v43, 0.0  ;;  %v8051_v43 = vpop.permute.xlu1 %2149  ;;  %v8071_v49 = vpop.permute.xlu0 %2147 }
 0x1d0   :  { %1452 = vst.msk [vmem:[#allocation2 + $0x91] sm:$0xff] %vm663_vm2, %v1278_v42  ;;  %1453 = vst.msk [vmem:[#allocation2 + $0x99] sm:$0xff] %vm663_vm2, %v1279_v2  ;;  %v1299_v55 = vmax.f32 %v7849_v50, 0.0  ;;  %v1300_v62 = vmax.f32 %v7853_v9, 0.0  ;;  %v1301_v17 = vmax.f32 %v7857_v19, 0.0  ;;  %v1302_v25 = vmax.f32 %v7861_v14, 0.0 }
 0x1d1   :  { %1454 = vst.msk [vmem:[#allocation2 + $0xa9] sm:$0xff] %vm663_vm2, %v1280_v13  ;;  %1455 = vst.msk [vmem:[#allocation2 + $0xb1] sm:$0xff] %vm663_vm2, %v1281_v46  ;;  %v1303_v40 = vmax.f32 %v7865_v39, 0.0  ;;  %v1304_v57 = vmax.f32 %v7869_v54, 0.0  ;;  %v1305_v1 = vmax.f32 %v7875_v48, 0.0  ;;  %v1306_v50 = vmax.f32 %v7879_v22, 0.0 }
 0x1d2   :  { %1456 = vst.msk [vmem:[#allocation2 + $0xc1] sm:$0xff] %vm663_vm2, %v1282_v10  ;;  %1457 = vst.msk [vmem:[#allocation2 + $0xc9] sm:$0xff] %vm663_vm2, %v1283_v23  ;;  %v1636_v53 = vld [vmem:[#allocation2 + $0x19] sm:$0xff]  ;;  %v1307_v9 = vmax.f32 %v7883_v11, 0.0  ;;  %v1308_v19 = vmax.f32 %v7887_v52, 0.0  ;;  %v11682_v14 = vld [vmem:[#allocation18_spill] sm:$0xff] }
 0x1d3   :  { %1458 = vst.msk [vmem:[#allocation2 + $0xd9] sm:$0xff] %vm663_vm2, %v1284_v45  ;;  %1459 = vst.msk [vmem:[#allocation2 + $0xe1] sm:$0xff] %vm663_vm2, %v1285_v5  ;;  %v1309_v39 = vmax.f32 %v11682_v14, 0.0  ;;  %v1638_v54 = vld [vmem:[#allocation2 + $0x31] sm:$0xff]  ;;  %1766 = vrot.lane.b32.xlu1 %v1636_v53, %s6075_s0  ;;  %v11683_v48 = vld [vmem:[#allocation21_spill] sm:$0xff]  ;;  %v1311_v22 = vmax.f32 %v7899_v3, 0.0 }
 0x1d4   :  { %1460 = vst.msk [vmem:[#allocation2 + $0xf1] sm:$0xff] %vm663_vm2, %v1286_v33  ;;  %1461 = vst.msk [vmem:[#allocation2 + $0xf9] sm:$0xff] %vm663_vm2, %v1287_v12  ;;  %v1310_v34 = vmax.f32 %v11683_v48, 0.0  ;;  %v1312_v11 = vmax.f32 %v7903_v51, 0.0  ;;  %v1313_v52 = vmax.f32 %v7907_v63, 0.0  ;;  %1770 = vrot.lane.b32.xlu0 %v1638_v54, %s6075_s0  ;;  %v1314_v29 = vmax.f32 %v7911_v31, 0.0 }
 0x1d5   :  { %1462 = vst.msk [vmem:[#allocation2 + $0x109] sm:$0xff] %vm663_vm2, %v1288_v44  ;;  %1463 = vst.msk [vmem:[#allocation2 + $0x111] sm:$0xff] %vm663_vm2, %v1289_v0  ;;  %v11684_v27 = vld [vmem:[#allocation23_spill] sm:$0xff]  ;;  %v11685_v26 = vld [vmem:[#allocation20_spill] sm:$0xff]  ;;  %v1317_v63 = vmax.f32 %v7923_v4, 0.0  ;;  %v1318_v31 = vmax.f32 %v7927_v58, 0.0  ;;  %v2214_v0 = vpop.permute.xlu1 %2213 }
 0x1d6   :  { %1464 = vst.msk [vmem:[#allocation2 + $0x121] sm:$0xff] %vm663_vm2, %v1290_v18  ;;  %1465 = vst.msk [vmem:[#allocation2 + $0x129] sm:$0xff] %vm663_vm2, %v1291_v59  ;;  %v1315_v3 = vmax.f32 %v11684_v27, 0.0  ;;  %v1316_v51 = vmax.f32 %v11685_v26, 0.0  ;;  %v8081_v21 = vld [vmem:[#allocation2 + $0x32] sm:$0xff]  ;;  %v8083_v7 = vld [vmem:[#allocation2 + $0x3a] sm:$0xff] }
 0x1d7   :  { %1466 = vst.msk [vmem:[#allocation2 + $0x139] sm:$0xff] %vm663_vm2, %v1292_v60  ;;  %1467 = vst.msk [vmem:[#allocation2 + $0x141] sm:$0xff] %vm663_vm2, %v1293_v6  ;;  %v1319_v15 = vmax.f32 %v7931_v35, 0.0  ;;  %v11686_v61 = vld [vmem:[#allocation7_spill] sm:$0xff]  ;;  %v1321_v4 = vmax.f32 %v7939_v56, 0.0  ;;  %v1640_v42 = vld [vmem:[#allocation2 + $0x49] sm:$0xff]  ;;  %v2212_v6 = vpop.permute.xlu0 %2211 }
 0x1d8   :  { %1468 = vst.msk [vmem:[#allocation2 + $0x151] sm:$0xff] %vm663_vm2, %v1294_v24  ;;  %1469 = vst.msk [vmem:[#allocation2 + $0x159] sm:$0xff] %vm663_vm2, %v1295_v37  ;;  %v1320_v8 = vmax.f32 %v11686_v61, 0.0  ;;  %v1637_v2 = vld [vmem:[#allocation2 + $0x21] sm:$0xff]  ;;  %v1322_v58 = vmax.f32 %v7943_v20, 0.0  ;;  %v1324_v13 = vmax.f32 %v7951_v16, 0.0  ;;  %1774 = vrot.lane.b32.xlu0 %v1640_v42, %s6075_s0 }
 0x1d9   :  { %1470 = vst.msk [vmem:[#allocation2 + $0x169] sm:$0xff] %vm663_vm2, %v1296_v38  ;;  %1471 = vst.msk [vmem:[#allocation2 + $0x171] sm:$0xff] %vm663_vm2, %v1297_v41  ;;  %v11687_v35 = vld [vmem:[#allocation4_spill] sm:$0xff]  ;;  %v1325_v46 = vmax.f32 %v7955_v30, 0.0  ;;  %1768 = vrot.lane.b32.xlu1 %v1637_v2, %s6075_s0  ;;  %v11688_v20 = vld [vmem:[#allocation6_spill] sm:$0xff]  ;;  %v1331_v18 = vmax.f32 %v7977_v47, 0.0 }
 0x1da   :  { %1472 = vst.msk [vmem:[#allocation2 + $0x181] sm:$0xff] %vm663_vm2, %v1298_v36  ;;  %1473 = vst.msk [vmem:[#allocation2 + $0x189] sm:$0xff] %vm663_vm2, %v1299_v55  ;;  %v1323_v56 = vmax.f32 %v11687_v35, 0.0  ;;  %v1326_v45 = vmax.f32 %v11688_v20, 0.0  ;;  %v11689_v5 = vld [vmem:[#allocation9_spill] sm:$0xff]  ;;  %v11690_v33 = vld [vmem:[#allocation11_spill] sm:$0xff] }
 0x1db   :  { %1474 = vst.msk [vmem:[#allocation2 + $0x1c9] sm:$0xff] %vm663_vm2, %v1300_v62  ;;  %1475 = vst.msk [vmem:[#allocation2 + $0x1d1] sm:$0xff] %vm663_vm2, %v1301_v17  ;;  %v1327_v16 = vmax.f32 %v11689_v5, 0.0  ;;  %v1328_v30 = vmax.f32 %v11690_v33, 0.0  ;;  %v11691_v12 = vld [vmem:[#allocation14_spill] sm:$0xff]  ;;  %v1639_v59 = vld [vmem:[#allocation2 + $0x39] sm:$0xff] }
 0x1dc   :  { %1476 = vst.msk [vmem:[#allocation2 + $0x1e1] sm:$0xff] %vm663_vm2, %v1302_v25  ;;  %1477 = vst.msk [vmem:[#allocation2 + $0x1e9] sm:$0xff] %vm663_vm2, %v1303_v40  ;;  %v8106_v10 = vld [vmem:[#allocation2 + $0x10a] sm:$0xff]  ;;  %v8108_v23 = vld [vmem:[#allocation2 + $0x112] sm:$0xff]  ;;  %v1330_v44 = vmax.f32 %v11691_v12, 0.0 }
 0x1dd   :  { %1478 = vst.msk [vmem:[#allocation2 + $0x1f9] sm:$0xff] %vm663_vm2, %v1304_v57  ;;  %1479 = vst.msk [vmem:[#allocation2 + $0x201] sm:$0xff] %vm663_vm2, %v1305_v1  ;;  %v11692_v47 = vld [vmem:[#allocation16_spill] sm:$0xff]  ;;  %1772 = vrot.lane.b32.xlu1 %v1639_v59, %s6075_s0  ;;  %v1641_v38 = vld [vmem:[#allocation2 + $0x51] sm:$0xff] }
 0x1de   :  { %1480 = vst.msk [vmem:[#allocation2 + $0x211] sm:$0xff] %vm663_vm2, %v1306_v50  ;;  %1481 = vst.msk [vmem:[#allocation2 + $0x219] sm:$0xff] %vm663_vm2, %v1307_v9  ;;  %v11693_v60 = vld [vmem:[#allocation8_spill] sm:$0xff]  ;;  %v1643_v17 = vld [vmem:[#allocation2 + $0x69] sm:$0xff] }
 0x1df   :  { %1482 = vst.msk [vmem:[#allocation2 + $0x229] sm:$0xff] %vm663_vm2, %v1308_v19  ;;  %1483 = vst.msk [vmem:[#allocation2 + $0x231] sm:$0xff] %vm663_vm2, %v1309_v39  ;;  %v1642_v24 = vld [vmem:[#allocation2 + $0x61] sm:$0xff]  ;;  %v1644_v55 = vld [vmem:[#allocation2 + $0x79] sm:$0xff] }
 0x1e0   :  { %1484 = vst.msk [vmem:[#allocation2 + $0x241] sm:$0xff] %vm663_vm2, %v1310_v34  ;;  %1485 = vst.msk [vmem:[#allocation2 + $0x249] sm:$0xff] %vm663_vm2, %v1311_v22  ;;  %1778 = vrot.lane.b32.xlu0 %v1642_v24, %s6075_s0  ;;  %v1646_v25 = vld [vmem:[#allocation2 + $0x91] sm:$0xff]  ;;  %v1645_v40 = vld [vmem:[#allocation2 + $0x81] sm:$0xff] }
 0x1e1   :  { %1486 = vst.msk [vmem:[#allocation2 + $0x259] sm:$0xff] %vm663_vm2, %v1312_v11  ;;  %1487 = vst.msk [vmem:[#allocation2 + $0x261] sm:$0xff] %vm663_vm2, %v1313_v52  ;;  %1776 = vrot.lane.b32.xlu1 %v1641_v38, %s6075_s0  ;;  %v1648_v57 = vld [vmem:[#allocation2 + $0xa9] sm:$0xff]  ;;  %v1647_v1 = vld [vmem:[#allocation2 + $0x99] sm:$0xff] }
 0x1e2   :  { %4394 = vst.msk [vmem:[#allocation3 + $0x8] sm:$0xff] %vm663_vm2, %v8081_v21  ;;  %4395 = vst.msk [vmem:[#allocation3 + $0x18] sm:$0xff] %vm663_vm2, %v8083_v7  ;;  %v8157_v53 = vld [vmem:[#allocation2 + $0x30] sm:$0xff]  ;;  %v1650_v50 = vld [vmem:[#allocation2 + $0xc1] sm:$0xff] }
 0x1e3   :  { %1488 = vst.msk [vmem:[#allocation2 + $0x271] sm:$0xff] %vm663_vm2, %v1314_v29  ;;  %1489 = vst.msk [vmem:[#allocation2 + $0x279] sm:$0xff] %vm663_vm2, %v1315_v3  ;;  %v8166_v9 = vld [vmem:[#allocation2 + $0x48] sm:$0xff]  ;;  %v8171_v19 = vld [vmem:[#allocation2 + $0x20] sm:$0xff] }
 0x1e4   :  { %1490 = vst.msk [vmem:[#allocation2 + $0x289] sm:$0xff] %vm663_vm2, %v1316_v51  ;;  %1491 = vst.msk [vmem:[#allocation2 + $0x291] sm:$0xff] %vm663_vm2, %v1317_v63  ;;  %1782 = vrot.lane.b32.xlu0 %v1644_v55, %s6075_s0  ;;  %v8173_v14 = vld [vmem:[#allocation2 + $0x60] sm:$0xff]  ;;  %v8175_v39 = vld [vmem:[#allocation2 + $0x38] sm:$0xff] }
 0x1e5   :  { %1492 = vst.msk [vmem:[#allocation2 + $0x2a1] sm:$0xff] %vm663_vm2, %v1318_v31  ;;  %1493 = vst.msk [vmem:[#allocation2 + $0x2a9] sm:$0xff] %vm663_vm2, %v1319_v15  ;;  %1780 = vrot.lane.b32.xlu1 %v1643_v17, %s6075_s0  ;;  %v8183_v54 = vld [vmem:[#allocation2 + $0x78] sm:$0xff]  ;;  %v8187_v34 = vld [vmem:[#allocation2 + $0x50] sm:$0xff] }
 0x1e6   :  { %1494 = vst.msk [vmem:[#allocation2 + $0x2b9] sm:$0xff] %vm663_vm2, %v1320_v8  ;;  %1495 = vst.msk [vmem:[#allocation2 + $0x2c1] sm:$0xff] %vm663_vm2, %v1321_v4  ;;  %v1649_v48 = vld [vmem:[#allocation2 + $0xb1] sm:$0xff]  ;;  %v1652_v11 = vld [vmem:[#allocation2 + $0xd9] sm:$0xff] }
 0x1e7   :  { %4412 = vst.msk [vmem:[#allocation3 + $0x128] sm:$0xff] %vm663_vm2, %v8106_v10  ;;  %4413 = vst.msk [vmem:[#allocation3 + $0x138] sm:$0xff] %vm663_vm2, %v8108_v23  ;;  %v8189_v22 = vld [vmem:[#allocation2 + $0x90] sm:$0xff]  ;;  %v8196_v52 = vld [vmem:[#allocation2 + $0x68] sm:$0xff] }
 0x1e8   :  { %1496 = vst.msk [vmem:[#allocation2 + $0x2d1] sm:$0xff] %vm663_vm2, %v1322_v58  ;;  %1497 = vst.msk [vmem:[#allocation2 + $0x2d9] sm:$0xff] %vm663_vm2, %v1323_v56  ;;  %1786 = vrot.lane.b32.xlu0 %v1646_v25, %s6075_s0  ;;  %v8203_v29 = vld [vmem:[#allocation2 + $0x80] sm:$0xff]  ;;  %v8211_v3 = vld [vmem:[#allocation2 + $0x98] sm:$0xff] }
 0x1e9   :  { %1498 = vst.msk [vmem:[#allocation2 + $0x2e9] sm:$0xff] %vm663_vm2, %v1324_v13  ;;  %1499 = vst.msk [vmem:[#allocation2 + $0x2f1] sm:$0xff] %vm663_vm2, %v1325_v46  ;;  %1784 = vrot.lane.b32.xlu1 %v1645_v40, %s6075_s0  ;;  %v8209_v27 = vld [vmem:[#allocation2 + $0xc0] sm:$0xff]  ;;  %v1651_v26 = vld [vmem:[#allocation2 + $0xc9] sm:$0xff] }
 0x1ea   :  { %1500 = vst.msk [vmem:[#allocation2 + $0x301] sm:$0xff] %vm663_vm2, %v1326_v45  ;;  %1501 = vst.msk [vmem:[#allocation2 + $0x309] sm:$0xff] %vm663_vm2, %v1327_v16  ;;  %v8217_v51 = vld [vmem:[#allocation2 + $0xd8] sm:$0xff]  ;;  %v8222_v31 = vld [vmem:[#allocation2 + $0xb0] sm:$0xff] }
 0x1eb   :  { %1502 = vst.msk [vmem:[#allocation2 + $0x319] sm:$0xff] %vm663_vm2, %v1328_v30  ;;  %1504 = vst.msk [vmem:[#allocation2 + $0x331] sm:$0xff] %vm663_vm2, %v1330_v44  ;;  %v1654_v63 = vld [vmem:[#allocation2 + $0xf1] sm:$0xff]  ;;  %v8229_v61 = vld [vmem:[#allocation2 + $0xc8] sm:$0xff] }
 0x1ec   :  { %1955 = vst.msk [vmem:[#allocation3] sm:$0xff] %vm1954_vm4, %v11692_v47  ;;  %1956 = vst.msk [vmem:[#allocation3 + $0x10] sm:$0xff] %vm1954_vm4, %v11693_v60  ;;  %1790 = vrot.lane.b32.xlu0 %v1648_v57, %s6075_s0  ;;  %v8227_v15 = vld [vmem:[#allocation2 + $0xf0] sm:$0xff]  ;;  %v8235_v8 = vld [vmem:[#allocation2 + $0x108] sm:$0xff] }
 0x1ed   :  { %1988 = vst.msk [vmem:[#allocation3 + $0x210] sm:$0xff] %vm1954_vm4, %v7999_v28  ;;  %1987 = vst.msk [vmem:[#allocation3 + $0x200] sm:$0xff] %vm1954_vm4, %v8017_v32  ;;  %v4459_v28 = vld [vmem:[#allocation3 + $0x8] sm:$0xff]  ;;  %v4461_v32 = vld [vmem:[#allocation3 + $0x18] sm:$0xff]  ;;  %1788 = vrot.lane.b32.xlu1 %v1647_v1, %s6075_s0 }
 0x1ee   :  { %1505 = vst.msk [vmem:[#allocation2 + $0x339] sm:$0xff] %vm663_vm2, %v1331_v18  ;;  %v4587_v37 = vpack.c.bf16 %v4461_v32, %v4459_v28  ;;  %v4495_v41 = vld [vmem:[#allocation3 + $0x128] sm:$0xff]  ;;  %v4497_v36 = vld [vmem:[#allocation3 + $0x138] sm:$0xff]  ;;  %1574 = vst.msk [vmem:[#allocation3 + $0x40] sm:$0xff] %vm663_vm2, %v8157_v53 }
 0x1ef   :  { %2341 = vst.msk [vmem:[#allocation3 + $0x10] sm:$0xff] %vm2339_vm5, %v8051_v43  ;;  %2340 = vst.msk [vmem:[#allocation3] sm:$0xff] %vm2339_vm5, %v8071_v49  ;;  %v4605_v62 = vpack.c.bf16 %v4497_v36, %v4495_v41  ;;  %v8159_v43 = vld [vmem:[#allocation2 + $0x18] sm:$0xff]  ;;  %v8201_v49 = vld [vmem:[#allocation2 + $0xa8] sm:$0xff] }
 0x1f0   :  { %2373 = vst.msk [vmem:[#allocation3 + $0x210] sm:$0xff] %vm2339_vm5, %v2214_v0  ;;  %2372 = vst.msk [vmem:[#allocation3 + $0x200] sm:$0xff] %vm2339_vm5, %v2212_v6  ;;  %5859 = vmatprep.mubr.msk.bf16.mxu0 %vm663_vm2, %v4587_v37  ;;  %1794 = vrot.lane.b32.xlu0 %v1650_v50, %s6075_s0  ;;  %v8237_v4 = vld [vmem:[#allocation2 + $0xe0] sm:$0xff]  ;;  %v1656_v58 = vld [vmem:[#allocation2 + $0x109] sm:$0xff] }
 0x1f1   :  { %5868 = vmatprep.mubr.msk.bf16.mxu1 %vm663_vm2, %v4605_v62  ;;  %1572 = vst.msk [vmem:[#allocation3 + $0x20] sm:$0xff] %vm663_vm2, %v8159_v43  ;;  %1576 = vst.msk [vmem:[#allocation3 + $0x60] sm:$0xff] %vm663_vm2, %v8166_v9  ;;  %1792 = vrot.lane.b32.xlu1 %v1649_v48, %s6075_s0  ;;  %v1653_v42 = vld [vmem:[#allocation2 + $0xe1] sm:$0xff]  ;;  %v8248_v35 = vld [vmem:[#allocation2 + $0xf8] sm:$0xff] }
 0x1f2   :  { %1573 = vst.msk [vmem:[#allocation3 + $0x30] sm:$0xff] %vm663_vm2, %v8171_v19  ;;  %1578 = vst.msk [vmem:[#allocation3 + $0x80] sm:$0xff] %vm663_vm2, %v8173_v14  ;;  %v8243_v2 = vld [vmem:[#allocation2 + $0x120] sm:$0xff]  ;;  %v8250_v56 = vld [vmem:[#allocation2 + $0x138] sm:$0xff] }
 0x1f3   :  { %1575 = vst.msk [vmem:[#allocation3 + $0x50] sm:$0xff] %vm663_vm2, %v8175_v39  ;;  %1580 = vst.msk [vmem:[#allocation3 + $0xa0] sm:$0xff] %vm663_vm2, %v8183_v54  ;;  %v8257_v13 = vld [vmem:[#allocation2 + $0x110] sm:$0xff]  ;;  %v8263_v20 = vld [vmem:[#allocation2 + $0x128] sm:$0xff] }
 0x1f4   :  { %1577 = vst.msk [vmem:[#allocation3 + $0x70] sm:$0xff] %vm663_vm2, %v8187_v34  ;;  %1582 = vst.msk [vmem:[#allocation3 + $0xc0] sm:$0xff] %vm663_vm2, %v8189_v22  ;;  %1798 = vrot.lane.b32.xlu0 %v1652_v11, %s6075_s0  ;;  %v8261_v46 = vld [vmem:[#allocation2 + $0x150] sm:$0xff]  ;;  %v1655_v45 = vld [vmem:[#allocation2 + $0xf9] sm:$0xff] }
 0x1f5   :  { %1579 = vst.msk [vmem:[#allocation3 + $0x90] sm:$0xff] %vm663_vm2, %v8196_v52  ;;  %1584 = vst.msk [vmem:[#allocation3 + $0xe0] sm:$0xff] %vm663_vm2, %v8201_v49  ;;  %1796 = vrot.lane.b32.xlu1 %v1651_v26, %s6075_s0  ;;  %v8269_v5 = vld [vmem:[#allocation2 + $0x168] sm:$0xff]  ;;  %v8271_v16 = vld [vmem:[#allocation2 + $0x140] sm:$0xff] }
 0x1f6   :  { %1581 = vst.msk [vmem:[#allocation3 + $0xb0] sm:$0xff] %vm663_vm2, %v8203_v29  ;;  %1586 = vst.msk [vmem:[#allocation3 + $0x100] sm:$0xff] %vm663_vm2, %v8209_v27  ;;  %v1658_v33 = vld [vmem:[#allocation2 + $0x121] sm:$0xff]  ;;  %v8280_v12 = vld [vmem:[#allocation2 + $0x158] sm:$0xff] }
 0x1f7   :  { %1583 = vst.msk [vmem:[#allocation3 + $0xd0] sm:$0xff] %vm663_vm2, %v8211_v3  ;;  %1588 = vst.msk [vmem:[#allocation3 + $0x120] sm:$0xff] %vm663_vm2, %v8217_v51  ;;  %v8278_v30 = vld [vmem:[#allocation2 + $0x1c8] sm:$0xff]  ;;  %v8287_v44 = vld [vmem:[#allocation2 + $0x1e0] sm:$0xff] }
 0x1f8   :  { %1802 = vrot.lane.b32.xlu0 %v1654_v63, %s6075_s0  ;;  %1585 = vst.msk [vmem:[#allocation3 + $0xf0] sm:$0xff] %vm663_vm2, %v8222_v31  ;;  %1590 = vst.msk [vmem:[#allocation3 + $0x140] sm:$0xff] %vm663_vm2, %v8227_v15  ;;  %v8291_v0 = vld [vmem:[#allocation2 + $0x170] sm:$0xff]  ;;  %v8295_v59 = vld [vmem:[#allocation2 + $0x1f8] sm:$0xff] }
 0x1f9   :  { %1587 = vst.msk [vmem:[#allocation3 + $0x110] sm:$0xff] %vm663_vm2, %v8229_v61  ;;  %1592 = vst.msk [vmem:[#allocation3 + $0x160] sm:$0xff] %vm663_vm2, %v8235_v8  ;;  %1800 = vrot.lane.b32.xlu1 %v1653_v42, %s6075_s0  ;;  %v1657_v18 = vld [vmem:[#allocation2 + $0x111] sm:$0xff]  ;;  %v1660_v60 = vld [vmem:[#allocation2 + $0x139] sm:$0xff] }
 0x1fa   :  { %1589 = vst.msk [vmem:[#allocation3 + $0x130] sm:$0xff] %vm663_vm2, %v8237_v4  ;;  %1594 = vst.msk [vmem:[#allocation3 + $0x180] sm:$0xff] %vm663_vm2, %v8243_v2  ;;  %v8297_v47 = vld [vmem:[#allocation2 + $0x1d0] sm:$0xff]  ;;  %v8306_v24 = vld [vmem:[#allocation2 + $0x1e8] sm:$0xff] }
 0x1fb   :  { %1591 = vst.msk [vmem:[#allocation3 + $0x150] sm:$0xff] %vm663_vm2, %v8248_v35  ;;  %1596 = vst.msk [vmem:[#allocation3 + $0x1a0] sm:$0xff] %vm663_vm2, %v8250_v56  ;;  %v8304_v6 = vld [vmem:[#allocation2 + $0x210] sm:$0xff]  ;;  %v8313_v28 = vld [vmem:[#allocation2 + $0x228] sm:$0xff] }
 0x1fc   :  { %1806 = vrot.lane.b32.xlu0 %v1656_v58, %s6075_s0  ;;  %1593 = vst.msk [vmem:[#allocation3 + $0x170] sm:$0xff] %vm663_vm2, %v8257_v13  ;;  %1598 = vst.msk [vmem:[#allocation3 + $0x1c0] sm:$0xff] %vm663_vm2, %v8261_v46  ;;  %v8317_v32 = vld [vmem:[#allocation2 + $0x200] sm:$0xff]  ;;  %v1659_v37 = vld [vmem:[#allocation2 + $0x129] sm:$0xff] }
 0x1fd   :  { %1595 = vst.msk [vmem:[#allocation3 + $0x190] sm:$0xff] %vm663_vm2, %v8263_v20  ;;  %1804 = vrot.lane.b32.xlu1 %v1655_v45, %s6075_s0  ;;  %1600 = vst.msk [vmem:[#allocation3 + $0x1e0] sm:$0xff] %vm663_vm2, %v8269_v5  ;;  %v8321_v38 = vld [vmem:[#allocation2 + $0x240] sm:$0xff]  ;;  %v8323_v41 = vld [vmem:[#allocation2 + $0x218] sm:$0xff] }
 0x1fe   :  { %1597 = vst.msk [vmem:[#allocation3 + $0x1b0] sm:$0xff] %vm663_vm2, %v8271_v16  ;;  %1604 = vst.msk [vmem:[#allocation3 + $0x220] sm:$0xff] %vm663_vm2, %v8278_v30  ;;  %v1662_v36 = vld [vmem:[#allocation2 + $0x151] sm:$0xff]  ;;  %v8343_v25 = vld [vmem:[#allocation2 + $0x248] sm:$0xff] }
 0x1ff   :  { %1599 = vst.msk [vmem:[#allocation3 + $0x1d0] sm:$0xff] %vm663_vm2, %v8280_v12  ;;  %1606 = vst.msk [vmem:[#allocation3 + $0x240] sm:$0xff] %vm663_vm2, %v8287_v44  ;;  %v8330_v55 = vld [vmem:[#allocation2 + $0x258] sm:$0xff]  ;;  %v8332_v62 = vld [vmem:[#allocation2 + $0x230] sm:$0xff] }
 0x200   :  { %1810 = vrot.lane.b32.xlu0 %v1658_v33, %s6075_s0  ;;  %1601 = vst.msk [vmem:[#allocation3 + $0x1f0] sm:$0xff] %vm663_vm2, %v8291_v0  ;;  %1608 = vst.msk [vmem:[#allocation3 + $0x260] sm:$0xff] %vm663_vm2, %v8295_v59  ;;  %v8339_v17 = vld [vmem:[#allocation2 + $0x270] sm:$0xff]  ;;  %v1661_v40 = vld [vmem:[#allocation2 + $0x141] sm:$0xff] }
 0x201   :  { %1808 = vrot.lane.b32.xlu1 %v1657_v18, %s6075_s0  ;;  %1605 = vst.msk [vmem:[#allocation3 + $0x230] sm:$0xff] %vm663_vm2, %v8297_v47  ;;  %1610 = vst.msk [vmem:[#allocation3 + $0x280] sm:$0xff] %vm663_vm2, %v8304_v6  ;;  %v8347_v57 = vld [vmem:[#allocation2 + $0x288] sm:$0xff]  ;;  %v8349_v1 = vld [vmem:[#allocation2 + $0x260] sm:$0xff] }
 0x202   :  { %1607 = vst.msk [vmem:[#allocation3 + $0x250] sm:$0xff] %vm663_vm2, %v8306_v24  ;;  %1612 = vst.msk [vmem:[#allocation3 + $0x2a0] sm:$0xff] %vm663_vm2, %v8313_v28  ;;  %v1664_v50 = vld [vmem:[#allocation2 + $0x169] sm:$0xff]  ;;  %v8356_v48 = vld [vmem:[#allocation2 + $0x2a0] sm:$0xff] }
 0x203   :  { %1609 = vst.msk [vmem:[#allocation3 + $0x270] sm:$0xff] %vm663_vm2, %v8317_v32  ;;  %1614 = vst.msk [vmem:[#allocation3 + $0x2c0] sm:$0xff] %vm663_vm2, %v8321_v38  ;;  %v8358_v11 = vld [vmem:[#allocation2 + $0x278] sm:$0xff]  ;;  %v8369_v63 = vld [vmem:[#allocation2 + $0x290] sm:$0xff] }
 0x204   :  { %1814 = vrot.lane.b32.xlu0 %v1660_v60, %s6075_s0  ;;  %1611 = vst.msk [vmem:[#allocation3 + $0x290] sm:$0xff] %vm663_vm2, %v8323_v41  ;;  %1616 = vst.msk [vmem:[#allocation3 + $0x2e0] sm:$0xff] %vm663_vm2, %v8330_v55  ;;  %v8365_v26 = vld [vmem:[#allocation2 + $0x2b8] sm:$0xff]  ;;  %v8373_v58 = vld [vmem:[#allocation2 + $0x2d0] sm:$0xff] }
 0x205   :  { %1812 = vrot.lane.b32.xlu1 %v1659_v37, %s6075_s0  ;;  %1613 = vst.msk [vmem:[#allocation3 + $0x2b0] sm:$0xff] %vm663_vm2, %v8332_v62  ;;  %1618 = vst.msk [vmem:[#allocation3 + $0x300] sm:$0xff] %vm663_vm2, %v8339_v17  ;;  %v1663_v42 = vld [vmem:[#allocation2 + $0x159] sm:$0xff]  ;;  %v8375_v45 = vld [vmem:[#allocation2 + $0x2a8] sm:$0xff] }
 0x206   :  { %1615 = vst.msk [vmem:[#allocation3 + $0x2d0] sm:$0xff] %vm663_vm2, %v8343_v25  ;;  %1620 = vst.msk [vmem:[#allocation3 + $0x320] sm:$0xff] %vm663_vm2, %v8347_v57  ;;  %v1668_v33 = vld [vmem:[#allocation2 + $0x1c9] sm:$0xff]  ;;  %v8384_v60 = vld [vmem:[#allocation2 + $0x2c0] sm:$0xff] }
 0x207   :  { %1617 = vst.msk [vmem:[#allocation3 + $0x2f0] sm:$0xff] %vm663_vm2, %v8349_v1  ;;  %1622 = vst.msk [vmem:[#allocation3 + $0x340] sm:$0xff] %vm663_vm2, %v8356_v48  ;;  %v8382_v18 = vld [vmem:[#allocation2 + $0x2e8] sm:$0xff]  ;;  %v8391_v37 = vld [vmem:[#allocation2 + $0x300] sm:$0xff] }
 0x208   :  { %1818 = vrot.lane.b32.xlu0 %v1662_v36, %s6075_s0  ;;  %1619 = vst.msk [vmem:[#allocation3 + $0x310] sm:$0xff] %vm663_vm2, %v8358_v11  ;;  %1624 = vst.msk [vmem:[#allocation3 + $0x360] sm:$0xff] %vm663_vm2, %v8365_v26  ;;  %v8395_v36 = vld [vmem:[#allocation2 + $0x2d8] sm:$0xff] }
 0x209   :  { %1816 = vrot.lane.b32.xlu1 %v1661_v40, %s6075_s0  ;;  %1621 = vst.msk [vmem:[#allocation3 + $0x330] sm:$0xff] %vm663_vm2, %v8369_v63  ;;  %11694 = vst [vmem:[#allocation22_spill] sm:$0xff] %v8373_v58  ;;  %v1665_v40 = vld [vmem:[#allocation2 + $0x171] sm:$0xff] }
 0x20a   :  { %1626 = vst.msk [vmem:[#allocation3 + $0x380] sm:$0xff] %vm663_vm2, %v8373_v58  ;;  %1623 = vst.msk [vmem:[#allocation3 + $0x350] sm:$0xff] %vm663_vm2, %v8375_v45  ;;  %v8578_v58 = vld [vmem:[#allocation2 + $0x25a] sm:$0xff] }
 0x20b   :  { %11695 = vst [vmem:[#allocation25_spill] sm:$0xff] %v8382_v18  ;;  %11696 = vst [vmem:[#allocation5_spill] sm:$0xff] %v8384_v60 }
 0x20c   :  { %1822 = vrot.lane.b32.xlu0 %v1664_v50, %s6075_s0  ;;  %1628 = vst.msk [vmem:[#allocation3 + $0x3a0] sm:$0xff] %vm663_vm2, %v8382_v18  ;;  %1625 = vst.msk [vmem:[#allocation3 + $0x370] sm:$0xff] %vm663_vm2, %v8384_v60  ;;  %v8399_v50 = vld [vmem:[#allocation2 + $0x318] sm:$0xff]  ;;  %v8425_v60 = vld [vmem:[#allocation2 + $0x12a] sm:$0xff] }
 0x20d   :  { %1820 = vrot.lane.b32.xlu1 %v1663_v42, %s6075_s0  ;;  %11697 = vst [vmem:[#allocation24_spill] sm:$0xff] %v8391_v37  ;;  %1630 = vst.msk [vmem:[#allocation3 + $0x3c0] sm:$0xff] %vm663_vm2, %v8391_v37  ;;  %v8401_v42 = vld [vmem:[#allocation2 + $0x2f0] sm:$0xff]  ;;  %v8408_v37 = vld [vmem:[#allocation2 + $0x308] sm:$0xff] }
 0x20e   :  { %11698 = vst [vmem:[#allocation26_spill] sm:$0xff] %v8395_v36  ;;  %1627 = vst.msk [vmem:[#allocation3 + $0x390] sm:$0xff] %vm663_vm2, %v8395_v36  ;;  %v8413_v36 = vld [vmem:[#allocation2 + $0x320] sm:$0xff]  ;;  %v1669_v18 = vld [vmem:[#allocation2 + $0x1d1] sm:$0xff] }
 0x20f   :  { %11699 = vst [vmem:[#allocation10_spill] sm:$0xff] %v8399_v50  ;;  %11700 = vst [vmem:[#allocation13_spill] sm:$0xff] %v8401_v42 }
 0x210   :  { %1830 = vrot.lane.b32.xlu0 %v1668_v33, %s6075_s0  ;;  %v1670_v33 = vld [vmem:[#allocation2 + $0x1e1] sm:$0xff]  ;;  %1632 = vst.msk [vmem:[#allocation3 + $0x3e0] sm:$0xff] %vm663_vm2, %v8399_v50  ;;  %1629 = vst.msk [vmem:[#allocation3 + $0x3b0] sm:$0xff] %vm663_vm2, %v8401_v42  ;;  %v1671_v50 = vld [vmem:[#allocation2 + $0x1e9] sm:$0xff] }
 0x211   :  { %1824 = vrot.lane.b32.xlu1 %v1665_v40, %s6075_s0  ;;  %11701 = vst [vmem:[#allocation15_spill] sm:$0xff] %v8408_v37  ;;  %1631 = vst.msk [vmem:[#allocation3 + $0x3d0] sm:$0xff] %vm663_vm2, %v8408_v37  ;;  %v1672_v40 = vld [vmem:[#allocation2 + $0x1f9] sm:$0xff]  ;;  %v1674_v42 = vld [vmem:[#allocation2 + $0x211] sm:$0xff] }
 0x212   :  { %11702 = vst [vmem:[#allocation12_spill] sm:$0xff] %v8413_v36  ;;  %1633 = vst.msk [vmem:[#allocation3 + $0x3f0] sm:$0xff] %vm663_vm2, %v8413_v36  ;;  %v1673_v37 = vld [vmem:[#allocation2 + $0x201] sm:$0xff]  ;;  %v1676_v36 = vld [vmem:[#allocation2 + $0x229] sm:$0xff] }
 0x213   :  { %11704 = vst [vmem:[#allocation19_spill] sm:$0xff] %v8425_v60  ;;  %4415 = vst.msk [vmem:[#allocation3 + $0x158] sm:$0xff] %vm663_vm2, %v8425_v60  ;;  %v8443_v60 = vld [vmem:[#allocation2 + $0x15a] sm:$0xff] }
 0x214   :  { %1834 = vrot.lane.b32.xlu0 %v1670_v33, %s6075_s0  ;;  %v8421_v33 = vld [vmem:[#allocation2 + $0x122] sm:$0xff]  ;;  %11708 = vst [vmem:[#allocation20_spill] sm:$0xff] %v8443_v60  ;;  %4419 = vst.msk [vmem:[#allocation3 + $0x198] sm:$0xff] %vm663_vm2, %v8443_v60  ;;  %v1682_v60 = vld [vmem:[#allocation2 + $0x271] sm:$0xff] }
 0x215   :  { %1832 = vrot.lane.b32.xlu1 %v1669_v18, %s6075_s0  ;;  %11703 = vst [vmem:[#allocation17_spill] sm:$0xff] %v8421_v33  ;;  %4414 = vst.msk [vmem:[#allocation3 + $0x148] sm:$0xff] %vm663_vm2, %v8421_v33  ;;  %v8431_v18 = vld [vmem:[#allocation2 + $0x13a] sm:$0xff]  ;;  %v8451_v33 = vld [vmem:[#allocation2 + $0x52] sm:$0xff] }
 0x216   :  { %11705 = vst [vmem:[#allocation18_spill] sm:$0xff] %v8431_v18  ;;  %4416 = vst.msk [vmem:[#allocation3 + $0x168] sm:$0xff] %vm663_vm2, %v8431_v18  ;;  %v1677_v18 = vld [vmem:[#allocation2 + $0x231] sm:$0xff] }
 0x217   :  { %11710 = vst [vmem:[#allocation4_spill] sm:$0xff] %v8451_v33  ;;  %4397 = vst.msk [vmem:[#allocation3 + $0x38] sm:$0xff] %vm663_vm2, %v8451_v33  ;;  %v8487_v33 = vld [vmem:[#allocation2 + $0x82] sm:$0xff] }
 0x218   :  { %1838 = vrot.lane.b32.xlu0 %v1672_v40, %s6075_s0  ;;  %v1678_v40 = vld [vmem:[#allocation2 + $0x241] sm:$0xff]  ;;  %11718 = vst [vmem:[#allocation28_spill] sm:$0xff] %v8487_v33  ;;  %4401 = vst.msk [vmem:[#allocation3 + $0x78] sm:$0xff] %vm663_vm2, %v8487_v33  ;;  %v1690_v33 = vld [vmem:[#allocation2 + $0x2d1] sm:$0xff] }
 0x219   :  { %1836 = vrot.lane.b32.xlu1 %v1671_v50, %s6075_s0  ;;  %v8433_v50 = vld [vmem:[#allocation2 + $0x142] sm:$0xff]  ;;  %11737 = vst [vmem:[#allocation47_spill] sm:$0xff] %v8578_v58  ;;  %4436 = vst.msk [vmem:[#allocation3 + $0x2a8] sm:$0xff] %vm663_vm2, %v8578_v58  ;;  %v8623_v58 = vld [vmem:[#allocation2 + $0x2ba] sm:$0xff] }
 0x21a   :  { %11706 = vst [vmem:[#allocation21_spill] sm:$0xff] %v8433_v50  ;;  %4417 = vst.msk [vmem:[#allocation3 + $0x178] sm:$0xff] %vm663_vm2, %v8433_v50  ;;  %v8463_v50 = vld [vmem:[#allocation2 + $0x62] sm:$0xff] }
 0x21b   :  { %11713 = vst [vmem:[#allocation11_spill] sm:$0xff] %v8463_v50  ;;  %4398 = vst.msk [vmem:[#allocation3 + $0x48] sm:$0xff] %vm663_vm2, %v8463_v50  ;;  %v1681_v50 = vld [vmem:[#allocation2 + $0x261] sm:$0xff] }
 0x21c   :  { %1842 = vrot.lane.b32.xlu0 %v1674_v42, %s6075_s0  ;;  %v1675_v42 = vld [vmem:[#allocation2 + $0x219] sm:$0xff]  ;;  %11743 = vst [vmem:[#allocation53_spill] sm:$0xff] %v8623_v58  ;;  %4444 = vst.msk [vmem:[#allocation3 + $0x328] sm:$0xff] %vm663_vm2, %v8623_v58 }
 0x21d   :  { %1840 = vrot.lane.b32.xlu1 %v1673_v37, %s6075_s0  ;;  %v8440_v37 = vld [vmem:[#allocation2 + $0x152] sm:$0xff] }
 0x21e   :  { %11707 = vst [vmem:[#allocation23_spill] sm:$0xff] %v8440_v37  ;;  %4418 = vst.msk [vmem:[#allocation3 + $0x188] sm:$0xff] %vm663_vm2, %v8440_v37  ;;  %v8461_v37 = vld [vmem:[#allocation2 + $0x172] sm:$0xff] }
 0x21f   :  { %11712 = vst [vmem:[#allocation9_spill] sm:$0xff] %v8461_v37  ;;  %4421 = vst.msk [vmem:[#allocation3 + $0x1b8] sm:$0xff] %vm663_vm2, %v8461_v37  ;;  %v8483_v37 = vld [vmem:[#allocation2 + $0x7a] sm:$0xff] }
 0x220   :  { %1846 = vrot.lane.b32.xlu0 %v1676_v36, %s6075_s0  ;;  %v8447_v36 = vld [vmem:[#allocation2 + $0x4a] sm:$0xff]  ;;  %11717 = vst [vmem:[#allocation27_spill] sm:$0xff] %v8483_v37  ;;  %4400 = vst.msk [vmem:[#allocation3 + $0x68] sm:$0xff] %vm663_vm2, %v8483_v37  ;;  %v8501_v37 = vld [vmem:[#allocation2 + $0x9a] sm:$0xff] }
 0x221   :  { %1844 = vrot.lane.b32.xlu1 %v1675_v42, %s6075_s0  ;;  %11709 = vst [vmem:[#allocation7_spill] sm:$0xff] %v8447_v36  ;;  %4396 = vst.msk [vmem:[#allocation3 + $0x28] sm:$0xff] %vm663_vm2, %v8447_v36  ;;  %v1680_v42 = vld [vmem:[#allocation2 + $0x259] sm:$0xff]  ;;  %v8471_v36 = vld [vmem:[#allocation2 + $0x6a] sm:$0xff] }
 0x222   :  { %11714 = vst [vmem:[#allocation14_spill] sm:$0xff] %v8471_v36  ;;  %4399 = vst.msk [vmem:[#allocation3 + $0x58] sm:$0xff] %vm663_vm2, %v8471_v36  ;;  %v1686_v36 = vld [vmem:[#allocation2 + $0x2a1] sm:$0xff] }
 0x223   :  { %11720 = vst [vmem:[#allocation30_spill] sm:$0xff] %v8501_v37  ;;  %4403 = vst.msk [vmem:[#allocation3 + $0x98] sm:$0xff] %vm663_vm2, %v8501_v37  ;;  %v8519_v37 = vld [vmem:[#allocation2 + $0xb2] sm:$0xff] }
 0x224   :  { %1850 = vrot.lane.b32.xlu0 %v1678_v40, %s6075_s0  ;;  %v8456_v40 = vld [vmem:[#allocation2 + $0x16a] sm:$0xff]  ;;  %11724 = vst [vmem:[#allocation34_spill] sm:$0xff] %v8519_v37  ;;  %4405 = vst.msk [vmem:[#allocation3 + $0xb8] sm:$0xff] %vm663_vm2, %v8519_v37  ;;  %v8549_v37 = vld [vmem:[#allocation2 + $0xda] sm:$0xff] }
 0x225   :  { %1848 = vrot.lane.b32.xlu1 %v1677_v18, %s6075_s0  ;;  %11711 = vst [vmem:[#allocation6_spill] sm:$0xff] %v8456_v40  ;;  %4420 = vst.msk [vmem:[#allocation3 + $0x1a8] sm:$0xff] %vm663_vm2, %v8456_v40  ;;  %v1679_v18 = vld [vmem:[#allocation2 + $0x249] sm:$0xff] }
 0x226   :  { %v8479_v40 = vld [vmem:[#allocation2 + $0x18a] sm:$0xff]  ;;  %11731 = vst [vmem:[#allocation41_spill] sm:$0xff] %v8549_v37  ;;  %4408 = vst.msk [vmem:[#allocation3 + $0xe8] sm:$0xff] %vm663_vm2, %v8549_v37 }
 0x227   :  { %11716 = vst [vmem:[#allocation8_spill] sm:$0xff] %v8479_v40  ;;  %4423 = vst.msk [vmem:[#allocation3 + $0x1d8] sm:$0xff] %vm663_vm2, %v8479_v40  ;;  %v8503_v40 = vld [vmem:[#allocation2 + $0x1e2] sm:$0xff]  ;;  %v8573_v37 = vld [vmem:[#allocation2 + $0x24a] sm:$0xff] }
 0x228   :  { %1854 = vrot.lane.b32.xlu0 %v1680_v42, %s6075_s0  ;;  %v8474_v42 = vld [vmem:[#allocation2 + $0x182] sm:$0xff]  ;;  %11721 = vst [vmem:[#allocation31_spill] sm:$0xff] %v8503_v40  ;;  %4426 = vst.msk [vmem:[#allocation3 + $0x208] sm:$0xff] %vm663_vm2, %v8503_v40  ;;  %v8522_v40 = vld [vmem:[#allocation2 + $0x1fa] sm:$0xff] }
 0x229   :  { %1852 = vrot.lane.b32.xlu1 %v1679_v18, %s6075_s0  ;;  %11715 = vst [vmem:[#allocation16_spill] sm:$0xff] %v8474_v42  ;;  %4422 = vst.msk [vmem:[#allocation3 + $0x1c8] sm:$0xff] %vm663_vm2, %v8474_v42  ;;  %v1684_v18 = vld [vmem:[#allocation2 + $0x289] sm:$0xff]  ;;  %v8495_v42 = vld [vmem:[#allocation2 + $0x92] sm:$0xff] }
 0x22a   :  { %11719 = vst [vmem:[#allocation29_spill] sm:$0xff] %v8495_v42  ;;  %4402 = vst.msk [vmem:[#allocation3 + $0x88] sm:$0xff] %vm663_vm2, %v8495_v42  ;;  %v8513_v42 = vld [vmem:[#allocation2 + $0xaa] sm:$0xff] }
 0x22b   :  { %11723 = vst [vmem:[#allocation33_spill] sm:$0xff] %v8513_v42  ;;  %4404 = vst.msk [vmem:[#allocation3 + $0xa8] sm:$0xff] %vm663_vm2, %v8513_v42  ;;  %v1689_v42 = vld [vmem:[#allocation2 + $0x2c1] sm:$0xff] }
 0x22c   :  { %1858 = vrot.lane.b32.xlu0 %v1682_v60, %s6075_s0  ;;  %v1683_v60 = vld [vmem:[#allocation2 + $0x279] sm:$0xff]  ;;  %11725 = vst [vmem:[#allocation35_spill] sm:$0xff] %v8522_v40  ;;  %4428 = vst.msk [vmem:[#allocation3 + $0x228] sm:$0xff] %vm663_vm2, %v8522_v40 }
 0x22d   :  { %1856 = vrot.lane.b32.xlu1 %v1681_v50, %s6075_s0  ;;  %v1685_v50 = vld [vmem:[#allocation2 + $0x291] sm:$0xff]  ;;  %v8545_v40 = vld [vmem:[#allocation2 + $0x21a] sm:$0xff]  ;;  %11736 = vst [vmem:[#allocation46_spill] sm:$0xff] %v8573_v37  ;;  %4435 = vst.msk [vmem:[#allocation3 + $0x298] sm:$0xff] %vm663_vm2, %v8573_v37 }
 0x22e   :  { %11730 = vst [vmem:[#allocation40_spill] sm:$0xff] %v8545_v40  ;;  %4431 = vst.msk [vmem:[#allocation3 + $0x258] sm:$0xff] %vm663_vm2, %v8545_v40  ;;  %v1696_v40 = vld [vmem:[#allocation2 + $0x319] sm:$0xff] }
 0x22f   :  { %v8594_v37 = vld [vmem:[#allocation2 + $0x27a] sm:$0xff] }
 0x230   :  { %1862 = vrot.lane.b32.xlu0 %v1684_v18, %s6075_s0  ;;  %v1688_v18 = vld [vmem:[#allocation2 + $0x2b9] sm:$0xff]  ;;  %11740 = vst [vmem:[#allocation50_spill] sm:$0xff] %v8594_v37  ;;  %4439 = vst.msk [vmem:[#allocation3 + $0x2d8] sm:$0xff] %vm663_vm2, %v8594_v37 }
 0x231   :  { %1860 = vrot.lane.b32.xlu1 %v1683_v60, %s6075_s0  ;;  %v8510_v60 = vld [vmem:[#allocation2 + $0x1ea] sm:$0xff]  ;;  %v4347_v37 = vld [vmem:[#allocation2 + $0xfa] sm:$0xff] }
 0x232   :  { %11722 = vst [vmem:[#allocation32_spill] sm:$0xff] %v8510_v60  ;;  %4427 = vst.msk [vmem:[#allocation3 + $0x218] sm:$0xff] %vm663_vm2, %v8510_v60  ;;  %v8535_v60 = vld [vmem:[#allocation2 + $0xca] sm:$0xff] }
 0x233   :  { %11728 = vst [vmem:[#allocation38_spill] sm:$0xff] %v8535_v60  ;;  %4407 = vst.msk [vmem:[#allocation3 + $0xd8] sm:$0xff] %vm663_vm2, %v8535_v60  ;;  %v8563_v60 = vld [vmem:[#allocation2 + $0x232] sm:$0xff] }
 0x234   :  { %1866 = vrot.lane.b32.xlu0 %v1686_v36, %s6075_s0  ;;  %v1687_v36 = vld [vmem:[#allocation2 + $0x2a9] sm:$0xff]  ;;  %11734 = vst [vmem:[#allocation44_spill] sm:$0xff] %v8563_v60  ;;  %4433 = vst.msk [vmem:[#allocation3 + $0x278] sm:$0xff] %vm663_vm2, %v8563_v60 }
 0x235   :  { %1864 = vrot.lane.b32.xlu1 %v1685_v50, %s6075_s0  ;;  %v8527_v50 = vld [vmem:[#allocation2 + $0x202] sm:$0xff]  ;;  %4411 = vst.msk [vmem:[#allocation3 + $0x118] sm:$0xff] %vm663_vm2, %v4347_v37  ;;  %v8641_v37 = vld [vmem:[#allocation2 + $0x2da] sm:$0xff] }
 0x236   :  { %11726 = vst [vmem:[#allocation36_spill] sm:$0xff] %v8527_v50  ;;  %4429 = vst.msk [vmem:[#allocation3 + $0x238] sm:$0xff] %vm663_vm2, %v8527_v50  ;;  %v1691_v50 = vld [vmem:[#allocation2 + $0x2d9] sm:$0xff] }
 0x237   :  { %11746 = vst [vmem:[#allocation56_spill] sm:$0xff] %v8641_v37  ;;  %4447 = vst.msk [vmem:[#allocation3 + $0x358] sm:$0xff] %vm663_vm2, %v8641_v37  ;;  %v8662_v37 = vld [vmem:[#allocation2 + $0x30a] sm:$0xff] }
 0x238   :  { %1870 = vrot.lane.b32.xlu0 %v1688_v18, %s6075_s0  ;;  %v8531_v18 = vld [vmem:[#allocation2 + $0xc2] sm:$0xff]  ;;  %11750 = vst [vmem:[#allocation60_spill] sm:$0xff] %v8662_v37  ;;  %4451 = vst.msk [vmem:[#allocation3 + $0x398] sm:$0xff] %vm663_vm2, %v8662_v37 }
 0x239   :  { %1868 = vrot.lane.b32.xlu1 %v1687_v36, %s6075_s0  ;;  %11727 = vst [vmem:[#allocation37_spill] sm:$0xff] %v8531_v18  ;;  %4406 = vst.msk [vmem:[#allocation3 + $0xc8] sm:$0xff] %vm663_vm2, %v8531_v18  ;;  %v1692_v36 = vld [vmem:[#allocation2 + $0x2e9] sm:$0xff]  ;;  %v1694_v18 = vld [vmem:[#allocation2 + $0x301] sm:$0xff] }
 0x23c   :  { %1874 = vrot.lane.b32.xlu0 %v1690_v33, %s6075_s0  ;;  %v8543_v33 = vld [vmem:[#allocation2 + $0x212] sm:$0xff] }
 0x23d   :  { %1872 = vrot.lane.b32.xlu1 %v1689_v42, %s6075_s0  ;;  %11729 = vst [vmem:[#allocation39_spill] sm:$0xff] %v8543_v33  ;;  %4430 = vst.msk [vmem:[#allocation3 + $0x248] sm:$0xff] %vm663_vm2, %v8543_v33  ;;  %v8557_v42 = vld [vmem:[#allocation2 + $0xe2] sm:$0xff]  ;;  %v1693_v33 = vld [vmem:[#allocation2 + $0x2f1] sm:$0xff] }
 0x23e   :  { %11732 = vst [vmem:[#allocation42_spill] sm:$0xff] %v8557_v42  ;;  %4409 = vst.msk [vmem:[#allocation3 + $0xf8] sm:$0xff] %vm663_vm2, %v8557_v42 }
 0x240   :  { %1878 = vrot.lane.b32.xlu0 %v1692_v36, %s6075_s0  ;;  %v8559_v36 = vld [vmem:[#allocation2 + $0x22a] sm:$0xff] }
 0x241   :  { %1876 = vrot.lane.b32.xlu1 %v1691_v50, %s6075_s0  ;;  %11733 = vst [vmem:[#allocation43_spill] sm:$0xff] %v8559_v36  ;;  %4432 = vst.msk [vmem:[#allocation3 + $0x268] sm:$0xff] %vm663_vm2, %v8559_v36  ;;  %v8571_v50 = vld [vmem:[#allocation2 + $0x242] sm:$0xff] }
 0x242   :  { %11735 = vst [vmem:[#allocation45_spill] sm:$0xff] %v8571_v50  ;;  %4434 = vst.msk [vmem:[#allocation3 + $0x288] sm:$0xff] %vm663_vm2, %v8571_v50  ;;  %v1695_v36 = vld [vmem:[#allocation2 + $0x309] sm:$0xff] }
 0x244   :  { %1882 = vrot.lane.b32.xlu0 %v1694_v18, %s6075_s0 }
 0x245   :  { %1880 = vrot.lane.b32.xlu1 %v1693_v33, %s6075_s0  ;;  %v1767_v18 = vpop.permute.xlu1 %1766  ;;  %v8587_v33 = vld [vmem:[#allocation2 + $0x262] sm:$0xff] }
 0x246   :  { %v1771_v42 = vpop.permute.xlu0 %1770  ;;  %1957 = vst.msk [vmem:[#allocation3 + $0x20] sm:$0xff] %vm1954_vm4, %v1767_v18  ;;  %11738 = vst [vmem:[#allocation48_spill] sm:$0xff] %v8587_v33  ;;  %v8589_v18 = vld [vmem:[#allocation2 + $0x272] sm:$0xff] }
 0x247   :  { %1959 = vst.msk [vmem:[#allocation3 + $0x40] sm:$0xff] %vm1954_vm4, %v1771_v42  ;;  %11739 = vst [vmem:[#allocation49_spill] sm:$0xff] %v8589_v18  ;;  %v1697_v42 = vld [vmem:[#allocation2 + $0x321] sm:$0xff] }
 0x248   :  { %1886 = vrot.lane.b32.xlu0 %v1696_v40, %s6075_s0  ;;  %v2021_v40 = vld [vmem:[#allocation2 + $0x1a] sm:$0xff]  ;;  %4437 = vst.msk [vmem:[#allocation3 + $0x2b8] sm:$0xff] %vm663_vm2, %v8587_v33  ;;  %4438 = vst.msk [vmem:[#allocation3 + $0x2c8] sm:$0xff] %vm663_vm2, %v8589_v18  ;;  %v8611_v18 = vld [vmem:[#allocation2 + $0x2a2] sm:$0xff] }
 0x249   :  { %1884 = vrot.lane.b32.xlu1 %v1695_v36, %s6075_s0  ;;  %v8604_v36 = vld [vmem:[#allocation2 + $0x28a] sm:$0xff]  ;;  %4442 = vst.msk [vmem:[#allocation3 + $0x308] sm:$0xff] %vm663_vm2, %v8611_v18 }
 0x24a   :  { %v1775_v60 = vpop.permute.xlu0 %1774  ;;  %11741 = vst [vmem:[#allocation51_spill] sm:$0xff] %v8604_v36  ;;  %4440 = vst.msk [vmem:[#allocation3 + $0x2e8] sm:$0xff] %vm663_vm2, %v8604_v36  ;;  %v4346_v36 = vld [vmem:[#allocation2 + $0xf2] sm:$0xff] }
 0x24b   :  { %v1769_v50 = vpop.permute.xlu1 %1768  ;;  %1961 = vst.msk [vmem:[#allocation3 + $0x60] sm:$0xff] %vm1954_vm4, %v1775_v60  ;;  %v2022_v60 = vld [vmem:[#allocation2 + $0x22] sm:$0xff] }
 0x24c   :  { %2151 = vrot.lane.b32.xlu0 %v2021_v40, %s6076_s22  ;;  %1958 = vst.msk [vmem:[#allocation3 + $0x30] sm:$0xff] %vm1954_vm4, %v1769_v50  ;;  %v8606_v50 = vld [vmem:[#allocation2 + $0x292] sm:$0xff] }
 0x24d   :  { %1888 = vrot.lane.b32.xlu1 %v1697_v42, %s6075_s0  ;;  %4441 = vst.msk [vmem:[#allocation3 + $0x2f8] sm:$0xff] %vm663_vm2, %v8606_v50  ;;  %v8620_v42 = vld [vmem:[#allocation2 + $0x2aa] sm:$0xff]  ;;  %4410 = vst.msk [vmem:[#allocation3 + $0x108] sm:$0xff] %vm663_vm2, %v4346_v36  ;;  %v8639_v36 = vld [vmem:[#allocation2 + $0x2d2] sm:$0xff] }
 0x24e   :  { %11742 = vst [vmem:[#allocation52_spill] sm:$0xff] %v8620_v42  ;;  %4443 = vst.msk [vmem:[#allocation3 + $0x318] sm:$0xff] %vm663_vm2, %v8620_v42  ;;  %v8646_v42 = vld [vmem:[#allocation2 + $0x2ea] sm:$0xff] }
 0x24f   :  { %v1773_v40 = vpop.permute.xlu1 %1772  ;;  %11745 = vst [vmem:[#allocation55_spill] sm:$0xff] %v8639_v36  ;;  %4446 = vst.msk [vmem:[#allocation3 + $0x348] sm:$0xff] %vm663_vm2, %v8639_v36  ;;  %v8659_v36 = vld [vmem:[#allocation2 + $0x302] sm:$0xff] }
 0x250   :  { %2155 = vrot.lane.b32.xlu0 %v8081_v21, %s6076_s22  ;;  %1960 = vst.msk [vmem:[#allocation3 + $0x50] sm:$0xff] %vm1954_vm4, %v1773_v40  ;;  %v2025_v21 = vld [vmem:[#allocation2 + $0x4a] sm:$0xff]  ;;  %11747 = vst [vmem:[#allocation57_spill] sm:$0xff] %v8646_v42 }
 0x251   :  { %2153 = vrot.lane.b32.xlu1 %v2022_v60, %s6076_s22  ;;  %v8629_v60 = vld [vmem:[#allocation2 + $0x2c2] sm:$0xff]  ;;  %4448 = vst.msk [vmem:[#allocation3 + $0x368] sm:$0xff] %vm663_vm2, %v8646_v42  ;;  %11749 = vst [vmem:[#allocation59_spill] sm:$0xff] %v8659_v36 }
 0x252   :  { %v1779_v33 = vpop.permute.xlu0 %1778  ;;  %11744 = vst [vmem:[#allocation54_spill] sm:$0xff] %v8629_v60  ;;  %4445 = vst.msk [vmem:[#allocation3 + $0x338] sm:$0xff] %vm663_vm2, %v8629_v60 }
 0x253   :  { %1963 = vst.msk [vmem:[#allocation3 + $0x80] sm:$0xff] %vm1954_vm4, %v1779_v33  ;;  %v1777_v40 = vpop.permute.xlu1 %1776 }
 0x254   :  { %2159 = vrot.lane.b32.xlu0 %v2025_v21, %s6076_s22  ;;  %1962 = vst.msk [vmem:[#allocation3 + $0x70] sm:$0xff] %vm1954_vm4, %v1777_v40  ;;  %v2027_v21 = vld [vmem:[#allocation2 + $0x62] sm:$0xff] }
 0x255   :  { %2157 = vrot.lane.b32.xlu1 %v8083_v7, %s6076_s22  ;;  %v2029_v7 = vld [vmem:[#allocation2 + $0x7a] sm:$0xff]  ;;  %4450 = vst.msk [vmem:[#allocation3 + $0x388] sm:$0xff] %vm663_vm2, %v8659_v36  ;;  %v8678_v36 = vld [vmem:[#allocation2 + $0x332] sm:$0xff] }
 0x256   :  { %v1783_v33 = vpop.permute.xlu0 %1782  ;;  %11753 = vst [vmem:[#allocation63_spill] sm:$0xff] %v8678_v36  ;;  %4454 = vst.msk [vmem:[#allocation3 + $0x3c8] sm:$0xff] %vm663_vm2, %v8678_v36 }
 0x257   :  { %1965 = vst.msk [vmem:[#allocation3 + $0xa0] sm:$0xff] %vm1954_vm4, %v1783_v33  ;;  %v1781_v40 = vpop.permute.xlu1 %1780  ;;  %v2026_v33 = vld [vmem:[#allocation2 + $0x52] sm:$0xff] }
 0x258   :  { %2163 = vrot.lane.b32.xlu0 %v2027_v21, %s6076_s22  ;;  %1964 = vst.msk [vmem:[#allocation3 + $0x90] sm:$0xff] %vm1954_vm4, %v1781_v40  ;;  %v8652_v21 = vld [vmem:[#allocation2 + $0x2f2] sm:$0xff] }
 0x259   :  { %2161 = vrot.lane.b32.xlu1 %v2026_v33, %s6076_s22  ;;  %11748 = vst [vmem:[#allocation58_spill] sm:$0xff] %v8652_v21  ;;  %4449 = vst.msk [vmem:[#allocation3 + $0x378] sm:$0xff] %vm663_vm2, %v8652_v21  ;;  %v2031_v33 = vld [vmem:[#allocation2 + $0x92] sm:$0xff] }
 0x25a   :  { %v1787_v58 = vpop.permute.xlu0 %1786 }
 0x25b   :  { %1967 = vst.msk [vmem:[#allocation3 + $0xc0] sm:$0xff] %vm1954_vm4, %v1787_v58  ;;  %v1785_v40 = vpop.permute.xlu1 %1784  ;;  %v2028_v58 = vld [vmem:[#allocation2 + $0x6a] sm:$0xff] }
 0x25c   :  { %2167 = vrot.lane.b32.xlu0 %v2029_v7, %s6076_s22  ;;  %1966 = vst.msk [vmem:[#allocation3 + $0xb0] sm:$0xff] %vm1954_vm4, %v1785_v40  ;;  %v8671_v7 = vld [vmem:[#allocation2 + $0x31a] sm:$0xff]  ;;  %v8673_v40 = vld [vmem:[#allocation2 + $0x322] sm:$0xff] }
 0x25d   :  { %2165 = vrot.lane.b32.xlu1 %v2028_v58, %s6076_s22  ;;  %11751 = vst [vmem:[#allocation61_spill] sm:$0xff] %v8671_v7  ;;  %11752 = vst [vmem:[#allocation62_spill] sm:$0xff] %v8673_v40  ;;  %v2033_v58 = vld [vmem:[#allocation2 + $0xaa] sm:$0xff] }
 0x25e   :  { %v1791_v60 = vpop.permute.xlu0 %1790  ;;  %4452 = vst.msk [vmem:[#allocation3 + $0x3a8] sm:$0xff] %vm663_vm2, %v8671_v7  ;;  %4453 = vst.msk [vmem:[#allocation3 + $0x3b8] sm:$0xff] %vm663_vm2, %v8673_v40  ;;  %v2032_v40 = vld [vmem:[#allocation2 + $0x9a] sm:$0xff] }
 0x25f   :  { %1969 = vst.msk [vmem:[#allocation3 + $0xe0] sm:$0xff] %vm1954_vm4, %v1791_v60  ;;  %v1789_v21 = vpop.permute.xlu1 %1788  ;;  %v2030_v60 = vld [vmem:[#allocation2 + $0x82] sm:$0xff] }
 0x260   :  { %2171 = vrot.lane.b32.xlu0 %v2031_v33, %s6076_s22  ;;  %1968 = vst.msk [vmem:[#allocation3 + $0xd0] sm:$0xff] %vm1954_vm4, %v1789_v21  ;;  %v8684_v33 = vld [vmem:[#allocation2 + $0x33a] sm:$0xff] }
 0x261   :  { %2169 = vrot.lane.b32.xlu1 %v2030_v60, %s6076_s22  ;;  %11754 = vst [vmem:[#allocation64_spill] sm:$0xff] %v8684_v33  ;;  %4455 = vst.msk [vmem:[#allocation3 + $0x3d8] sm:$0xff] %vm663_vm2, %v8684_v33  ;;  %v2037_v33 = vld [vmem:[#allocation2 + $0xda] sm:$0xff] }
 0x262   :  { %v1795_v42 = vpop.permute.xlu0 %1794 }
 0x263   :  { %1971 = vst.msk [vmem:[#allocation3 + $0x100] sm:$0xff] %vm1954_vm4, %v1795_v42  ;;  %v1793_v21 = vpop.permute.xlu1 %1792  ;;  %v2035_v42 = vld [vmem:[#allocation2 + $0xc2] sm:$0xff] }
 0x264   :  { %2175 = vrot.lane.b32.xlu0 %v2033_v58, %s6076_s22  ;;  %1970 = vst.msk [vmem:[#allocation3 + $0xf0] sm:$0xff] %vm1954_vm4, %v1793_v21  ;;  %v2034_v58 = vld [vmem:[#allocation2 + $0xb2] sm:$0xff] }
 0x265   :  { %2173 = vrot.lane.b32.xlu1 %v2032_v40, %s6076_s22  ;;  %v2039_v40 = vld [vmem:[#allocation2 + $0xf2] sm:$0xff] }
 0x266   :  { %v1799_v7 = vpop.permute.xlu0 %1798 }
 0x267   :  { %1973 = vst.msk [vmem:[#allocation3 + $0x120] sm:$0xff] %vm1954_vm4, %v1799_v7  ;;  %v1797_v60 = vpop.permute.xlu1 %1796  ;;  %v2036_v7 = vld [vmem:[#allocation2 + $0xca] sm:$0xff] }
 0x268   :  { %2179 = vrot.lane.b32.xlu0 %v2035_v42, %s6076_s22  ;;  %1972 = vst.msk [vmem:[#allocation3 + $0x110] sm:$0xff] %vm1954_vm4, %v1797_v60 }
 0x269   :  { %2177 = vrot.lane.b32.xlu1 %v2034_v58, %s6076_s22 }
 0x26a   :  { %v1803_v37 = vpop.permute.xlu0 %1802 }
 0x26b   :  { %1975 = vst.msk [vmem:[#allocation3 + $0x140] sm:$0xff] %vm1954_vm4, %v1803_v37  ;;  %v1801_v21 = vpop.permute.xlu1 %1800  ;;  %v2038_v37 = vld [vmem:[#allocation2 + $0xe2] sm:$0xff] }
 0x26c   :  { %2183 = vrot.lane.b32.xlu0 %v2037_v33, %s6076_s22  ;;  %1974 = vst.msk [vmem:[#allocation3 + $0x130] sm:$0xff] %vm1954_vm4, %v1801_v21  ;;  %v2043_v21 = vld [vmem:[#allocation2 + $0x122] sm:$0xff] }
 0x26d   :  { %2181 = vrot.lane.b32.xlu1 %v2036_v7, %s6076_s22 }
 0x26e   :  { %v1807_v36 = vpop.permute.xlu0 %1806 }
 0x26f   :  { %1977 = vst.msk [vmem:[#allocation3 + $0x160] sm:$0xff] %vm1954_vm4, %v1807_v36  ;;  %v1805_v42 = vpop.permute.xlu1 %1804  ;;  %v2040_v36 = vld [vmem:[#allocation2 + $0xfa] sm:$0xff] }
 0x270   :  { %2187 = vrot.lane.b32.xlu0 %v2039_v40, %s6076_s22  ;;  %1976 = vst.msk [vmem:[#allocation3 + $0x150] sm:$0xff] %vm1954_vm4, %v1805_v42  ;;  %v2045_v42 = vld [vmem:[#allocation2 + $0x13a] sm:$0xff] }
 0x271   :  { %2185 = vrot.lane.b32.xlu1 %v2038_v37, %s6076_s22  ;;  %v2044_v37 = vld [vmem:[#allocation2 + $0x12a] sm:$0xff] }
 0x272   :  { %v1811_v60 = vpop.permute.xlu0 %1810 }
 0x273   :  { %1979 = vst.msk [vmem:[#allocation3 + $0x180] sm:$0xff] %vm1954_vm4, %v1811_v60  ;;  %v1809_v33 = vpop.permute.xlu1 %1808 }
 0x274   :  { %2191 = vrot.lane.b32.xlu0 %v8106_v10, %s6076_s22  ;;  %1978 = vst.msk [vmem:[#allocation3 + $0x170] sm:$0xff] %vm1954_vm4, %v1809_v33  ;;  %v2047_v33 = vld [vmem:[#allocation2 + $0x152] sm:$0xff] }
 0x275   :  { %2189 = vrot.lane.b32.xlu1 %v2040_v36, %s6076_s22 }
 0x276   :  { %v1815_v58 = vpop.permute.xlu0 %1814 }
 0x277   :  { %1981 = vst.msk [vmem:[#allocation3 + $0x1a0] sm:$0xff] %vm1954_vm4, %v1815_v58  ;;  %v1813_v7 = vpop.permute.xlu1 %1812 }
 0x278   :  { %2195 = vrot.lane.b32.xlu0 %v2043_v21, %s6076_s22  ;;  %1980 = vst.msk [vmem:[#allocation3 + $0x190] sm:$0xff] %vm1954_vm4, %v1813_v7  ;;  %v2046_v21 = vld [vmem:[#allocation2 + $0x142] sm:$0xff] }
 0x279   :  { %2193 = vrot.lane.b32.xlu1 %v8108_v23, %s6076_s22  ;;  %v2049_v23 = vld [vmem:[#allocation2 + $0x16a] sm:$0xff] }
 0x27a   :  { %v1819_v40 = vpop.permute.xlu0 %1818 }
 0x27b   :  { %1983 = vst.msk [vmem:[#allocation3 + $0x1c0] sm:$0xff] %vm1954_vm4, %v1819_v40  ;;  %v1817_v10 = vpop.permute.xlu1 %1816 }
 0x27c   :  { %2199 = vrot.lane.b32.xlu0 %v2045_v42, %s6076_s22  ;;  %1982 = vst.msk [vmem:[#allocation3 + $0x1b0] sm:$0xff] %vm1954_vm4, %v1817_v10  ;;  %v2048_v42 = vld [vmem:[#allocation2 + $0x15a] sm:$0xff]  ;;  %v2053_v10 = vld [vmem:[#allocation2 + $0x1ca] sm:$0xff] }
 0x27d   :  { %2197 = vrot.lane.b32.xlu1 %v2044_v37, %s6076_s22 }
 0x27e   :  { %v1823_v60 = vpop.permute.xlu0 %1822 }
 0x27f   :  { %1985 = vst.msk [vmem:[#allocation3 + $0x1e0] sm:$0xff] %vm1954_vm4, %v1823_v60  ;;  %v1821_v58 = vpop.permute.xlu1 %1820 }
 0x280   :  { %2203 = vrot.lane.b32.xlu0 %v2047_v33, %s6076_s22  ;;  %1984 = vst.msk [vmem:[#allocation3 + $0x1d0] sm:$0xff] %vm1954_vm4, %v1821_v58  ;;  %v2050_v33 = vld [vmem:[#allocation2 + $0x172] sm:$0xff]  ;;  %v2055_v58 = vld [vmem:[#allocation2 + $0x1e2] sm:$0xff] }
 0x281   :  { %2201 = vrot.lane.b32.xlu1 %v2046_v21, %s6076_s22 }
 0x282   :  { %v1831_v36 = vpop.permute.xlu0 %1830 }
 0x283   :  { %1989 = vst.msk [vmem:[#allocation3 + $0x220] sm:$0xff] %vm1954_vm4, %v1831_v36  ;;  %v1825_v7 = vpop.permute.xlu1 %1824 }
 0x284   :  { %2207 = vrot.lane.b32.xlu0 %v2049_v23, %s6076_s22  ;;  %1986 = vst.msk [vmem:[#allocation3 + $0x1f0] sm:$0xff] %vm1954_vm4, %v1825_v7  ;;  %v2054_v23 = vld [vmem:[#allocation2 + $0x1d2] sm:$0xff]  ;;  %v2057_v7 = vld [vmem:[#allocation2 + $0x1fa] sm:$0xff] }
 0x285   :  { %2205 = vrot.lane.b32.xlu1 %v2048_v42, %s6076_s22 }
 0x286   :  { %v1835_v40 = vpop.permute.xlu0 %1834 }
 0x287   :  { %1991 = vst.msk [vmem:[#allocation3 + $0x240] sm:$0xff] %vm1954_vm4, %v1835_v40  ;;  %v1833_v60 = vpop.permute.xlu1 %1832 }
 0x288   :  { %2215 = vrot.lane.b32.xlu0 %v2053_v10, %s6076_s22  ;;  %1990 = vst.msk [vmem:[#allocation3 + $0x230] sm:$0xff] %vm1954_vm4, %v1833_v60  ;;  %v2056_v10 = vld [vmem:[#allocation2 + $0x1ea] sm:$0xff]  ;;  %v2059_v60 = vld [vmem:[#allocation2 + $0x212] sm:$0xff] }
 0x289   :  { %2209 = vrot.lane.b32.xlu1 %v2050_v33, %s6076_s22 }
 0x28a   :  { %v1839_v37 = vpop.permute.xlu0 %1838 }
 0x28b   :  { %1993 = vst.msk [vmem:[#allocation3 + $0x260] sm:$0xff] %vm1954_vm4, %v1839_v37  ;;  %v1837_v36 = vpop.permute.xlu1 %1836 }
 0x28c   :  { %2219 = vrot.lane.b32.xlu0 %v2055_v58, %s6076_s22  ;;  %1992 = vst.msk [vmem:[#allocation3 + $0x250] sm:$0xff] %vm1954_vm4, %v1837_v36  ;;  %v2058_v58 = vld [vmem:[#allocation2 + $0x202] sm:$0xff]  ;;  %v2061_v36 = vld [vmem:[#allocation2 + $0x22a] sm:$0xff] }
 0x28d   :  { %2217 = vrot.lane.b32.xlu1 %v2054_v23, %s6076_s22 }
 0x28e   :  { %v1843_v21 = vpop.permute.xlu0 %1842 }
 0x28f   :  { %1995 = vst.msk [vmem:[#allocation3 + $0x280] sm:$0xff] %vm1954_vm4, %v1843_v21  ;;  %v1841_v40 = vpop.permute.xlu1 %1840 }
 0x290   :  { %2223 = vrot.lane.b32.xlu0 %v2057_v7, %s6076_s22  ;;  %1994 = vst.msk [vmem:[#allocation3 + $0x270] sm:$0xff] %vm1954_vm4, %v1841_v40  ;;  %v2060_v7 = vld [vmem:[#allocation2 + $0x21a] sm:$0xff]  ;;  %v2063_v40 = vld [vmem:[#allocation2 + $0x242] sm:$0xff] }
 0x291   :  { %2221 = vrot.lane.b32.xlu1 %v2056_v10, %s6076_s22 }
 0x292   :  { %v1847_v42 = vpop.permute.xlu0 %1846 }
 0x293   :  { %1997 = vst.msk [vmem:[#allocation3 + $0x2a0] sm:$0xff] %vm1954_vm4, %v1847_v42  ;;  %v1845_v37 = vpop.permute.xlu1 %1844 }
 0x294   :  { %2227 = vrot.lane.b32.xlu0 %v2059_v60, %s6076_s22  ;;  %1996 = vst.msk [vmem:[#allocation3 + $0x290] sm:$0xff] %vm1954_vm4, %v1845_v37  ;;  %v2062_v60 = vld [vmem:[#allocation2 + $0x232] sm:$0xff]  ;;  %v2065_v37 = vld [vmem:[#allocation2 + $0x25a] sm:$0xff] }
 0x295   :  { %2225 = vrot.lane.b32.xlu1 %v2058_v58, %s6076_s22 }
 0x296   :  { %v1851_v33 = vpop.permute.xlu0 %1850 }
 0x297   :  { %1999 = vst.msk [vmem:[#allocation3 + $0x2c0] sm:$0xff] %vm1954_vm4, %v1851_v33  ;;  %v1849_v21 = vpop.permute.xlu1 %1848 }
 0x298   :  { %2231 = vrot.lane.b32.xlu0 %v2061_v36, %s6076_s22  ;;  %1998 = vst.msk [vmem:[#allocation3 + $0x2b0] sm:$0xff] %vm1954_vm4, %v1849_v21  ;;  %v2064_v36 = vld [vmem:[#allocation2 + $0x24a] sm:$0xff]  ;;  %v2067_v21 = vld [vmem:[#allocation2 + $0x272] sm:$0xff] }
 0x299   :  { %2229 = vrot.lane.b32.xlu1 %v2060_v7, %s6076_s22 }
 0x29a   :  { %v1855_v23 = vpop.permute.xlu0 %1854 }
 0x29b   :  { %2001 = vst.msk [vmem:[#allocation3 + $0x2e0] sm:$0xff] %vm1954_vm4, %v1855_v23  ;;  %v1853_v42 = vpop.permute.xlu1 %1852 }
 0x29c   :  { %2235 = vrot.lane.b32.xlu0 %v2063_v40, %s6076_s22  ;;  %2000 = vst.msk [vmem:[#allocation3 + $0x2d0] sm:$0xff] %vm1954_vm4, %v1853_v42  ;;  %v2066_v40 = vld [vmem:[#allocation2 + $0x262] sm:$0xff]  ;;  %v2069_v42 = vld [vmem:[#allocation2 + $0x28a] sm:$0xff] }
 0x29d   :  { %2233 = vrot.lane.b32.xlu1 %v2062_v60, %s6076_s22 }
 0x29e   :  { %v1859_v10 = vpop.permute.xlu0 %1858 }
 0x29f   :  { %2003 = vst.msk [vmem:[#allocation3 + $0x300] sm:$0xff] %vm1954_vm4, %v1859_v10  ;;  %v1857_v33 = vpop.permute.xlu1 %1856 }
 0x2a0   :  { %2239 = vrot.lane.b32.xlu0 %v2065_v37, %s6076_s22  ;;  %2002 = vst.msk [vmem:[#allocation3 + $0x2f0] sm:$0xff] %vm1954_vm4, %v1857_v33  ;;  %v2068_v37 = vld [vmem:[#allocation2 + $0x27a] sm:$0xff]  ;;  %v2071_v33 = vld [vmem:[#allocation2 + $0x2a2] sm:$0xff] }
 0x2a1   :  { %2237 = vrot.lane.b32.xlu1 %v2064_v36, %s6076_s22 }
 0x2a2   :  { %v1863_v58 = vpop.permute.xlu0 %1862 }
 0x2a3   :  { %2005 = vst.msk [vmem:[#allocation3 + $0x320] sm:$0xff] %vm1954_vm4, %v1863_v58  ;;  %v1861_v23 = vpop.permute.xlu1 %1860 }
 0x2a4   :  { %2243 = vrot.lane.b32.xlu0 %v2067_v21, %s6076_s22  ;;  %2004 = vst.msk [vmem:[#allocation3 + $0x310] sm:$0xff] %vm1954_vm4, %v1861_v23  ;;  %v2070_v21 = vld [vmem:[#allocation2 + $0x292] sm:$0xff]  ;;  %v2073_v23 = vld [vmem:[#allocation2 + $0x2ba] sm:$0xff] }
 0x2a5   :  { %2241 = vrot.lane.b32.xlu1 %v2066_v40, %s6076_s22 }
 0x2a6   :  { %v1867_v7 = vpop.permute.xlu0 %1866 }
 0x2a7   :  { %2007 = vst.msk [vmem:[#allocation3 + $0x340] sm:$0xff] %vm1954_vm4, %v1867_v7  ;;  %v1865_v10 = vpop.permute.xlu1 %1864 }
 0x2a8   :  { %2247 = vrot.lane.b32.xlu0 %v2069_v42, %s6076_s22  ;;  %2006 = vst.msk [vmem:[#allocation3 + $0x330] sm:$0xff] %vm1954_vm4, %v1865_v10  ;;  %v2072_v42 = vld [vmem:[#allocation2 + $0x2aa] sm:$0xff]  ;;  %v2075_v10 = vld [vmem:[#allocation2 + $0x2d2] sm:$0xff] }
 0x2a9   :  { %2245 = vrot.lane.b32.xlu1 %v2068_v37, %s6076_s22 }
 0x2aa   :  { %v1871_v60 = vpop.permute.xlu0 %1870 }
 0x2ab   :  { %2009 = vst.msk [vmem:[#allocation3 + $0x360] sm:$0xff] %vm1954_vm4, %v1871_v60  ;;  %v1869_v58 = vpop.permute.xlu1 %1868 }
 0x2ac   :  { %2251 = vrot.lane.b32.xlu0 %v2071_v33, %s6076_s22  ;;  %2008 = vst.msk [vmem:[#allocation3 + $0x350] sm:$0xff] %vm1954_vm4, %v1869_v58  ;;  %v2074_v33 = vld [vmem:[#allocation2 + $0x2c2] sm:$0xff]  ;;  %v2077_v58 = vld [vmem:[#allocation2 + $0x2ea] sm:$0xff] }
 0x2ad   :  { %2249 = vrot.lane.b32.xlu1 %v2070_v21, %s6076_s22 }
 0x2ae   :  { %v1875_v36 = vpop.permute.xlu0 %1874 }
 0x2af   :  { %2011 = vst.msk [vmem:[#allocation3 + $0x380] sm:$0xff] %vm1954_vm4, %v1875_v36  ;;  %v1873_v7 = vpop.permute.xlu1 %1872 }
 0x2b0   :  { %2255 = vrot.lane.b32.xlu0 %v2073_v23, %s6076_s22  ;;  %2010 = vst.msk [vmem:[#allocation3 + $0x370] sm:$0xff] %vm1954_vm4, %v1873_v7  ;;  %v2076_v23 = vld [vmem:[#allocation2 + $0x2da] sm:$0xff]  ;;  %v2079_v7 = vld [vmem:[#allocation2 + $0x302] sm:$0xff] }
 0x2b1   :  { %2253 = vrot.lane.b32.xlu1 %v2072_v42, %s6076_s22 }
 0x2b2   :  { %v1879_v40 = vpop.permute.xlu0 %1878 }
 0x2b3   :  { %2013 = vst.msk [vmem:[#allocation3 + $0x3a0] sm:$0xff] %vm1954_vm4, %v1879_v40  ;;  %v1877_v60 = vpop.permute.xlu1 %1876 }
 0x2b4   :  { %2259 = vrot.lane.b32.xlu0 %v2075_v10, %s6076_s22  ;;  %2012 = vst.msk [vmem:[#allocation3 + $0x390] sm:$0xff] %vm1954_vm4, %v1877_v60  ;;  %v2078_v10 = vld [vmem:[#allocation2 + $0x2f2] sm:$0xff]  ;;  %v2081_v60 = vld [vmem:[#allocation2 + $0x31a] sm:$0xff] }
 0x2b5   :  { %2257 = vrot.lane.b32.xlu1 %v2074_v33, %s6076_s22 }
 0x2b6   :  { %v1883_v37 = vpop.permute.xlu0 %1882 }
 0x2b7   :  { %2015 = vst.msk [vmem:[#allocation3 + $0x3c0] sm:$0xff] %vm1954_vm4, %v1883_v37  ;;  %v1881_v36 = vpop.permute.xlu1 %1880 }
 0x2b8   :  { %2263 = vrot.lane.b32.xlu0 %v2077_v58, %s6076_s22  ;;  %2014 = vst.msk [vmem:[#allocation3 + $0x3b0] sm:$0xff] %vm1954_vm4, %v1881_v36  ;;  %v2080_v58 = vld [vmem:[#allocation2 + $0x30a] sm:$0xff] }
 0x2b9   :  { %2261 = vrot.lane.b32.xlu1 %v2076_v23, %s6076_s22  ;;  %v2082_v23 = vld [vmem:[#allocation2 + $0x322] sm:$0xff] }
 0x2ba   :  { %v1887_v21 = vpop.permute.xlu0 %1886 }
 0x2bb   :  { %2017 = vst.msk [vmem:[#allocation3 + $0x3e0] sm:$0xff] %vm1954_vm4, %v1887_v21  ;;  %v1885_v40 = vpop.permute.xlu1 %1884 }
 0x2bc   :  { %2267 = vrot.lane.b32.xlu0 %v2079_v7, %s6076_s22  ;;  %2016 = vst.msk [vmem:[#allocation3 + $0x3d0] sm:$0xff] %vm1954_vm4, %v1885_v40 }
 0x2bd   :  { %2265 = vrot.lane.b32.xlu1 %v2078_v10, %s6076_s22 }
 0x2be   :  { %v2152_v42 = vpop.permute.xlu0 %2151 }
 0x2bf   :  { %2342 = vst.msk [vmem:[#allocation3 + $0x20] sm:$0xff] %vm2339_vm5, %v2152_v42  ;;  %v1889_v37 = vpop.permute.xlu1 %1888 }
 0x2c0   :  { %2271 = vrot.lane.b32.xlu0 %v2081_v60, %s6076_s22  ;;  %2018 = vst.msk [vmem:[#allocation3 + $0x3f0] sm:$0xff] %vm1954_vm4, %v1889_v37 }
 0x2c1   :  { %2269 = vrot.lane.b32.xlu1 %v2080_v58, %s6076_s22 }
 0x2c2   :  { %v2156_v33 = vpop.permute.xlu0 %2155 }
 0x2c3   :  { %2344 = vst.msk [vmem:[#allocation3 + $0x40] sm:$0xff] %vm2339_vm5, %v2156_v33  ;;  %v2154_v36 = vpop.permute.xlu1 %2153 }
 0x2c4   :  { %2532 = vrot.lane.b32.xlu0 %v8159_v43, %s6077_s3  ;;  %2343 = vst.msk [vmem:[#allocation3 + $0x30] sm:$0xff] %vm2339_vm5, %v2154_v36 }
 0x2c5   :  { %2273 = vrot.lane.b32.xlu1 %v2082_v23, %s6076_s22 }
 0x2c6   :  { %v2160_v21 = vpop.permute.xlu0 %2159 }
 0x2c7   :  { %2346 = vst.msk [vmem:[#allocation3 + $0x60] sm:$0xff] %vm2339_vm5, %v2160_v21  ;;  %v2158_v7 = vpop.permute.xlu1 %2157 }
 0x2c8   :  { %2536 = vrot.lane.b32.xlu0 %v8157_v53, %s6077_s3  ;;  %2345 = vst.msk [vmem:[#allocation3 + $0x50] sm:$0xff] %vm2339_vm5, %v2158_v7  ;;  %v11759_v7 = vld [vmem:[#allocation24_spill] sm:$0xff] }
 0x2c9   :  { %2534 = vrot.lane.b32.xlu1 %v8171_v19, %s6077_s3 }
 0x2ca   :  { %v2164_v40 = vpop.permute.xlu0 %2163 }
 0x2cb   :  { %2348 = vst.msk [vmem:[#allocation3 + $0x80] sm:$0xff] %vm2339_vm5, %v2164_v40  ;;  %v2162_v43 = vpop.permute.xlu1 %2161 }
 0x2cc   :  { %2540 = vrot.lane.b32.xlu0 %v8166_v9, %s6077_s3  ;;  %2347 = vst.msk [vmem:[#allocation3 + $0x70] sm:$0xff] %vm2339_vm5, %v2162_v43 }
 0x2cd   :  { %2538 = vrot.lane.b32.xlu1 %v8175_v39, %s6077_s3 }
 0x2ce   :  { %v2168_v42 = vpop.permute.xlu0 %2167 }
 0x2cf   :  { %2350 = vst.msk [vmem:[#allocation3 + $0xa0] sm:$0xff] %vm2339_vm5, %v2168_v42  ;;  %v2166_v53 = vpop.permute.xlu1 %2165  ;;  %v11760_v42 = vld [vmem:[#allocation13_spill] sm:$0xff] }
 0x2d0   :  { %2544 = vrot.lane.b32.xlu0 %v8173_v14, %s6077_s3  ;;  %2349 = vst.msk [vmem:[#allocation3 + $0x90] sm:$0xff] %vm2339_vm5, %v2166_v53  ;;  %v11761_v53 = vld [vmem:[#allocation10_spill] sm:$0xff] }
 0x2d1   :  { %2542 = vrot.lane.b32.xlu1 %v8187_v34, %s6077_s3 }
 0x2d2   :  { %v2172_v10 = vpop.permute.xlu0 %2171 }
 0x2d3   :  { %2352 = vst.msk [vmem:[#allocation3 + $0xc0] sm:$0xff] %vm2339_vm5, %v2172_v10  ;;  %v2170_v9 = vpop.permute.xlu1 %2169 }
 0x2d4   :  { %2548 = vrot.lane.b32.xlu0 %v8183_v54, %s6077_s3  ;;  %2351 = vst.msk [vmem:[#allocation3 + $0xb0] sm:$0xff] %vm2339_vm5, %v2170_v9  ;;  %v2466_v9 = vld [vmem:[#allocation2 + $0x330] sm:$0xff] }
 0x2d5   :  { %2546 = vrot.lane.b32.xlu1 %v8196_v52, %s6077_s3 }
 0x2d6   :  { %v2176_v19 = vpop.permute.xlu0 %2175 }
 0x2d7   :  { %2354 = vst.msk [vmem:[#allocation3 + $0xe0] sm:$0xff] %vm2339_vm5, %v2176_v19  ;;  %v2174_v14 = vpop.permute.xlu1 %2173  ;;  %v6078_v19 = vmov 0  }
 0x2d8   :  { %2552 = vrot.lane.b32.xlu0 %v8189_v22, %s6077_s3  ;;  %2353 = vst.msk [vmem:[#allocation3 + $0xd0] sm:$0xff] %vm2339_vm5, %v2174_v14  ;;  %5998 = vmatprep.subr.bf16.mxu1 %v6078_v19  ;;  %v6061_v14 = vld [vmem:[%s11354_s4] sm:$0xff]  }
 0x2d9   :  { %2550 = vrot.lane.b32.xlu1 %v8203_v29, %s6077_s3  ;;  %4818 = vmatprep.subr.bf16.mxu0 %v6078_v19 }
 0x2da   :  { %v2180_v39 = vpop.permute.xlu0 %2179  ;;  %6007 = vmatpush1.bf16.msra.mxu1 %v6061_v14  ;;  %4819 = vmatpush1.bf16.msra.mxu0 %v6061_v14 }
 0x2db   :  { %2356 = vst.msk [vmem:[#allocation3 + $0x100] sm:$0xff] %vm2339_vm5, %v2180_v39  ;;  %v2178_v54 = vpop.permute.xlu1 %2177  ;;  %5999 = vmatprep.subr.bf16.mxu1 %v6078_v19  ;;  %4820 = vmatprep.subr.bf16.mxu0 %v6078_v19 }
 0x2dc   :  { %2556 = vrot.lane.b32.xlu0 %v8201_v49, %s6077_s3  ;;  %2355 = vst.msk [vmem:[#allocation3 + $0xf0] sm:$0xff] %vm2339_vm5, %v2178_v54  ;;  %v11762_v54 = vld [vmem:[#allocation15_spill] sm:$0xff] }
 0x2dd   :  { %2554 = vrot.lane.b32.xlu1 %v8211_v3, %s6077_s3 }
 0x2de   :  { %v2184_v34 = vpop.permute.xlu0 %2183 }
 0x2df   :  { %2358 = vst.msk [vmem:[#allocation3 + $0x120] sm:$0xff] %vm2339_vm5, %v2184_v34  ;;  %v2182_v22 = vpop.permute.xlu1 %2181  ;;  %v6062_v34 = vld [vmem:[%s11354_s4 + $0x8] sm:$0xff]  }
 0x2e0   :  { %2560 = vrot.lane.b32.xlu0 %v8209_v27, %s6077_s3  ;;  %2357 = vst.msk [vmem:[#allocation3 + $0x110] sm:$0xff] %vm2339_vm5, %v2182_v22  ;;  %6008 = vmatpush1.bf16.msra.mxu1 %v6062_v34 }
 0x2e1   :  { %2558 = vrot.lane.b32.xlu1 %v8222_v31, %s6077_s3  ;;  %6000 = vmatprep.subr.bf16.mxu1 %v6078_v19 }
 0x2e2   :  { %v2188_v52 = vpop.permute.xlu0 %2187  ;;  %4821 = vmatpush1.bf16.msra.mxu0 %v6062_v34 }
 0x2e3   :  { %2360 = vst.msk [vmem:[#allocation3 + $0x140] sm:$0xff] %vm2339_vm5, %v2188_v52  ;;  %v2186_v49 = vpop.permute.xlu1 %2185  ;;  %4822 = vmatprep.subr.bf16.mxu0 %v6078_v19 }
 0x2e4   :  { %2564 = vrot.lane.b32.xlu0 %v8217_v51, %s6077_s3  ;;  %2359 = vst.msk [vmem:[#allocation3 + $0x130] sm:$0xff] %vm2339_vm5, %v2186_v49  ;;  %v2789_v49 = vld [vmem:[#allocation2 + $0x19] sm:$0xff] }
 0x2e5   :  { %2562 = vrot.lane.b32.xlu1 %v8229_v61, %s6077_s3 }
 0x2e6   :  { %v2192_v29 = vpop.permute.xlu0 %2191 }
 0x2e7   :  { %2362 = vst.msk [vmem:[#allocation3 + $0x160] sm:$0xff] %vm2339_vm5, %v2192_v29  ;;  %v2190_v27 = vpop.permute.xlu1 %2189  ;;  %v11763_v29 = vld [vmem:[#allocation12_spill] sm:$0xff] }
 0x2e8   :  { %2568 = vrot.lane.b32.xlu0 %v8227_v15, %s6077_s3  ;;  %2361 = vst.msk [vmem:[#allocation3 + $0x150] sm:$0xff] %vm2339_vm5, %v2190_v27  ;;  %v6063_v27 = vld [vmem:[%s11354_s4 + $0x10] sm:$0xff]  }
 0x2e9   :  { %2566 = vrot.lane.b32.xlu1 %v8237_v4, %s6077_s3  ;;  %6009 = vmatpush1.bf16.msra.mxu1 %v6063_v27 }
 0x2ea   :  { %v2196_v3 = vpop.permute.xlu0 %2195  ;;  %6001 = vmatprep.subr.bf16.mxu1 %v6078_v19  ;;  %4823 = vmatpush1.bf16.msra.mxu0 %v6063_v27 }
 0x2eb   :  { %2364 = vst.msk [vmem:[#allocation3 + $0x180] sm:$0xff] %vm2339_vm5, %v2196_v3  ;;  %v2194_v51 = vpop.permute.xlu1 %2193  ;;  %4824 = vmatprep.subr.bf16.mxu0 %v6078_v19 }
 0x2ec   :  { %2572 = vrot.lane.b32.xlu0 %v8235_v8, %s6077_s3  ;;  %2363 = vst.msk [vmem:[#allocation3 + $0x170] sm:$0xff] %vm2339_vm5, %v2194_v51 }
 0x2ed   :  { %2570 = vrot.lane.b32.xlu1 %v8248_v35, %s6077_s3 }
 0x2ee   :  { %v2200_v31 = vpop.permute.xlu0 %2199 }
 0x2ef   :  { %2366 = vst.msk [vmem:[#allocation3 + $0x1a0] sm:$0xff] %vm2339_vm5, %v2200_v31  ;;  %v2198_v15 = vpop.permute.xlu1 %2197  ;;  %v2467_v31 = vld [vmem:[#allocation2 + $0x338] sm:$0xff] }
 0x2f0   :  { %2576 = vrot.lane.b32.xlu0 %v8243_v2, %s6077_s3  ;;  %2365 = vst.msk [vmem:[#allocation3 + $0x190] sm:$0xff] %vm2339_vm5, %v2198_v15  ;;  %v9000_v15 = vld [vmem:[#allocation2 + $0x31] sm:$0xff] }
 0x2f1   :  { %2574 = vrot.lane.b32.xlu1 %v8257_v13, %s6077_s3 }
 0x2f2   :  { %v2204_v61 = vpop.permute.xlu0 %2203 }
 0x2f3   :  { %2368 = vst.msk [vmem:[#allocation3 + $0x1c0] sm:$0xff] %vm2339_vm5, %v2204_v61  ;;  %v2202_v8 = vpop.permute.xlu1 %2201  ;;  %v6064_v61 = vld [vmem:[%s11354_s4 + $0x18] sm:$0xff]  }
 0x2f4   :  { %2580 = vrot.lane.b32.xlu0 %v8250_v56, %s6077_s3  ;;  %2367 = vst.msk [vmem:[#allocation3 + $0x1b0] sm:$0xff] %vm2339_vm5, %v2202_v8  ;;  %6010 = vmatpush1.bf16.msra.mxu1 %v6064_v61 }
 0x2f5   :  { %2578 = vrot.lane.b32.xlu1 %v8263_v20, %s6077_s3  ;;  %v8875_v20 = vld [vmem:[#allocation2 + $0x180] sm:$0xff]  ;;  %6002 = vmatprep.subr.bf16.mxu1 %v6078_v19 }
 0x2f6   :  { %v2208_v4 = vpop.permute.xlu0 %2207  ;;  %4825 = vmatpush1.bf16.msra.mxu0 %v6064_v61 }
 0x2f7   :  { %2370 = vst.msk [vmem:[#allocation3 + $0x1e0] sm:$0xff] %vm2339_vm5, %v2208_v4  ;;  %v2206_v2 = vpop.permute.xlu1 %2205  ;;  %4826 = vmatprep.subr.bf16.mxu0 %v6078_v19 }
 0x2f8   :  { %2584 = vrot.lane.b32.xlu0 %v8261_v46, %s6077_s3  ;;  %2369 = vst.msk [vmem:[#allocation3 + $0x1d0] sm:$0xff] %vm2339_vm5, %v2206_v2  ;;  %v2790_v2 = vld [vmem:[#allocation2 + $0x21] sm:$0xff] }
 0x2f9   :  { %2582 = vrot.lane.b32.xlu1 %v8271_v16, %s6077_s3 }
 0x2fa   :  { %v2216_v35 = vpop.permute.xlu0 %2215 }
 0x2fb   :  { %2374 = vst.msk [vmem:[#allocation3 + $0x220] sm:$0xff] %vm2339_vm5, %v2216_v35  ;;  %v2210_v56 = vpop.permute.xlu1 %2209  ;;  %v9012_v35 = vld [vmem:[#allocation2 + $0x49] sm:$0xff] }
 0x2fc   :  { %2588 = vrot.lane.b32.xlu0 %v8269_v5, %s6077_s3  ;;  %2371 = vst.msk [vmem:[#allocation3 + $0x1f0] sm:$0xff] %vm2339_vm5, %v2210_v56  ;;  %v6065_v56 = vld [vmem:[%s11354_s4 + $0x20] sm:$0xff]  }
 0x2fd   :  { %2586 = vrot.lane.b32.xlu1 %v8280_v12, %s6077_s3  ;;  %v8888_v12 = vld [vmem:[#allocation2 + $0x188] sm:$0xff]  ;;  %6011 = vmatpush1.bf16.msra.mxu1 %v6065_v56 }
 0x2fe   :  { %v2220_v13 = vpop.permute.xlu0 %2219  ;;  %6003 = vmatprep.subr.bf16.mxu1 %v6078_v19  ;;  %4827 = vmatpush1.bf16.msra.mxu0 %v6065_v56 }
 0x2ff   :  { %2376 = vst.msk [vmem:[#allocation3 + $0x240] sm:$0xff] %vm2339_vm5, %v2220_v13  ;;  %v2218_v46 = vpop.permute.xlu1 %2217  ;;  %4828 = vmatprep.subr.bf16.mxu0 %v6078_v19 }
 0x300   :  { %2592 = vrot.lane.b32.xlu0 %v8875_v20, %s6077_s3  ;;  %2375 = vst.msk [vmem:[#allocation3 + $0x230] sm:$0xff] %vm2339_vm5, %v2218_v46 }
 0x301   :  { %2590 = vrot.lane.b32.xlu1 %v8291_v0, %s6077_s3 }
 0x302   :  { %v2224_v60 = vpop.permute.xlu0 %2223 }
 0x303   :  { %2378 = vst.msk [vmem:[#allocation3 + $0x260] sm:$0xff] %vm2339_vm5, %v2224_v60  ;;  %v2222_v5 = vpop.permute.xlu1 %2221  ;;  %v9022_v60 = vld [vmem:[#allocation2 + $0x39] sm:$0xff] }
 0x304   :  { %2596 = vrot.lane.b32.xlu0 %v8278_v30, %s6077_s3  ;;  %2377 = vst.msk [vmem:[#allocation3 + $0x250] sm:$0xff] %vm2339_vm5, %v2222_v5  ;;  %v2807_v5 = vld [vmem:[#allocation2 + $0xf1] sm:$0xff] }
 0x305   :  { %2594 = vrot.lane.b32.xlu1 %v8888_v12, %s6077_s3 }
 0x306   :  { %v2228_v16 = vpop.permute.xlu0 %2227 }
 0x307   :  { %2380 = vst.msk [vmem:[#allocation3 + $0x280] sm:$0xff] %vm2339_vm5, %v2228_v16  ;;  %v2226_v37 = vpop.permute.xlu1 %2225  ;;  %v6066_v16 = vld [vmem:[%s11354_s4 + $0x28] sm:$0xff]  }
 0x308   :  { %2600 = vrot.lane.b32.xlu0 %v8287_v44, %s6077_s3  ;;  %2379 = vst.msk [vmem:[#allocation3 + $0x270] sm:$0xff] %vm2339_vm5, %v2226_v37  ;;  %6012 = vmatpush1.bf16.msra.mxu1 %v6066_v16 }
 0x309   :  { %2598 = vrot.lane.b32.xlu1 %v8297_v47, %s6077_s3  ;;  %6004 = vmatprep.subr.bf16.mxu1 %v6078_v19 }
 0x30a   :  { %v2232_v33 = vpop.permute.xlu0 %2231  ;;  %4829 = vmatpush1.bf16.msra.mxu0 %v6066_v16  ;;  %v3561_v16 = vld [vmem:[#allocation2 + $0x38] sm:$0xff] }
 0x30b   :  { %2382 = vst.msk [vmem:[#allocation3 + $0x2a0] sm:$0xff] %vm2339_vm5, %v2232_v33  ;;  %v2230_v30 = vpop.permute.xlu1 %2229  ;;  %4830 = vmatprep.subr.bf16.mxu0 %v6078_v19 }
 0x30c   :  { %2604 = vrot.lane.b32.xlu0 %v8295_v59, %s6077_s3  ;;  %2381 = vst.msk [vmem:[#allocation3 + $0x290] sm:$0xff] %vm2339_vm5, %v2230_v30  ;;  %v9034_v30 = vld [vmem:[#allocation2 + $0x51] sm:$0xff] }
 0x30d   :  { %2602 = vrot.lane.b32.xlu1 %v8306_v24, %s6077_s3 }
 0x30e   :  { %v2236_v0 = vpop.permute.xlu0 %2235 }
 0x30f   :  { %2384 = vst.msk [vmem:[#allocation3 + $0x2c0] sm:$0xff] %vm2339_vm5, %v2236_v0  ;;  %v2234_v44 = vpop.permute.xlu1 %2233  ;;  %v3192_v0 = vld [vmem:[#allocation2 + $0xf2] sm:$0xff] }
 0x310   :  { %2608 = vrot.lane.b32.xlu0 %v8304_v6, %s6077_s3  ;;  %2383 = vst.msk [vmem:[#allocation3 + $0x2b0] sm:$0xff] %vm2339_vm5, %v2234_v44  ;;  %v6067_v44 = vld [vmem:[%s11354_s4 + $0x30] sm:$0xff]  }
 0x311   :  { %2606 = vrot.lane.b32.xlu1 %v8317_v32, %s6077_s3  ;;  %6013 = vmatpush1.bf16.msra.mxu1 %v6067_v44 }
 0x312   :  { %v2240_v58 = vpop.permute.xlu0 %2239  ;;  %6005 = vmatprep.subr.bf16.mxu1 %v6078_v19  ;;  %4831 = vmatpush1.bf16.msra.mxu0 %v6067_v44 }
 0x313   :  { %2386 = vst.msk [vmem:[#allocation3 + $0x2e0] sm:$0xff] %vm2339_vm5, %v2240_v58  ;;  %v2238_v59 = vpop.permute.xlu1 %2237  ;;  %4832 = vmatprep.subr.bf16.mxu0 %v6078_v19 }
 0x314   :  { %2612 = vrot.lane.b32.xlu0 %v8313_v28, %s6077_s3  ;;  %2385 = vst.msk [vmem:[#allocation3 + $0x2d0] sm:$0xff] %vm2339_vm5, %v2238_v59 }
 0x315   :  { %2610 = vrot.lane.b32.xlu1 %v8323_v41, %s6077_s3 }
 0x316   :  { %v2244_v47 = vpop.permute.xlu0 %2243 }
 0x317   :  { %2388 = vst.msk [vmem:[#allocation3 + $0x300] sm:$0xff] %vm2339_vm5, %v2244_v47  ;;  %v2242_v6 = vpop.permute.xlu1 %2241  ;;  %v2808_v47 = vld [vmem:[#allocation2 + $0xf9] sm:$0xff] }
 0x318   :  { %2616 = vrot.lane.b32.xlu0 %v8321_v38, %s6077_s3  ;;  %2387 = vst.msk [vmem:[#allocation3 + $0x2f0] sm:$0xff] %vm2339_vm5, %v2242_v6  ;;  %v3578_v6 = vld [vmem:[#allocation2 + $0x108] sm:$0xff] }
 0x319   :  { %2614 = vrot.lane.b32.xlu1 %v8332_v62, %s6077_s3 }
 0x31a   :  { %v2248_v24 = vpop.permute.xlu0 %2247 }
 0x31b   :  { %2390 = vst.msk [vmem:[#allocation3 + $0x320] sm:$0xff] %vm2339_vm5, %v2248_v24  ;;  %v2246_v28 = vpop.permute.xlu1 %2245  ;;  %v6068_v24 = vld [vmem:[%s11354_s4 + $0x38] sm:$0xff]  }
 0x31c   :  { %2620 = vrot.lane.b32.xlu0 %v8330_v55, %s6077_s3  ;;  %2389 = vst.msk [vmem:[#allocation3 + $0x310] sm:$0xff] %vm2339_vm5, %v2246_v28  ;;  %6014 = vmatpush1.bf16.msra.mxu1 %v6068_v24 }
 0x31d   :  { %2618 = vrot.lane.b32.xlu1 %v8343_v25, %s6077_s3  ;;  %6006 = vmatprep.subr.bf16.mxu1 %v6078_v19 }
 0x31e   :  { %v2252_v32 = vpop.permute.xlu0 %2251  ;;  %4833 = vmatpush1.bf16.msra.mxu0 %v6068_v24 }
 0x31f   :  { %2392 = vst.msk [vmem:[#allocation3 + $0x340] sm:$0xff] %vm2339_vm5, %v2252_v32  ;;  %v2250_v38 = vpop.permute.xlu1 %2249  ;;  %4834 = vmatprep.subr.bf16.mxu0 %v6078_v19  ;;  %v11764_v19 = vld [vmem:[#allocation17_spill] sm:$0xff] }
 0x320   :  { %2624 = vrot.lane.b32.xlu0 %v8339_v17, %s6077_s3  ;;  %2391 = vst.msk [vmem:[#allocation3 + $0x330] sm:$0xff] %vm2339_vm5, %v2250_v38  ;;  %v3193_v38 = vld [vmem:[#allocation2 + $0xfa] sm:$0xff] }
 0x321   :  { %2622 = vrot.lane.b32.xlu1 %v8349_v1, %s6077_s3 }
 0x322   :  { %v2256_v41 = vpop.permute.xlu0 %2255 }
 0x323   :  { %2394 = vst.msk [vmem:[#allocation3 + $0x360] sm:$0xff] %vm2339_vm5, %v2256_v41  ;;  %v2254_v55 = vpop.permute.xlu1 %2253  ;;  %v3963_v41 = vld [vmem:[#allocation2 + $0x109] sm:$0xff] }
 0x324   :  { %2628 = vrot.lane.b32.xlu0 %v8347_v57, %s6077_s3  ;;  %2393 = vst.msk [vmem:[#allocation3 + $0x350] sm:$0xff] %vm2339_vm5, %v2254_v55  ;;  %v6069_v55 = vld [vmem:[%s11354_s4 + $0x40] sm:$0xff]  }
 0x325   :  { %2626 = vrot.lane.b32.xlu1 %v8358_v11, %s6077_s3  ;;  %6015 = vmatpush1.bf16.msra.mxu1 %v6069_v55 }
 0x326   :  { %v2260_v62 = vpop.permute.xlu0 %2259  ;;  %4835 = vmatpush1.bf16.msra.mxu0 %v6069_v55 }
 0x327   :  { %2396 = vst.msk [vmem:[#allocation3 + $0x380] sm:$0xff] %vm2339_vm5, %v2260_v62  ;;  %v2258_v17 = vpop.permute.xlu1 %2257 }
 0x328   :  { %2632 = vrot.lane.b32.xlu0 %v8356_v48, %s6077_s3  ;;  %2395 = vst.msk [vmem:[#allocation3 + $0x370] sm:$0xff] %vm2339_vm5, %v2258_v17  ;;  %v11755_v48 = vld [vmem:[#allocation22_spill] sm:$0xff] }
 0x329   :  { %2630 = vrot.lane.b32.xlu1 %v8369_v63, %s6077_s3  ;;  %v11757_v63 = vld [vmem:[#allocation25_spill] sm:$0xff] }
 0x32a   :  { %v2264_v25 = vpop.permute.xlu0 %2263 }
 0x32b   :  { %2398 = vst.msk [vmem:[#allocation3 + $0x3a0] sm:$0xff] %vm2339_vm5, %v2264_v25  ;;  %v2262_v57 = vpop.permute.xlu1 %2261  ;;  %v3579_v25 = vld [vmem:[#allocation2 + $0x110] sm:$0xff] }
 0x32c   :  { %2636 = vrot.lane.b32.xlu0 %v8365_v26, %s6077_s3  ;;  %2397 = vst.msk [vmem:[#allocation3 + $0x390] sm:$0xff] %vm2339_vm5, %v2262_v57  ;;  %v11756_v26 = vld [vmem:[#allocation5_spill] sm:$0xff] }
 0x32d   :  { %2634 = vrot.lane.b32.xlu1 %v8375_v45, %s6077_s3  ;;  %v11758_v45 = vld [vmem:[#allocation26_spill] sm:$0xff] }
 0x32e   :  { %v2268_v1 = vpop.permute.xlu0 %2267 }
 0x32f   :  { %2400 = vst.msk [vmem:[#allocation3 + $0x3c0] sm:$0xff] %vm2339_vm5, %v2268_v1  ;;  %v2266_v11 = vpop.permute.xlu1 %2265 }
 0x330   :  { %2640 = vrot.lane.b32.xlu0 %v11755_v48, %s6077_s3  ;;  %2399 = vst.msk [vmem:[#allocation3 + $0x3b0] sm:$0xff] %vm2339_vm5, %v2266_v11  ;;  %v3964_v48 = vld [vmem:[#allocation2 + $0x111] sm:$0xff] }
 0x331   :  { %2638 = vrot.lane.b32.xlu1 %v11756_v26, %s6077_s3  ;;  %v3194_v11 = vld [vmem:[#allocation2 + $0x10a] sm:$0xff] }
 0x332   :  { %v2272_v36 = vpop.permute.xlu0 %2271 }
 0x333   :  { %2402 = vst.msk [vmem:[#allocation3 + $0x3e0] sm:$0xff] %vm2339_vm5, %v2272_v36  ;;  %v2270_v21 = vpop.permute.xlu1 %2269 }
 0x334   :  { %2644 = vrot.lane.b32.xlu0 %v11757_v63, %s6077_s3  ;;  %2401 = vst.msk [vmem:[#allocation3 + $0x3d0] sm:$0xff] %vm2339_vm5, %v2270_v21  ;;  %v3580_v63 = vld [vmem:[#allocation2 + $0x120] sm:$0xff] }
 0x335   :  { %2642 = vrot.lane.b32.xlu1 %v11758_v45, %s6077_s3  ;;  %v3195_v45 = vld [vmem:[#allocation2 + $0x112] sm:$0xff] }
 0x336   :  { %v2533_v23 = vpop.permute.xlu0 %2532 }
 0x337   :  { %2725 = vst.msk [vmem:[#allocation3] sm:$0xff] %vm2724_vm6, %v2533_v23  ;;  %v2274_v40 = vpop.permute.xlu1 %2273 }
 0x338   :  { %2648 = vrot.lane.b32.xlu0 %v11759_v7, %s6077_s3  ;;  %2403 = vst.msk [vmem:[#allocation3 + $0x3f0] sm:$0xff] %vm2339_vm5, %v2274_v40  ;;  %v3965_v7 = vld [vmem:[#allocation2 + $0x121] sm:$0xff] }
 0x339   :  { %2646 = vrot.lane.b32.xlu1 %v11760_v42, %s6077_s3  ;;  %v3581_v42 = vld [vmem:[#allocation2 + $0x128] sm:$0xff] }
 0x33a   :  { %v2537_v43 = vpop.permute.xlu0 %2536 }
 0x33b   :  { %2727 = vst.msk [vmem:[#allocation3 + $0x20] sm:$0xff] %vm2724_vm6, %v2537_v43  ;;  %v2535_v10 = vpop.permute.xlu1 %2534 }
 0x33c   :  { %2652 = vrot.lane.b32.xlu0 %v11761_v53, %s6077_s3  ;;  %2726 = vst.msk [vmem:[#allocation3 + $0x10] sm:$0xff] %vm2724_vm6, %v2535_v10 }
 0x33d   :  { %2650 = vrot.lane.b32.xlu1 %v11762_v54, %s6077_s3  ;;  %v3582_v54 = vld [vmem:[#allocation2 + $0x138] sm:$0xff] }
 0x33e   :  { %v2541_v39 = vpop.permute.xlu0 %2540 }
 0x33f   :  { %2729 = vst.msk [vmem:[#allocation3 + $0x40] sm:$0xff] %vm2724_vm6, %v2541_v39  ;;  %v2539_v22 = vpop.permute.xlu1 %2538 }
 0x340   :  { %2656 = vrot.lane.b32.xlu0 %v2466_v9, %s6077_s3  ;;  %2728 = vst.msk [vmem:[#allocation3 + $0x30] sm:$0xff] %vm2724_vm6, %v2539_v22  ;;  %v3966_v9 = vld [vmem:[#allocation2 + $0x129] sm:$0xff] }
 0x341   :  { %2654 = vrot.lane.b32.xlu1 %v11763_v29, %s6077_s3 }
 0x342   :  { %v2545_v52 = vpop.permute.xlu0 %2544 }
 0x343   :  { %2731 = vst.msk [vmem:[#allocation3 + $0x60] sm:$0xff] %vm2724_vm6, %v2545_v52  ;;  %v2543_v3 = vpop.permute.xlu1 %2542  ;;  %v3967_v52 = vld [vmem:[#allocation2 + $0x139] sm:$0xff] }
 0x344   :  { %2917 = vrot.lane.b32.xlu0 %v2789_v49, %s6079_s30  ;;  %2730 = vst.msk [vmem:[#allocation3 + $0x50] sm:$0xff] %vm2724_vm6, %v2543_v3  ;;  %v11765_v49 = vld [vmem:[#allocation19_spill] sm:$0xff]  ;;  %v3583_v3 = vld [vmem:[#allocation2 + $0x140] sm:$0xff] }
 0x345   :  { %2658 = vrot.lane.b32.xlu1 %v2467_v31, %s6077_s3 }
 0x346   :  { %v2549_v51 = vpop.permute.xlu0 %2548 }
 0x347   :  { %2733 = vst.msk [vmem:[#allocation3 + $0x80] sm:$0xff] %vm2724_vm6, %v2549_v51  ;;  %v2547_v8 = vpop.permute.xlu1 %2546  ;;  %v3174_v51 = vld [vmem:[#allocation2 + $0x1a] sm:$0xff] }
 0x348   :  { %2921 = vrot.lane.b32.xlu0 %v9000_v15, %s6079_s30  ;;  %2732 = vst.msk [vmem:[#allocation3 + $0x70] sm:$0xff] %vm2724_vm6, %v2547_v8  ;;  %v3968_v8 = vld [vmem:[#allocation2 + $0x141] sm:$0xff] }
 0x349   :  { %2919 = vrot.lane.b32.xlu1 %v2790_v2, %s6079_s30 }
 0x34a   :  { %v2553_v4 = vpop.permute.xlu0 %2552 }
 0x34b   :  { %2735 = vst.msk [vmem:[#allocation3 + $0xa0] sm:$0xff] %vm2724_vm6, %v2553_v4  ;;  %v2551_v13 = vpop.permute.xlu1 %2550  ;;  %v3560_v4 = vld [vmem:[#allocation2 + $0x30] sm:$0xff] }
 0x34c   :  { %2925 = vrot.lane.b32.xlu0 %v9012_v35, %s6079_s30  ;;  %2734 = vst.msk [vmem:[#allocation3 + $0x90] sm:$0xff] %vm2724_vm6, %v2551_v13  ;;  %v3175_v13 = vld [vmem:[#allocation2 + $0x22] sm:$0xff] }
 0x34d   :  { %2923 = vrot.lane.b32.xlu1 %v9022_v60, %s6079_s30 }
 0x34e   :  { %v2557_v46 = vpop.permute.xlu0 %2556 }
 0x34f   :  { %2737 = vst.msk [vmem:[#allocation3 + $0xc0] sm:$0xff] %vm2724_vm6, %v2557_v46  ;;  %v2555_v37 = vpop.permute.xlu1 %2554 }
 0x350   :  { %2953 = vrot.lane.b32.xlu0 %v2807_v5, %s6079_s30  ;;  %2736 = vst.msk [vmem:[#allocation3 + $0xb0] sm:$0xff] %vm2724_vm6, %v2555_v37 }
 0x351   :  { %2927 = vrot.lane.b32.xlu1 %v9034_v30, %s6079_s30 }
 0x352   :  { %v2561_v33 = vpop.permute.xlu0 %2560 }
 0x353   :  { %2739 = vst.msk [vmem:[#allocation3 + $0xe0] sm:$0xff] %vm2724_vm6, %v2561_v33  ;;  %v2559_v58 = vpop.permute.xlu1 %2558 }
 0x354   :  { %3338 = vrot.lane.b32.xlu0 %v3192_v0, %s6080_s15  ;;  %2738 = vst.msk [vmem:[#allocation3 + $0xd0] sm:$0xff] %vm2724_vm6, %v2559_v58  ;;  %v3584_v58 = vld [vmem:[#allocation2 + $0x150] sm:$0xff] }
 0x355   :  { %2955 = vrot.lane.b32.xlu1 %v2808_v47, %s6079_s30 }
 0x356   :  { %v2565_v59 = vpop.permute.xlu0 %2564 }
 0x357   :  { %2741 = vst.msk [vmem:[#allocation3 + $0x100] sm:$0xff] %vm2724_vm6, %v2565_v59  ;;  %v2563_v28 = vpop.permute.xlu1 %2562 }
 0x358   :  { %3724 = vrot.lane.b32.xlu0 %v3578_v6, %s6081_s18  ;;  %2740 = vst.msk [vmem:[#allocation3 + $0xf0] sm:$0xff] %vm2724_vm6, %v2563_v28  ;;  %v11767_v6 = vld [vmem:[#allocation21_spill] sm:$0xff] }
 0x359   :  { %3340 = vrot.lane.b32.xlu1 %v3193_v38, %s6080_s15  ;;  %v3176_v38 = vld [vmem:[#allocation2 + $0x32] sm:$0xff] }
 0x35a   :  { %v2569_v32 = vpop.permute.xlu0 %2568 }
 0x35b   :  { %2743 = vst.msk [vmem:[#allocation3 + $0x120] sm:$0xff] %vm2724_vm6, %v2569_v32  ;;  %v2567_v62 = vpop.permute.xlu1 %2566  ;;  %v3585_v32 = vld [vmem:[#allocation2 + $0x158] sm:$0xff] }
 0x35c   :  { %4109 = vrot.lane.b32.xlu0 %v3963_v41, %s6082_s21  ;;  %2742 = vst.msk [vmem:[#allocation3 + $0x110] sm:$0xff] %vm2724_vm6, %v2567_v62  ;;  %v3970_v62 = vld [vmem:[#allocation2 + $0x159] sm:$0xff] }
 0x35d   :  { %3726 = vrot.lane.b32.xlu1 %v3579_v25, %s6081_s18 }
 0x35e   :  { %v2573_v17 = vpop.permute.xlu0 %2572 }
 0x35f   :  { %2745 = vst.msk [vmem:[#allocation3 + $0x140] sm:$0xff] %vm2724_vm6, %v2573_v17  ;;  %v2571_v57 = vpop.permute.xlu1 %2570  ;;  %v3562_v17 = vld [vmem:[#allocation2 + $0x48] sm:$0xff] }
 0x360   :  { %2957 = vrot.lane.b32.xlu0 %v3963_v41, %s6079_s30  ;;  %2744 = vst.msk [vmem:[#allocation3 + $0x130] sm:$0xff] %vm2724_vm6, %v2571_v57 }
 0x361   :  { %4111 = vrot.lane.b32.xlu1 %v3964_v48, %s6082_s21 }
 0x362   :  { %v2577_v1 = vpop.permute.xlu0 %2576 }
 0x363   :  { %2747 = vst.msk [vmem:[#allocation3 + $0x160] sm:$0xff] %vm2724_vm6, %v2577_v1  ;;  %v2575_v36 = vpop.permute.xlu1 %2574  ;;  %v3177_v1 = vld [vmem:[#allocation2 + $0x3a] sm:$0xff] }
 0x364   :  { %3342 = vrot.lane.b32.xlu0 %v3194_v11, %s6080_s15  ;;  %2746 = vst.msk [vmem:[#allocation3 + $0x150] sm:$0xff] %vm2724_vm6, %v2575_v36  ;;  %v3563_v36 = vld [vmem:[#allocation2 + $0x50] sm:$0xff] }
 0x365   :  { %2959 = vrot.lane.b32.xlu1 %v3964_v48, %s6079_s30 }
 0x366   :  { %v2581_v26 = vpop.permute.xlu0 %2580 }
 0x367   :  { %2749 = vst.msk [vmem:[#allocation3 + $0x180] sm:$0xff] %vm2724_vm6, %v2581_v26  ;;  %v2579_v21 = vpop.permute.xlu1 %2578 }
 0x368   :  { %3728 = vrot.lane.b32.xlu0 %v3580_v63, %s6081_s18  ;;  %2748 = vst.msk [vmem:[#allocation3 + $0x170] sm:$0xff] %vm2724_vm6, %v2579_v21 }
 0x369   :  { %3344 = vrot.lane.b32.xlu1 %v3195_v45, %s6080_s15  ;;  %v3586_v45 = vld [vmem:[#allocation2 + $0x168] sm:$0xff] }
 0x36a   :  { %v2585_v23 = vpop.permute.xlu0 %2584 }
 0x36b   :  { %2751 = vst.msk [vmem:[#allocation3 + $0x1a0] sm:$0xff] %vm2724_vm6, %v2585_v23  ;;  %v2583_v40 = vpop.permute.xlu1 %2582 }
 0x36c   :  { %4113 = vrot.lane.b32.xlu0 %v3965_v7, %s6082_s21  ;;  %2750 = vst.msk [vmem:[#allocation3 + $0x190] sm:$0xff] %vm2724_vm6, %v2583_v40 }
 0x36d   :  { %3730 = vrot.lane.b32.xlu1 %v3581_v42, %s6081_s18 }
 0x36e   :  { %v2589_v43 = vpop.permute.xlu0 %2588 }
 0x36f   :  { %2753 = vst.msk [vmem:[#allocation3 + $0x1c0] sm:$0xff] %vm2724_vm6, %v2589_v43  ;;  %v2587_v53 = vpop.permute.xlu1 %2586  ;;  %v11769_v43 = vld [vmem:[#allocation20_spill] sm:$0xff] }
 0x370   :  { %2961 = vrot.lane.b32.xlu0 %v3965_v7, %s6079_s30  ;;  %2752 = vst.msk [vmem:[#allocation3 + $0x1b0] sm:$0xff] %vm2724_vm6, %v2587_v53 }
 0x371   :  { %4115 = vrot.lane.b32.xlu1 %v3966_v9, %s6082_s21 }
 0x372   :  { %v2593_v10 = vpop.permute.xlu0 %2592 }
 0x373   :  { %2755 = vst.msk [vmem:[#allocation3 + $0x1e0] sm:$0xff] %vm2724_vm6, %v2593_v10  ;;  %v2591_v14 = vpop.permute.xlu1 %2590  ;;  %v3587_v10 = vld [vmem:[#allocation2 + $0x170] sm:$0xff] }
 0x374   :  { %3346 = vrot.lane.b32.xlu0 %v11764_v19, %s6080_s15  ;;  %2754 = vst.msk [vmem:[#allocation3 + $0x1d0] sm:$0xff] %vm2724_vm6, %v2591_v14 }
 0x375   :  { %2963 = vrot.lane.b32.xlu1 %v3966_v9, %s6079_s30  ;;  %v11770_v9 = vld [vmem:[#allocation7_spill] sm:$0xff] }
 0x376   :  { %v2597_v39 = vpop.permute.xlu0 %2596 }
 0x377   :  { %2757 = vst.msk [vmem:[#allocation3 + $0x200] sm:$0xff] %vm2724_vm6, %v2597_v39  ;;  %v2595_v34 = vpop.permute.xlu1 %2594  ;;  %v3972_v39 = vld [vmem:[#allocation2 + $0x171] sm:$0xff] }
 0x378   :  { %3732 = vrot.lane.b32.xlu0 %v3582_v54, %s6081_s18  ;;  %2756 = vst.msk [vmem:[#allocation3 + $0x1f0] sm:$0xff] %vm2724_vm6, %v2595_v34  ;;  %v3564_v54 = vld [vmem:[#allocation2 + $0x60] sm:$0xff] }
 0x379   :  { %3348 = vrot.lane.b32.xlu1 %v11765_v49, %s6080_s15  ;;  %v11771_v49 = vld [vmem:[#allocation4_spill] sm:$0xff] }
 0x37a   :  { %v2601_v22 = vpop.permute.xlu0 %2600 }
 0x37b   :  { %2759 = vst.msk [vmem:[#allocation3 + $0x220] sm:$0xff] %vm2724_vm6, %v2601_v22  ;;  %v2599_v29 = vpop.permute.xlu1 %2598 }
 0x37c   :  { %4117 = vrot.lane.b32.xlu0 %v3967_v52, %s6082_s21  ;;  %2758 = vst.msk [vmem:[#allocation3 + $0x210] sm:$0xff] %vm2724_vm6, %v2599_v29 }
 0x37d   :  { %3734 = vrot.lane.b32.xlu1 %v3583_v3, %s6081_s18  ;;  %v3565_v3 = vld [vmem:[#allocation2 + $0x68] sm:$0xff] }
 0x37e   :  { %v2605_v27 = vpop.permute.xlu0 %2604 }
 0x37f   :  { %2761 = vst.msk [vmem:[#allocation3 + $0x240] sm:$0xff] %vm2724_vm6, %v2605_v27  ;;  %v2603_v31 = vpop.permute.xlu1 %2602 }
 0x380   :  { %3302 = vrot.lane.b32.xlu0 %v3174_v51, %s6080_s15  ;;  %2760 = vst.msk [vmem:[#allocation3 + $0x230] sm:$0xff] %vm2724_vm6, %v2603_v31 }
 0x381   :  { %4119 = vrot.lane.b32.xlu1 %v3968_v8, %s6082_s21 }
 0x382   :  { %v2609_v61 = vpop.permute.xlu0 %2608 }
 0x383   :  { %2763 = vst.msk [vmem:[#allocation3 + $0x260] sm:$0xff] %vm2724_vm6, %v2609_v61  ;;  %v2607_v2 = vpop.permute.xlu1 %2606  ;;  %v3950_v61 = vld [vmem:[#allocation2 + $0x69] sm:$0xff] }
 0x384   :  { %3688 = vrot.lane.b32.xlu0 %v3560_v4, %s6081_s18  ;;  %2762 = vst.msk [vmem:[#allocation3 + $0x250] sm:$0xff] %vm2724_vm6, %v2607_v2 }
 0x385   :  { %3304 = vrot.lane.b32.xlu1 %v3175_v13, %s6080_s15 }
 0x386   :  { %v2613_v56 = vpop.permute.xlu0 %2612 }
 0x387   :  { %2765 = vst.msk [vmem:[#allocation3 + $0x280] sm:$0xff] %vm2724_vm6, %v2613_v56  ;;  %v2611_v46 = vpop.permute.xlu1 %2610 }
 0x388   :  { %4073 = vrot.lane.b32.xlu0 %v9000_v15, %s6082_s21  ;;  %2764 = vst.msk [vmem:[#allocation3 + $0x270] sm:$0xff] %vm2724_vm6, %v2611_v46  ;;  %v11766_v15 = vld [vmem:[#allocation18_spill] sm:$0xff]  ;;  %v3973_v46 = vld [vmem:[#allocation2 + $0x181] sm:$0xff] }
 0x389   :  { %3690 = vrot.lane.b32.xlu1 %v3561_v16, %s6081_s18 }
 0x38a   :  { %v2617_v5 = vpop.permute.xlu0 %2616 }
 0x38b   :  { %2767 = vst.msk [vmem:[#allocation3 + $0x2a0] sm:$0xff] %vm2724_vm6, %v2617_v5  ;;  %v2615_v37 = vpop.permute.xlu1 %2614  ;;  %v11773_v5 = vld [vmem:[#allocation9_spill] sm:$0xff] }
 0x38c   :  { %2965 = vrot.lane.b32.xlu0 %v3967_v52, %s6079_s30  ;;  %2766 = vst.msk [vmem:[#allocation3 + $0x290] sm:$0xff] %vm2724_vm6, %v2615_v37  ;;  %v3949_v52 = vld [vmem:[#allocation2 + $0x61] sm:$0xff] }
 0x38d   :  { %4075 = vrot.lane.b32.xlu1 %v9022_v60, %s6082_s21  ;;  %v3969_v60 = vld [vmem:[#allocation2 + $0x151] sm:$0xff] }
 0x38e   :  { %v2621_v33 = vpop.permute.xlu0 %2620 }
 0x38f   :  { %2769 = vst.msk [vmem:[#allocation3 + $0x2c0] sm:$0xff] %vm2724_vm6, %v2621_v33  ;;  %v2619_v0 = vpop.permute.xlu1 %2618 }
 0x390   :  { %3350 = vrot.lane.b32.xlu0 %v11766_v15, %s6080_s15  ;;  %2768 = vst.msk [vmem:[#allocation3 + $0x2b0] sm:$0xff] %vm2724_vm6, %v2619_v0  ;;  %v3974_v15 = vld [vmem:[#allocation2 + $0x189] sm:$0xff]  ;;  %v11774_v0 = vld [vmem:[#allocation11_spill] sm:$0xff] }
 0x391   :  { %2967 = vrot.lane.b32.xlu1 %v3968_v8, %s6079_s30  ;;  %v11772_v8 = vld [vmem:[#allocation6_spill] sm:$0xff] }
 0x392   :  { %v2625_v44 = vpop.permute.xlu0 %2624 }
 0x393   :  { %2771 = vst.msk [vmem:[#allocation3 + $0x2e0] sm:$0xff] %vm2724_vm6, %v2625_v44  ;;  %v2623_v59 = vpop.permute.xlu1 %2622 }
 0x394   :  { %3736 = vrot.lane.b32.xlu0 %v3584_v58, %s6081_s18  ;;  %2770 = vst.msk [vmem:[#allocation3 + $0x2d0] sm:$0xff] %vm2724_vm6, %v2623_v59  ;;  %v4499_v59 = vld [vmem:[#allocation3 + $0x148] sm:$0xff] }
 0x395   :  { %3352 = vrot.lane.b32.xlu1 %v11767_v6, %s6080_s15 }
 0x396   :  { %v2629_v47 = vpop.permute.xlu0 %2628 }
 0x397   :  { %2773 = vst.msk [vmem:[#allocation3 + $0x300] sm:$0xff] %vm2724_vm6, %v2629_v47  ;;  %v2627_v24 = vpop.permute.xlu1 %2626  ;;  %v4501_v47 = vld [vmem:[#allocation3 + $0x158] sm:$0xff] }
 0x398   :  { %4121 = vrot.lane.b32.xlu0 %v3969_v60, %s6082_s21  ;;  %2772 = vst.msk [vmem:[#allocation3 + $0x2f0] sm:$0xff] %vm2724_vm6, %v2627_v24 }
 0x399   :  { %3738 = vrot.lane.b32.xlu1 %v3585_v32, %s6081_s18 }
 0x39a   :  { %v2633_v28 = vpop.permute.xlu0 %2632 }
 0x39b   :  { %2775 = vst.msk [vmem:[#allocation3 + $0x320] sm:$0xff] %vm2724_vm6, %v2633_v28  ;;  %v2631_v41 = vpop.permute.xlu1 %2630 }
 0x39c   :  { %3306 = vrot.lane.b32.xlu0 %v3176_v38, %s6080_s15  ;;  %2774 = vst.msk [vmem:[#allocation3 + $0x310] sm:$0xff] %vm2724_vm6, %v2631_v41  ;;  %v3951_v38 = vld [vmem:[#allocation2 + $0x79] sm:$0xff]  ;;  %v11775_v41 = vld [vmem:[#allocation14_spill] sm:$0xff] }
 0x39d   :  { %4123 = vrot.lane.b32.xlu1 %v3970_v62, %s6082_s21 }
 0x39e   :  { %v2637_v55 = vpop.permute.xlu0 %2636 }
 0x39f   :  { %2777 = vst.msk [vmem:[#allocation3 + $0x340] sm:$0xff] %vm2724_vm6, %v2637_v55  ;;  %v2635_v25 = vpop.permute.xlu1 %2634  ;;  %v4607_v55 = vpack.c.bf16 %v4501_v47, %v4499_v59 }
 0x3a0   :  { %3692 = vrot.lane.b32.xlu0 %v3562_v17, %s6081_s18  ;;  %2776 = vst.msk [vmem:[#allocation3 + $0x330] sm:$0xff] %vm2724_vm6, %v2635_v25  ;;  %v3567_v25 = vld [vmem:[#allocation2 + $0x80] sm:$0xff] }
 0x3a1   :  { %3308 = vrot.lane.b32.xlu1 %v3177_v1, %s6080_s15 }
 0x3a2   :  { %v2641_v57 = vpop.permute.xlu0 %2640 }
 0x3a3   :  { %2779 = vst.msk [vmem:[#allocation3 + $0x360] sm:$0xff] %vm2724_vm6, %v2641_v57  ;;  %v2639_v48 = vpop.permute.xlu1 %2638 }
 0x3a4   :  { %4077 = vrot.lane.b32.xlu0 %v9012_v35, %s6082_s21  ;;  %2778 = vst.msk [vmem:[#allocation3 + $0x350] sm:$0xff] %vm2724_vm6, %v2639_v48  ;;  %v11768_v35 = vld [vmem:[#allocation23_spill] sm:$0xff]  ;;  %v3952_v48 = vld [vmem:[#allocation2 + $0x81] sm:$0xff] }
 0x3a5   :  { %3694 = vrot.lane.b32.xlu1 %v3563_v36, %s6081_s18 }
 0x3a6   :  { %v2645_v11 = vpop.permute.xlu0 %2644 }
 0x3a7   :  { %2781 = vst.msk [vmem:[#allocation3 + $0x380] sm:$0xff] %vm2724_vm6, %v2645_v11  ;;  %v2643_v26 = vpop.permute.xlu1 %2642  ;;  %v11776_v11 = vld [vmem:[#allocation16_spill] sm:$0xff] }
 0x3a8   :  { %2969 = vrot.lane.b32.xlu0 %v3969_v60, %s6079_s30  ;;  %2780 = vst.msk [vmem:[#allocation3 + $0x370] sm:$0xff] %vm2724_vm6, %v2643_v26  ;;  %v3590_v26 = vld [vmem:[#allocation2 + $0x198] sm:$0xff] }
 0x3a9   :  { %4079 = vrot.lane.b32.xlu1 %v9034_v30, %s6082_s21  ;;  %v3971_v30 = vld [vmem:[#allocation2 + $0x169] sm:$0xff] }
 0x3aa   :  { %v2649_v63 = vpop.permute.xlu0 %2648 }
 0x3ab   :  { %2783 = vst.msk [vmem:[#allocation3 + $0x3a0] sm:$0xff] %vm2724_vm6, %v2649_v63  ;;  %v2647_v21 = vpop.permute.xlu1 %2646 }
 0x3ac   :  { %3354 = vrot.lane.b32.xlu0 %v11768_v35, %s6080_s15  ;;  %2782 = vst.msk [vmem:[#allocation3 + $0x390] sm:$0xff] %vm2724_vm6, %v2647_v21  ;;  %v4503_v35 = vld [vmem:[#allocation3 + $0x168] sm:$0xff]  ;;  %v4505_v21 = vld [vmem:[#allocation3 + $0x178] sm:$0xff] }
 0x3ad   :  { %2971 = vrot.lane.b32.xlu1 %v3970_v62, %s6079_s30 }
 0x3ae   :  { %v2653_v23 = vpop.permute.xlu0 %2652 }
 0x3af   :  { %2785 = vst.msk [vmem:[#allocation3 + $0x3c0] sm:$0xff] %vm2724_vm6, %v2653_v23  ;;  %v2651_v7 = vpop.permute.xlu1 %2650 }
 0x3b0   :  { %3740 = vrot.lane.b32.xlu0 %v3586_v45, %s6081_s18  ;;  %2784 = vst.msk [vmem:[#allocation3 + $0x3b0] sm:$0xff] %vm2724_vm6, %v2651_v7  ;;  %v3975_v45 = vld [vmem:[#allocation2 + $0x199] sm:$0xff] }
 0x3b1   :  { %3356 = vrot.lane.b32.xlu1 %v11769_v43, %s6080_s15 }
 0x3b2   :  { %v2657_v40 = vpop.permute.xlu0 %2656 }
 0x3b3   :  { %2787 = vst.msk [vmem:[#allocation3 + $0x3e0] sm:$0xff] %vm2724_vm6, %v2657_v40  ;;  %v2655_v42 = vpop.permute.xlu1 %2654 }
 0x3b4   :  { %4125 = vrot.lane.b32.xlu0 %v3971_v30, %s6082_s21  ;;  %2786 = vst.msk [vmem:[#allocation3 + $0x3d0] sm:$0xff] %vm2724_vm6, %v2655_v42  ;;  %v11777_v42 = vld [vmem:[#allocation8_spill] sm:$0xff] }
 0x3b5   :  { %3742 = vrot.lane.b32.xlu1 %v3587_v10, %s6081_s18  ;;  %v3591_v10 = vld [vmem:[#allocation2 + $0x1a0] sm:$0xff] }
 0x3b6   :  { %v2918_v53 = vpop.permute.xlu0 %2917 }
 0x3b7   :  { %3110 = vst.msk [vmem:[#allocation3] sm:$0xff] %vm3109_vm7, %v2918_v53  ;;  %v2659_v19 = vpop.permute.xlu1 %2658  ;;  %v4609_v53 = vpack.c.bf16 %v4505_v21, %v4503_v35  ;;  %v4513_v35 = vld [vmem:[#allocation3 + $0x1b8] sm:$0xff] }
 0x3b8   :  { %3310 = vrot.lane.b32.xlu0 %v11770_v9, %s6080_s15  ;;  %2788 = vst.msk [vmem:[#allocation3 + $0x3f0] sm:$0xff] %vm2724_vm6, %v2659_v19 }
 0x3b9   :  { %4127 = vrot.lane.b32.xlu1 %v3972_v39, %s6082_s21 }
 0x3ba   :  { %v2922_v14 = vpop.permute.xlu0 %2921 }
 0x3bb   :  { %3112 = vst.msk [vmem:[#allocation3 + $0x20] sm:$0xff] %vm3109_vm7, %v2922_v14  ;;  %v2920_v34 = vpop.permute.xlu1 %2919  ;;  %v3976_v14 = vld [vmem:[#allocation2 + $0x1a1] sm:$0xff] }
 0x3bc   :  { %3696 = vrot.lane.b32.xlu0 %v3564_v54, %s6081_s18  ;;  %3111 = vst.msk [vmem:[#allocation3 + $0x10] sm:$0xff] %vm3109_vm7, %v2920_v34  ;;  %v4361_v54 = vld [vmem:[#allocation2 + $0x1a2] sm:$0xff] }
 0x3bd   :  { %3312 = vrot.lane.b32.xlu1 %v11771_v49, %s6080_s15  ;;  %4425 = vst.msk [vmem:[#allocation3 + $0x1f8] sm:$0xff] %vm663_vm2, %v4361_v54  ;;  %v4467_v54 = vld [vmem:[#allocation3 + $0x48] sm:$0xff] }
 0x3be   :  { %v2926_v22 = vpop.permute.xlu0 %2925 }
 0x3bf   :  { %3114 = vst.msk [vmem:[#allocation3 + $0x40] sm:$0xff] %vm3109_vm7, %v2926_v22  ;;  %v2924_v29 = vpop.permute.xlu1 %2923 }
 0x3c0   :  { %4081 = vrot.lane.b32.xlu0 %v3949_v52, %s6082_s21  ;;  %3113 = vst.msk [vmem:[#allocation3 + $0x30] sm:$0xff] %vm3109_vm7, %v2924_v29 }
 0x3c1   :  { %3698 = vrot.lane.b32.xlu1 %v3565_v3, %s6081_s18  ;;  %v4507_v3 = vld [vmem:[#allocation3 + $0x188] sm:$0xff] }
 0x3c2   :  { %v2954_v27 = vpop.permute.xlu0 %2953 }
 0x3c3   :  { %3128 = vst.msk [vmem:[#allocation3 + $0x120] sm:$0xff] %vm3109_vm7, %v2954_v27  ;;  %v2928_v51 = vpop.permute.xlu1 %2927  ;;  %v3568_v27 = vld [vmem:[#allocation2 + $0x90] sm:$0xff] }
 0x3c4   :  { %2973 = vrot.lane.b32.xlu0 %v3971_v30, %s6079_s30  ;;  %3115 = vst.msk [vmem:[#allocation3 + $0x50] sm:$0xff] %vm3109_vm7, %v2928_v51  ;;  %v4509_v51 = vld [vmem:[#allocation3 + $0x198] sm:$0xff] }
 0x3c5   :  { %4083 = vrot.lane.b32.xlu1 %v3950_v61, %s6082_s21 }
 0x3c6   :  { %v3339_v31 = vpop.permute.xlu0 %3338 }
 0x3c7   :  { %3513 = vst.msk [vmem:[#allocation3 + $0x120] sm:$0xff] %vm3494_vm8, %v3339_v31  ;;  %v2956_v4 = vpop.permute.xlu1 %2955 }
 0x3c8   :  { %3358 = vrot.lane.b32.xlu0 %v11772_v8, %s6080_s15  ;;  %3129 = vst.msk [vmem:[#allocation3 + $0x130] sm:$0xff] %vm3109_vm7, %v2956_v4 }
 0x3c9   :  { %2975 = vrot.lane.b32.xlu1 %v3972_v39, %s6079_s30  ;;  %v4360_v39 = vld [vmem:[#allocation2 + $0x19a] sm:$0xff] }
 0x3ca   :  { %v3725_v2 = vpop.permute.xlu0 %3724  ;;  %4424 = vst.msk [vmem:[#allocation3 + $0x1e8] sm:$0xff] %vm663_vm2, %v4360_v39  ;;  %v3571_v39 = vld [vmem:[#allocation2 + $0xb0] sm:$0xff] }
 0x3cb   :  { %3899 = vst.msk [vmem:[#allocation3 + $0x120] sm:$0xff] %vm3880_vm9, %v3725_v2  ;;  %v3341_v56 = vpop.permute.xlu1 %3340 }
 0x3cc   :  { %3744 = vrot.lane.b32.xlu0 %v8875_v20, %s6081_s18  ;;  %3514 = vst.msk [vmem:[#allocation3 + $0x130] sm:$0xff] %vm3494_vm8, %v3341_v56  ;;  %v3953_v56 = vld [vmem:[#allocation2 + $0x91] sm:$0xff] }
 0x3cd   :  { %3360 = vrot.lane.b32.xlu1 %v11773_v5, %s6080_s15 }
 0x3ce   :  { %v4110_v13 = vpop.permute.xlu0 %4109 }
 0x3cf   :  { %4284 = vst.msk [vmem:[#allocation3 + $0x120] sm:$0xff] %vm4265_vm10, %v4110_v13  ;;  %v3727_v16 = vpop.permute.xlu1 %3726  ;;  %v11779_v13 = vld [vmem:[#allocation28_spill] sm:$0xff] }
 0x3d0   :  { %4129 = vrot.lane.b32.xlu0 %v3973_v46, %s6082_s21  ;;  %3900 = vst.msk [vmem:[#allocation3 + $0x130] sm:$0xff] %vm3880_vm9, %v3727_v16 }
 0x3d1   :  { %3746 = vrot.lane.b32.xlu1 %v8888_v12, %s6081_s18  ;;  %v3566_v12 = vld [vmem:[#allocation2 + $0x78] sm:$0xff] }
 0x3d2   :  { %v2958_v37 = vpop.permute.xlu0 %2957 }
 0x3d3   :  { %3130 = vst.msk [vmem:[#allocation3 + $0x140] sm:$0xff] %vm3109_vm7, %v2958_v37  ;;  %v4112_v20 = vpop.permute.xlu1 %4111  ;;  %v3569_v37 = vld [vmem:[#allocation2 + $0x98] sm:$0xff] }
 0x3d4   :  { %2929 = vrot.lane.b32.xlu0 %v3949_v52, %s6079_s30  ;;  %4285 = vst.msk [vmem:[#allocation3 + $0x130] sm:$0xff] %vm4265_vm10, %v4112_v20  ;;  %v11778_v52 = vld [vmem:[#allocation27_spill] sm:$0xff]  ;;  %v2821_v20 = vld [vmem:[#allocation2 + $0x1c9] sm:$0xff] }
 0x3d5   :  { %4131 = vrot.lane.b32.xlu1 %v3974_v15, %s6082_s21 }
 0x3d6   :  { %v3343_v33 = vpop.permute.xlu0 %3342  ;;  %v4494_v6 = vld [vmem:[#allocation3 + $0x120] sm:$0xff] }
 0x3d7   :  { %3515 = vst.msk [vmem:[#allocation3 + $0x140] sm:$0xff] %vm3494_vm8, %v3343_v33  ;;  %v2960_v44 = vpop.permute.xlu1 %2959 }
 0x3d8   :  { %3314 = vrot.lane.b32.xlu0 %v11774_v0, %s6080_s15  ;;  %3131 = vst.msk [vmem:[#allocation3 + $0x150] sm:$0xff] %vm3109_vm7, %v2960_v44  ;;  %v3954_v0 = vld [vmem:[#allocation2 + $0x99] sm:$0xff]  ;;  %v3206_v44 = vld [vmem:[#allocation2 + $0x1ca] sm:$0xff] }
 0x3d9   :  { %2931 = vrot.lane.b32.xlu1 %v3950_v61, %s6079_s30 }
 0x3da   :  { %v3729_v58 = vpop.permute.xlu0 %3728 }
 0x3db   :  { %3901 = vst.msk [vmem:[#allocation3 + $0x140] sm:$0xff] %vm3880_vm9, %v3729_v58  ;;  %v3345_v60 = vpop.permute.xlu1 %3344  ;;  %v4496_v24 = vld [vmem:[#allocation3 + $0x130] sm:$0xff]  ;;  %v4463_v58 = vld [vmem:[#allocation3 + $0x28] sm:$0xff] }
 0x3dc   :  { %3700 = vrot.lane.b32.xlu0 %v3566_v12, %s6081_s18  ;;  %3516 = vst.msk [vmem:[#allocation3 + $0x150] sm:$0xff] %vm3494_vm8, %v3345_v60  ;;  %v4604_v32 = vpack.c.bf16 %v4496_v24, %v4494_v6  ;;  %v4465_v12 = vld [vmem:[#allocation3 + $0x38] sm:$0xff] }
 0x3dd   :  { %3316 = vrot.lane.b32.xlu1 %v11775_v41, %s6080_s15  ;;  %v2822_v24 = vld [vmem:[#allocation2 + $0x1d1] sm:$0xff] }
 0x3de   :  { %v4114_v28 = vpop.permute.xlu0 %4113  ;;  %4923 = vmatmul.mubr.bf16.vlgmr.msra.gmra.mrb[0].mxu1 %v4604_v32  ;;  %v3592_v32 = vld [vmem:[#allocation2 + $0x1e0] sm:$0xff] }
 0x3df   :  { %4286 = vst.msk [vmem:[#allocation3 + $0x140] sm:$0xff] %vm4265_vm10, %v4114_v28  ;;  %5869 = vmatprep.mubr.msk.bf16.mxu1 %vm663_vm2, %v4607_v55  ;;  %v3731_v62 = vpop.permute.xlu1 %3730 }
 0x3e0   :  { %4085 = vrot.lane.b32.xlu0 %v3951_v38, %s6082_s21  ;;  %3902 = vst.msk [vmem:[#allocation3 + $0x150] sm:$0xff] %vm3880_vm9, %v3731_v62  ;;  %v3207_v62 = vld [vmem:[#allocation2 + $0x1d2] sm:$0xff] }
 0x3e1   :  { %3702 = vrot.lane.b32.xlu1 %v3567_v25, %s6081_s18 }
 0x3e2   :  { %v2962_v17 = vpop.permute.xlu0 %2961 }
 0x3e3   :  { %3132 = vst.msk [vmem:[#allocation3 + $0x160] sm:$0xff] %vm3109_vm7, %v2962_v17  ;;  %v4116_v57 = vpop.permute.xlu1 %4115  ;;  %v3977_v17 = vld [vmem:[#allocation2 + $0x1e1] sm:$0xff] }
 0x3e4   :  { %2977 = vrot.lane.b32.xlu0 %v3973_v46, %s6079_s30  ;;  %4287 = vst.msk [vmem:[#allocation3 + $0x150] sm:$0xff] %vm4265_vm10, %v4116_v57  ;;  %v4611_v46 = vpack.c.bf16 %v4509_v51, %v4507_v3 }
 0x3e5   :  { %4087 = vrot.lane.b32.xlu1 %v3952_v48, %s6082_s21 }
 0x3e6   :  { %v3347_v1 = vpop.permute.xlu0 %3346  ;;  %v4498_v7 = vld [vmem:[#allocation3 + $0x140] sm:$0xff] }
 0x3e7   :  { %3517 = vst.msk [vmem:[#allocation3 + $0x160] sm:$0xff] %vm3494_vm8, %v3347_v1  ;;  %v2964_v36 = vpop.permute.xlu1 %2963  ;;  %v3593_v1 = vld [vmem:[#allocation2 + $0x1e8] sm:$0xff] }
 0x3e8   :  { %3362 = vrot.lane.b32.xlu0 %v11776_v11, %s6080_s15  ;;  %3133 = vst.msk [vmem:[#allocation3 + $0x170] sm:$0xff] %vm3109_vm7, %v2964_v36  ;;  %v3978_v36 = vld [vmem:[#allocation2 + $0x1e9] sm:$0xff] }
 0x3e9   :  { %2979 = vrot.lane.b32.xlu1 %v3974_v15, %s6079_s30 }
 0x3ea   :  { %v3733_v63 = vpop.permute.xlu0 %3732 }
 0x3eb   :  { %3903 = vst.msk [vmem:[#allocation3 + $0x160] sm:$0xff] %vm3880_vm9, %v3733_v63  ;;  %v3349_v23 = vpop.permute.xlu1 %3348  ;;  %v4500_v40 = vld [vmem:[#allocation3 + $0x150] sm:$0xff]  ;;  %v4511_v63 = vld [vmem:[#allocation3 + $0x1a8] sm:$0xff] }
 0x3ec   :  { %3748 = vrot.lane.b32.xlu0 %v3590_v26, %s6081_s18  ;;  %3518 = vst.msk [vmem:[#allocation3 + $0x170] sm:$0xff] %vm3494_vm8, %v3349_v23  ;;  %v4606_v43 = vpack.c.bf16 %v4500_v40, %v4498_v7  ;;  %v11780_v26 = vld [vmem:[#allocation29_spill] sm:$0xff] }
 0x3ed   :  { %3364 = vrot.lane.b32.xlu1 %v11777_v42, %s6080_s15 }
 0x3ee   :  { %v4118_v30 = vpop.permute.xlu0 %4117  ;;  %4931 = vmatmul.mubr.bf16.gmra.mrb[4].mxu1 %v4606_v43  ;;  %v4613_v43 = vpack.c.bf16 %v4513_v35, %v4511_v63 }
 0x3ef   :  { %4288 = vst.msk [vmem:[#allocation3 + $0x160] sm:$0xff] %vm4265_vm10, %v4118_v30  ;;  %5870 = vmatprep.mubr.msk.bf16.mxu1 %vm663_vm2, %v4609_v53  ;;  %v3735_v9 = vpop.permute.xlu1 %3734  ;;  %v3570_v30 = vld [vmem:[#allocation2 + $0xa8] sm:$0xff] }
 0x3f0   :  { %4133 = vrot.lane.b32.xlu0 %v3975_v45, %s6082_s21  ;;  %3904 = vst.msk [vmem:[#allocation3 + $0x170] sm:$0xff] %vm3880_vm9, %v3735_v9  ;;  %v11781_v9 = vld [vmem:[#allocation30_spill] sm:$0xff] }
 0x3f1   :  { %3750 = vrot.lane.b32.xlu1 %v3591_v10, %s6081_s18  ;;  %v3955_v10 = vld [vmem:[#allocation2 + $0xa9] sm:$0xff] }
 0x3f2   :  { %v3303_v19 = vpop.permute.xlu0 %3302 }
 0x3f3   :  { %3495 = vst.msk [vmem:[#allocation3] sm:$0xff] %vm3494_vm8, %v3303_v19  ;;  %v4120_v34 = vpop.permute.xlu1 %4119 }
 0x3f4   :  { %2933 = vrot.lane.b32.xlu0 %v3951_v38, %s6079_s30  ;;  %4289 = vst.msk [vmem:[#allocation3 + $0x170] sm:$0xff] %vm4265_vm10, %v4120_v34  ;;  %v4589_v38 = vpack.c.bf16 %v4465_v12, %v4463_v58  ;;  %v4469_v34 = vld [vmem:[#allocation3 + $0x58] sm:$0xff]  ;;  %v3980_v12 = vld [vmem:[#allocation2 + $0x201] sm:$0xff] }
 0x3f5   :  { %4135 = vrot.lane.b32.xlu1 %v3976_v14, %s6082_s21  ;;  %v4591_v51 = vpack.c.bf16 %v4469_v34, %v4467_v54 }
 0x3f6   :  { %v3689_v22 = vpop.permute.xlu0 %3688  ;;  %v4502_v61 = vld [vmem:[#allocation3 + $0x160] sm:$0xff] }
 0x3f7   :  { %3881 = vst.msk [vmem:[#allocation3] sm:$0xff] %vm3880_vm9, %v3689_v22  ;;  %v3305_v49 = vpop.permute.xlu1 %3304 }
 0x3f8   :  { %3318 = vrot.lane.b32.xlu0 %v11778_v52, %s6080_s15  ;;  %3496 = vst.msk [vmem:[#allocation3 + $0x10] sm:$0xff] %vm3494_vm8, %v3305_v49 }
 0x3f9   :  { %2935 = vrot.lane.b32.xlu1 %v3952_v48, %s6079_s30 }
 0x3fa   :  { %v4074_v29 = vpop.permute.xlu0 %4073 }
 0x3fb   :  { %4266 = vst.msk [vmem:[#allocation3] sm:$0xff] %vm4265_vm10, %v4074_v29  ;;  %v3691_v31 = vpop.permute.xlu1 %3690  ;;  %v4504_v8 = vld [vmem:[#allocation3 + $0x170] sm:$0xff] }
 0x3fc   :  { %3704 = vrot.lane.b32.xlu0 %v3568_v27, %s6081_s18  ;;  %3882 = vst.msk [vmem:[#allocation3 + $0x10] sm:$0xff] %vm3880_vm9, %v3691_v31  ;;  %v4608_v2 = vpack.c.bf16 %v4504_v8, %v4502_v61  ;;  %v3956_v27 = vld [vmem:[#allocation2 + $0xb1] sm:$0xff] }
 0x3fd   :  { %3320 = vrot.lane.b32.xlu1 %v11779_v13, %s6080_s15  ;;  %v11782_v31 = vld [vmem:[#allocation31_spill] sm:$0xff] }
 0x3fe   :  { %v2966_v4 = vpop.permute.xlu0 %2965  ;;  %4939 = vmatmul.mubr.bf16.gmra.mrb[8].mxu1 %v4608_v2  ;;  %v3979_v13 = vld [vmem:[#allocation2 + $0x1f9] sm:$0xff] }
 0x3ff   :  { %3134 = vst.msk [vmem:[#allocation3 + $0x180] sm:$0xff] %vm3109_vm7, %v2966_v4  ;;  %5871 = vmatprep.mubr.msk.bf16.mxu1 %vm663_vm2, %v4611_v46  ;;  %v4076_v5 = vpop.permute.xlu1 %4075  ;;  %v3594_v4 = vld [vmem:[#allocation2 + $0x1f8] sm:$0xff]  ;;  %v11783_v46 = vld [vmem:[#allocation32_spill] sm:$0xff] }
 0x400   :  { %4089 = vrot.lane.b32.xlu0 %v3953_v56, %s6082_s21  ;;  %4267 = vst.msk [vmem:[#allocation3 + $0x10] sm:$0xff] %vm4265_vm10, %v4076_v5 }
 0x401   :  { %3706 = vrot.lane.b32.xlu1 %v3569_v37, %s6081_s18  ;;  %v3595_v37 = vld [vmem:[#allocation2 + $0x200] sm:$0xff] }
 0x402   :  { %v3351_v16 = vpop.permute.xlu0 %3350  ;;  %v4458_v47 = vld [vmem:[#allocation3] sm:$0xff] }
 0x403   :  { %3519 = vst.msk [vmem:[#allocation3 + $0x180] sm:$0xff] %vm3494_vm8, %v3351_v16  ;;  %v2968_v33 = vpop.permute.xlu1 %2967 }
 0x404   :  { %2981 = vrot.lane.b32.xlu0 %v2821_v20, %s6079_s30  ;;  %3135 = vst.msk [vmem:[#allocation3 + $0x190] sm:$0xff] %vm3109_vm7, %v2968_v33  ;;  %v4515_v20 = vld [vmem:[#allocation3 + $0x1c8] sm:$0xff]  ;;  %v4517_v33 = vld [vmem:[#allocation3 + $0x1d8] sm:$0xff] }
 0x405   :  { %4091 = vrot.lane.b32.xlu1 %v3954_v0, %s6082_s21 }
 0x406   :  { %v3737_v15 = vpop.permute.xlu0 %3736 }
 0x407   :  { %3905 = vst.msk [vmem:[#allocation3 + $0x180] sm:$0xff] %vm3880_vm9, %v3737_v15  ;;  %v3353_v59 = vpop.permute.xlu1 %3352  ;;  %v4460_v60 = vld [vmem:[#allocation3 + $0x10] sm:$0xff] }
 0x408   :  { %3366 = vrot.lane.b32.xlu0 %v3206_v44, %s6080_s15  ;;  %3520 = vst.msk [vmem:[#allocation3 + $0x190] sm:$0xff] %vm3494_vm8, %v3353_v59  ;;  %v4586_v28 = vpack.c.bf16 %v4460_v60, %v4458_v47  ;;  %v4615_v47 = vpack.c.bf16 %v4517_v33, %v4515_v20  ;;  %v11784_v60 = vld [vmem:[#allocation33_spill] sm:$0xff]  ;;  %v3575_v33 = vld [vmem:[#allocation2 + $0xe0] sm:$0xff] }
 0x409   :  { %2983 = vrot.lane.b32.xlu1 %v2822_v24, %s6079_s30 }
 0x40a   :  { %v4122_v6 = vpop.permute.xlu0 %4121  ;;  %4851 = vmatmul.mubr.bf16.vlgmr.msra.gmra.mrb[64].mxu0 %v4586_v28  ;;  %v3572_v28 = vld [vmem:[#allocation2 + $0xc0] sm:$0xff] }
 0x40b   :  { %4290 = vst.msk [vmem:[#allocation3 + $0x180] sm:$0xff] %vm4265_vm10, %v4122_v6  ;;  %5860 = vmatprep.mubr.msk.bf16.mxu0 %vm663_vm2, %v4589_v38  ;;  %v3739_v41 = vpop.permute.xlu1 %3738 }
 0x40c   :  { %3752 = vrot.lane.b32.xlu0 %v3592_v32, %s6081_s18  ;;  %3906 = vst.msk [vmem:[#allocation3 + $0x190] sm:$0xff] %vm3880_vm9, %v3739_v41  ;;  %v3957_v41 = vld [vmem:[#allocation2 + $0xc1] sm:$0xff] }
 0x40d   :  { %3368 = vrot.lane.b32.xlu1 %v3207_v62, %s6080_s15  ;;  %v4471_v62 = vld [vmem:[#allocation3 + $0x68] sm:$0xff] }
 0x40e   :  { %v3307_v55 = vpop.permute.xlu0 %3306 }
 0x40f   :  { %3497 = vst.msk [vmem:[#allocation3 + $0x20] sm:$0xff] %vm3494_vm8, %v3307_v55  ;;  %v4124_v25 = vpop.permute.xlu1 %4123  ;;  %v11785_v55 = vld [vmem:[#allocation34_spill] sm:$0xff] }
 0x410   :  { %4137 = vrot.lane.b32.xlu0 %v3977_v17, %s6082_s21  ;;  %4291 = vst.msk [vmem:[#allocation3 + $0x190] sm:$0xff] %vm4265_vm10, %v4124_v25 }
 0x411   :  { %3754 = vrot.lane.b32.xlu1 %v3593_v1, %s6081_s18 }
 0x412   :  { %v3693_v57 = vpop.permute.xlu0 %3692  ;;  %v4506_v23 = vld [vmem:[#allocation3 + $0x180] sm:$0xff] }
 0x413   :  { %3883 = vst.msk [vmem:[#allocation3 + $0x20] sm:$0xff] %vm3880_vm9, %v3693_v57  ;;  %v3309_v48 = vpop.permute.xlu1 %3308 }
 0x414   :  { %2937 = vrot.lane.b32.xlu0 %v3953_v56, %s6079_s30  ;;  %3498 = vst.msk [vmem:[#allocation3 + $0x30] sm:$0xff] %vm3494_vm8, %v3309_v48 }
 0x415   :  { %4139 = vrot.lane.b32.xlu1 %v3978_v36, %s6082_s21 }
 0x416   :  { %v4078_v11 = vpop.permute.xlu0 %4077 }
 0x417   :  { %4268 = vst.msk [vmem:[#allocation3 + $0x20] sm:$0xff] %vm4265_vm10, %v4078_v11  ;;  %v3695_v21 = vpop.permute.xlu1 %3694  ;;  %v4508_v45 = vld [vmem:[#allocation3 + $0x190] sm:$0xff]  ;;  %v3573_v11 = vld [vmem:[#allocation2 + $0xc8] sm:$0xff] }
 0x418   :  { %3322 = vrot.lane.b32.xlu0 %v11780_v26, %s6080_s15  ;;  %3884 = vst.msk [vmem:[#allocation3 + $0x30] sm:$0xff] %vm3880_vm9, %v3695_v21  ;;  %v4610_v40 = vpack.c.bf16 %v4508_v45, %v4506_v23  ;;  %v3958_v21 = vld [vmem:[#allocation2 + $0xc9] sm:$0xff]  ;;  %v11786_v23 = vld [vmem:[#allocation35_spill] sm:$0xff] }
 0x419   :  { %2939 = vrot.lane.b32.xlu1 %v3954_v0, %s6079_s30 }
 0x41a   :  { %v2970_v7 = vpop.permute.xlu0 %2969  ;;  %4947 = vmatmul.mubr.bf16.gmra.mrb[12].mxu1 %v4610_v40  ;;  %v3596_v40 = vld [vmem:[#allocation2 + $0x210] sm:$0xff] }
 0x41b   :  { %3136 = vst.msk [vmem:[#allocation3 + $0x1a0] sm:$0xff] %vm3109_vm7, %v2970_v7  ;;  %5872 = vmatprep.mubr.msk.bf16.mxu1 %vm663_vm2, %v4613_v43  ;;  %v4080_v42 = vpop.permute.xlu1 %4079 }
 0x41c   :  { %3708 = vrot.lane.b32.xlu0 %v3570_v30, %s6081_s18  ;;  %4269 = vst.msk [vmem:[#allocation3 + $0x30] sm:$0xff] %vm4265_vm10, %v4080_v42  ;;  %v4519_v42 = vld [vmem:[#allocation3 + $0x1e8] sm:$0xff] }
 0x41d   :  { %3324 = vrot.lane.b32.xlu1 %v11781_v9, %s6080_s15  ;;  %v11787_v9 = vld [vmem:[#allocation36_spill] sm:$0xff] }
 0x41e   :  { %v3355_v53 = vpop.permute.xlu0 %3354  ;;  %v4462_v52 = vld [vmem:[#allocation3 + $0x20] sm:$0xff] }
 0x41f   :  { %3521 = vst.msk [vmem:[#allocation3 + $0x1a0] sm:$0xff] %vm3494_vm8, %v3355_v53  ;;  %v2972_v19 = vpop.permute.xlu1 %2971  ;;  %v4521_v53 = vld [vmem:[#allocation3 + $0x1f8] sm:$0xff] }
 0x420   :  { %4093 = vrot.lane.b32.xlu0 %v3955_v10, %s6082_s21  ;;  %3137 = vst.msk [vmem:[#allocation3 + $0x1b0] sm:$0xff] %vm3109_vm7, %v2972_v19  ;;  %v4617_v54 = vpack.c.bf16 %v4521_v53, %v4519_v42  ;;  %v4479_v42 = vld [vmem:[#allocation3 + $0xa8] sm:$0xff]  ;;  %v4481_v53 = vld [vmem:[#allocation3 + $0xb8] sm:$0xff] }
 0x421   :  { %3710 = vrot.lane.b32.xlu1 %v3571_v39, %s6081_s18 }
 0x422   :  { %v3741_v14 = vpop.permute.xlu0 %3740 }
 0x423   :  { %3907 = vst.msk [vmem:[#allocation3 + $0x1a0] sm:$0xff] %vm3880_vm9, %v3741_v14  ;;  %v3357_v22 = vpop.permute.xlu1 %3356  ;;  %v4464_v49 = vld [vmem:[#allocation3 + $0x30] sm:$0xff] }
 0x424   :  { %2985 = vrot.lane.b32.xlu0 %v3977_v17, %s6079_s30  ;;  %3522 = vst.msk [vmem:[#allocation3 + $0x1b0] sm:$0xff] %vm3494_vm8, %v3357_v22  ;;  %v4588_v3 = vpack.c.bf16 %v4464_v49, %v4462_v52  ;;  %v4473_v17 = vld [vmem:[#allocation3 + $0x78] sm:$0xff] }
 0x425   :  { %4095 = vrot.lane.b32.xlu1 %v3956_v27, %s6082_s21  ;;  %v4593_v26 = vpack.c.bf16 %v4473_v17, %v4471_v62  ;;  %v3597_v22 = vld [vmem:[#allocation2 + $0x218] sm:$0xff] }
 0x426   :  { %v4126_v29 = vpop.permute.xlu0 %4125  ;;  %4859 = vmatmul.mubr.bf16.gmra.mrb[68].mxu0 %v4588_v3  ;;  %v11788_v3 = vld [vmem:[#allocation37_spill] sm:$0xff]  ;;  %v4525_v62 = vld [vmem:[#allocation3 + $0x218] sm:$0xff] }
 0x427   :  { %4292 = vst.msk [vmem:[#allocation3 + $0x1a0] sm:$0xff] %vm4265_vm10, %v4126_v29  ;;  %v3743_v61 = vpop.permute.xlu1 %3742  ;;  %5861 = vmatprep.mubr.msk.bf16.mxu0 %vm663_vm2, %v4591_v51 }
 0x428   :  { %3370 = vrot.lane.b32.xlu0 %v11782_v31, %s6080_s15  ;;  %3908 = vst.msk [vmem:[#allocation3 + $0x1b0] sm:$0xff] %vm3880_vm9, %v3743_v61  ;;  %v3574_v61 = vld [vmem:[#allocation2 + $0xd8] sm:$0xff] }
 0x429   :  { %2987 = vrot.lane.b32.xlu1 %v3978_v36, %s6079_s30 }
 0x42a   :  { %v3311_v8 = vpop.permute.xlu0 %3310 }
 0x42b   :  { %3499 = vst.msk [vmem:[#allocation3 + $0x40] sm:$0xff] %vm3494_vm8, %v3311_v8  ;;  %v4128_v2 = vpop.permute.xlu1 %4127 }
 0x42c   :  { %3756 = vrot.lane.b32.xlu0 %v3594_v4, %s6081_s18  ;;  %4293 = vst.msk [vmem:[#allocation3 + $0x1b0] sm:$0xff] %vm4265_vm10, %v4128_v2  ;;  %v3959_v2 = vld [vmem:[#allocation2 + $0xd9] sm:$0xff] }
 0x42d   :  { %3372 = vrot.lane.b32.xlu1 %v11783_v46, %s6080_s15  ;;  %v4477_v46 = vld [vmem:[#allocation3 + $0x98] sm:$0xff] }
 0x42e   :  { %v3697_v56 = vpop.permute.xlu0 %3696  ;;  %v4510_v0 = vld [vmem:[#allocation3 + $0x1a0] sm:$0xff] }
 0x42f   :  { %3885 = vst.msk [vmem:[#allocation3 + $0x40] sm:$0xff] %vm3880_vm9, %v3697_v56  ;;  %v3313_v5 = vpop.permute.xlu1 %3312  ;;  %v11789_v56 = vld [vmem:[#allocation38_spill] sm:$0xff] }
 0x430   :  { %4141 = vrot.lane.b32.xlu0 %v3979_v13, %s6082_s21  ;;  %3500 = vst.msk [vmem:[#allocation3 + $0x50] sm:$0xff] %vm3494_vm8, %v3313_v5 }
 0x431   :  { %3758 = vrot.lane.b32.xlu1 %v3595_v37, %s6081_s18 }
 0x432   :  { %v4082_v16 = vpop.permute.xlu0 %4081 }
 0x433   :  { %4270 = vst.msk [vmem:[#allocation3 + $0x40] sm:$0xff] %vm4265_vm10, %v4082_v16  ;;  %v3699_v15 = vpop.permute.xlu1 %3698  ;;  %v4512_v44 = vld [vmem:[#allocation3 + $0x1b0] sm:$0xff] }
 0x434   :  { %2941 = vrot.lane.b32.xlu0 %v3955_v10, %s6079_s30  ;;  %3886 = vst.msk [vmem:[#allocation3 + $0x50] sm:$0xff] %vm3880_vm9, %v3699_v15  ;;  %v4612_v59 = vpack.c.bf16 %v4512_v44, %v4510_v0  ;;  %v3981_v10 = vld [vmem:[#allocation2 + $0x211] sm:$0xff] }
 0x435   :  { %4143 = vrot.lane.b32.xlu1 %v3980_v12, %s6082_s21 }
 0x436   :  { %v2974_v58 = vpop.permute.xlu0 %2973  ;;  %4955 = vmatmul.mubr.bf16.gmra.mrb[16].mxu1 %v4612_v59  ;;  %v11790_v59 = vld [vmem:[#allocation39_spill] sm:$0xff] }
 0x437   :  { %3138 = vst.msk [vmem:[#allocation3 + $0x1c0] sm:$0xff] %vm3109_vm7, %v2974_v58  ;;  %5873 = vmatprep.mubr.msk.bf16.mxu1 %vm663_vm2, %v4615_v47  ;;  %v4084_v6 = vpop.permute.xlu1 %4083 }
 0x438   :  { %3326 = vrot.lane.b32.xlu0 %v11784_v60, %s6080_s15  ;;  %4271 = vst.msk [vmem:[#allocation3 + $0x50] sm:$0xff] %vm4265_vm10, %v4084_v6  ;;  %v3598_v6 = vld [vmem:[#allocation2 + $0x228] sm:$0xff] }
 0x439   :  { %2943 = vrot.lane.b32.xlu1 %v3956_v27, %s6079_s30  ;;  %v3982_v27 = vld [vmem:[#allocation2 + $0x219] sm:$0xff] }
 0x43a   :  { %v3359_v24 = vpop.permute.xlu0 %3358  ;;  %v4466_v57 = vld [vmem:[#allocation3 + $0x40] sm:$0xff] }
 0x43b   :  { %3523 = vst.msk [vmem:[#allocation3 + $0x1c0] sm:$0xff] %vm3494_vm8, %v3359_v24  ;;  %v2976_v32 = vpop.permute.xlu1 %2975 }
 0x43c   :  { %3712 = vrot.lane.b32.xlu0 %v3572_v28, %s6081_s18  ;;  %3139 = vst.msk [vmem:[#allocation3 + $0x1d0] sm:$0xff] %vm3109_vm7, %v2976_v32  ;;  %v3983_v32 = vld [vmem:[#allocation2 + $0x229] sm:$0xff] }
 0x43d   :  { %3328 = vrot.lane.b32.xlu1 %v11785_v55, %s6080_s15  ;;  %v4523_v55 = vld [vmem:[#allocation3 + $0x208] sm:$0xff] }
 0x43e   :  { %v3745_v38 = vpop.permute.xlu0 %3744 }
 0x43f   :  { %3909 = vst.msk [vmem:[#allocation3 + $0x1c0] sm:$0xff] %vm3880_vm9, %v3745_v38  ;;  %v3361_v25 = vpop.permute.xlu1 %3360  ;;  %v4468_v1 = vld [vmem:[#allocation3 + $0x50] sm:$0xff]  ;;  %v11791_v38 = vld [vmem:[#allocation40_spill] sm:$0xff] }
 0x440   :  { %4097 = vrot.lane.b32.xlu0 %v3957_v41, %s6082_s21  ;;  %3524 = vst.msk [vmem:[#allocation3 + $0x1d0] sm:$0xff] %vm3494_vm8, %v3361_v25  ;;  %v4590_v36 = vpack.c.bf16 %v4468_v1, %v4466_v57  ;;  %v3599_v1 = vld [vmem:[#allocation2 + $0x230] sm:$0xff] }
 0x441   :  { %3714 = vrot.lane.b32.xlu1 %v3573_v11, %s6081_s18  ;;  %v4619_v11 = vpack.c.bf16 %v4525_v62, %v4523_v55 }
 0x442   :  { %v4130_v48 = vpop.permute.xlu0 %4129  ;;  %4867 = vmatmul.mubr.bf16.gmra.mrb[72].mxu0 %v4590_v36 }
 0x443   :  { %4294 = vst.msk [vmem:[#allocation3 + $0x1c0] sm:$0xff] %vm4265_vm10, %v4130_v48  ;;  %v3747_v63 = vpop.permute.xlu1 %3746  ;;  %5862 = vmatprep.mubr.msk.bf16.mxu0 %vm663_vm2, %v4593_v26 }
 0x444   :  { %2989 = vrot.lane.b32.xlu0 %v3979_v13, %s6079_s30  ;;  %3910 = vst.msk [vmem:[#allocation3 + $0x1d0] sm:$0xff] %vm3880_vm9, %v3747_v63  ;;  %v4475_v13 = vld [vmem:[#allocation3 + $0x88] sm:$0xff]  ;;  %v3984_v63 = vld [vmem:[#allocation2 + $0x231] sm:$0xff] }
 0x445   :  { %4099 = vrot.lane.b32.xlu1 %v3958_v21, %s6082_s21  ;;  %v4595_v0 = vpack.c.bf16 %v4477_v46, %v4475_v13 }
 0x446   :  { %v2930_v35 = vpop.permute.xlu0 %2929 }
 0x447   :  { %3116 = vst.msk [vmem:[#allocation3 + $0x60] sm:$0xff] %vm3109_vm7, %v2930_v35  ;;  %v4132_v45 = vpop.permute.xlu1 %4131  ;;  %v11792_v35 = vld [vmem:[#allocation41_spill] sm:$0xff] }
 0x448   :  { %3374 = vrot.lane.b32.xlu0 %v11786_v23, %s6080_s15  ;;  %4295 = vst.msk [vmem:[#allocation3 + $0x1d0] sm:$0xff] %vm4265_vm10, %v4132_v45  ;;  %v3576_v45 = vld [vmem:[#allocation2 + $0xf0] sm:$0xff] }
 0x449   :  { %2991 = vrot.lane.b32.xlu1 %v3980_v12, %s6079_s30  ;;  %v3960_v12 = vld [vmem:[#allocation2 + $0xe1] sm:$0xff] }
 0x44a   :  { %v3315_v7 = vpop.permute.xlu0 %3314  ;;  %v4514_v14 = vld [vmem:[#allocation3 + $0x1c0] sm:$0xff] }
 0x44b   :  { %3501 = vst.msk [vmem:[#allocation3 + $0x60] sm:$0xff] %vm3494_vm8, %v3315_v7  ;;  %v2932_v30 = vpop.permute.xlu1 %2931 }
 0x44c   :  { %3760 = vrot.lane.b32.xlu0 %v3596_v40, %s6081_s18  ;;  %3117 = vst.msk [vmem:[#allocation3 + $0x70] sm:$0xff] %vm3109_vm7, %v2932_v30  ;;  %v3961_v30 = vld [vmem:[#allocation2 + $0xf1] sm:$0xff] }
 0x44d   :  { %3376 = vrot.lane.b32.xlu1 %v11787_v9, %s6080_s15 }
 0x44e   :  { %v3701_v43 = vpop.permute.xlu0 %3700 }
 0x44f   :  { %3887 = vst.msk [vmem:[#allocation3 + $0x60] sm:$0xff] %vm3880_vm9, %v3701_v43  ;;  %v3317_v19 = vpop.permute.xlu1 %3316  ;;  %v4516_v39 = vld [vmem:[#allocation3 + $0x1d0] sm:$0xff] }
 0x450   :  { %4145 = vrot.lane.b32.xlu0 %v3981_v10, %s6082_s21  ;;  %3502 = vst.msk [vmem:[#allocation3 + $0x70] sm:$0xff] %vm3494_vm8, %v3317_v19  ;;  %v4614_v52 = vpack.c.bf16 %v4516_v39, %v4514_v14  ;;  %v11793_v43 = vld [vmem:[#allocation42_spill] sm:$0xff]  ;;  %v3577_v39 = vld [vmem:[#allocation2 + $0xf8] sm:$0xff] }
 0x451   :  { %3762 = vrot.lane.b32.xlu1 %v3597_v22, %s6081_s18 }
 0x452   :  { %v4086_v34 = vpop.permute.xlu0 %4085  ;;  %4963 = vmatmul.mubr.bf16.gmra.mrb[20].mxu1 %v4614_v52 }
 0x453   :  { %4272 = vst.msk [vmem:[#allocation3 + $0x60] sm:$0xff] %vm4265_vm10, %v4086_v34  ;;  %v3703_v49 = vpop.permute.xlu1 %3702  ;;  %5874 = vmatprep.mubr.msk.bf16.mxu1 %vm663_vm2, %v4617_v54  ;;  %v4597_v34 = vpack.c.bf16 %v4481_v53, %v4479_v42 }
 0x454   :  { %2945 = vrot.lane.b32.xlu0 %v3957_v41, %s6079_s30  ;;  %3888 = vst.msk [vmem:[#allocation3 + $0x70] sm:$0xff] %vm3880_vm9, %v3703_v49  ;;  %v3962_v49 = vld [vmem:[#allocation2 + $0xf9] sm:$0xff] }
 0x455   :  { %4147 = vrot.lane.b32.xlu1 %v3982_v27, %s6082_s21 }
 0x456   :  { %v2978_v29 = vpop.permute.xlu0 %2977 }
 0x457   :  { %3140 = vst.msk [vmem:[#allocation3 + $0x1e0] sm:$0xff] %vm3109_vm7, %v2978_v29  ;;  %v4088_v51 = vpop.permute.xlu1 %4087  ;;  %v11794_v29 = vld [vmem:[#allocation43_spill] sm:$0xff] }
 0x458   :  { %3330 = vrot.lane.b32.xlu0 %v11788_v3, %s6080_s15  ;;  %4273 = vst.msk [vmem:[#allocation3 + $0x70] sm:$0xff] %vm4265_vm10, %v4088_v51  ;;  %v3600_v51 = vld [vmem:[#allocation2 + $0x240] sm:$0xff] }
 0x459   :  { %2947 = vrot.lane.b32.xlu1 %v3958_v21, %s6079_s30 }
 0x45a   :  { %v3363_v31 = vpop.permute.xlu0 %3362  ;;  %v4470_v16 = vld [vmem:[#allocation3 + $0x60] sm:$0xff] }
 0x45b   :  { %3525 = vst.msk [vmem:[#allocation3 + $0x1e0] sm:$0xff] %vm3494_vm8, %v3363_v31  ;;  %v2980_v8 = vpop.permute.xlu1 %2979 }
 0x45c   :  { %3716 = vrot.lane.b32.xlu0 %v3574_v61, %s6081_s18  ;;  %3141 = vst.msk [vmem:[#allocation3 + $0x1f0] sm:$0xff] %vm3109_vm7, %v2980_v8  ;;  %v3985_v8 = vld [vmem:[#allocation2 + $0x241] sm:$0xff] }
 0x45d   :  { %3332 = vrot.lane.b32.xlu1 %v11789_v56, %s6080_s15  ;;  %v4529_v56 = vld [vmem:[#allocation3 + $0x238] sm:$0xff] }
 0x45e   :  { %v3749_v4 = vpop.permute.xlu0 %3748 }
 0x45f   :  { %3911 = vst.msk [vmem:[#allocation3 + $0x1e0] sm:$0xff] %vm3880_vm9, %v3749_v4  ;;  %v3365_v5 = vpop.permute.xlu1 %3364  ;;  %v4472_v37 = vld [vmem:[#allocation3 + $0x70] sm:$0xff]  ;;  %v11795_v4 = vld [vmem:[#allocation44_spill] sm:$0xff] }
 0x460   :  { %4101 = vrot.lane.b32.xlu0 %v3959_v2, %s6082_s21  ;;  %3526 = vst.msk [vmem:[#allocation3 + $0x1f0] sm:$0xff] %vm3494_vm8, %v3365_v5  ;;  %v4592_v15 = vpack.c.bf16 %v4472_v37, %v4470_v16  ;;  %v3601_v37 = vld [vmem:[#allocation2 + $0x248] sm:$0xff] }
 0x461   :  { %3718 = vrot.lane.b32.xlu1 %v3575_v33, %s6081_s18 }
 0x462   :  { %v4134_v20 = vpop.permute.xlu0 %4133  ;;  %4875 = vmatmul.mubr.bf16.gmra.mrb[76].mxu0 %v4592_v15 }
 0x463   :  { %4296 = vst.msk [vmem:[#allocation3 + $0x1e0] sm:$0xff] %vm4265_vm10, %v4134_v20  ;;  %v3751_v44 = vpop.permute.xlu1 %3750  ;;  %5863 = vmatprep.mubr.msk.bf16.mxu0 %vm663_vm2, %v4595_v0 }
 0x464   :  { %2993 = vrot.lane.b32.xlu0 %v3981_v10, %s6079_s30  ;;  %3912 = vst.msk [vmem:[#allocation3 + $0x1f0] sm:$0xff] %vm3880_vm9, %v3751_v44  ;;  %v3986_v44 = vld [vmem:[#allocation2 + $0x249] sm:$0xff] }
 0x465   :  { %4103 = vrot.lane.b32.xlu1 %v3960_v12, %s6082_s21 }
 0x466   :  { %v2934_v58 = vpop.permute.xlu0 %2933 }
 0x467   :  { %3118 = vst.msk [vmem:[#allocation3 + $0x80] sm:$0xff] %vm3109_vm7, %v2934_v58  ;;  %v4136_v47 = vpop.permute.xlu1 %4135  ;;  %v11796_v58 = vld [vmem:[#allocation45_spill] sm:$0xff] }
 0x468   :  { %3378 = vrot.lane.b32.xlu0 %v11790_v59, %s6080_s15  ;;  %4297 = vst.msk [vmem:[#allocation3 + $0x1f0] sm:$0xff] %vm4265_vm10, %v4136_v47  ;;  %v3602_v47 = vld [vmem:[#allocation2 + $0x258] sm:$0xff] }
 0x469   :  { %2995 = vrot.lane.b32.xlu1 %v3982_v27, %s6079_s30 }
 0x46a   :  { %v3319_v60 = vpop.permute.xlu0 %3318  ;;  %v4518_v41 = vld [vmem:[#allocation3 + $0x1e0] sm:$0xff] }
 0x46b   :  { %3503 = vst.msk [vmem:[#allocation3 + $0x80] sm:$0xff] %vm3494_vm8, %v3319_v60  ;;  %v2936_v24 = vpop.permute.xlu1 %2935 }
 0x46c   :  { %3764 = vrot.lane.b32.xlu0 %v3598_v6, %s6081_s18  ;;  %3119 = vst.msk [vmem:[#allocation3 + $0x90] sm:$0xff] %vm3109_vm7, %v2936_v24  ;;  %v3987_v24 = vld [vmem:[#allocation2 + $0x259] sm:$0xff] }
 0x46d   :  { %3380 = vrot.lane.b32.xlu1 %v11791_v38, %s6080_s15  ;;  %v4485_v38 = vld [vmem:[#allocation3 + $0xd8] sm:$0xff] }
 0x46e   :  { %v3705_v28 = vpop.permute.xlu0 %3704 }
 0x46f   :  { %3889 = vst.msk [vmem:[#allocation3 + $0x80] sm:$0xff] %vm3880_vm9, %v3705_v28  ;;  %v3321_v17 = vpop.permute.xlu1 %3320  ;;  %v4520_v25 = vld [vmem:[#allocation3 + $0x1f0] sm:$0xff] }
 0x470   :  { %4149 = vrot.lane.b32.xlu0 %v3983_v32, %s6082_s21  ;;  %3504 = vst.msk [vmem:[#allocation3 + $0x90] sm:$0xff] %vm3494_vm8, %v3321_v17  ;;  %v4616_v48 = vpack.c.bf16 %v4520_v25, %v4518_v41  ;;  %v11797_v28 = vld [vmem:[#allocation46_spill] sm:$0xff]  ;;  %v3603_v25 = vld [vmem:[#allocation2 + $0x260] sm:$0xff] }
 0x471   :  { %3766 = vrot.lane.b32.xlu1 %v3599_v1, %s6081_s18 }
 0x472   :  { %v4090_v57 = vpop.permute.xlu0 %4089  ;;  %4971 = vmatmul.mubr.bf16.gmra.mrb[24].mxu1 %v4616_v48 }
 0x473   :  { %4274 = vst.msk [vmem:[#allocation3 + $0x80] sm:$0xff] %vm4265_vm10, %v4090_v57  ;;  %5875 = vmatprep.mubr.msk.bf16.mxu1 %vm663_vm2, %v4619_v11  ;;  %v3707_v36 = vpop.permute.xlu1 %3706 }
 0x474   :  { %2949 = vrot.lane.b32.xlu0 %v3959_v2, %s6079_s30  ;;  %3890 = vst.msk [vmem:[#allocation3 + $0x90] sm:$0xff] %vm3880_vm9, %v3707_v36  ;;  %v4527_v2 = vld [vmem:[#allocation3 + $0x228] sm:$0xff] }
 0x475   :  { %4151 = vrot.lane.b32.xlu1 %v3984_v63, %s6082_s21  ;;  %v4621_v33 = vpack.c.bf16 %v4529_v56, %v4527_v2  ;;  %v3988_v36 = vld [vmem:[#allocation2 + $0x261] sm:$0xff]  ;;  %v3991_v2 = vld [vmem:[#allocation2 + $0x289] sm:$0xff] }
 0x476   :  { %v2982_v26 = vpop.permute.xlu0 %2981  ;;  %v11801_v56 = vld [vmem:[#allocation50_spill] sm:$0xff] }
 0x477   :  { %3142 = vst.msk [vmem:[#allocation3 + $0x200] sm:$0xff] %vm3109_vm7, %v2982_v26  ;;  %v4092_v21 = vpop.permute.xlu1 %4091  ;;  %v11798_v26 = vld [vmem:[#allocation47_spill] sm:$0xff] }
 0x478   :  { %3334 = vrot.lane.b32.xlu0 %v11792_v35, %s6080_s15  ;;  %4275 = vst.msk [vmem:[#allocation3 + $0x90] sm:$0xff] %vm4265_vm10, %v4092_v21  ;;  %v3604_v21 = vld [vmem:[#allocation2 + $0x270] sm:$0xff] }
 0x479   :  { %2951 = vrot.lane.b32.xlu1 %v3960_v12, %s6079_s30 }
 0x47a   :  { %v3367_v23 = vpop.permute.xlu0 %3366  ;;  %v4474_v9 = vld [vmem:[#allocation3 + $0x80] sm:$0xff] }
 0x47b   :  { %3527 = vst.msk [vmem:[#allocation3 + $0x200] sm:$0xff] %vm3494_vm8, %v3367_v23  ;;  %v2984_v7 = vpop.permute.xlu1 %2983 }
 0x47c   :  { %3720 = vrot.lane.b32.xlu0 %v3576_v45, %s6081_s18  ;;  %3143 = vst.msk [vmem:[#allocation3 + $0x210] sm:$0xff] %vm3109_vm7, %v2984_v7  ;;  %v3989_v7 = vld [vmem:[#allocation2 + $0x271] sm:$0xff] }
 0x47d   :  { %3336 = vrot.lane.b32.xlu1 %v11793_v43, %s6080_s15  ;;  %v4533_v43 = vld [vmem:[#allocation3 + $0x258] sm:$0xff] }
 0x47e   :  { %v3753_v40 = vpop.permute.xlu0 %3752 }
 0x47f   :  { %3913 = vst.msk [vmem:[#allocation3 + $0x200] sm:$0xff] %vm3880_vm9, %v3753_v40  ;;  %v3369_v10 = vpop.permute.xlu1 %3368  ;;  %v4476_v19 = vld [vmem:[#allocation3 + $0x90] sm:$0xff]  ;;  %v11799_v40 = vld [vmem:[#allocation48_spill] sm:$0xff] }
 0x480   :  { %4105 = vrot.lane.b32.xlu0 %v3961_v30, %s6082_s21  ;;  %3528 = vst.msk [vmem:[#allocation3 + $0x210] sm:$0xff] %vm3494_vm8, %v3369_v10  ;;  %v4594_v54 = vpack.c.bf16 %v4476_v19, %v4474_v9  ;;  %v4531_v30 = vld [vmem:[#allocation3 + $0x248] sm:$0xff]  ;;  %v3605_v19 = vld [vmem:[#allocation2 + $0x278] sm:$0xff] }
 0x481   :  { %3722 = vrot.lane.b32.xlu1 %v3577_v39, %s6081_s18 }
 0x482   :  { %v4138_v14 = vpop.permute.xlu0 %4137  ;;  %4883 = vmatmul.mubr.bf16.gmra.mrb[80].mxu0 %v4594_v54  ;;  %v4623_v54 = vpack.c.bf16 %v4533_v43, %v4531_v30 }
 0x483   :  { %4298 = vst.msk [vmem:[#allocation3 + $0x200] sm:$0xff] %vm4265_vm10, %v4138_v14  ;;  %v3755_v22 = vpop.permute.xlu1 %3754  ;;  %5864 = vmatprep.mubr.msk.bf16.mxu0 %vm663_vm2, %v4597_v34 }
 0x484   :  { %2997 = vrot.lane.b32.xlu0 %v3983_v32, %s6079_s30  ;;  %3914 = vst.msk [vmem:[#allocation3 + $0x210] sm:$0xff] %vm3880_vm9, %v3755_v22  ;;  %v4483_v32 = vld [vmem:[#allocation3 + $0xc8] sm:$0xff] }
 0x485   :  { %4107 = vrot.lane.b32.xlu1 %v3962_v49, %s6082_s21  ;;  %v4599_v1 = vpack.c.bf16 %v4485_v38, %v4483_v32  ;;  %v3608_v38 = vld [vmem:[#allocation2 + $0x2a0] sm:$0xff] }
 0x486   :  { %v2938_v52 = vpop.permute.xlu0 %2937 }
 0x487   :  { %3120 = vst.msk [vmem:[#allocation3 + $0xa0] sm:$0xff] %vm3109_vm7, %v2938_v52  ;;  %v4140_v27 = vpop.permute.xlu1 %4139 }
 0x488   :  { %3382 = vrot.lane.b32.xlu0 %v11794_v29, %s6080_s15  ;;  %4299 = vst.msk [vmem:[#allocation3 + $0x210] sm:$0xff] %vm4265_vm10, %v4140_v27  ;;  %v3990_v27 = vld [vmem:[#allocation2 + $0x279] sm:$0xff] }
 0x489   :  { %2999 = vrot.lane.b32.xlu1 %v3984_v63, %s6079_s30 }
 0x48a   :  { %v3323_v3 = vpop.permute.xlu0 %3322  ;;  %v4522_v46 = vld [vmem:[#allocation3 + $0x200] sm:$0xff] }
 0x48b   :  { %3505 = vst.msk [vmem:[#allocation3 + $0xa0] sm:$0xff] %vm3494_vm8, %v3323_v3  ;;  %v2940_v31 = vpop.permute.xlu1 %2939  ;;  %v11800_v3 = vld [vmem:[#allocation49_spill] sm:$0xff] }
 0x48c   :  { %3768 = vrot.lane.b32.xlu0 %v3600_v51, %s6081_s18  ;;  %3121 = vst.msk [vmem:[#allocation3 + $0xb0] sm:$0xff] %vm3109_vm7, %v2940_v31 }
 0x48d   :  { %3384 = vrot.lane.b32.xlu1 %v11795_v4, %s6080_s15 }
 0x48e   :  { %v3709_v61 = vpop.permute.xlu0 %3708 }
 0x48f   :  { %3891 = vst.msk [vmem:[#allocation3 + $0xa0] sm:$0xff] %vm3880_vm9, %v3709_v61  ;;  %v3325_v13 = vpop.permute.xlu1 %3324  ;;  %v4524_v5 = vld [vmem:[#allocation3 + $0x210] sm:$0xff]  ;;  %v3606_v61 = vld [vmem:[#allocation2 + $0x288] sm:$0xff] }
 0x490   :  { %4153 = vrot.lane.b32.xlu0 %v3985_v8, %s6082_s21  ;;  %3506 = vst.msk [vmem:[#allocation3 + $0xb0] sm:$0xff] %vm3494_vm8, %v3325_v13  ;;  %v4618_v20 = vpack.c.bf16 %v4524_v5, %v4522_v46  ;;  %v4487_v13 = vld [vmem:[#allocation3 + $0xe8] sm:$0xff]  ;;  %v4489_v46 = vld [vmem:[#allocation3 + $0xf8] sm:$0xff] }
 0x491   :  { %3770 = vrot.lane.b32.xlu1 %v3601_v37, %s6081_s18 }
 0x492   :  { %v4094_v16 = vpop.permute.xlu0 %4093  ;;  %4979 = vmatmul.mubr.bf16.gmra.mrb[28].mxu1 %v4618_v20 }
 0x493   :  { %4276 = vst.msk [vmem:[#allocation3 + $0xa0] sm:$0xff] %vm4265_vm10, %v4094_v16  ;;  %5876 = vmatprep.mubr.msk.bf16.mxu1 %vm663_vm2, %v4621_v33  ;;  %v3711_v15 = vpop.permute.xlu1 %3710  ;;  %v3607_v33 = vld [vmem:[#allocation2 + $0x290] sm:$0xff] }
 0x494   :  { %3001 = vrot.lane.b32.xlu0 %v3985_v8, %s6079_s30  ;;  %3892 = vst.msk [vmem:[#allocation3 + $0xb0] sm:$0xff] %vm3880_vm9, %v3711_v15 }
 0x495   :  { %4155 = vrot.lane.b32.xlu1 %v3986_v44, %s6082_s21 }
 0x496   :  { %v2986_v0 = vpop.permute.xlu0 %2985 }
 0x497   :  { %3144 = vst.msk [vmem:[#allocation3 + $0x220] sm:$0xff] %vm3109_vm7, %v2986_v0  ;;  %v4096_v12 = vpop.permute.xlu1 %4095 }
 0x498   :  { %3386 = vrot.lane.b32.xlu0 %v11796_v58, %s6080_s15  ;;  %4277 = vst.msk [vmem:[#allocation3 + $0xb0] sm:$0xff] %vm4265_vm10, %v4096_v12 }
 0x499   :  { %3003 = vrot.lane.b32.xlu1 %v3986_v44, %s6079_s30  ;;  %v4601_v44 = vpack.c.bf16 %v4489_v46, %v4487_v13 }
 0x49a   :  { %v3371_v59 = vpop.permute.xlu0 %3370  ;;  %v4478_v55 = vld [vmem:[#allocation3 + $0xa0] sm:$0xff] }
 0x49b   :  { %3529 = vst.msk [vmem:[#allocation3 + $0x220] sm:$0xff] %vm3494_vm8, %v3371_v59  ;;  %v2988_v60 = vpop.permute.xlu1 %2987 }
 0x49c   :  { %3772 = vrot.lane.b32.xlu0 %v3602_v47, %s6081_s18  ;;  %3145 = vst.msk [vmem:[#allocation3 + $0x230] sm:$0xff] %vm3109_vm7, %v2988_v60 }
 0x49d   :  { %3388 = vrot.lane.b32.xlu1 %v11797_v28, %s6080_s15 }
 0x49e   :  { %v3757_v6 = vpop.permute.xlu0 %3756 }
 0x49f   :  { %3915 = vst.msk [vmem:[#allocation3 + $0x220] sm:$0xff] %vm3880_vm9, %v3757_v6  ;;  %v3373_v41 = vpop.permute.xlu1 %3372  ;;  %v4480_v62 = vld [vmem:[#allocation3 + $0xb0] sm:$0xff] }
 0x4a0   :  { %4157 = vrot.lane.b32.xlu0 %v3987_v24, %s6082_s21  ;;  %3530 = vst.msk [vmem:[#allocation3 + $0x230] sm:$0xff] %vm3494_vm8, %v3373_v41  ;;  %v4596_v57 = vpack.c.bf16 %v4480_v62, %v4478_v55  ;;  %v3992_v6 = vld [vmem:[#allocation2 + $0x291] sm:$0xff]  ;;  %v3993_v62 = vld [vmem:[#allocation2 + $0x2a1] sm:$0xff] }
 0x4a1   :  { %3774 = vrot.lane.b32.xlu1 %v3603_v25, %s6081_s18  ;;  %v4537_v25 = vld [vmem:[#allocation3 + $0x278] sm:$0xff] }
 0x4a2   :  { %v4142_v17 = vpop.permute.xlu0 %4141  ;;  %4891 = vmatmul.mubr.bf16.gmra.mrb[84].mxu0 %v4596_v57 }
 0x4a3   :  { %4300 = vst.msk [vmem:[#allocation3 + $0x220] sm:$0xff] %vm4265_vm10, %v4142_v17  ;;  %v3759_v48 = vpop.permute.xlu1 %3758  ;;  %5865 = vmatprep.mubr.msk.bf16.mxu0 %vm663_vm2, %v4599_v1  ;;  %v4535_v17 = vld [vmem:[#allocation3 + $0x268] sm:$0xff] }
 0x4a4   :  { %3005 = vrot.lane.b32.xlu0 %v3987_v24, %s6079_s30  ;;  %3916 = vst.msk [vmem:[#allocation3 + $0x230] sm:$0xff] %vm3880_vm9, %v3759_v48  ;;  %v11802_v24 = vld [vmem:[#allocation51_spill] sm:$0xff] }
 0x4a5   :  { %4159 = vrot.lane.b32.xlu1 %v3988_v36, %s6082_s21 }
 0x4a6   :  { %v2942_v11 = vpop.permute.xlu0 %2941 }
 0x4a7   :  { %3122 = vst.msk [vmem:[#allocation3 + $0xc0] sm:$0xff] %vm3109_vm7, %v2942_v11  ;;  %v4144_v63 = vpop.permute.xlu1 %4143 }
 0x4a8   :  { %3390 = vrot.lane.b32.xlu0 %v11798_v26, %s6080_s15  ;;  %4301 = vst.msk [vmem:[#allocation3 + $0x230] sm:$0xff] %vm4265_vm10, %v4144_v63 }
 0x4a9   :  { %3007 = vrot.lane.b32.xlu1 %v3988_v36, %s6079_s30  ;;  %v3609_v36 = vld [vmem:[#allocation2 + $0x2a8] sm:$0xff] }
 0x4aa   :  { %v3327_v35 = vpop.permute.xlu0 %3326  ;;  %v4526_v53 = vld [vmem:[#allocation3 + $0x220] sm:$0xff] }
 0x4ab   :  { %3507 = vst.msk [vmem:[#allocation3 + $0xc0] sm:$0xff] %vm3494_vm8, %v3327_v35  ;;  %v2944_v23 = vpop.permute.xlu1 %2943  ;;  %v4625_v35 = vpack.c.bf16 %v4537_v25, %v4535_v17 }
 0x4ac   :  { %3776 = vrot.lane.b32.xlu0 %v3604_v21, %s6081_s18  ;;  %3123 = vst.msk [vmem:[#allocation3 + $0xd0] sm:$0xff] %vm3109_vm7, %v2944_v23 }
 0x4ad   :  { %3392 = vrot.lane.b32.xlu1 %v11799_v40, %s6080_s15  ;;  %v3994_v40 = vld [vmem:[#allocation2 + $0x2a9] sm:$0xff] }
 0x4ae   :  { %v3713_v45 = vpop.permute.xlu0 %3712 }
 0x4af   :  { %3893 = vst.msk [vmem:[#allocation3 + $0xc0] sm:$0xff] %vm3880_vm9, %v3713_v45  ;;  %v3329_v42 = vpop.permute.xlu1 %3328  ;;  %v4528_v10 = vld [vmem:[#allocation3 + $0x230] sm:$0xff] }
 0x4b0   :  { %4161 = vrot.lane.b32.xlu0 %v3989_v7, %s6082_s21  ;;  %3508 = vst.msk [vmem:[#allocation3 + $0xd0] sm:$0xff] %vm3494_vm8, %v3329_v42  ;;  %v4620_v14 = vpack.c.bf16 %v4528_v10, %v4526_v53  ;;  %v3610_v42 = vld [vmem:[#allocation2 + $0x2b8] sm:$0xff] }
 0x4b1   :  { %v9464_v39 = vpop.f32.mrb[0].mxu1  ;;  %3778 = vrot.lane.b32.xlu1 %v3605_v19, %s6081_s18 }
 0x4b2   :  { %v4098_v9 = vpop.permute.xlu0 %4097  ;;  %v4926_v34 = vpop.f32.mrb[1].mxu1  ;;  %4987 = vmatmul.mubr.bf16.gmra.mrb[32].mxu1 %v4620_v14 }
 0x4b3   :  { %4278 = vst.msk [vmem:[#allocation3 + $0xc0] sm:$0xff] %vm4265_vm10, %v4098_v9  ;;  %v9468_v22 = vpop.f32.mrb[2].mxu1  ;;  %5877 = vmatprep.mubr.msk.bf16.mxu1 %vm663_vm2, %v4623_v54  ;;  %v3715_v52 = vpop.permute.xlu1 %3714  ;;  %v3995_v9 = vld [vmem:[#allocation2 + $0x2b9] sm:$0xff]  ;;  %v4491_v34 = vld [vmem:[#allocation3 + $0x108] sm:$0xff] }
 0x4b4   :  { %3009 = vrot.lane.b32.xlu0 %v3989_v7, %s6079_s30  ;;  %3894 = vst.msk [vmem:[#allocation3 + $0xd0] sm:$0xff] %vm3880_vm9, %v3715_v52  ;;  %v4929_v29 = vpop.f32.mrb[3].mxu1  ;;  %v4493_v52 = vld [vmem:[#allocation3 + $0x118] sm:$0xff] }
 0x4b5   :  { %4163 = vrot.lane.b32.xlu1 %v3990_v27, %s6082_s21  ;;  %v4603_v46 = vpack.c.bf16 %v4493_v52, %v4491_v34 }
 0x4b6   :  { %v2990_v49 = vpop.permute.xlu0 %2989 }
 0x4b7   :  { %3146 = vst.msk [vmem:[#allocation3 + $0x240] sm:$0xff] %vm3109_vm7, %v2990_v49  ;;  %v4100_v51 = vpop.permute.xlu1 %4099 }
 0x4b8   :  { %3394 = vrot.lane.b32.xlu0 %v11800_v3, %s6080_s15  ;;  %4279 = vst.msk [vmem:[#allocation3 + $0xd0] sm:$0xff] %vm4265_vm10, %v4100_v51 }
 0x4b9   :  { %3011 = vrot.lane.b32.xlu1 %v3990_v27, %s6079_s30 }
 0x4ba   :  { %v3375_v31 = vpop.permute.xlu0 %3374  ;;  %v4482_v16 = vld [vmem:[#allocation3 + $0xc0] sm:$0xff] }
 0x4bb   :  { %3531 = vst.msk [vmem:[#allocation3 + $0x240] sm:$0xff] %vm3494_vm8, %v3375_v31  ;;  %v2992_v8 = vpop.permute.xlu1 %2991 }
 0x4bc   :  { %3780 = vrot.lane.b32.xlu0 %v3606_v61, %s6081_s18  ;;  %3147 = vst.msk [vmem:[#allocation3 + $0x250] sm:$0xff] %vm3109_vm7, %v2992_v8 }
 0x4bd   :  { %3396 = vrot.lane.b32.xlu1 %v11801_v56, %s6080_s15 }
 0x4be   :  { %v3761_v4 = vpop.permute.xlu0 %3760 }
 0x4bf   :  { %3917 = vst.msk [vmem:[#allocation3 + $0x240] sm:$0xff] %vm3880_vm9, %v3761_v4  ;;  %v3377_v5 = vpop.permute.xlu1 %3376  ;;  %v4484_v37 = vld [vmem:[#allocation3 + $0xd0] sm:$0xff] }
 0x4c0   :  { %4165 = vrot.lane.b32.xlu0 %v3991_v2, %s6082_s21  ;;  %3532 = vst.msk [vmem:[#allocation3 + $0x250] sm:$0xff] %vm3494_vm8, %v3377_v5  ;;  %v4598_v15 = vpack.c.bf16 %v4484_v37, %v4482_v16 }
 0x4c1   :  { %v9487_v0 = vpop.f32.mrb[4].mxu1  ;;  %3782 = vrot.lane.b32.xlu1 %v3607_v33, %s6081_s18 }
 0x4c2   :  { %v4146_v20 = vpop.permute.xlu0 %4145  ;;  %4899 = vmatmul.mubr.bf16.gmra.mrb[88].mxu0 %v4598_v15  ;;  %v4934_v58 = vpop.f32.mrb[5].mxu1  ;;  %v3996_v15 = vld [vmem:[#allocation2 + $0x2c1] sm:$0xff] }
 0x4c3   :  { %4302 = vst.msk [vmem:[#allocation3 + $0x240] sm:$0xff] %vm4265_vm10, %v4146_v20  ;;  %v9491_v12 = vpop.f32.mrb[6].mxu1  ;;  %v3763_v59 = vpop.permute.xlu1 %3762  ;;  %5866 = vmatprep.mubr.msk.bf16.mxu0 %vm663_vm2, %v4601_v44  ;;  %v11804_v44 = vld [vmem:[#allocation53_spill] sm:$0xff] }
 0x4c4   :  { %3013 = vrot.lane.b32.xlu0 %v3991_v2, %s6079_s30  ;;  %3918 = vst.msk [vmem:[#allocation3 + $0x250] sm:$0xff] %vm3880_vm9, %v3763_v59  ;;  %v4937_v60 = vpop.f32.mrb[7].mxu1  ;;  %v3611_v2 = vld [vmem:[#allocation2 + $0x2c0] sm:$0xff] }
 0x4c5   :  { %4167 = vrot.lane.b32.xlu1 %v3992_v6, %s6082_s21 }
 0x4c6   :  { %v2946_v47 = vpop.permute.xlu0 %2945 }
 0x4c7   :  { %3124 = vst.msk [vmem:[#allocation3 + $0xe0] sm:$0xff] %vm3109_vm7, %v2946_v47  ;;  %v4148_v28 = vpop.permute.xlu1 %4147  ;;  %v3612_v47 = vld [vmem:[#allocation2 + $0x2d0] sm:$0xff] }
 0x4c8   :  { %3398 = vrot.lane.b32.xlu0 %v11802_v24, %s6080_s15  ;;  %4303 = vst.msk [vmem:[#allocation3 + $0x250] sm:$0xff] %vm4265_vm10, %v4148_v28  ;;  %v3997_v24 = vld [vmem:[#allocation2 + $0x2d1] sm:$0xff] }
 0x4c9   :  { %3015 = vrot.lane.b32.xlu1 %v3992_v6, %s6079_s30 }
 0x4ca   :  { %v3331_v32 = vpop.permute.xlu0 %3330  ;;  %v4530_v1 = vld [vmem:[#allocation3 + $0x240] sm:$0xff] }
 0x4cb   :  { %3509 = vst.msk [vmem:[#allocation3 + $0xe0] sm:$0xff] %vm3494_vm8, %v3331_v32  ;;  %v2948_v41 = vpop.permute.xlu1 %2947  ;;  %v11805_v32 = vld [vmem:[#allocation54_spill] sm:$0xff] }
 0x4cc   :  { %3784 = vrot.lane.b32.xlu0 %v3608_v38, %s6081_s18  ;;  %3125 = vst.msk [vmem:[#allocation3 + $0xf0] sm:$0xff] %vm3109_vm7, %v2948_v41  ;;  %v4539_v41 = vld [vmem:[#allocation3 + $0x288] sm:$0xff] }
 0x4cd   :  { %3400 = vrot.lane.b32.xlu1 %v8606_v50, %s6080_s15 }
 0x4ce   :  { %v3717_v55 = vpop.permute.xlu0 %3716 }
 0x4cf   :  { %3895 = vst.msk [vmem:[#allocation3 + $0xe0] sm:$0xff] %vm3880_vm9, %v3717_v55  ;;  %v3333_v57 = vpop.permute.xlu1 %3332  ;;  %v4532_v48 = vld [vmem:[#allocation3 + $0x250] sm:$0xff]  ;;  %v4541_v55 = vld [vmem:[#allocation3 + $0x298] sm:$0xff] }
 0x4d0   :  { %4169 = vrot.lane.b32.xlu0 %v3993_v62, %s6082_s21  ;;  %3510 = vst.msk [vmem:[#allocation3 + $0xf0] sm:$0xff] %vm3494_vm8, %v3333_v57  ;;  %v4622_v26 = vpack.c.bf16 %v4532_v48, %v4530_v1 }
 0x4d1   :  { %v9510_v63 = vpop.f32.mrb[8].mxu1  ;;  %3786 = vrot.lane.b32.xlu1 %v3609_v36, %s6081_s18 }
 0x4d2   :  { %v4102_v11 = vpop.permute.xlu0 %4101  ;;  %v4942_v50 = vpop.f32.mrb[9].mxu1  ;;  %4995 = vmatmul.mubr.bf16.gmra.mrb[36].mxu1 %v4622_v26  ;;  %v4627_v26 = vpack.c.bf16 %v4541_v55, %v4539_v41  ;;  %v4001_v41 = vld [vmem:[#allocation2 + $0x301] sm:$0xff]  ;;  %v11809_v55 = vld [vmem:[#allocation58_spill] sm:$0xff] }
 0x4d3   :  { %4280 = vst.msk [vmem:[#allocation3 + $0xe0] sm:$0xff] %vm4265_vm10, %v4102_v11  ;;  %v9514_v21 = vpop.f32.mrb[10].mxu1  ;;  %5878 = vmatprep.mubr.msk.bf16.mxu1 %vm663_vm2, %v4625_v35  ;;  %v3719_v23 = vpop.permute.xlu1 %3718  ;;  %v3613_v11 = vld [vmem:[#allocation2 + $0x2d8] sm:$0xff] }
 0x4d4   :  { %3017 = vrot.lane.b32.xlu0 %v3993_v62, %s6079_s30  ;;  %3896 = vst.msk [vmem:[#allocation3 + $0xf0] sm:$0xff] %vm3880_vm9, %v3719_v23  ;;  %v4945_v7 = vpop.f32.mrb[11].mxu1  ;;  %v3998_v23 = vld [vmem:[#allocation2 + $0x2d9] sm:$0xff] }
 0x4d5   :  { %4171 = vrot.lane.b32.xlu1 %v3994_v40, %s6082_s21 }
 0x4d6   :  { %v2994_v45 = vpop.permute.xlu0 %2993 }
 0x4d7   :  { %3148 = vst.msk [vmem:[#allocation3 + $0x260] sm:$0xff] %vm3109_vm7, %v2994_v45  ;;  %v4104_v30 = vpop.permute.xlu1 %4103  ;;  %v11806_v45 = vld [vmem:[#allocation55_spill] sm:$0xff] }
 0x4d8   :  { %3402 = vrot.lane.b32.xlu0 %v8611_v18, %s6080_s15  ;;  %4281 = vst.msk [vmem:[#allocation3 + $0xf0] sm:$0xff] %vm4265_vm10, %v4104_v30  ;;  %v11803_v18 = vld [vmem:[#allocation52_spill] sm:$0xff]  ;;  %v3614_v30 = vld [vmem:[#allocation2 + $0x2e8] sm:$0xff] }
 0x4d9   :  { %3019 = vrot.lane.b32.xlu1 %v3994_v40, %s6079_s30 }
 0x4da   :  { %v3379_v43 = vpop.permute.xlu0 %3378  ;;  %v4486_v27 = vld [vmem:[#allocation3 + $0xe0] sm:$0xff] }
 0x4db   :  { %3533 = vst.msk [vmem:[#allocation3 + $0x260] sm:$0xff] %vm3494_vm8, %v3379_v43  ;;  %v2996_v53 = vpop.permute.xlu1 %2995 }
 0x4dc   :  { %3788 = vrot.lane.b32.xlu0 %v3610_v42, %s6081_s18  ;;  %3149 = vst.msk [vmem:[#allocation3 + $0x270] sm:$0xff] %vm3109_vm7, %v2996_v53 }
 0x4dd   :  { %v9528_v19 = vpop.f32.mrb[64].mxu0  ;;  %3404 = vrot.lane.b32.xlu1 %v11803_v18, %s6080_s15 }
 0x4de   :  { %v3765_v10 = vpop.permute.xlu0 %3764  ;;  %v5243_v14 = vmul.f32 %v9528_v19, %v9528_v19  ;;  %v4854_v54 = vpop.f32.mrb[65].mxu0  ;;  %v5109_v51 = vsel %vm663_vm2, %v9528_v19, 0.0 }
 0x4df   :  { %3919 = vst.msk [vmem:[#allocation3 + $0x260] sm:$0xff] %vm3880_vm9, %v3765_v10  ;;  %v9535_v49 = vpop.f32.mrb[66].mxu0  ;;  %v3381_v29 = vpop.permute.xlu1 %3380  ;;  %v4488_v3 = vld [vmem:[#allocation3 + $0xf0] sm:$0xff] }
 0x4e0   :  { %4173 = vrot.lane.b32.xlu0 %v3995_v9, %s6082_s21  ;;  %v5110_v61 = vsel %vm663_vm2, %v9535_v49, 0.0  ;;  %v5244_v8 = vmul.f32 %v9535_v49, %v9535_v49  ;;  %3534 = vst.msk [vmem:[#allocation3 + $0x270] sm:$0xff] %vm3494_vm8, %v3381_v29  ;;  %v4857_v4 = vpop.f32.mrb[67].mxu0  ;;  %v4600_v56 = vpack.c.bf16 %v4488_v3, %v4486_v27  ;;  %v5307_v5 = vsel %vm663_vm2, %v5243_v14, 0.0 }
 0x4e1   :  { %v9545_v13 = vadd.f32 %v5110_v61, %v5109_v51  ;;  %3790 = vrot.lane.b32.xlu1 %v3611_v2, %s6081_s18  ;;  %v11807_v61 = vld [vmem:[#allocation56_spill] sm:$0xff] }
 0x4e2   :  { %v4150_v31 = vpop.permute.xlu0 %4149  ;;  %v5308_v16 = vsel %vm663_vm2, %v5244_v8, 0.0  ;;  %4907 = vmatmul.mubr.bf16.gmra.mrb[92].mxu0 %v4600_v56 }
 0x4e3   :  { %4304 = vst.msk [vmem:[#allocation3 + $0x260] sm:$0xff] %vm4265_vm10, %v4150_v31  ;;  %v9551_v37 = vadd.f32 %v5308_v16, %v5307_v5  ;;  %v3767_v20 = vpop.permute.xlu1 %3766  ;;  %5867 = vmatprep.mubr.msk.bf16.mxu0 %vm663_vm2, %v4603_v46  ;;  %v3999_v31 = vld [vmem:[#allocation2 + $0x2e9] sm:$0xff] }
 0x4e4   :  { %3021 = vrot.lane.b32.xlu0 %v3995_v9, %s6079_s30  ;;  %3920 = vst.msk [vmem:[#allocation3 + $0x270] sm:$0xff] %vm3880_vm9, %v3767_v20  ;;  %v3615_v5 = vld [vmem:[#allocation2 + $0x2f0] sm:$0xff] }
 0x4e5   :  { %4175 = vrot.lane.b32.xlu1 %v3996_v15, %s6082_s21 }
 0x4e6   :  { %v2950_v33 = vpop.permute.xlu0 %2949 }
 0x4e7   :  { %3126 = vst.msk [vmem:[#allocation3 + $0x100] sm:$0xff] %vm3109_vm7, %v2950_v33  ;;  %v4152_v58 = vpop.permute.xlu1 %4151  ;;  %v4000_v33 = vld [vmem:[#allocation2 + $0x2f1] sm:$0xff] }
 0x4e8   :  { %3406 = vrot.lane.b32.xlu0 %v11804_v44, %s6080_s15  ;;  %4305 = vst.msk [vmem:[#allocation3 + $0x270] sm:$0xff] %vm4265_vm10, %v4152_v58 }
 0x4e9   :  { %3023 = vrot.lane.b32.xlu1 %v3996_v15, %s6079_s30  ;;  %v11808_v15 = vld [vmem:[#allocation57_spill] sm:$0xff] }
 0x4ea   :  { %v3335_v59 = vpop.permute.xlu0 %3334  ;;  %v4534_v25 = vld [vmem:[#allocation3 + $0x260] sm:$0xff] }
 0x4eb   :  { %3511 = vst.msk [vmem:[#allocation3 + $0x100] sm:$0xff] %vm3494_vm8, %v3335_v59  ;;  %v2952_v60 = vpop.permute.xlu1 %2951  ;;  %v3616_v59 = vld [vmem:[#allocation2 + $0x300] sm:$0xff] }
 0x4ec   :  { %3792 = vrot.lane.b32.xlu0 %v3612_v47, %s6081_s18  ;;  %3127 = vst.msk [vmem:[#allocation3 + $0x110] sm:$0xff] %vm3109_vm7, %v2952_v60 }
 0x4ed   :  { %v9565_v28 = vpop.f32.mrb[12].mxu1  ;;  %3408 = vrot.lane.b32.xlu1 %v11805_v32, %s6080_s15 }
 0x4ee   :  { %v3721_v6 = vpop.permute.xlu0 %3720  ;;  %v4950_v38 = vpop.f32.mrb[13].mxu1 }
 0x4ef   :  { %3897 = vst.msk [vmem:[#allocation3 + $0x100] sm:$0xff] %vm3880_vm9, %v3721_v6  ;;  %v9570_v62 = vpop.f32.mrb[14].mxu1  ;;  %v3337_v17 = vpop.permute.xlu1 %3336  ;;  %v4536_v57 = vld [vmem:[#allocation3 + $0x270] sm:$0xff] }
 0x4f0   :  { %4177 = vrot.lane.b32.xlu0 %v3997_v24, %s6082_s21  ;;  %3512 = vst.msk [vmem:[#allocation3 + $0x110] sm:$0xff] %vm3494_vm8, %v3337_v17  ;;  %v4953_v48 = vpop.f32.mrb[15].mxu1  ;;  %v4624_v36 = vpack.c.bf16 %v4536_v57, %v4534_v25  ;;  %v4543_v17 = vld [vmem:[#allocation3 + $0x2a8] sm:$0xff]  ;;  %v4545_v25 = vld [vmem:[#allocation3 + $0x2b8] sm:$0xff] }
 0x4f1   :  { %3794 = vrot.lane.b32.xlu1 %v3613_v11, %s6081_s18 }
 0x4f2   :  { %v4106_v1 = vpop.permute.xlu0 %4105  ;;  %5003 = vmatmul.mubr.bf16.gmra.mrb[40].mxu1 %v4624_v36  ;;  %v3617_v36 = vld [vmem:[#allocation2 + $0x308] sm:$0xff] }
 0x4f3   :  { %4282 = vst.msk [vmem:[#allocation3 + $0x100] sm:$0xff] %vm4265_vm10, %v4106_v1  ;;  %5879 = vmatprep.mubr.msk.bf16.mxu1 %vm663_vm2, %v4627_v26  ;;  %v3723_v35 = vpop.permute.xlu1 %3722 }
 0x4f4   :  { %3025 = vrot.lane.b32.xlu0 %v3997_v24, %s6079_s30  ;;  %3898 = vst.msk [vmem:[#allocation3 + $0x110] sm:$0xff] %vm3880_vm9, %v3723_v35  ;;  %v4629_v35 = vpack.c.bf16 %v4545_v25, %v4543_v17 }
 0x4f5   :  { %4179 = vrot.lane.b32.xlu1 %v3998_v23, %s6082_s21 }
 0x4f6   :  { %v2998_v50 = vpop.permute.xlu0 %2997 }
 0x4f7   :  { %3150 = vst.msk [vmem:[#allocation3 + $0x280] sm:$0xff] %vm3109_vm7, %v2998_v50  ;;  %v4108_v7 = vpop.permute.xlu1 %4107 }
 0x4f8   :  { %3410 = vrot.lane.b32.xlu0 %v11806_v45, %s6080_s15  ;;  %4283 = vst.msk [vmem:[#allocation3 + $0x110] sm:$0xff] %vm4265_vm10, %v4108_v7  ;;  %v4002_v45 = vld [vmem:[#allocation2 + $0x309] sm:$0xff] }
 0x4f9   :  { %3027 = vrot.lane.b32.xlu1 %v3998_v23, %s6079_s30  ;;  %v9585_v43 = vpop.f32.mrb[68].mxu0 }
 0x4fa   :  { %v3383_v40 = vpop.permute.xlu0 %3382  ;;  %v5112_v42 = vsel %vm663_vm2, %v9585_v43, 0.0  ;;  %v5245_v53 = vmul.f32 %v9585_v43, %v9585_v43  ;;  %v4862_v10 = vpop.f32.mrb[69].mxu0  ;;  %v4490_v56 = vld [vmem:[#allocation3 + $0x100] sm:$0xff] }
 0x4fb   :  { %3535 = vst.msk [vmem:[#allocation3 + $0x280] sm:$0xff] %vm3494_vm8, %v3383_v40  ;;  %v5113_v9 = vadd.f32 %v5112_v42, %v9545_v13  ;;  %v3000_v18 = vpop.permute.xlu1 %2999  ;;  %v9593_v14 = vpop.f32.mrb[70].mxu0  ;;  %v11810_v40 = vld [vmem:[#allocation59_spill] sm:$0xff] }
 0x4fc   :  { %3796 = vrot.lane.b32.xlu0 %v3614_v30, %s6081_s18  ;;  %v5310_v54 = vsel %vm663_vm2, %v5245_v53, 0.0  ;;  %3151 = vst.msk [vmem:[#allocation3 + $0x290] sm:$0xff] %vm3109_vm7, %v3000_v18  ;;  %v5114_v52 = vsel %vm663_vm2, %v9593_v14, 0.0  ;;  %v5246_v29 = vmul.f32 %v9593_v14, %v9593_v14  ;;  %v4865_v27 = vpop.f32.mrb[71].mxu0 }
 0x4fd   :  { %v5311_v3 = vadd.f32 %v5310_v54, %v9551_v37  ;;  %v9603_v51 = vadd.f32 %v5114_v52, %v5113_v9  ;;  %3412 = vrot.lane.b32.xlu1 %v11807_v61, %s6080_s15 }
 0x4fe   :  { %v3769_v34 = vpop.permute.xlu0 %3768  ;;  %v5312_v8 = vsel %vm663_vm2, %v5246_v29, 0.0 }
 0x4ff   :  { %3921 = vst.msk [vmem:[#allocation3 + $0x280] sm:$0xff] %vm3880_vm9, %v3769_v34  ;;  %v9609_v4 = vadd.f32 %v5312_v8, %v5311_v3  ;;  %v3385_v2 = vpop.permute.xlu1 %3384  ;;  %v4492_v13 = vld [vmem:[#allocation3 + $0x110] sm:$0xff] }
 0x500   :  { %4181 = vrot.lane.b32.xlu0 %v3999_v31, %s6082_s21  ;;  %3536 = vst.msk [vmem:[#allocation3 + $0x290] sm:$0xff] %vm3494_vm8, %v3385_v2  ;;  %v4602_v16 = vpack.c.bf16 %v4492_v13, %v4490_v56  ;;  %v11811_v13 = vld [vmem:[#allocation60_spill] sm:$0xff] }
 0x501   :  { %3798 = vrot.lane.b32.xlu1 %v3615_v5, %s6081_s18  ;;  %v4549_v5 = vld [vmem:[#allocation3 + $0x2d8] sm:$0xff] }
 0x502   :  { %v4154_v46 = vpop.permute.xlu0 %4153  ;;  %4915 = vmatmul.mubr.bf16.gmra.mrb[96].mxu0 %v4602_v16 }
 0x503   :  { %4306 = vst.msk [vmem:[#allocation3 + $0x280] sm:$0xff] %vm4265_vm10, %v4154_v46  ;;  %v3771_v37 = vpop.permute.xlu1 %3770  ;;  %v4547_v46 = vld [vmem:[#allocation3 + $0x2c8] sm:$0xff] }
 0x504   :  { %3029 = vrot.lane.b32.xlu0 %v3999_v31, %s6079_s30  ;;  %3922 = vst.msk [vmem:[#allocation3 + $0x290] sm:$0xff] %vm3880_vm9, %v3771_v37  ;;  %v3618_v31 = vld [vmem:[#allocation2 + $0x318] sm:$0xff] }
 0x505   :  { %4183 = vrot.lane.b32.xlu1 %v4000_v33, %s6082_s21 }
 0x506   :  { %v3002_v20 = vpop.permute.xlu0 %3001 }
 0x507   :  { %3152 = vst.msk [vmem:[#allocation3 + $0x2a0] sm:$0xff] %vm3109_vm7, %v3002_v20  ;;  %v4156_v44 = vpop.permute.xlu1 %4155 }
 0x508   :  { %3414 = vrot.lane.b32.xlu0 %v11808_v15, %s6080_s15  ;;  %4307 = vst.msk [vmem:[#allocation3 + $0x290] sm:$0xff] %vm4265_vm10, %v4156_v44  ;;  %v3619_v15 = vld [vmem:[#allocation2 + $0x320] sm:$0xff] }
 0x509   :  { %v9622_v47 = vpop.f32.mrb[16].mxu1  ;;  %3031 = vrot.lane.b32.xlu1 %v4000_v33, %s6079_s30 }
 0x50a   :  { %v3387_v58 = vpop.permute.xlu0 %3386  ;;  %v4958_v60 = vpop.f32.mrb[17].mxu1  ;;  %v4538_v1 = vld [vmem:[#allocation3 + $0x280] sm:$0xff] }
 0x50b   :  { %3537 = vst.msk [vmem:[#allocation3 + $0x2a0] sm:$0xff] %vm3494_vm8, %v3387_v58  ;;  %v9626_v6 = vpop.f32.mrb[18].mxu1  ;;  %v3004_v24 = vpop.permute.xlu1 %3003  ;;  %v4631_v58 = vpack.c.bf16 %v4549_v5, %v4547_v46 }
 0x50c   :  { %3800 = vrot.lane.b32.xlu0 %v3616_v59, %s6081_s18  ;;  %3153 = vst.msk [vmem:[#allocation3 + $0x2b0] sm:$0xff] %vm3109_vm7, %v3004_v24  ;;  %v4961_v38 = vpop.f32.mrb[19].mxu1  ;;  %v4004_v24 = vld [vmem:[#allocation2 + $0x321] sm:$0xff] }
 0x50d   :  { %3416 = vrot.lane.b32.xlu1 %v11809_v55, %s6080_s15  ;;  %v11812_v38 = vld [vmem:[#allocation61_spill] sm:$0xff] }
 0x50e   :  { %v3773_v32 = vpop.permute.xlu0 %3772 }
 0x50f   :  { %3923 = vst.msk [vmem:[#allocation3 + $0x2a0] sm:$0xff] %vm3880_vm9, %v3773_v32  ;;  %v3389_v57 = vpop.permute.xlu1 %3388  ;;  %v4540_v48 = vld [vmem:[#allocation3 + $0x290] sm:$0xff] }
 0x510   :  { %4185 = vrot.lane.b32.xlu0 %v4001_v41, %s6082_s21  ;;  %3538 = vst.msk [vmem:[#allocation3 + $0x2b0] sm:$0xff] %vm3494_vm8, %v3389_v57  ;;  %v4626_v26 = vpack.c.bf16 %v4540_v48, %v4538_v1  ;;  %v3620_v1 = vld [vmem:[#allocation2 + $0x330] sm:$0xff] }
 0x511   :  { %3802 = vrot.lane.b32.xlu1 %v3617_v36, %s6081_s18  ;;  %v4005_v36 = vld [vmem:[#allocation2 + $0x331] sm:$0xff] }
 0x512   :  { %v4158_v11 = vpop.permute.xlu0 %4157  ;;  %5011 = vmatmul.mubr.bf16.gmra.mrb[44].mxu1 %v4626_v26  ;;  %v11813_v26 = vld [vmem:[#allocation62_spill] sm:$0xff] }
 0x513   :  { %4308 = vst.msk [vmem:[#allocation3 + $0x2a0] sm:$0xff] %vm4265_vm10, %v4158_v11  ;;  %5880 = vmatprep.mubr.msk.bf16.mxu1 %vm663_vm2, %v4629_v35  ;;  %v3775_v50 = vpop.permute.xlu1 %3774  ;;  %v4551_v35 = vld [vmem:[#allocation3 + $0x2e8] sm:$0xff] }
 0x514   :  { %3033 = vrot.lane.b32.xlu0 %v4001_v41, %s6079_s30  ;;  %3924 = vst.msk [vmem:[#allocation3 + $0x2b0] sm:$0xff] %vm3880_vm9, %v3775_v50  ;;  %v4553_v50 = vld [vmem:[#allocation3 + $0x2f8] sm:$0xff] }
 0x515   :  { %4187 = vrot.lane.b32.xlu1 %v4002_v45, %s6082_s21  ;;  %v9641_v7 = vpop.f32.mrb[72].mxu0 }
 0x516   :  { %v3006_v23 = vpop.permute.xlu0 %3005  ;;  %v5116_v30 = vsel %vm663_vm2, %v9641_v7, 0.0  ;;  %v5247_v42 = vmul.f32 %v9641_v7, %v9641_v7  ;;  %v4870_v53 = vpop.f32.mrb[73].mxu0 }
 0x517   :  { %3154 = vst.msk [vmem:[#allocation3 + $0x2c0] sm:$0xff] %vm3109_vm7, %v3006_v23  ;;  %v5117_v10 = vadd.f32 %v5116_v30, %v9603_v51  ;;  %v4160_v9 = vpop.permute.xlu1 %4159  ;;  %v9650_v18 = vpop.f32.mrb[74].mxu0 }
 0x518   :  { %3418 = vrot.lane.b32.xlu0 %v11810_v40, %s6080_s15  ;;  %v5314_v54 = vsel %vm663_vm2, %v5247_v42, 0.0  ;;  %4309 = vst.msk [vmem:[#allocation3 + $0x2b0] sm:$0xff] %vm4265_vm10, %v4160_v9  ;;  %v5118_v52 = vsel %vm663_vm2, %v9650_v18, 0.0  ;;  %v5248_v29 = vmul.f32 %v9650_v18, %v9650_v18  ;;  %v4873_v27 = vpop.f32.mrb[75].mxu0  ;;  %v3621_v42 = vld [vmem:[#allocation2 + $0x338] sm:$0xff] }
 0x519   :  { %v5315_v3 = vadd.f32 %v5314_v54, %v9609_v4  ;;  %v9660_v51 = vadd.f32 %v5118_v52, %v5117_v10  ;;  %3035 = vrot.lane.b32.xlu1 %v4002_v45, %s6079_s30  ;;  %v4003_v4 = vld [vmem:[#allocation2 + $0x319] sm:$0xff]  ;;  %v4633_v10 = vpack.c.bf16 %v4553_v50, %v4551_v35 }
 0x51a   :  { %v3391_v34 = vpop.permute.xlu0 %3390  ;;  %v5316_v61 = vsel %vm663_vm2, %v5248_v29, 0.0  ;;  %v4542_v37 = vld [vmem:[#allocation3 + $0x2a0] sm:$0xff]  ;;  %v11814_v29 = vld [vmem:[#allocation63_spill] sm:$0xff] }
 0x51b   :  { %3539 = vst.msk [vmem:[#allocation3 + $0x2c0] sm:$0xff] %vm3494_vm8, %v3391_v34  ;;  %v9665_v8 = vadd.f32 %v5316_v61, %v5315_v3  ;;  %v3008_v2 = vpop.permute.xlu1 %3007  ;;  %v4006_v34 = vld [vmem:[#allocation2 + $0x339] sm:$0xff] }
 0x51c   :  { %3804 = vrot.lane.b32.xlu0 %v3618_v31, %s6081_s18  ;;  %3155 = vst.msk [vmem:[#allocation3 + $0x2d0] sm:$0xff] %vm3109_vm7, %v3008_v2 }
 0x51d   :  { %3420 = vrot.lane.b32.xlu1 %v11811_v13, %s6080_s15 }
 0x51e   :  { %v3777_v56 = vpop.permute.xlu0 %3776 }
 0x51f   :  { %3925 = vst.msk [vmem:[#allocation3 + $0x2c0] sm:$0xff] %vm3880_vm9, %v3777_v56  ;;  %v3393_v16 = vpop.permute.xlu1 %3392  ;;  %v4544_v20 = vld [vmem:[#allocation3 + $0x2b0] sm:$0xff] }
 0x520   :  { %4189 = vrot.lane.b32.xlu0 %v4003_v4, %s6082_s21  ;;  %3540 = vst.msk [vmem:[#allocation3 + $0x2d0] sm:$0xff] %vm3494_vm8, %v3393_v16  ;;  %v4628_v44 = vpack.c.bf16 %v4544_v20, %v4542_v37 }
 0x521   :  { %3806 = vrot.lane.b32.xlu1 %v3619_v15, %s6081_s18 }
 0x522   :  { %v4162_v33 = vpop.permute.xlu0 %4161  ;;  %5019 = vmatmul.mubr.bf16.gmra.mrb[48].mxu1 %v4628_v44 }
 0x523   :  { %4310 = vst.msk [vmem:[#allocation3 + $0x2c0] sm:$0xff] %vm4265_vm10, %v4162_v33  ;;  %5881 = vmatprep.mubr.msk.bf16.mxu1 %vm663_vm2, %v4631_v58  ;;  %v3779_v59 = vpop.permute.xlu1 %3778  ;;  %v4007_v58 = vld [vmem:[#allocation2 + $0x349] sm:$0xff] }
 0x524   :  { %3037 = vrot.lane.b32.xlu0 %v4003_v4, %s6079_s30  ;;  %3926 = vst.msk [vmem:[#allocation3 + $0x2d0] sm:$0xff] %vm3880_vm9, %v3779_v59  ;;  %v3622_v4 = vld [vmem:[#allocation2 + $0x348] sm:$0xff] }
 0x525   :  { %v9679_v32 = vpop.f32.mrb[20].mxu1  ;;  %4191 = vrot.lane.b32.xlu1 %v4004_v24, %s6082_s21  ;;  %v4392_v59 = vld [vmem:[#allocation2 + $0x34a] sm:$0xff] }
 0x526   :  { %v3010_v60 = vpop.permute.xlu0 %3009  ;;  %v4966_v41 = vpop.f32.mrb[21].mxu1  ;;  %4456 = vst.msk [vmem:[#allocation3 + $0x3e8] sm:$0xff] %vm663_vm2, %v4392_v59 }
 0x527   :  { %3156 = vst.msk [vmem:[#allocation3 + $0x2e0] sm:$0xff] %vm3109_vm7, %v3010_v60  ;;  %v9684_v55 = vpop.f32.mrb[22].mxu1  ;;  %v4164_v17 = vpop.permute.xlu1 %4163  ;;  %v4393_v60 = vld [vmem:[#allocation2 + $0x352] sm:$0xff]  ;;  %v4555_v41 = vld [vmem:[#allocation3 + $0x308] sm:$0xff] }
 0x528   :  { %3422 = vrot.lane.b32.xlu0 %v11812_v38, %s6080_s15  ;;  %4311 = vst.msk [vmem:[#allocation3 + $0x2d0] sm:$0xff] %vm4265_vm10, %v4164_v17  ;;  %v4969_v57 = vpop.f32.mrb[23].mxu1  ;;  %v3623_v38 = vld [vmem:[#allocation2 + $0x350] sm:$0xff]  ;;  %v4557_v17 = vld [vmem:[#allocation3 + $0x318] sm:$0xff] }
 0x529   :  { %3039 = vrot.lane.b32.xlu1 %v4004_v24, %s6079_s30  ;;  %4457 = vst.msk [vmem:[#allocation3 + $0x3f8] sm:$0xff] %vm663_vm2, %v4393_v60 }
 0x52a   :  { %v3395_v25 = vpop.permute.xlu0 %3394  ;;  %v4546_v45 = vld [vmem:[#allocation3 + $0x2c0] sm:$0xff] }
 0x52b   :  { %3541 = vst.msk [vmem:[#allocation3 + $0x2e0] sm:$0xff] %vm3494_vm8, %v3395_v25  ;;  %v3012_v48 = vpop.permute.xlu1 %3011 }
 0x52c   :  { %3808 = vrot.lane.b32.xlu0 %v3620_v1, %s6081_s18  ;;  %3157 = vst.msk [vmem:[#allocation3 + $0x2f0] sm:$0xff] %vm3109_vm7, %v3012_v48 }
 0x52d   :  { %3424 = vrot.lane.b32.xlu1 %v11813_v26, %s6080_s15  ;;  %v4008_v26 = vld [vmem:[#allocation2 + $0x351] sm:$0xff] }
 0x52e   :  { %v3781_v11 = vpop.permute.xlu0 %3780 }
 0x52f   :  { %3927 = vst.msk [vmem:[#allocation3 + $0x2e0] sm:$0xff] %vm3880_vm9, %v3781_v11  ;;  %v3397_v23 = vpop.permute.xlu1 %3396  ;;  %v4548_v40 = vld [vmem:[#allocation3 + $0x2d0] sm:$0xff] }
 0x530   :  { %4193 = vrot.lane.b32.xlu0 %v4005_v36, %s6082_s21  ;;  %3542 = vst.msk [vmem:[#allocation3 + $0x2f0] sm:$0xff] %vm3494_vm8, %v3397_v23  ;;  %v4630_v53 = vpack.c.bf16 %v4548_v40, %v4546_v45 }
 0x531   :  { %3810 = vrot.lane.b32.xlu1 %v3621_v42, %s6081_s18 }
 0x532   :  { %v4166_v30 = vpop.permute.xlu0 %4165  ;;  %5027 = vmatmul.mubr.bf16.gmra.mrb[52].mxu1 %v4630_v53 }
 0x533   :  { %4312 = vst.msk [vmem:[#allocation3 + $0x2e0] sm:$0xff] %vm4265_vm10, %v4166_v30  ;;  %5882 = vmatprep.mubr.msk.bf16.mxu1 %vm663_vm2, %v4633_v10  ;;  %v3783_v9 = vpop.permute.xlu1 %3782 }
 0x534   :  { %3041 = vrot.lane.b32.xlu0 %v4005_v36, %s6079_s30  ;;  %3928 = vst.msk [vmem:[#allocation3 + $0x2f0] sm:$0xff] %vm3880_vm9, %v3783_v9  ;;  %v4635_v36 = vpack.c.bf16 %v4557_v17, %v4555_v41 }
 0x535   :  { %4195 = vrot.lane.b32.xlu1 %v4006_v34, %s6082_s21  ;;  %v9703_v52 = vpop.f32.mrb[76].mxu0 }
 0x536   :  { %v3014_v54 = vpop.permute.xlu0 %3013  ;;  %v5120_v27 = vsel %vm663_vm2, %v9703_v52, 0.0  ;;  %v5249_v3 = vmul.f32 %v9703_v52, %v9703_v52  ;;  %v4878_v31 = vpop.f32.mrb[77].mxu0 }
 0x537   :  { %3158 = vst.msk [vmem:[#allocation3 + $0x300] sm:$0xff] %vm3109_vm7, %v3014_v54  ;;  %v5121_v61 = vadd.f32 %v5120_v27, %v9660_v51  ;;  %v4168_v2 = vpop.permute.xlu1 %4167  ;;  %v9712_v56 = vpop.f32.mrb[78].mxu0  ;;  %v4559_v54 = vld [vmem:[#allocation3 + $0x328] sm:$0xff] }
 0x538   :  { %3426 = vrot.lane.b32.xlu0 %v11814_v29, %s6080_s15  ;;  %v5318_v13 = vsel %vm663_vm2, %v5249_v3, 0.0  ;;  %4313 = vst.msk [vmem:[#allocation3 + $0x2f0] sm:$0xff] %vm4265_vm10, %v4168_v2  ;;  %v5122_v5 = vsel %vm663_vm2, %v9712_v56, 0.0  ;;  %v5250_v16 = vmul.f32 %v9712_v56, %v9712_v56  ;;  %v4881_v37 = vpop.f32.mrb[79].mxu0 }
 0x539   :  { %v5319_v20 = vadd.f32 %v5318_v13, %v9665_v8  ;;  %v9722_v51 = vadd.f32 %v5122_v5, %v5121_v61  ;;  %3043 = vrot.lane.b32.xlu1 %v4006_v34, %s6079_s30  ;;  %v11815_v8 = vld [vmem:[#allocation64_spill] sm:$0xff]  ;;  %v4561_v34 = vld [vmem:[#allocation3 + $0x338] sm:$0xff] }
 0x53a   :  { %v3399_v46 = vpop.permute.xlu0 %3398  ;;  %v5320_v33 = vsel %vm663_vm2, %v5250_v16, 0.0  ;;  %v4550_v57 = vld [vmem:[#allocation3 + $0x2e0] sm:$0xff]  ;;  %v4637_v2 = vpack.c.bf16 %v4561_v34, %v4559_v54 }
 0x53b   :  { %3543 = vst.msk [vmem:[#allocation3 + $0x300] sm:$0xff] %vm3494_vm8, %v3399_v46  ;;  %v9727_v15 = vadd.f32 %v5320_v33, %v5319_v20  ;;  %v3016_v44 = vpop.permute.xlu1 %3015 }
 0x53c   :  { %3812 = vrot.lane.b32.xlu0 %v3622_v4, %s6081_s18  ;;  %3159 = vst.msk [vmem:[#allocation3 + $0x310] sm:$0xff] %vm3109_vm7, %v3016_v44 }
 0x53d   :  { %3428 = vrot.lane.b32.xlu1 %v11815_v8, %s6080_s15 }
 0x53e   :  { %v3785_v24 = vpop.permute.xlu0 %3784 }
 0x53f   :  { %3929 = vst.msk [vmem:[#allocation3 + $0x300] sm:$0xff] %vm3880_vm9, %v3785_v24  ;;  %v3401_v25 = vpop.permute.xlu1 %3400  ;;  %v4552_v1 = vld [vmem:[#allocation3 + $0x2f0] sm:$0xff] }
 0x540   :  { %4197 = vrot.lane.b32.xlu0 %v4007_v58, %s6082_s21  ;;  %3544 = vst.msk [vmem:[#allocation3 + $0x310] sm:$0xff] %vm3494_vm8, %v3401_v25  ;;  %v4632_v11 = vpack.c.bf16 %v4552_v1, %v4550_v57  ;;  %v4563_v1 = vld [vmem:[#allocation3 + $0x348] sm:$0xff] }
 0x541   :  { %3814 = vrot.lane.b32.xlu1 %v3623_v38, %s6081_s18 }
 0x542   :  { %v4170_v48 = vpop.permute.xlu0 %4169  ;;  %5035 = vmatmul.mubr.bf16.gmra.mrb[56].mxu1 %v4632_v11 }
 0x543   :  { %4314 = vst.msk [vmem:[#allocation3 + $0x300] sm:$0xff] %vm4265_vm10, %v4170_v48  ;;  %5883 = vmatprep.mubr.msk.bf16.mxu1 %vm663_vm2, %v4635_v36  ;;  %v3787_v35 = vpop.permute.xlu1 %3786  ;;  %v4565_v48 = vld [vmem:[#allocation3 + $0x358] sm:$0xff] }
 0x544   :  { %3930 = vst.msk [vmem:[#allocation3 + $0x310] sm:$0xff] %vm3880_vm9, %v3787_v35 }
 0x545   :  { %v9742_v23 = vpop.f32.mrb[24].mxu1  ;;  %4199 = vrot.lane.b32.xlu1 %v4008_v26, %s6082_s21 }
 0x546   :  { %v3018_v50 = vpop.permute.xlu0 %3017  ;;  %v4974_v45 = vpop.f32.mrb[25].mxu1 }
 0x547   :  { %3160 = vst.msk [vmem:[#allocation3 + $0x320] sm:$0xff] %vm3109_vm7, %v3018_v50  ;;  %v9745_v40 = vpop.f32.mrb[26].mxu1  ;;  %v4172_v30 = vpop.permute.xlu1 %4171  ;;  %v4639_v50 = vpack.c.bf16 %v4565_v48, %v4563_v1 }
 0x548   :  { %4315 = vst.msk [vmem:[#allocation3 + $0x310] sm:$0xff] %vm4265_vm10, %v4172_v30  ;;  %v4977_v53 = vpop.f32.mrb[27].mxu1 }
 0x54a   :  { %v3403_v42 = vpop.permute.xlu0 %3402  ;;  %v4554_v27 = vld [vmem:[#allocation3 + $0x300] sm:$0xff] }
 0x54b   :  { %3545 = vst.msk [vmem:[#allocation3 + $0x320] sm:$0xff] %vm3494_vm8, %v3403_v42  ;;  %v3020_v10 = vpop.permute.xlu1 %3019 }
 0x54c   :  { %3161 = vst.msk [vmem:[#allocation3 + $0x330] sm:$0xff] %vm3109_vm7, %v3020_v10 }
 0x54e   :  { %v3789_v9 = vpop.permute.xlu0 %3788 }
 0x54f   :  { %3931 = vst.msk [vmem:[#allocation3 + $0x320] sm:$0xff] %vm3880_vm9, %v3789_v9  ;;  %v3405_v29 = vpop.permute.xlu1 %3404  ;;  %v4556_v3 = vld [vmem:[#allocation3 + $0x310] sm:$0xff] }
 0x550   :  { %3546 = vst.msk [vmem:[#allocation3 + $0x330] sm:$0xff] %vm3494_vm8, %v3405_v29  ;;  %v4634_v61 = vpack.c.bf16 %v4556_v3, %v4554_v27  ;;  %v4567_v3 = vld [vmem:[#allocation3 + $0x368] sm:$0xff] }
 0x552   :  { %v4174_v31 = vpop.permute.xlu0 %4173  ;;  %5043 = vmatmul.mubr.bf16.gmra.mrb[60].mxu1 %v4634_v61 }
 0x553   :  { %4316 = vst.msk [vmem:[#allocation3 + $0x320] sm:$0xff] %vm4265_vm10, %v4174_v31  ;;  %5884 = vmatprep.mubr.msk.bf16.mxu1 %vm663_vm2, %v4637_v2  ;;  %v3791_v4 = vpop.permute.xlu1 %3790  ;;  %v4569_v31 = vld [vmem:[#allocation3 + $0x378] sm:$0xff] }
 0x554   :  { %3932 = vst.msk [vmem:[#allocation3 + $0x330] sm:$0xff] %vm3880_vm9, %v3791_v4 }
 0x555   :  { %v9756_v46 = vpop.f32.mrb[80].mxu0 }
 0x556   :  { %v3022_v13 = vpop.permute.xlu0 %3021  ;;  %v5124_v5 = vsel %vm663_vm2, %v9756_v46, 0.0  ;;  %v5251_v16 = vmul.f32 %v9756_v46, %v9756_v46  ;;  %v4886_v37 = vpop.f32.mrb[81].mxu0 }
 0x557   :  { %3162 = vst.msk [vmem:[#allocation3 + $0x340] sm:$0xff] %vm3109_vm7, %v3022_v13  ;;  %v5125_v20 = vadd.f32 %v5124_v5, %v9722_v51  ;;  %v4176_v33 = vpop.permute.xlu1 %4175  ;;  %v9763_v44 = vpop.f32.mrb[82].mxu0 }
 0x558   :  { %v5322_v58 = vsel %vm663_vm2, %v5251_v16, 0.0  ;;  %4317 = vst.msk [vmem:[#allocation3 + $0x330] sm:$0xff] %vm4265_vm10, %v4176_v33  ;;  %v5126_v60 = vsel %vm663_vm2, %v9763_v44, 0.0  ;;  %v5252_v24 = vmul.f32 %v9763_v44, %v9763_v44  ;;  %v4889_v8 = vpop.f32.mrb[83].mxu0  ;;  %v4641_v16 = vpack.c.bf16 %v4569_v31, %v4567_v3 }
 0x559   :  { %v5323_v38 = vadd.f32 %v5322_v58, %v9727_v15  ;;  %v5127_v51 = vadd.f32 %v5126_v60, %v5125_v20 }
 0x55a   :  { %v3407_v59 = vpop.permute.xlu0 %3406  ;;  %v5324_v41 = vsel %vm663_vm2, %v5252_v24, 0.0  ;;  %v4558_v36 = vld [vmem:[#allocation3 + $0x320] sm:$0xff] }
 0x55b   :  { %3547 = vst.msk [vmem:[#allocation3 + $0x340] sm:$0xff] %vm3494_vm8, %v3407_v59  ;;  %v5325_v17 = vadd.f32 %v5324_v41, %v5323_v38  ;;  %v3024_v25 = vpop.permute.xlu1 %3023 }
 0x55c   :  { %3163 = vst.msk [vmem:[#allocation3 + $0x350] sm:$0xff] %vm3109_vm7, %v3024_v25 }
 0x55e   :  { %v3793_v57 = vpop.permute.xlu0 %3792 }
 0x55f   :  { %3933 = vst.msk [vmem:[#allocation3 + $0x340] sm:$0xff] %vm3880_vm9, %v3793_v57  ;;  %v3409_v11 = vpop.permute.xlu1 %3408  ;;  %v4560_v26 = vld [vmem:[#allocation3 + $0x330] sm:$0xff] }
 0x560   :  { %3548 = vst.msk [vmem:[#allocation3 + $0x350] sm:$0xff] %vm3494_vm8, %v3409_v11  ;;  %v4636_v15 = vpack.c.bf16 %v4560_v26, %v4558_v36 }
 0x562   :  { %v4178_v35 = vpop.permute.xlu0 %4177  ;;  %5051 = vmatmul.mubr.bf16.gmra.mrb[64].mxu1 %v4636_v15 }
 0x563   :  { %4318 = vst.msk [vmem:[#allocation3 + $0x340] sm:$0xff] %vm4265_vm10, %v4178_v35  ;;  %5885 = vmatprep.mubr.msk.bf16.mxu1 %vm663_vm2, %v4639_v50  ;;  %v3795_v45 = vpop.permute.xlu1 %3794  ;;  %v4571_v50 = vld [vmem:[#allocation3 + $0x388] sm:$0xff] }
 0x564   :  { %3934 = vst.msk [vmem:[#allocation3 + $0x350] sm:$0xff] %vm3880_vm9, %v3795_v45  ;;  %v4573_v45 = vld [vmem:[#allocation3 + $0x398] sm:$0xff] }
 0x565   :  { %v9781_v42 = vpop.f32.mrb[28].mxu1 }
 0x566   :  { %v3026_v30 = vpop.permute.xlu0 %3025  ;;  %v4982_v53 = vpop.f32.mrb[29].mxu1 }
 0x567   :  { %3164 = vst.msk [vmem:[#allocation3 + $0x360] sm:$0xff] %vm3109_vm7, %v3026_v30  ;;  %v9783_v10 = vpop.f32.mrb[30].mxu1  ;;  %v4180_v9 = vpop.permute.xlu1 %4179 }
 0x568   :  { %4319 = vst.msk [vmem:[#allocation3 + $0x350] sm:$0xff] %vm4265_vm10, %v4180_v9  ;;  %v4985_v34 = vpop.f32.mrb[31].mxu1 }
 0x569   :  { %v4643_v34 = vpack.c.bf16 %v4573_v45, %v4571_v50 }
 0x56a   :  { %v3411_v54 = vpop.permute.xlu0 %3410  ;;  %v4562_v2 = vld [vmem:[#allocation3 + $0x340] sm:$0xff] }
 0x56b   :  { %3549 = vst.msk [vmem:[#allocation3 + $0x360] sm:$0xff] %vm3494_vm8, %v3411_v54  ;;  %v3028_v29 = vpop.permute.xlu1 %3027 }
 0x56c   :  { %3165 = vst.msk [vmem:[#allocation3 + $0x370] sm:$0xff] %vm3109_vm7, %v3028_v29 }
 0x56e   :  { %v3797_v27 = vpop.permute.xlu0 %3796 }
 0x56f   :  { %3935 = vst.msk [vmem:[#allocation3 + $0x360] sm:$0xff] %vm3880_vm9, %v3797_v27  ;;  %v3413_v61 = vpop.permute.xlu1 %3412  ;;  %v4564_v4 = vld [vmem:[#allocation3 + $0x350] sm:$0xff] }
 0x570   :  { %3550 = vst.msk [vmem:[#allocation3 + $0x370] sm:$0xff] %vm3494_vm8, %v3413_v61  ;;  %v4638_v5 = vpack.c.bf16 %v4564_v4, %v4562_v2 }
 0x572   :  { %v4182_v13 = vpop.permute.xlu0 %4181  ;;  %5059 = vmatmul.mubr.bf16.gmra.mrb[68].mxu1 %v4638_v5 }
 0x573   :  { %4320 = vst.msk [vmem:[#allocation3 + $0x360] sm:$0xff] %vm4265_vm10, %v4182_v13  ;;  %5886 = vmatprep.mubr.msk.bf16.mxu1 %vm663_vm2, %v4641_v16  ;;  %v3799_v37 = vpop.permute.xlu1 %3798 }
 0x574   :  { %3936 = vst.msk [vmem:[#allocation3 + $0x370] sm:$0xff] %vm3880_vm9, %v3799_v37  ;;  %v4575_v37 = vld [vmem:[#allocation3 + $0x3a8] sm:$0xff] }
 0x575   :  { %v9794_v33 = vpop.f32.mrb[84].mxu0 }
 0x576   :  { %v3030_v20 = vpop.permute.xlu0 %3029  ;;  %v5128_v58 = vsel %vm663_vm2, %v9794_v33, 0.0  ;;  %v5253_v59 = vmul.f32 %v9794_v33, %v9794_v33  ;;  %v4894_v60 = vpop.f32.mrb[85].mxu0 }
 0x577   :  { %3166 = vst.msk [vmem:[#allocation3 + $0x380] sm:$0xff] %vm3109_vm7, %v3030_v20  ;;  %v5129_v24 = vadd.f32 %v5128_v58, %v5127_v51  ;;  %v4184_v8 = vpop.permute.xlu1 %4183  ;;  %v9800_v38 = vpop.f32.mrb[86].mxu0  ;;  %v4577_v20 = vld [vmem:[#allocation3 + $0x3b8] sm:$0xff] }
 0x578   :  { %v5326_v41 = vsel %vm663_vm2, %v5253_v59, 0.0  ;;  %4321 = vst.msk [vmem:[#allocation3 + $0x370] sm:$0xff] %vm4265_vm10, %v4184_v8  ;;  %v5130_v57 = vsel %vm663_vm2, %v9800_v38, 0.0  ;;  %v5254_v1 = vmul.f32 %v9800_v38, %v9800_v38  ;;  %v4897_v48 = vpop.f32.mrb[87].mxu0 }
 0x579   :  { %v5327_v11 = vadd.f32 %v5326_v41, %v5325_v17  ;;  %v5131_v36 = vadd.f32 %v5130_v57, %v5129_v24  ;;  %v4645_v41 = vpack.c.bf16 %v4577_v20, %v4575_v37 }
 0x57a   :  { %v3415_v25 = vpop.permute.xlu0 %3414  ;;  %v5328_v51 = vsel %vm663_vm2, %v5254_v1, 0.0  ;;  %v4566_v53 = vld [vmem:[#allocation3 + $0x360] sm:$0xff] }
 0x57b   :  { %3551 = vst.msk [vmem:[#allocation3 + $0x380] sm:$0xff] %vm3494_vm8, %v3415_v25  ;;  %v5329_v26 = vadd.f32 %v5328_v51, %v5327_v11  ;;  %v3032_v35 = vpop.permute.xlu1 %3031 }
 0x57c   :  { %3167 = vst.msk [vmem:[#allocation3 + $0x390] sm:$0xff] %vm3109_vm7, %v3032_v35 }
 0x57e   :  { %v3801_v15 = vpop.permute.xlu0 %3800 }
 0x57f   :  { %3937 = vst.msk [vmem:[#allocation3 + $0x380] sm:$0xff] %vm3880_vm9, %v3801_v15  ;;  %v3417_v30 = vpop.permute.xlu1 %3416  ;;  %v4568_v9 = vld [vmem:[#allocation3 + $0x370] sm:$0xff] }
 0x580   :  { %3552 = vst.msk [vmem:[#allocation3 + $0x390] sm:$0xff] %vm3494_vm8, %v3417_v30  ;;  %v4640_v17 = vpack.c.bf16 %v4568_v9, %v4566_v53 }
 0x582   :  { %v4186_v54 = vpop.permute.xlu0 %4185  ;;  %5067 = vmatmul.mubr.bf16.gmra.mrb[72].mxu1 %v4640_v17 }
 0x583   :  { %4322 = vst.msk [vmem:[#allocation3 + $0x380] sm:$0xff] %vm4265_vm10, %v4186_v54  ;;  %5887 = vmatprep.mubr.msk.bf16.mxu1 %vm663_vm2, %v4643_v34  ;;  %v3803_v29 = vpop.permute.xlu1 %3802 }
 0x584   :  { %3938 = vst.msk [vmem:[#allocation3 + $0x390] sm:$0xff] %vm3880_vm9, %v3803_v29 }
 0x585   :  { %v9817_v3 = vpop.f32.mrb[32].mxu1 }
 0x586   :  { %v3034_v27 = vpop.permute.xlu0 %3033  ;;  %v4990_v31 = vpop.f32.mrb[33].mxu1 }
 0x587   :  { %3168 = vst.msk [vmem:[#allocation3 + $0x3a0] sm:$0xff] %vm3109_vm7, %v3034_v27  ;;  %v9819_v61 = vpop.f32.mrb[34].mxu1  ;;  %v4188_v2 = vpop.permute.xlu1 %4187 }
 0x588   :  { %4323 = vst.msk [vmem:[#allocation3 + $0x390] sm:$0xff] %vm4265_vm10, %v4188_v2  ;;  %v4993_v13 = vpop.f32.mrb[35].mxu1  ;;  %v4579_v2 = vld [vmem:[#allocation3 + $0x3c8] sm:$0xff] }
 0x58a   :  { %v3419_v4 = vpop.permute.xlu0 %3418  ;;  %v4570_v59 = vld [vmem:[#allocation3 + $0x380] sm:$0xff] }
 0x58b   :  { %3553 = vst.msk [vmem:[#allocation3 + $0x3a0] sm:$0xff] %vm3494_vm8, %v3419_v4  ;;  %v3036_v5 = vpop.permute.xlu1 %3035  ;;  %v4581_v4 = vld [vmem:[#allocation3 + $0x3d8] sm:$0xff] }
 0x58c   :  { %3169 = vst.msk [vmem:[#allocation3 + $0x3b0] sm:$0xff] %vm3109_vm7, %v3036_v5  ;;  %v4647_v20 = vpack.c.bf16 %v4581_v4, %v4579_v2 }
 0x58e   :  { %v3805_v16 = vpop.permute.xlu0 %3804 }
 0x58f   :  { %3939 = vst.msk [vmem:[#allocation3 + $0x3a0] sm:$0xff] %vm3880_vm9, %v3805_v16  ;;  %v3421_v58 = vpop.permute.xlu1 %3420  ;;  %v4572_v60 = vld [vmem:[#allocation3 + $0x390] sm:$0xff] }
 0x590   :  { %3554 = vst.msk [vmem:[#allocation3 + $0x3b0] sm:$0xff] %vm3494_vm8, %v3421_v58  ;;  %v4642_v8 = vpack.c.bf16 %v4572_v60, %v4570_v59 }
 0x592   :  { %v4190_v24 = vpop.permute.xlu0 %4189  ;;  %5075 = vmatmul.mubr.bf16.gmra.mrb[76].mxu1 %v4642_v8 }
 0x593   :  { %4324 = vst.msk [vmem:[#allocation3 + $0x3a0] sm:$0xff] %vm4265_vm10, %v4190_v24  ;;  %5888 = vmatprep.mubr.msk.bf16.mxu1 %vm663_vm2, %v4645_v41  ;;  %v3807_v25 = vpop.permute.xlu1 %3806 }
 0x594   :  { %3940 = vst.msk [vmem:[#allocation3 + $0x3b0] sm:$0xff] %vm3880_vm9, %v3807_v25 }
 0x595   :  { %v9830_v1 = vpop.f32.mrb[88].mxu0 }
 0x596   :  { %v3038_v57 = vpop.permute.xlu0 %3037  ;;  %v5132_v48 = vsel %vm663_vm2, %v9830_v1, 0.0  ;;  %v5255_v11 = vmul.f32 %v9830_v1, %v9830_v1  ;;  %v4902_v51 = vpop.f32.mrb[89].mxu0 }
 0x597   :  { %3170 = vst.msk [vmem:[#allocation3 + $0x3c0] sm:$0xff] %vm3109_vm7, %v3038_v57  ;;  %v5133_v35 = vadd.f32 %v5132_v48, %v5131_v36  ;;  %v4192_v15 = vpop.permute.xlu1 %4191  ;;  %v9836_v50 = vpop.f32.mrb[90].mxu0  ;;  %v4583_v51 = vld [vmem:[#allocation3 + $0x3e8] sm:$0xff] }
 0x598   :  { %v5330_v45 = vsel %vm663_vm2, %v5255_v11, 0.0  ;;  %4325 = vst.msk [vmem:[#allocation3 + $0x3b0] sm:$0xff] %vm4265_vm10, %v4192_v15  ;;  %v5134_v53 = vsel %vm663_vm2, %v9836_v50, 0.0  ;;  %v5256_v9 = vmul.f32 %v9836_v50, %v9836_v50  ;;  %v4905_v54 = vpop.f32.mrb[91].mxu0 }
 0x599   :  { %v5331_v17 = vadd.f32 %v5330_v45, %v5329_v26  ;;  %v5135_v34 = vadd.f32 %v5134_v53, %v5133_v35  ;;  %v4585_v35 = vld [vmem:[#allocation3 + $0x3f8] sm:$0xff] }
 0x59a   :  { %v3423_v30 = vpop.permute.xlu0 %3422  ;;  %v5332_v36 = vsel %vm663_vm2, %v5256_v9, 0.0  ;;  %v4574_v5 = vld [vmem:[#allocation3 + $0x3a0] sm:$0xff]  ;;  %v4649_v53 = vpack.c.bf16 %v4585_v35, %v4583_v51 }
 0x59b   :  { %3555 = vst.msk [vmem:[#allocation3 + $0x3c0] sm:$0xff] %vm3494_vm8, %v3423_v30  ;;  %v5333_v29 = vadd.f32 %v5332_v36, %v5331_v17  ;;  %v3040_v27 = vpop.permute.xlu1 %3039 }
 0x59c   :  { %3171 = vst.msk [vmem:[#allocation3 + $0x3d0] sm:$0xff] %vm3109_vm7, %v3040_v27 }
 0x59e   :  { %v3809_v31 = vpop.permute.xlu0 %3808 }
 0x59f   :  { %3941 = vst.msk [vmem:[#allocation3 + $0x3c0] sm:$0xff] %vm3880_vm9, %v3809_v31  ;;  %v3425_v13 = vpop.permute.xlu1 %3424  ;;  %v4576_v16 = vld [vmem:[#allocation3 + $0x3b0] sm:$0xff] }
 0x5a0   :  { %3556 = vst.msk [vmem:[#allocation3 + $0x3d0] sm:$0xff] %vm3494_vm8, %v3425_v13  ;;  %v4644_v26 = vpack.c.bf16 %v4576_v16, %v4574_v5 }
 0x5a2   :  { %v4194_v37 = vpop.permute.xlu0 %4193  ;;  %5083 = vmatmul.mubr.bf16.gmra.mrb[80].mxu1 %v4644_v26 }
 0x5a3   :  { %4326 = vst.msk [vmem:[#allocation3 + $0x3c0] sm:$0xff] %vm4265_vm10, %v4194_v37  ;;  %5889 = vmatprep.mubr.msk.bf16.mxu1 %vm663_vm2, %v4647_v20  ;;  %v3811_v58 = vpop.permute.xlu1 %3810 }
 0x5a4   :  { %3942 = vst.msk [vmem:[#allocation3 + $0x3d0] sm:$0xff] %vm3880_vm9, %v3811_v58 }
 0x5a5   :  { %v9853_v60 = vpop.f32.mrb[36].mxu1 }
 0x5a6   :  { %v3042_v59 = vpop.permute.xlu0 %3041  ;;  %v4998_v24 = vpop.f32.mrb[37].mxu1 }
 0x5a7   :  { %3172 = vst.msk [vmem:[#allocation3 + $0x3e0] sm:$0xff] %vm3109_vm7, %v3042_v59  ;;  %v9855_v8 = vpop.f32.mrb[38].mxu1  ;;  %v4196_v41 = vpop.permute.xlu1 %4195 }
 0x5a8   :  { %4327 = vst.msk [vmem:[#allocation3 + $0x3d0] sm:$0xff] %vm4265_vm10, %v4196_v41  ;;  %v5001_v57 = vpop.f32.mrb[39].mxu1 }
 0x5aa   :  { %v3427_v25 = vpop.permute.xlu0 %3426  ;;  %v4578_v45 = vld [vmem:[#allocation3 + $0x3c0] sm:$0xff] }
 0x5ab   :  { %3557 = vst.msk [vmem:[#allocation3 + $0x3e0] sm:$0xff] %vm3494_vm8, %v3427_v25  ;;  %v3044_v48 = vpop.permute.xlu1 %3043 }
 0x5ac   :  { %3173 = vst.msk [vmem:[#allocation3 + $0x3f0] sm:$0xff] %vm3109_vm7, %v3044_v48 }
 0x5ae   :  { %v3813_v11 = vpop.permute.xlu0 %3812 }
 0x5af   :  { %3943 = vst.msk [vmem:[#allocation3 + $0x3e0] sm:$0xff] %vm3880_vm9, %v3813_v11  ;;  %v3429_v15 = vpop.permute.xlu1 %3428  ;;  %v4580_v30 = vld [vmem:[#allocation3 + $0x3d0] sm:$0xff] }
 0x5b0   :  { %3558 = vst.msk [vmem:[#allocation3 + $0x3f0] sm:$0xff] %vm3494_vm8, %v3429_v15  ;;  %v4646_v9 = vpack.c.bf16 %v4580_v30, %v4578_v45 }
 0x5b2   :  { %v4198_v54 = vpop.permute.xlu0 %4197  ;;  %5091 = vmatmul.mubr.bf16.gmra.mrb[84].mxu1 %v4646_v9 }
 0x5b3   :  { %4328 = vst.msk [vmem:[#allocation3 + $0x3e0] sm:$0xff] %vm4265_vm10, %v4198_v54  ;;  %v3815_v17 = vpop.permute.xlu1 %3814  ;;  %5890 = vmatprep.mubr.msk.bf16.mxu1 %vm663_vm2, %v4649_v53  ;;  %v5261_v54 = vmul.f32 %v9464_v39, %v9464_v39 }
 0x5b4   :  { %3944 = vst.msk [vmem:[#allocation3 + $0x3f0] sm:$0xff] %vm3880_vm9, %v3815_v17 }
 0x5b5   :  { %v9865_v36 = vpop.f32.mrb[92].mxu0 }
 0x5b6   :  { %v5136_v27 = vsel %vm663_vm2, %v9865_v36, 0.0  ;;  %v5257_v31 = vmul.f32 %v9865_v36, %v9865_v36  ;;  %v4910_v2 = vpop.f32.mrb[93].mxu0 }
 0x5b7   :  { %v5137_v4 = vadd.f32 %v5136_v27, %v5135_v34  ;;  %v4200_v13 = vpop.permute.xlu1 %4199  ;;  %v9871_v5 = vpop.f32.mrb[94].mxu0 }
 0x5b8   :  { %v5334_v16 = vsel %vm663_vm2, %v5257_v31, 0.0  ;;  %4329 = vst.msk [vmem:[#allocation3 + $0x3f0] sm:$0xff] %vm4265_vm10, %v4200_v13  ;;  %v5138_v37 = vsel %vm663_vm2, %v9871_v5, 0.0  ;;  %v5258_v26 = vmul.f32 %v9871_v5, %v9871_v5  ;;  %v4913_v20 = vpop.f32.mrb[95].mxu0 }
 0x5b9   :  { %v5335_v58 = vadd.f32 %v5334_v16, %v5333_v29  ;;  %v5139_v59 = vadd.f32 %v5138_v37, %v5137_v4  ;;  %v5144_v16 = vsel %vm663_vm2, %v9464_v39, 0.0  ;;  %v5262_v37 = vmul.f32 %v9468_v22, %v9468_v22 }
 0x5ba   :  { %v5336_v24 = vsel %vm663_vm2, %v5258_v26, 0.0  ;;  %v4582_v34 = vld [vmem:[#allocation3 + $0x3e0] sm:$0xff] }
 0x5bb   :  { %v5337_v41 = vadd.f32 %v5336_v24, %v5335_v58  ;;  %v5146_v24 = vsel %vm663_vm2, %v9468_v22, 0.0 }
 0x5bf   :  { %v4584_v25 = vld [vmem:[#allocation3 + $0x3f0] sm:$0xff] }
 0x5c0   :  { %v4648_v57 = vpack.c.bf16 %v4584_v25, %v4582_v34  ;;  %v5263_v34 = vmul.f32 %v9487_v0, %v9487_v0 }
 0x5c2   :  { %5099 = vmatmul.mubr.bf16.gmra.mrb[88].mxu1 %v4648_v57  ;;  %v5344_v57 = vsel %vm663_vm2, %v5262_v37, 0.0 }
 0x5c5   :  { %v9880_v48 = vpop.f32.mrb[40].mxu1 }
 0x5c6   :  { %v5006_v11 = vpop.f32.mrb[41].mxu1 }
 0x5c7   :  { %v9882_v51 = vpop.f32.mrb[42].mxu1  ;;  %v5148_v11 = vsel %vm663_vm2, %v9487_v0, 0.0 }
 0x5c8   :  { %v5009_v35 = vpop.f32.mrb[43].mxu1 }
 0x5c9   :  { %v5264_v35 = vmul.f32 %v9491_v12, %v9491_v12 }
 0x5d5   :  { %v9884_v15 = vpop.f32.mrb[96].mxu0 }
 0x5d6   :  { %v5140_v45 = vsel %vm663_vm2, %v9884_v15, 0.0  ;;  %v5259_v29 = vmul.f32 %v9884_v15, %v9884_v15  ;;  %v4918_v30 = vpop.f32.mrb[97].mxu0 }
 0x5d7   :  { %v5141_v53 = vadd.f32 %v5140_v45, %v5139_v59  ;;  %v9890_v9 = vpop.f32.mrb[98].mxu0  ;;  %v5342_v59 = vsel %vm663_vm2, %v5261_v54, 0.0  ;;  %v5346_v30 = vsel %vm663_vm2, %v5263_v34, 0.0  ;;  %v5265_v54 = vmul.f32 %v9510_v63, %v9510_v63 }
 0x5d8   :  { %v5338_v17 = vsel %vm663_vm2, %v5259_v29, 0.0  ;;  %v5142_v27 = vsel %vm663_vm2, %v9890_v9, 0.0  ;;  %v5260_v31 = vmul.f32 %v9890_v9, %v9890_v9  ;;  %v4921_v2 = vpop.f32.mrb[99].mxu0 }
 0x5d9   :  { %v5339_v4 = vadd.f32 %v5338_v17, %v5337_v41  ;;  %v5143_v13 = vadd.f32 %v5142_v27, %v5141_v53  ;;  %v5150_v53 = vsel %vm663_vm2, %v9491_v12, 0.0  ;;  %v5152_v2 = vsel %vm663_vm2, %v9510_v63, 0.0 }
 0x5da   :  { %v5340_v26 = vsel %vm663_vm2, %v5260_v31, 0.0  ;;  %v5348_v31 = vsel %vm663_vm2, %v5264_v35, 0.0  ;;  %v5350_v37 = vsel %vm663_vm2, %v5265_v54, 0.0 }
 0x5db   :  { %v5145_v20 = vadd.f32 %v5144_v16, %v5143_v13  ;;  %v5341_v58 = vadd.f32 %v5340_v26, %v5339_v4  ;;  %v5266_v4 = vmul.f32 %v9514_v21, %v9514_v21  ;;  %v5154_v26 = vsel %vm663_vm2, %v9514_v21, 0.0 }
 0x5dd   :  { %v5147_v41 = vadd.f32 %v5146_v24, %v5145_v20  ;;  %v5343_v25 = vadd.f32 %v5342_v59, %v5341_v58  ;;  %v5267_v20 = vmul.f32 %v9565_v28, %v9565_v28  ;;  %v5352_v34 = vsel %vm663_vm2, %v5266_v4, 0.0 }
 0x5de   :  { %v5270_v4 = vmul.f32 %v9626_v6, %v9626_v6 }
 0x5df   :  { %v5149_v45 = vadd.f32 %v5148_v11, %v5147_v41  ;;  %v5345_v29 = vadd.f32 %v5344_v57, %v5343_v25  ;;  %v5156_v41 = vsel %vm663_vm2, %v9565_v28, 0.0  ;;  %v5268_v25 = vmul.f32 %v9570_v62, %v9570_v62 }
 0x5e1   :  { %v5151_v17 = vadd.f32 %v5150_v53, %v5149_v45  ;;  %v5347_v27 = vadd.f32 %v5346_v30, %v5345_v29  ;;  %v5354_v29 = vsel %vm663_vm2, %v5267_v20, 0.0  ;;  %v5158_v30 = vsel %vm663_vm2, %v9570_v62, 0.0 }
 0x5e2   :  { %v5269_v53 = vmul.f32 %v9622_v47, %v9622_v47  ;;  %v5271_v20 = vmul.f32 %v9679_v32, %v9679_v32 }
 0x5e3   :  { %v5153_v13 = vadd.f32 %v5152_v2, %v5151_v17  ;;  %v5349_v16 = vadd.f32 %v5348_v31, %v5347_v27  ;;  %v5356_v31 = vsel %vm663_vm2, %v5268_v25, 0.0  ;;  %v5160_v2 = vsel %vm663_vm2, %v9622_v47, 0.0 }
 0x5e4   :  { %v5272_v25 = vmul.f32 %v9684_v55, %v9684_v55 }
 0x5e5   :  { %v5155_v58 = vadd.f32 %v5154_v26, %v5153_v13  ;;  %v5351_v59 = vadd.f32 %v5350_v37, %v5349_v16  ;;  %v9929_v24 = vpop.f32.mrb[44].mxu1  ;;  %v5358_v37 = vsel %vm663_vm2, %v5269_v53, 0.0  ;;  %v5162_v26 = vsel %vm663_vm2, %v9626_v6, 0.0 }
 0x5e6   :  { %v5014_v57 = vpop.f32.mrb[45].mxu1 }
 0x5e7   :  { %v5157_v11 = vadd.f32 %v5156_v41, %v5155_v58  ;;  %v5353_v35 = vadd.f32 %v5352_v34, %v5351_v59  ;;  %v9936_v45 = vpop.f32.mrb[46].mxu1  ;;  %v5360_v34 = vsel %vm663_vm2, %v5270_v4, 0.0  ;;  %v5164_v41 = vsel %vm663_vm2, %v9679_v32, 0.0 }
 0x5e8   :  { %11816 = vst [vmem:[#allocation22_spill] sm:$0xff] %v9936_v45  ;;  %v5017_v54 = vpop.f32.mrb[47].mxu1 }
 0x5e9   :  { %v5159_v17 = vadd.f32 %v5158_v30, %v5157_v11  ;;  %v5355_v27 = vadd.f32 %v5354_v29, %v5353_v35  ;;  %v5362_v35 = vsel %vm663_vm2, %v5271_v20, 0.0  ;;  %v5166_v29 = vsel %vm663_vm2, %v9684_v55, 0.0 }
 0x5ea   :  { %v5273_v30 = vmul.f32 %v9742_v23, %v9742_v23 }
 0x5eb   :  { %v5161_v13 = vadd.f32 %v5160_v2, %v5159_v17  ;;  %v5357_v16 = vadd.f32 %v5356_v31, %v5355_v27  ;;  %v5364_v17 = vsel %vm663_vm2, %v5272_v25, 0.0  ;;  %v5168_v27 = vsel %vm663_vm2, %v9742_v23, 0.0 }
 0x5ec   :  { %v5274_v31 = vmul.f32 %v9745_v40, %v9745_v40 }
 0x5ed   :  { %v5163_v58 = vadd.f32 %v5162_v26, %v5161_v13  ;;  %v5359_v59 = vadd.f32 %v5358_v37, %v5357_v16  ;;  %v5366_v13 = vsel %vm663_vm2, %v5273_v30, 0.0  ;;  %v5170_v16 = vsel %vm663_vm2, %v9745_v40, 0.0 }
 0x5ee   :  { %v5275_v37 = vmul.f32 %v9781_v42, %v9781_v42  ;;  %v5174_v30 = vsel %vm663_vm2, %v9783_v10, 0.0 }
 0x5ef   :  { %v5165_v57 = vadd.f32 %v5164_v41, %v5163_v58  ;;  %v5361_v11 = vadd.f32 %v5360_v34, %v5359_v59  ;;  %v5368_v59 = vsel %vm663_vm2, %v5274_v31, 0.0  ;;  %v5172_v34 = vsel %vm663_vm2, %v9781_v42, 0.0 }
 0x5f0   :  { %v5276_v41 = vmul.f32 %v9783_v10, %v9783_v10 }
 0x5f1   :  { %v5363_v53 = vadd.f32 %v5362_v35, %v5361_v11  ;;  %v5167_v54 = vadd.f32 %v5166_v29, %v5165_v57  ;;  %v5370_v29 = vsel %vm663_vm2, %v5275_v37, 0.0 }
 0x5f2   :  { %v5372_v31 = vsel %vm663_vm2, %v5276_v41, 0.0 }
 0x5f3   :  { %v5169_v2 = vadd.f32 %v5168_v27, %v5167_v54  ;;  %v5365_v4 = vadd.f32 %v5364_v17, %v5363_v53  ;;  %v5277_v53 = vmul.f32 %v9817_v3, %v9817_v3 }
 0x5f5   :  { %v5171_v26 = vadd.f32 %v5170_v16, %v5169_v2  ;;  %v5367_v20 = vadd.f32 %v5366_v13, %v5365_v4  ;;  %v9973_v58 = vpop.f32.mrb[48].mxu1  ;;  %v5176_v2 = vsel %vm663_vm2, %v9817_v3, 0.0  ;;  %v5278_v4 = vmul.f32 %v9819_v61, %v9819_v61 }
 0x5f6   :  { %11817 = vst [vmem:[#allocation5_spill] sm:$0xff] %v9973_v58  ;;  %v5022_v25 = vpop.f32.mrb[49].mxu1  ;;  %v5374_v37 = vsel %vm663_vm2, %v5277_v53, 0.0  ;;  %v5182_v53 = vsel %vm663_vm2, %v9855_v8, 0.0 }
 0x5f7   :  { %v5173_v57 = vadd.f32 %v5172_v34, %v5171_v26  ;;  %v5369_v11 = vadd.f32 %v5368_v59, %v5367_v20  ;;  %v9980_v35 = vpop.f32.mrb[50].mxu1  ;;  %v5178_v26 = vsel %vm663_vm2, %v9819_v61, 0.0  ;;  %v5279_v20 = vmul.f32 %v9853_v60, %v9853_v60 }
 0x5f8   :  { %11818 = vst [vmem:[#allocation25_spill] sm:$0xff] %v9980_v35  ;;  %v5025_v54 = vpop.f32.mrb[51].mxu1  ;;  %v5376_v41 = vsel %vm663_vm2, %v5278_v4, 0.0  ;;  %v5180_v25 = vsel %vm663_vm2, %v9853_v60, 0.0  ;;  %v5282_v4 = vmul.f32 %v9882_v51, %v9882_v51 }
 0x5f9   :  { %v5175_v17 = vadd.f32 %v5174_v30, %v5173_v57  ;;  %v5371_v27 = vadd.f32 %v5370_v29, %v5369_v11  ;;  %v5280_v57 = vmul.f32 %v9855_v8, %v9855_v8  ;;  %v5378_v30 = vsel %vm663_vm2, %v5279_v20, 0.0 }
 0x5fa   :  { %v5281_v54 = vmul.f32 %v9880_v48, %v9880_v48  ;;  %v5283_v20 = vmul.f32 %v9929_v24, %v9929_v24 }
 0x5fb   :  { %v5177_v13 = vadd.f32 %v5176_v2, %v5175_v17  ;;  %v5373_v16 = vadd.f32 %v5372_v31, %v5371_v27  ;;  %v5380_v31 = vsel %vm663_vm2, %v5280_v57, 0.0  ;;  %v5184_v2 = vsel %vm663_vm2, %v9880_v48, 0.0 }
 0x5fc   :  { %v5188_v57 = vsel %vm663_vm2, %v9929_v24, 0.0 }
 0x5fd   :  { %v5179_v59 = vadd.f32 %v5178_v26, %v5177_v13  ;;  %v5375_v34 = vadd.f32 %v5374_v37, %v5373_v16  ;;  %v5382_v37 = vsel %vm663_vm2, %v5281_v54, 0.0  ;;  %v5186_v26 = vsel %vm663_vm2, %v9882_v51, 0.0 }
 0x5ff   :  { %v5181_v11 = vadd.f32 %v5180_v25, %v5179_v59  ;;  %v5377_v29 = vadd.f32 %v5376_v41, %v5375_v34  ;;  %v5384_v25 = vsel %vm663_vm2, %v5282_v4, 0.0 }
 0x601   :  { %v5183_v17 = vadd.f32 %v5182_v53, %v5181_v11  ;;  %v5379_v27 = vadd.f32 %v5378_v30, %v5377_v29  ;;  %v5284_v11 = vmul.f32 %v9936_v45, %v9936_v45 }
 0x603   :  { %v5185_v13 = vadd.f32 %v5184_v2, %v5183_v17  ;;  %v5381_v16 = vadd.f32 %v5380_v31, %v5379_v27  ;;  %v5386_v17 = vsel %vm663_vm2, %v5283_v20, 0.0  ;;  %v5190_v27 = vsel %vm663_vm2, %v9936_v45, 0.0 }
 0x604   :  { %v5285_v31 = vmul.f32 %v9973_v58, %v9973_v58 }
 0x605   :  { %v5187_v59 = vadd.f32 %v5186_v26, %v5185_v13  ;;  %v5383_v34 = vadd.f32 %v5382_v37, %v5381_v16  ;;  %v10017_v41 = vpop.f32.mrb[52].mxu1  ;;  %v5388_v16 = vsel %vm663_vm2, %v5284_v11, 0.0  ;;  %v5192_v37 = vsel %vm663_vm2, %v9973_v58, 0.0 }
 0x606   :  { %11819 = vst [vmem:[#allocation26_spill] sm:$0xff] %v10017_v41  ;;  %v5030_v29 = vpop.f32.mrb[53].mxu1  ;;  %v5286_v26 = vmul.f32 %v9980_v35, %v9980_v35  ;;  %v5390_v20 = vsel %vm663_vm2, %v5285_v31, 0.0 }
 0x607   :  { %v5189_v30 = vadd.f32 %v5188_v57, %v5187_v59  ;;  %v5385_v53 = vadd.f32 %v5384_v25, %v5383_v34  ;;  %v10024_v54 = vpop.f32.mrb[54].mxu1  ;;  %v5194_v25 = vsel %vm663_vm2, %v9980_v35, 0.0  ;;  %v5287_v57 = vmul.f32 %v10017_v41, %v10017_v41 }
 0x608   :  { %11820 = vst [vmem:[#allocation24_spill] sm:$0xff] %v10024_v54  ;;  %v5033_v2 = vpop.f32.mrb[55].mxu1  ;;  %v5392_v11 = vsel %vm663_vm2, %v5286_v26, 0.0 }
 0x609   :  { %v5387_v4 = vadd.f32 %v5386_v17, %v5385_v53  ;;  %v5191_v13 = vadd.f32 %v5190_v27, %v5189_v30  ;;  %v5196_v53 = vsel %vm663_vm2, %v10017_v41, 0.0  ;;  %v5288_v17 = vmul.f32 %v10024_v54, %v10024_v54 }
 0x60a   :  { %v5394_v31 = vsel %vm663_vm2, %v5287_v57, 0.0 }
 0x60b   :  { %v5389_v59 = vadd.f32 %v5388_v16, %v5387_v4  ;;  %v5193_v34 = vadd.f32 %v5192_v37, %v5191_v13  ;;  %v5198_v4 = vsel %vm663_vm2, %v10024_v54, 0.0  ;;  %v5396_v37 = vsel %vm663_vm2, %v5288_v17, 0.0 }
 0x60d   :  { %v5391_v29 = vadd.f32 %v5390_v20, %v5389_v59  ;;  %v5195_v30 = vadd.f32 %v5194_v25, %v5193_v34 }
 0x60f   :  { %v5393_v27 = vadd.f32 %v5392_v11, %v5391_v29  ;;  %v5197_v2 = vadd.f32 %v5196_v53, %v5195_v30 }
 0x611   :  { %v5395_v13 = vadd.f32 %v5394_v31, %v5393_v27  ;;  %v5199_v16 = vadd.f32 %v5198_v4, %v5197_v2 }
 0x613   :  { %v5397_v59 = vadd.f32 %v5396_v37, %v5395_v13 }
 0x615   :  { %v10050_v34 = vpop.f32.mrb[56].mxu1 }
 0x616   :  { %11821 = vst [vmem:[#allocation13_spill] sm:$0xff] %v10050_v34  ;;  %v5200_v26 = vsel %vm663_vm2, %v10050_v34, 0.0  ;;  %v5289_v20 = vmul.f32 %v10050_v34, %v10050_v34  ;;  %v5038_v25 = vpop.f32.mrb[57].mxu1 }
 0x617   :  { %v5201_v29 = vadd.f32 %v5200_v26, %v5199_v16  ;;  %v10056_v30 = vpop.f32.mrb[58].mxu1 }
 0x618   :  { %11822 = vst [vmem:[#allocation10_spill] sm:$0xff] %v10056_v30  ;;  %v5398_v57 = vsel %vm663_vm2, %v5289_v20, 0.0  ;;  %v5202_v11 = vsel %vm663_vm2, %v10056_v30, 0.0  ;;  %v5290_v53 = vmul.f32 %v10056_v30, %v10056_v30  ;;  %v5041_v17 = vpop.f32.mrb[59].mxu1 }
 0x619   :  { %v5399_v27 = vadd.f32 %v5398_v57, %v5397_v59  ;;  %v5203_v2 = vadd.f32 %v5202_v11, %v5201_v29 }
 0x61a   :  { %v5400_v31 = vsel %vm663_vm2, %v5290_v53, 0.0 }
 0x61b   :  { %v5401_v4 = vadd.f32 %v5400_v31, %v5399_v27 }
 0x625   :  { %v10064_v13 = vpop.f32.mrb[60].mxu1 }
 0x626   :  { %11823 = vst [vmem:[#allocation15_spill] sm:$0xff] %v10064_v13  ;;  %v5204_v16 = vsel %vm663_vm2, %v10064_v13, 0.0  ;;  %v5291_v37 = vmul.f32 %v10064_v13, %v10064_v13  ;;  %v5046_v26 = vpop.f32.mrb[61].mxu1 }
 0x627   :  { %v5205_v20 = vadd.f32 %v5204_v16, %v5203_v2  ;;  %v10070_v25 = vpop.f32.mrb[62].mxu1 }
 0x628   :  { %11824 = vst [vmem:[#allocation12_spill] sm:$0xff] %v10070_v25  ;;  %v5402_v30 = vsel %vm663_vm2, %v5291_v37, 0.0  ;;  %v5206_v59 = vsel %vm663_vm2, %v10070_v25, 0.0  ;;  %v5292_v29 = vmul.f32 %v10070_v25, %v10070_v25  ;;  %v5049_v57 = vpop.f32.mrb[63].mxu1 }
 0x629   :  { %v5403_v11 = vadd.f32 %v5402_v30, %v5401_v4  ;;  %v5207_v53 = vadd.f32 %v5206_v59, %v5205_v20 }
 0x62a   :  { %v5404_v17 = vsel %vm663_vm2, %v5292_v29, 0.0 }
 0x62b   :  { %v5405_v27 = vadd.f32 %v5404_v17, %v5403_v11 }
 0x635   :  { %v10078_v31 = vpop.f32.mrb[64].mxu1 }
 0x636   :  { %11825 = vst [vmem:[#allocation17_spill] sm:$0xff] %v10078_v31  ;;  %v5208_v2 = vsel %vm663_vm2, %v10078_v31, 0.0  ;;  %v5293_v16 = vmul.f32 %v10078_v31, %v10078_v31  ;;  %v5054_v37 = vpop.f32.mrb[65].mxu1 }
 0x637   :  { %v5209_v26 = vadd.f32 %v5208_v2, %v5207_v53  ;;  %v10084_v13 = vpop.f32.mrb[66].mxu1 }
 0x638   :  { %11826 = vst [vmem:[#allocation19_spill] sm:$0xff] %v10084_v13  ;;  %v5406_v25 = vsel %vm663_vm2, %v5293_v16, 0.0  ;;  %v5210_v30 = vsel %vm663_vm2, %v10084_v13, 0.0  ;;  %v5294_v4 = vmul.f32 %v10084_v13, %v10084_v13  ;;  %v5057_v20 = vpop.f32.mrb[67].mxu1 }
 0x639   :  { %v5407_v59 = vadd.f32 %v5406_v25, %v5405_v27  ;;  %v5211_v29 = vadd.f32 %v5210_v30, %v5209_v26 }
 0x63a   :  { %v5408_v57 = vsel %vm663_vm2, %v5294_v4, 0.0 }
 0x63b   :  { %v5409_v11 = vadd.f32 %v5408_v57, %v5407_v59 }
 0x645   :  { %v10092_v17 = vpop.f32.mrb[68].mxu1 }
 0x646   :  { %11827 = vst [vmem:[#allocation18_spill] sm:$0xff] %v10092_v17  ;;  %v5212_v53 = vsel %vm663_vm2, %v10092_v17, 0.0  ;;  %v5295_v2 = vmul.f32 %v10092_v17, %v10092_v17  ;;  %v5062_v16 = vpop.f32.mrb[69].mxu1 }
 0x647   :  { %v5213_v37 = vadd.f32 %v5212_v53, %v5211_v29  ;;  %v10098_v31 = vpop.f32.mrb[70].mxu1 }
 0x648   :  { %11828 = vst [vmem:[#allocation21_spill] sm:$0xff] %v10098_v31  ;;  %v5410_v13 = vsel %vm663_vm2, %v5295_v2, 0.0  ;;  %v5214_v25 = vsel %vm663_vm2, %v10098_v31, 0.0  ;;  %v5296_v27 = vmul.f32 %v10098_v31, %v10098_v31  ;;  %v5065_v26 = vpop.f32.mrb[71].mxu1 }
 0x649   :  { %v5411_v30 = vadd.f32 %v5410_v13, %v5409_v11  ;;  %v5215_v4 = vadd.f32 %v5214_v25, %v5213_v37 }
 0x64a   :  { %v5412_v20 = vsel %vm663_vm2, %v5296_v27, 0.0 }
 0x64b   :  { %v5413_v59 = vadd.f32 %v5412_v20, %v5411_v30 }
 0x655   :  { %v10106_v57 = vpop.f32.mrb[72].mxu1 }
 0x656   :  { %11829 = vst [vmem:[#allocation23_spill] sm:$0xff] %v10106_v57  ;;  %v5216_v29 = vsel %vm663_vm2, %v10106_v57, 0.0  ;;  %v5297_v53 = vmul.f32 %v10106_v57, %v10106_v57  ;;  %v5070_v2 = vpop.f32.mrb[73].mxu1 }
 0x657   :  { %v5217_v16 = vadd.f32 %v5216_v29, %v5215_v4  ;;  %v10112_v17 = vpop.f32.mrb[74].mxu1 }
 0x658   :  { %11830 = vst [vmem:[#allocation20_spill] sm:$0xff] %v10112_v17  ;;  %v5414_v31 = vsel %vm663_vm2, %v5297_v53, 0.0  ;;  %v5218_v13 = vsel %vm663_vm2, %v10112_v17, 0.0  ;;  %v5298_v11 = vmul.f32 %v10112_v17, %v10112_v17  ;;  %v5073_v37 = vpop.f32.mrb[75].mxu1 }
 0x659   :  { %v5415_v25 = vadd.f32 %v5414_v31, %v5413_v59  ;;  %v5219_v27 = vadd.f32 %v5218_v13, %v5217_v16 }
 0x65a   :  { %v5416_v26 = vsel %vm663_vm2, %v5298_v11, 0.0 }
 0x65b   :  { %v5417_v30 = vadd.f32 %v5416_v26, %v5415_v25 }
 0x665   :  { %v10120_v20 = vpop.f32.mrb[76].mxu1 }
 0x666   :  { %11831 = vst [vmem:[#allocation7_spill] sm:$0xff] %v10120_v20  ;;  %v5220_v4 = vsel %vm663_vm2, %v10120_v20, 0.0  ;;  %v5299_v29 = vmul.f32 %v10120_v20, %v10120_v20  ;;  %v5078_v53 = vpop.f32.mrb[77].mxu1 }
 0x667   :  { %v5221_v2 = vadd.f32 %v5220_v4, %v5219_v27  ;;  %v10126_v57 = vpop.f32.mrb[78].mxu1 }
 0x668   :  { %11832 = vst [vmem:[#allocation4_spill] sm:$0xff] %v10126_v57  ;;  %v5418_v17 = vsel %vm663_vm2, %v5299_v29, 0.0  ;;  %v5222_v31 = vsel %vm663_vm2, %v10126_v57, 0.0  ;;  %v5300_v59 = vmul.f32 %v10126_v57, %v10126_v57  ;;  %v5081_v16 = vpop.f32.mrb[79].mxu1 }
 0x669   :  { %v5419_v13 = vadd.f32 %v5418_v17, %v5417_v30  ;;  %v5223_v11 = vadd.f32 %v5222_v31, %v5221_v2 }
 0x66a   :  { %v5420_v37 = vsel %vm663_vm2, %v5300_v59, 0.0 }
 0x66b   :  { %v5421_v25 = vadd.f32 %v5420_v37, %v5419_v13 }
 0x675   :  { %v10134_v26 = vpop.f32.mrb[80].mxu1 }
 0x676   :  { %11833 = vst [vmem:[#allocation6_spill] sm:$0xff] %v10134_v26  ;;  %v5224_v27 = vsel %vm663_vm2, %v10134_v26, 0.0  ;;  %v5301_v4 = vmul.f32 %v10134_v26, %v10134_v26  ;;  %v5086_v29 = vpop.f32.mrb[81].mxu1 }
 0x677   :  { %v5225_v53 = vadd.f32 %v5224_v27, %v5223_v11  ;;  %v10140_v20 = vpop.f32.mrb[82].mxu1 }
 0x678   :  { %11834 = vst [vmem:[#allocation9_spill] sm:$0xff] %v10140_v20  ;;  %v5422_v57 = vsel %vm663_vm2, %v5301_v4, 0.0  ;;  %v5226_v17 = vsel %vm663_vm2, %v10140_v20, 0.0  ;;  %v5302_v30 = vmul.f32 %v10140_v20, %v10140_v20  ;;  %v5089_v2 = vpop.f32.mrb[83].mxu1 }
 0x679   :  { %v5423_v31 = vadd.f32 %v5422_v57, %v5421_v25  ;;  %v5227_v59 = vadd.f32 %v5226_v17, %v5225_v53 }
 0x67a   :  { %v5424_v16 = vsel %vm663_vm2, %v5302_v30, 0.0 }
 0x67b   :  { %v5425_v13 = vadd.f32 %v5424_v16, %v5423_v31 }
 0x685   :  { %v10148_v37 = vpop.f32.mrb[84].mxu1 }
 0x686   :  { %11835 = vst [vmem:[#allocation11_spill] sm:$0xff] %v10148_v37  ;;  %v5228_v11 = vsel %vm663_vm2, %v10148_v37, 0.0  ;;  %v5303_v27 = vmul.f32 %v10148_v37, %v10148_v37  ;;  %v5094_v4 = vpop.f32.mrb[85].mxu1 }
 0x687   :  { %v5229_v29 = vadd.f32 %v5228_v11, %v5227_v59  ;;  %v10154_v26 = vpop.f32.mrb[86].mxu1 }
 0x688   :  { %11836 = vst [vmem:[#allocation14_spill] sm:$0xff] %v10154_v26  ;;  %v5426_v20 = vsel %vm663_vm2, %v5303_v27, 0.0  ;;  %v5230_v57 = vsel %vm663_vm2, %v10154_v26, 0.0  ;;  %v5304_v25 = vmul.f32 %v10154_v26, %v10154_v26  ;;  %v5097_v53 = vpop.f32.mrb[87].mxu1 }
 0x689   :  { %v5427_v17 = vadd.f32 %v5426_v20, %v5425_v13  ;;  %v5231_v30 = vadd.f32 %v5230_v57, %v5229_v29 }
 0x68a   :  { %v5428_v2 = vsel %vm663_vm2, %v5304_v25, 0.0 }
 0x68b   :  { %v5429_v31 = vadd.f32 %v5428_v2, %v5427_v17 }
 0x695   :  { %v10162_v16 = vpop.f32.mrb[88].mxu1 }
 0x696   :  { %11837 = vst [vmem:[#allocation16_spill] sm:$0xff] %v10162_v16  ;;  %v5232_v59 = vsel %vm663_vm2, %v10162_v16, 0.0  ;;  %v5305_v11 = vmul.f32 %v10162_v16, %v10162_v16  ;;  %v5102_v27 = vpop.f32.mrb[89].mxu1 }
 0x697   :  { %v5233_v4 = vadd.f32 %v5232_v59, %v5231_v30  ;;  %v10168_v37 = vpop.f32.mrb[90].mxu1 }
 0x698   :  { %11838 = vst [vmem:[#allocation8_spill] sm:$0xff] %v10168_v37  ;;  %v5430_v26 = vsel %vm663_vm2, %v5305_v11, 0.0  ;;  %v5234_v20 = vsel %vm663_vm2, %v10168_v37, 0.0  ;;  %v5306_v13 = vmul.f32 %v10168_v37, %v10168_v37  ;;  %v5105_v29 = vpop.f32.mrb[91].mxu1 }
 0x699   :  { %v5431_v57 = vadd.f32 %v5430_v26, %v5429_v31  ;;  %v5235_v25 = vadd.f32 %v5234_v20, %v5233_v4  ;;  %v11859_v31 = vld [vmem:[#allocation14_spill] sm:$0xff] }
 0x69a   :  { %v5432_v53 = vsel %vm663_vm2, %v5306_v13, 0.0 }
 0x69b   :  { %v5236_v17 = vrot.slane %v5235_v25, 4  ;;  %v5433_v2 = vadd.f32 %v5432_v53, %v5431_v57 }
 0x69d   :  { %v5237_v16 = vadd.f32 %v5236_v17, %v5235_v25  ;;  %v5434_v27 = vrot.slane %v5433_v2, 4  ;;  %v11860_v17 = vld [vmem:[#allocation16_spill] sm:$0xff] }
 0x69f   :  { %v5238_v30 = vrot.slane %v5237_v16, 2  ;;  %v5435_v59 = vadd.f32 %v5434_v27, %v5433_v2  ;;  %v11840_v2 = vld [vmem:[#allocation5_spill] sm:$0xff]  ;;  %v11861_v53 = vld [vmem:[#allocation8_spill] sm:$0xff] }
 0x6a0   :  { %v11841_v27 = vld [vmem:[#allocation25_spill] sm:$0xff] }
 0x6a1   :  { %v5239_v34 = vadd.f32 %v5238_v30, %v5237_v16  ;;  %v5436_v54 = vrot.slane %v5435_v59, 2  ;;  %v11842_v30 = vld [vmem:[#allocation26_spill] sm:$0xff]  ;;  %v11858_v16 = vld [vmem:[#allocation11_spill] sm:$0xff] }
 0x6a3   :  { %v5240_v11 = vrot.slane %v5239_v34, 1  ;;  %v5437_v41 = vadd.f32 %v5436_v54, %v5435_v59  ;;  %v11843_v59 = vld [vmem:[#allocation24_spill] sm:$0xff]  ;;  %v11857_v54 = vld [vmem:[#allocation9_spill] sm:$0xff] }
 0x6a5   :  { %v5241_v35 = vadd.f32 %v5240_v11, %v5239_v34  ;;  %v5438_v58 = vrot.slane %v5437_v41, 1  ;;  %v11844_v11 = vld [vmem:[#allocation13_spill] sm:$0xff] }
 0x6a7   :  { %v10176_v45 = vmul.f32 0.001953125, %v5241_v35  ;;  %v5439_v37 = vadd.f32 %v5438_v58, %v5437_v41  ;;  %v11855_v58 = vld [vmem:[#allocation4_spill] sm:$0xff]  ;;  %v11856_v35 = vld [vmem:[#allocation6_spill] sm:$0xff] }
 0x6a9   :  { %v10178_v29 = vmul.f32 0.001953125, %v5439_v37  ;;  %v10182_v26 = vmul.f32 %v10176_v45, %v10176_v45  ;;  %v11862_v57 = vsub.f32 %v9528_v19, %v10176_v45  ;;  %v11863_v20 = vsub.f32 %v9535_v49, %v10176_v45 }
 0x6aa   :  { %v11864_v37 = vsub.f32 %v9585_v43, %v10176_v45 }
 0x6ab   :  { %v5442_v34 = vsub.f32 %v10178_v29, %v10182_v26  ;;  %v11839_v26 = vld [vmem:[#allocation22_spill] sm:$0xff] }
 0x6ad   :  { %v5507_v29 = vadd.f32 1e-05, %v5442_v34 }
 0x6af   :  { %6072 = vrsqrt.f32 %v5507_v29  ;;  %v11865_v29 = vsub.f32 %v9593_v14, %v10176_v45 }
 0x6b9   :  { %v10314_v25 = vpop.eup %6072 }
 0x6ba   :  { %v10320_v13 = vmul.f32 %v10314_v25, %v11862_v57  ;;  %v10326_v4 = vmul.f32 %v10314_v25, %v11863_v20  ;;  %v10332_v34 = vmul.f32 %v10314_v25, %v11864_v37  ;;  %v10338_v19 = vmul.f32 %v10314_v25, %v11865_v29 }
 0x6bb   :  { %v11866_v57 = vsub.f32 %v9641_v7, %v10176_v45  ;;  %v11867_v20 = vsub.f32 %v9650_v18, %v10176_v45  ;;  %v11868_v37 = vsub.f32 %v9703_v52, %v10176_v45  ;;  %v11869_v29 = vsub.f32 %v9712_v56, %v10176_v45 }
 0x6bd   :  { %v10344_v49 = vmul.f32 %v10314_v25, %v11866_v57  ;;  %v10350_v43 = vmul.f32 %v10314_v25, %v11867_v20  ;;  %v10356_v14 = vmul.f32 %v10314_v25, %v11868_v37  ;;  %v10362_v7 = vmul.f32 %v10314_v25, %v11869_v29 }
 0x6be   :  { %v11870_v57 = vsub.f32 %v9756_v46, %v10176_v45  ;;  %v11871_v20 = vsub.f32 %v9763_v44, %v10176_v45  ;;  %v11872_v37 = vsub.f32 %v9794_v33, %v10176_v45  ;;  %v11873_v29 = vsub.f32 %v9800_v38, %v10176_v45 }
 0x6c0   :  { %v10368_v18 = vmul.f32 %v10314_v25, %v11870_v57  ;;  %v10374_v52 = vmul.f32 %v10314_v25, %v11871_v20  ;;  %v10380_v56 = vmul.f32 %v10314_v25, %v11872_v37  ;;  %v10386_v46 = vmul.f32 %v10314_v25, %v11873_v29 }
 0x6c1   :  { %v11874_v57 = vsub.f32 %v9830_v1, %v10176_v45  ;;  %v11875_v20 = vsub.f32 %v9836_v50, %v10176_v45  ;;  %v11876_v37 = vsub.f32 %v9865_v36, %v10176_v45  ;;  %v11877_v29 = vsub.f32 %v9871_v5, %v10176_v45 }
 0x6c3   :  { %v10392_v44 = vmul.f32 %v10314_v25, %v11874_v57  ;;  %v10398_v33 = vmul.f32 %v10314_v25, %v11875_v20  ;;  %v10404_v38 = vmul.f32 %v10314_v25, %v11876_v37  ;;  %v10410_v1 = vmul.f32 %v10314_v25, %v11877_v29 }
 0x6c4   :  { %v11878_v57 = vsub.f32 %v9884_v15, %v10176_v45  ;;  %v11879_v20 = vsub.f32 %v9890_v9, %v10176_v45  ;;  %v11880_v37 = vsub.f32 %v9464_v39, %v10176_v45  ;;  %v11881_v29 = vsub.f32 %v9468_v22, %v10176_v45 }
 0x6c6   :  { %v10416_v50 = vmul.f32 %v10314_v25, %v11878_v57  ;;  %v10422_v36 = vmul.f32 %v10314_v25, %v11879_v20  ;;  %v10428_v5 = vmul.f32 %v10314_v25, %v11880_v37  ;;  %v10434_v15 = vmul.f32 %v10314_v25, %v11881_v29 }
 0x6c7   :  { %v11882_v57 = vsub.f32 %v9487_v0, %v10176_v45  ;;  %v11883_v20 = vsub.f32 %v9491_v12, %v10176_v45  ;;  %v11884_v37 = vsub.f32 %v9510_v63, %v10176_v45  ;;  %v11885_v29 = vsub.f32 %v9514_v21, %v10176_v45 }
 0x6c9   :  { %v10440_v9 = vmul.f32 %v10314_v25, %v11882_v57  ;;  %v10446_v39 = vmul.f32 %v10314_v25, %v11883_v20  ;;  %v10452_v22 = vmul.f32 %v10314_v25, %v11884_v37  ;;  %v10458_v0 = vmul.f32 %v10314_v25, %v11885_v29 }
 0x6ca   :  { %v11886_v57 = vsub.f32 %v9565_v28, %v10176_v45  ;;  %v11887_v20 = vsub.f32 %v9570_v62, %v10176_v45  ;;  %v11888_v37 = vsub.f32 %v9622_v47, %v10176_v45  ;;  %v11889_v29 = vsub.f32 %v9626_v6, %v10176_v45 }
 0x6cc   :  { %v10464_v12 = vmul.f32 %v10314_v25, %v11886_v57  ;;  %v10470_v63 = vmul.f32 %v10314_v25, %v11887_v20  ;;  %v10476_v21 = vmul.f32 %v10314_v25, %v11888_v37  ;;  %v10482_v28 = vmul.f32 %v10314_v25, %v11889_v29 }
 0x6cd   :  { %v11890_v57 = vsub.f32 %v9679_v32, %v10176_v45  ;;  %v11891_v20 = vsub.f32 %v9684_v55, %v10176_v45  ;;  %v11892_v37 = vsub.f32 %v9742_v23, %v10176_v45  ;;  %v11893_v29 = vsub.f32 %v9745_v40, %v10176_v45 }
 0x6cf   :  { %v10488_v62 = vmul.f32 %v10314_v25, %v11890_v57  ;;  %v10494_v47 = vmul.f32 %v10314_v25, %v11891_v20  ;;  %v10500_v6 = vmul.f32 %v10314_v25, %v11892_v37  ;;  %v10506_v32 = vmul.f32 %v10314_v25, %v11893_v29 }
 0x6d0   :  { %v11894_v57 = vsub.f32 %v9781_v42, %v10176_v45  ;;  %v11895_v20 = vsub.f32 %v9783_v10, %v10176_v45  ;;  %v11896_v37 = vsub.f32 %v9817_v3, %v10176_v45  ;;  %v11897_v29 = vsub.f32 %v9819_v61, %v10176_v45 }
 0x6d2   :  { %v10512_v55 = vmul.f32 %v10314_v25, %v11894_v57  ;;  %v10518_v23 = vmul.f32 %v10314_v25, %v11895_v20  ;;  %v10524_v40 = vmul.f32 %v10314_v25, %v11896_v37  ;;  %v10530_v42 = vmul.f32 %v10314_v25, %v11897_v29 }
 0x6d3   :  { %v11898_v57 = vsub.f32 %v9853_v60, %v10176_v45  ;;  %v11899_v20 = vsub.f32 %v9855_v8, %v10176_v45  ;;  %v11900_v37 = vsub.f32 %v9880_v48, %v10176_v45  ;;  %v11901_v29 = vsub.f32 %v9882_v51, %v10176_v45 }
 0x6d5   :  { %v10536_v10 = vmul.f32 %v10314_v25, %v11898_v57  ;;  %v10542_v3 = vmul.f32 %v10314_v25, %v11899_v20  ;;  %v10548_v61 = vmul.f32 %v10314_v25, %v11900_v37  ;;  %v10554_v60 = vmul.f32 %v10314_v25, %v11901_v29 }
 0x6d6   :  { %v11902_v57 = vsub.f32 %v9929_v24, %v10176_v45  ;;  %v11903_v20 = vsub.f32 %v11839_v26, %v10176_v45  ;;  %v11904_v37 = vsub.f32 %v11840_v2, %v10176_v45  ;;  %v11905_v29 = vsub.f32 %v11841_v27, %v10176_v45 }
 0x6d8   :  { %v10560_v8 = vmul.f32 %v10314_v25, %v11902_v57  ;;  %v10566_v48 = vmul.f32 %v10314_v25, %v11903_v20  ;;  %v10572_v51 = vmul.f32 %v10314_v25, %v11904_v37  ;;  %v10578_v24 = vmul.f32 %v10314_v25, %v11905_v29  ;;  %v11913_v29 = vld [vmem:[#allocation10_spill] sm:$0xff] }
 0x6d9   :  { %v11907_v57 = vsub.f32 %v11842_v30, %v10176_v45  ;;  %v11909_v20 = vsub.f32 %v11843_v59, %v10176_v45  ;;  %v11911_v37 = vsub.f32 %v11844_v11, %v10176_v45  ;;  %v11914_v41 = vsub.f32 %v11913_v29, %v10176_v45 }
 0x6da   :  { %11906 = vst [vmem:[#allocation27_spill] sm:$0xff] %v10578_v24 }
 0x6db   :  { %v10584_v26 = vmul.f32 %v10314_v25, %v11907_v57  ;;  %v10590_v2 = vmul.f32 %v10314_v25, %v11909_v20  ;;  %v10596_v27 = vmul.f32 %v10314_v25, %v11911_v37  ;;  %v10602_v30 = vmul.f32 %v10314_v25, %v11914_v41  ;;  %v11916_v57 = vld [vmem:[#allocation15_spill] sm:$0xff]  ;;  %v11919_v20 = vld [vmem:[#allocation12_spill] sm:$0xff]  ;;  %v11922_v37 = vld [vmem:[#allocation17_spill] sm:$0xff] }
 0x6dc   :  { %v11925_v41 = vld [vmem:[#allocation19_spill] sm:$0xff] }
 0x6dd   :  { %11908 = vst [vmem:[#allocation28_spill] sm:$0xff] %v10584_v26  ;;  %11910 = vst [vmem:[#allocation29_spill] sm:$0xff] %v10590_v2  ;;  %v11917_v26 = vsub.f32 %v11916_v57, %v10176_v45  ;;  %v11920_v2 = vsub.f32 %v11919_v20, %v10176_v45  ;;  %v11928_v20 = vld [vmem:[#allocation18_spill] sm:$0xff] }
 0x6de   :  { %11912 = vst [vmem:[#allocation30_spill] sm:$0xff] %v10596_v27  ;;  %11915 = vst [vmem:[#allocation31_spill] sm:$0xff] %v10602_v30  ;;  %v11923_v27 = vsub.f32 %v11922_v37, %v10176_v45  ;;  %v11926_v30 = vsub.f32 %v11925_v41, %v10176_v45  ;;  %v11931_v37 = vld [vmem:[#allocation21_spill] sm:$0xff]  ;;  %v11933_v41 = vld [vmem:[#allocation23_spill] sm:$0xff] }
 0x6df   :  { %v10608_v59 = vmul.f32 %v10314_v25, %v11917_v26  ;;  %v10614_v11 = vmul.f32 %v10314_v25, %v11920_v2  ;;  %v10631_v26 = vld [vmem:[%s11355_s5] ss:$0 sm:$0xff]  ;;  %v11929_v2 = vsub.f32 %v11928_v20, %v10176_v45 }
 0x6e0   :  { %v10620_v29 = vmul.f32 %v10314_v25, %v11923_v27  ;;  %v10626_v57 = vmul.f32 %v10314_v25, %v11926_v30  ;;  %v11932_v27 = vsub.f32 %v11931_v37, %v10176_v45  ;;  %v11934_v30 = vsub.f32 %v11933_v41, %v10176_v45 }
 0x6e1   :  { %11918 = vst [vmem:[#allocation32_spill] sm:$0xff] %v10608_v59  ;;  %11921 = vst [vmem:[#allocation33_spill] sm:$0xff] %v10614_v11  ;;  %v10637_v11 = vmul.f32 %v10314_v25, %v11929_v2  ;;  %v11935_v59 = vld [vmem:[#allocation20_spill] sm:$0xff]  ;;  %v11937_v2 = vld [vmem:[#allocation7_spill] sm:$0xff] }
 0x6e2   :  { %11924 = vst [vmem:[#allocation34_spill] sm:$0xff] %v10620_v29  ;;  %11927 = vst [vmem:[#allocation35_spill] sm:$0xff] %v10626_v57  ;;  %v10643_v29 = vmul.f32 %v10314_v25, %v11932_v27  ;;  %v10649_v57 = vmul.f32 %v10314_v25, %v11934_v30  ;;  %v11936_v24 = vsub.f32 %v11935_v59, %v10176_v45 }
 0x6e3   :  { %11930 = vst [vmem:[#allocation36_spill] sm:$0xff] %v10637_v11  ;;  %v11938_v11 = vsub.f32 %v11937_v2, %v10176_v45  ;;  %v11939_v27 = vsub.f32 %v11855_v58, %v10176_v45  ;;  %v11940_v30 = vsub.f32 %v11856_v35, %v10176_v45 }
 0x6e4   :  { %v10655_v20 = vmul.f32 %v10314_v25, %v11936_v24  ;;  %v11941_v24 = vsub.f32 %v11857_v54, %v10176_v45 }
 0x6e5   :  { %v10661_v37 = vmul.f32 %v10314_v25, %v11938_v11  ;;  %v10667_v41 = vmul.f32 %v10314_v25, %v11939_v27  ;;  %v10673_v59 = vmul.f32 %v10314_v25, %v11940_v30  ;;  %v11942_v11 = vsub.f32 %v11858_v16, %v10176_v45 }
 0x6e6   :  { %v10679_v2 = vmul.f32 %v10314_v25, %v11941_v24  ;;  %v11943_v27 = vsub.f32 %v11859_v31, %v10176_v45  ;;  %v11944_v30 = vsub.f32 %v11860_v17, %v10176_v45  ;;  %v11945_v24 = vsub.f32 %v11861_v53, %v10176_v45 }
 0x6e7   :  { %v10685_v58 = vmul.f32 %v10314_v25, %v11942_v11  ;;  %v10707_v11 = vmul.f32 %v10631_v26, %v10320_v13  ;;  %v10711_v31 = vmul.f32 %v10631_v26, %v10326_v4  ;;  %v10715_v17 = vmul.f32 %v10631_v26, %v10332_v34 }
 0x6e8   :  { %v10691_v35 = vmul.f32 %v10314_v25, %v11943_v27  ;;  %v10697_v54 = vmul.f32 %v10314_v25, %v11944_v30  ;;  %v10703_v16 = vmul.f32 %v10314_v25, %v11945_v24  ;;  %v10719_v27 = vmul.f32 %v10631_v26, %v10338_v19  ;;  %v11952_v30 = vld [vmem:[#allocation29_spill] sm:$0xff]  ;;  %v11954_v24 = vld [vmem:[#allocation30_spill] sm:$0xff] }
 0x6e9   :  { %v10723_v45 = vmul.f32 %v10631_v26, %v10344_v49  ;;  %v10727_v13 = vmul.f32 %v10631_v26, %v10350_v43  ;;  %v10731_v4 = vmul.f32 %v10631_v26, %v10356_v14  ;;  %v10735_v25 = vmul.f32 %v10631_v26, %v10362_v7 }
 0x6ea   :  { %v10739_v53 = vmul.f32 %v10631_v26, %v10368_v18  ;;  %v10743_v34 = vmul.f32 %v10631_v26, %v10374_v52  ;;  %v10747_v19 = vmul.f32 %v10631_v26, %v10380_v56  ;;  %v10751_v49 = vmul.f32 %v10631_v26, %v10386_v46 }
 0x6eb   :  { %v10755_v43 = vmul.f32 %v10631_v26, %v10392_v44  ;;  %v10759_v14 = vmul.f32 %v10631_v26, %v10398_v33  ;;  %v10763_v7 = vmul.f32 %v10631_v26, %v10404_v38  ;;  %v10767_v18 = vmul.f32 %v10631_v26, %v10410_v1 }
 0x6ec   :  { %v10771_v52 = vmul.f32 %v10631_v26, %v10416_v50  ;;  %v10775_v56 = vmul.f32 %v10631_v26, %v10422_v36  ;;  %v10779_v46 = vmul.f32 %v10631_v26, %v10428_v5  ;;  %v10783_v44 = vmul.f32 %v10631_v26, %v10434_v15 }
 0x6ed   :  { %v10787_v33 = vmul.f32 %v10631_v26, %v10440_v9  ;;  %v10791_v38 = vmul.f32 %v10631_v26, %v10446_v39  ;;  %v10795_v1 = vmul.f32 %v10631_v26, %v10452_v22  ;;  %v10799_v50 = vmul.f32 %v10631_v26, %v10458_v0 }
 0x6ee   :  { %v10803_v36 = vmul.f32 %v10631_v26, %v10464_v12  ;;  %v10807_v5 = vmul.f32 %v10631_v26, %v10470_v63  ;;  %v10811_v15 = vmul.f32 %v10631_v26, %v10476_v21  ;;  %v10815_v9 = vmul.f32 %v10631_v26, %v10482_v28 }
 0x6ef   :  { %v10819_v39 = vmul.f32 %v10631_v26, %v10488_v62  ;;  %v10823_v22 = vmul.f32 %v10631_v26, %v10494_v47  ;;  %v10827_v0 = vmul.f32 %v10631_v26, %v10500_v6  ;;  %v10831_v12 = vmul.f32 %v10631_v26, %v10506_v32 }
 0x6f0   :  { %v10835_v63 = vmul.f32 %v10631_v26, %v10512_v55  ;;  %v10839_v21 = vmul.f32 %v10631_v26, %v10518_v23  ;;  %v10843_v28 = vmul.f32 %v10631_v26, %v10524_v40  ;;  %v10847_v62 = vmul.f32 %v10631_v26, %v10530_v42 }
 0x6f1   :  { %v10851_v47 = vmul.f32 %v10631_v26, %v10536_v10  ;;  %v10855_v6 = vmul.f32 %v10631_v26, %v10542_v3  ;;  %v10859_v32 = vmul.f32 %v10631_v26, %v10548_v61  ;;  %v10863_v55 = vmul.f32 %v10631_v26, %v10554_v60  ;;  %v11948_v10 = vld [vmem:[#allocation27_spill] sm:$0xff]  ;;  %v11950_v61 = vld [vmem:[#allocation28_spill] sm:$0xff] }
 0x6f2   :  { %v10867_v23 = vmul.f32 %v10631_v26, %v10560_v8  ;;  %v10871_v40 = vmul.f32 %v10631_v26, %v10566_v48  ;;  %v10875_v42 = vmul.f32 %v10631_v26, %v10572_v51  ;;  %v10879_v3 = vmul.f32 %v10631_v26, %v11948_v10 }
 0x6f3   :  { %v10883_v60 = vmul.f32 %v10631_v26, %v11950_v61  ;;  %v10887_v8 = vmul.f32 %v10631_v26, %v11952_v30  ;;  %v10891_v48 = vmul.f32 %v10631_v26, %v11954_v24 }
 0x6f4   :  { %11946 = vst [vmem:[#allocation37_spill] sm:$0xff] %v10871_v40  ;;  %11947 = vst [vmem:[#allocation38_spill] sm:$0xff] %v10875_v42  ;;  %v11955_v40 = vld [vmem:[#allocation31_spill] sm:$0xff]  ;;  %v11957_v42 = vld [vmem:[#allocation32_spill] sm:$0xff] }
 0x6f5   :  { %11949 = vst [vmem:[#allocation39_spill] sm:$0xff] %v10879_v3  ;;  %11951 = vst [vmem:[#allocation40_spill] sm:$0xff] %v10883_v60  ;;  %v10895_v51 = vmul.f32 %v10631_v26, %v11955_v40  ;;  %v10899_v10 = vmul.f32 %v10631_v26, %v11957_v42  ;;  %v11958_v3 = vld [vmem:[#allocation33_spill] sm:$0xff]  ;;  %v11959_v60 = vld [vmem:[#allocation34_spill] sm:$0xff] }
 0x6f6   :  { %11953 = vst [vmem:[#allocation41_spill] sm:$0xff] %v10887_v8  ;;  %v10903_v61 = vmul.f32 %v10631_v26, %v11958_v3  ;;  %v10907_v30 = vmul.f32 %v10631_v26, %v11959_v60  ;;  %v11960_v8 = vld [vmem:[#allocation35_spill] sm:$0xff]  ;;  %v10916_v40 = vld [vmem:[%s11356_s6] ss:$0 sm:$0xff]  ;;  %v10924_v3 = vmul.f32 %v10631_v26, %v10643_v29  ;;  %v10928_v60 = vmul.f32 %v10631_v26, %v10649_v57 }
 0x6f7   :  { %11956 = vst [vmem:[#allocation42_spill] sm:$0xff] %v10895_v51  ;;  %v10911_v24 = vmul.f32 %v10631_v26, %v11960_v8  ;;  %v11962_v51 = vld [vmem:[#allocation36_spill] sm:$0xff]  ;;  %v10932_v8 = vmul.f32 %v10631_v26, %v10655_v20  ;;  %v10944_v29 = vmul.f32 %v10631_v26, %v10673_v59  ;;  %v10948_v57 = vmul.f32 %v10631_v26, %v10679_v2 }
 0x6f8   :  { %v10920_v42 = vmul.f32 %v10631_v26, %v11962_v51  ;;  %v10940_v51 = vmul.f32 %v10631_v26, %v10667_v41  ;;  %v10952_v20 = vmul.f32 %v10631_v26, %v10685_v58  ;;  %v10960_v41 = vmul.f32 %v10631_v26, %v10697_v54 }
 0x6f9   :  { %11961 = vst [vmem:[#allocation43_spill] sm:$0xff] %v10911_v24  ;;  %v10936_v24 = vmul.f32 %v10631_v26, %v10661_v37  ;;  %11963 = vst [vmem:[#allocation44_spill] sm:$0xff] %v10948_v57  ;;  %v10956_v37 = vmul.f32 %v10631_v26, %v10691_v35  ;;  %v10964_v59 = vmul.f32 %v10631_v26, %v10703_v16 }
 0x6fa   :  { %11964 = vst [vmem:[#allocation45_spill] sm:$0xff] %v10960_v41  ;;  %v5649_v2 = vadd.f32 %v10916_v40, %v10707_v11  ;;  %v5650_v57 = vadd.f32 %v10916_v40, %v10711_v31  ;;  %v5651_v58 = vadd.f32 %v10916_v40, %v10715_v17  ;;  %v5652_v35 = vadd.f32 %v10916_v40, %v10719_v27 }
 0x6fb   :  { %v5653_v54 = vadd.f32 %v10916_v40, %v10723_v45  ;;  %v5654_v41 = vadd.f32 %v10916_v40, %v10727_v13  ;;  %v5655_v26 = vadd.f32 %v10916_v40, %v10731_v4  ;;  %v5656_v16 = vadd.f32 %v10916_v40, %v10735_v25 }
 0x6fc   :  { %v5657_v11 = vadd.f32 %v10916_v40, %v10739_v53  ;;  %v5658_v31 = vadd.f32 %v10916_v40, %v10743_v34  ;;  %v5659_v17 = vadd.f32 %v10916_v40, %v10747_v19  ;;  %v5660_v27 = vadd.f32 %v10916_v40, %v10751_v49  ;;  %5713 = vst.msk [vmem:[%s11357_s7] sm:$0xff] %vm663_vm2, %v5649_v2 }
 0x6fd   :  { %5714 = vst.msk [vmem:[%s11357_s7 + $0x8] sm:$0xff] %vm663_vm2, %v5650_v57  ;;  %5715 = vst.msk [vmem:[%s11357_s7 + $0x10] sm:$0xff] %vm663_vm2, %v5651_v58  ;;  %v5661_v45 = vadd.f32 %v10916_v40, %v10755_v43  ;;  %v5662_v13 = vadd.f32 %v10916_v40, %v10759_v14  ;;  %v5663_v4 = vadd.f32 %v10916_v40, %v10763_v7  ;;  %v11969_v57 = vld [vmem:[#allocation41_spill] sm:$0xff] }
 0x6fe   :  { %5716 = vst.msk [vmem:[%s11357_s7 + $0x18] sm:$0xff] %vm663_vm2, %v5652_v35  ;;  %v5664_v25 = vadd.f32 %v10916_v40, %v10767_v18  ;;  %5717 = vst.msk [vmem:[%s11357_s7 + $0x20] sm:$0xff] %vm663_vm2, %v5653_v54  ;;  %v5665_v53 = vadd.f32 %v10916_v40, %v10771_v52  ;;  %v5666_v34 = vadd.f32 %v10916_v40, %v10775_v56  ;;  %v11970_v58 = vld [vmem:[#allocation42_spill] sm:$0xff] }
 0x6ff   :  { %5718 = vst.msk [vmem:[%s11357_s7 + $0x28] sm:$0xff] %vm663_vm2, %v5654_v41  ;;  %5719 = vst.msk [vmem:[%s11357_s7 + $0x30] sm:$0xff] %vm663_vm2, %v5655_v26  ;;  %v5667_v19 = vadd.f32 %v10916_v40, %v10779_v46  ;;  %v5668_v49 = vadd.f32 %v10916_v40, %v10783_v44  ;;  %v5669_v43 = vadd.f32 %v10916_v40, %v10787_v33 }
 0x700   :  { %5720 = vst.msk [vmem:[%s11357_s7 + $0x38] sm:$0xff] %vm663_vm2, %v5656_v16  ;;  %5721 = vst.msk [vmem:[%s11357_s7 + $0x40] sm:$0xff] %vm663_vm2, %v5657_v11  ;;  %v5670_v14 = vadd.f32 %v10916_v40, %v10791_v38  ;;  %v5671_v7 = vadd.f32 %v10916_v40, %v10795_v1  ;;  %v5672_v18 = vadd.f32 %v10916_v40, %v10799_v50  ;;  %v11971_v16 = vld [vmem:[#allocation43_spill] sm:$0xff] }
 0x701   :  { %5722 = vst.msk [vmem:[%s11357_s7 + $0x48] sm:$0xff] %vm663_vm2, %v5658_v31  ;;  %5723 = vst.msk [vmem:[%s11357_s7 + $0x50] sm:$0xff] %vm663_vm2, %v5659_v17  ;;  %v5673_v52 = vadd.f32 %v10916_v40, %v10803_v36  ;;  %v5674_v56 = vadd.f32 %v10916_v40, %v10807_v5  ;;  %v5675_v46 = vadd.f32 %v10916_v40, %v10811_v15 }
 0x702   :  { %5724 = vst.msk [vmem:[%s11357_s7 + $0x58] sm:$0xff] %vm663_vm2, %v5660_v27  ;;  %5725 = vst.msk [vmem:[%s11357_s7 + $0x60] sm:$0xff] %vm663_vm2, %v5661_v45  ;;  %v5676_v44 = vadd.f32 %v10916_v40, %v10815_v9  ;;  %v5677_v33 = vadd.f32 %v10916_v40, %v10819_v39  ;;  %v5678_v38 = vadd.f32 %v10916_v40, %v10823_v22 }
 0x703   :  { %5726 = vst.msk [vmem:[%s11357_s7 + $0x68] sm:$0xff] %vm663_vm2, %v5662_v13  ;;  %5727 = vst.msk [vmem:[%s11357_s7 + $0x70] sm:$0xff] %vm663_vm2, %v5663_v4  ;;  %v5679_v1 = vadd.f32 %v10916_v40, %v10827_v0  ;;  %v5680_v50 = vadd.f32 %v10916_v40, %v10831_v12  ;;  %v5681_v36 = vadd.f32 %v10916_v40, %v10835_v63 }
 0x704   :  { %5728 = vst.msk [vmem:[%s11357_s7 + $0x78] sm:$0xff] %vm663_vm2, %v5664_v25  ;;  %5729 = vst.msk [vmem:[%s11357_s7 + $0x80] sm:$0xff] %vm663_vm2, %v5665_v53  ;;  %v5682_v5 = vadd.f32 %v10916_v40, %v10839_v21  ;;  %v5683_v15 = vadd.f32 %v10916_v40, %v10843_v28  ;;  %v5684_v9 = vadd.f32 %v10916_v40, %v10847_v62  ;;  %v11965_v21 = vld [vmem:[#allocation37_spill] sm:$0xff]  ;;  %v11966_v62 = vld [vmem:[#allocation38_spill] sm:$0xff] }
 0x705   :  { %5730 = vst.msk [vmem:[%s11357_s7 + $0x88] sm:$0xff] %vm663_vm2, %v5666_v34  ;;  %5731 = vst.msk [vmem:[%s11357_s7 + $0x90] sm:$0xff] %vm663_vm2, %v5667_v19  ;;  %v5685_v39 = vadd.f32 %v10916_v40, %v10851_v47  ;;  %v5686_v22 = vadd.f32 %v10916_v40, %v10855_v6  ;;  %v5687_v0 = vadd.f32 %v10916_v40, %v10859_v32  ;;  %v11967_v6 = vld [vmem:[#allocation39_spill] sm:$0xff] }
 0x706   :  { %5732 = vst.msk [vmem:[%s11357_s7 + $0x98] sm:$0xff] %vm663_vm2, %v5668_v49  ;;  %5733 = vst.msk [vmem:[%s11357_s7 + $0xa0] sm:$0xff] %vm663_vm2, %v5669_v43  ;;  %v5688_v12 = vadd.f32 %v10916_v40, %v10863_v55  ;;  %v5689_v63 = vadd.f32 %v10916_v40, %v10867_v23  ;;  %v5690_v28 = vadd.f32 %v10916_v40, %v11965_v21  ;;  %v11968_v55 = vld [vmem:[#allocation40_spill] sm:$0xff] }
 0x707   :  { %5734 = vst.msk [vmem:[%s11357_s7 + $0xa8] sm:$0xff] %vm663_vm2, %v5670_v14  ;;  %5735 = vst.msk [vmem:[%s11357_s7 + $0xb0] sm:$0xff] %vm663_vm2, %v5671_v7  ;;  %v5691_v47 = vadd.f32 %v10916_v40, %v11966_v62  ;;  %v5692_v32 = vadd.f32 %v10916_v40, %v11967_v6  ;;  %v5693_v23 = vadd.f32 %v10916_v40, %v11968_v55 }
 0x708   :  { %5736 = vst.msk [vmem:[%s11357_s7 + $0xb8] sm:$0xff] %vm663_vm2, %v5672_v18  ;;  %5737 = vst.msk [vmem:[%s11357_s7 + $0xc0] sm:$0xff] %vm663_vm2, %v5673_v52  ;;  %v5694_v41 = vadd.f32 %v10916_v40, %v11969_v57  ;;  %v5695_v2 = vadd.f32 %v10916_v40, %v10891_v48  ;;  %v5696_v35 = vadd.f32 %v10916_v40, %v11970_v58 }
 0x709   :  { %5738 = vst.msk [vmem:[%s11357_s7 + $0xc8] sm:$0xff] %vm663_vm2, %v5674_v56  ;;  %5739 = vst.msk [vmem:[%s11357_s7 + $0xd0] sm:$0xff] %vm663_vm2, %v5675_v46  ;;  %v5697_v48 = vadd.f32 %v10916_v40, %v10899_v10  ;;  %v5698_v54 = vadd.f32 %v10916_v40, %v10903_v61  ;;  %v5699_v26 = vadd.f32 %v10916_v40, %v10907_v30 }
 0x70a   :  { %5740 = vst.msk [vmem:[%s11357_s7 + $0xd8] sm:$0xff] %vm663_vm2, %v5676_v44  ;;  %5741 = vst.msk [vmem:[%s11357_s7 + $0xe0] sm:$0xff] %vm663_vm2, %v5677_v33  ;;  %v5700_v11 = vadd.f32 %v10916_v40, %v11971_v16  ;;  %v5701_v10 = vadd.f32 %v10916_v40, %v10920_v42  ;;  %v5702_v61 = vadd.f32 %v10916_v40, %v10924_v3 }
 0x70b   :  { %5742 = vst.msk [vmem:[%s11357_s7 + $0xe8] sm:$0xff] %vm663_vm2, %v5678_v38  ;;  %5743 = vst.msk [vmem:[%s11357_s7 + $0xf0] sm:$0xff] %vm663_vm2, %v5679_v1  ;;  %v5703_v30 = vadd.f32 %v10916_v40, %v10928_v60  ;;  %v5704_v31 = vadd.f32 %v10916_v40, %v10932_v8  ;;  %v5705_v42 = vadd.f32 %v10916_v40, %v10936_v24  ;;  %v11972_v8 = vld [vmem:[#allocation44_spill] sm:$0xff] }
 0x70c   :  { %5744 = vst.msk [vmem:[%s11357_s7 + $0xf8] sm:$0xff] %vm663_vm2, %v5680_v50  ;;  %5745 = vst.msk [vmem:[%s11357_s7 + $0x100] sm:$0xff] %vm663_vm2, %v5681_v36  ;;  %v5706_v3 = vadd.f32 %v10916_v40, %v10940_v51  ;;  %v5707_v60 = vadd.f32 %v10916_v40, %v10944_v29  ;;  %v5708_v17 = vadd.f32 %v10916_v40, %v11972_v8  ;;  %v11973_v29 = vld [vmem:[#allocation45_spill] sm:$0xff] }
 0x70d   :  { %5746 = vst.msk [vmem:[%s11357_s7 + $0x108] sm:$0xff] %vm663_vm2, %v5682_v5  ;;  %5747 = vst.msk [vmem:[%s11357_s7 + $0x110] sm:$0xff] %vm663_vm2, %v5683_v15  ;;  %v5709_v24 = vadd.f32 %v10916_v40, %v10952_v20  ;;  %v5710_v51 = vadd.f32 %v10916_v40, %v10956_v37  ;;  %v5711_v27 = vadd.f32 %v10916_v40, %v11973_v29 }
 0x70e   :  { %5748 = vst.msk [vmem:[%s11357_s7 + $0x118] sm:$0xff] %vm663_vm2, %v5684_v9  ;;  %5749 = vst.msk [vmem:[%s11357_s7 + $0x120] sm:$0xff] %vm663_vm2, %v5685_v39  ;;  %v5712_v45 = vadd.f32 %v10916_v40, %v10964_v59 }
 0x70f   :  { %5750 = vst.msk [vmem:[%s11357_s7 + $0x128] sm:$0xff] %vm663_vm2, %v5686_v22  ;;  %5751 = vst.msk [vmem:[%s11357_s7 + $0x130] sm:$0xff] %vm663_vm2, %v5687_v0 }
 0x710   :  { %5752 = vst.msk [vmem:[%s11357_s7 + $0x138] sm:$0xff] %vm663_vm2, %v5688_v12  ;;  %5753 = vst.msk [vmem:[%s11357_s7 + $0x140] sm:$0xff] %vm663_vm2, %v5689_v63 }
 0x711   :  { %5754 = vst.msk [vmem:[%s11357_s7 + $0x148] sm:$0xff] %vm663_vm2, %v5690_v28  ;;  %5755 = vst.msk [vmem:[%s11357_s7 + $0x150] sm:$0xff] %vm663_vm2, %v5691_v47 }
 0x712   :  { %5756 = vst.msk [vmem:[%s11357_s7 + $0x158] sm:$0xff] %vm663_vm2, %v5692_v32  ;;  %5757 = vst.msk [vmem:[%s11357_s7 + $0x160] sm:$0xff] %vm663_vm2, %v5693_v23 }
 0x713   :  { %5758 = vst.msk [vmem:[%s11357_s7 + $0x168] sm:$0xff] %vm663_vm2, %v5694_v41  ;;  %5759 = vst.msk [vmem:[%s11357_s7 + $0x170] sm:$0xff] %vm663_vm2, %v5695_v2 }
 0x714   :  { %5760 = vst.msk [vmem:[%s11357_s7 + $0x178] sm:$0xff] %vm663_vm2, %v5696_v35  ;;  %5761 = vst.msk [vmem:[%s11357_s7 + $0x180] sm:$0xff] %vm663_vm2, %v5697_v48 }
 0x715   :  { %5762 = vst.msk [vmem:[%s11357_s7 + $0x188] sm:$0xff] %vm663_vm2, %v5698_v54  ;;  %5763 = vst.msk [vmem:[%s11357_s7 + $0x190] sm:$0xff] %vm663_vm2, %v5699_v26 }
 0x716   :  { %5764 = vst.msk [vmem:[%s11357_s7 + $0x198] sm:$0xff] %vm663_vm2, %v5700_v11  ;;  %5765 = vst.msk [vmem:[%s11357_s7 + $0x1a0] sm:$0xff] %vm663_vm2, %v5701_v10 }
 0x717   :  { %5766 = vst.msk [vmem:[%s11357_s7 + $0x1a8] sm:$0xff] %vm663_vm2, %v5702_v61  ;;  %5767 = vst.msk [vmem:[%s11357_s7 + $0x1b0] sm:$0xff] %vm663_vm2, %v5703_v30 }
 0x718   :  { %5768 = vst.msk [vmem:[%s11357_s7 + $0x1b8] sm:$0xff] %vm663_vm2, %v5704_v31  ;;  %5769 = vst.msk [vmem:[%s11357_s7 + $0x1c0] sm:$0xff] %vm663_vm2, %v5705_v42 }
 0x719   :  { %5770 = vst.msk [vmem:[%s11357_s7 + $0x1c8] sm:$0xff] %vm663_vm2, %v5706_v3  ;;  %5771 = vst.msk [vmem:[%s11357_s7 + $0x1d0] sm:$0xff] %vm663_vm2, %v5707_v60 }
 0x71a   :  { %5772 = vst.msk [vmem:[%s11357_s7 + $0x1d8] sm:$0xff] %vm663_vm2, %v5708_v17  ;;  %5773 = vst.msk [vmem:[%s11357_s7 + $0x1e0] sm:$0xff] %vm663_vm2, %v5709_v24 }
 0x71b   :  { %5774 = vst.msk [vmem:[%s11357_s7 + $0x1e8] sm:$0xff] %vm663_vm2, %v5710_v51  ;;  %5775 = vst.msk [vmem:[%s11357_s7 + $0x1f0] sm:$0xff] %vm663_vm2, %v5711_v27 }
 0x71c   :  { %5776 = vst.msk [vmem:[%s11357_s7 + $0x1f8] sm:$0xff] %vm663_vm2, %v5712_v45 }

</bundles_post_ra>
